<compile_context>
chip_gen: v5e
topology: v5e:2x2
jax: 0.10.0
libtpu: 0.0.40
codegen_flags: <defaults>
</compile_context>

<pallas_src>
import numpy as np
import jax
import jax.numpy as jnp
from jax.experimental import pallas as pl
from jax.experimental.pallas import tpu as pltpu

N_FREQ = 10  # tcnn config: {'otype': 'Frequency', 'n_frequencies': 10}
PI = np.pi


def _fit_sin_turns_poly(n_terms=6):
    """Odd polynomial  r * sum_j c_j r^(2j)  ~  sin(2*pi*r)  on r in [-0.5, 0.5].

    Least-squares fit of sin(2*pi*r)/r in the scaled variable v = (r/0.5)^2
    (for conditioning); max error ~1e-6, far below the f32 angle-rounding floor.
    """
    r = np.linspace(0.0, 0.5, 4001)[1:]
    v = (r / 0.5) ** 2
    target = np.sin(2.0 * np.pi * r) / r
    A = np.stack([v ** j for j in range(n_terms)], axis=1)
    b, *_ = np.linalg.lstsq(A, target, rcond=None)
    c = b / (0.25 ** np.arange(n_terms))           # back to powers of u = r^2
    return tuple(float(x) for x in c)


_SIN_POLY = _fit_sin_turns_poly()                  # scalar constants, closed over


def _build_freq_constants(input_dim, bound):
    """Masked per-dim coef rows + phase row, in 'turns', normalization folded in.

      t[n, k]   = phase[k] + sum_d x[n, d] * coef[d, k]
      coef[d,k] = 2^f(k) / (4*bound)   if d == d(k) else 0
      phase[k]  = frac(2^(f(k)-2) + p(k)/4)
      out[n, k] = sin(2*pi * t[n, k])
    """
    bound = float(bound)                           # must stay a static Python scalar
    two_f = 2 * N_FREQ
    out_dim = input_dim * two_f
    f_idx = np.repeat(np.arange(N_FREQ, dtype=np.float64), 2)   # lane -> frequency
    p_idx = np.tile(np.array([0.0, 1.0]), N_FREQ)               # 0 = sin, 1 = cos
    coef_1d = (2.0 ** f_idx) / (4.0 * bound)                    # (2F,)
    phase_1d = ((2.0 ** f_idx) / 4.0 + p_idx / 4.0) % 1.0       # small & exact in f32
    coef = np.zeros((input_dim, out_dim), dtype=np.float64)
    for d in range(input_dim):
        coef[d, d * two_f:(d + 1) * two_f] = coef_1d
    phase = np.tile(phase_1d, input_dim).reshape(1, out_dim)
    return (jnp.asarray(coef, dtype=jnp.float32),
            jnp.asarray(phase, dtype=jnp.float32))


def freq_encoder_kernel(x_ref, coef_ref, phase_ref, o_ref):
    d_in = x_ref.shape[1]
    # Frequency fan-out: full-width masked FMAs, no lane-axis concatenate.
    t = x_ref[:, 0:1] * coef_ref[0:1, :] + phase_ref[...]
    for d in range(1, d_in):                       # unrolled at trace time (D small)
        t = t + x_ref[:, d:d + 1] * coef_ref[d:d + 1, :]
    # Power-of-two-turns range reduction; r - nearest-integer is exact in f32.
    r = t - jnp.floor(t + 0.5)
    u = r * r
    c0, c1, c2, c3, c4, c5 = _SIN_POLY
    s = c5
    for c in (c4, c3, c2, c1, c0):
        s = s * u + c                              # Horner on the VPU
    o_ref[...] = (r * s).astype(o_ref.dtype)       # == sin(2*pi*t)


def _pick_tile_n(n_rows, tile_n):
    """Sublane-aligned tile giving >= 4 grid steps (pipelining + v7x megacore)."""
    if n_rows <= 8:
        return n_rows
    target_steps = 4
    cap = max(8, (((n_rows + target_steps - 1) // target_steps) // 8) * 8)
    tile_n = max(8, min(int(tile_n), cap))
    tile_n = (tile_n // 8) * 8
    return min(tile_n, n_rows)


def freq_encoder(x, bound, *, tile_n=4096, out_dtype=jnp.float32):
    N, D = x.shape
    out_dim = D * 2 * N_FREQ
    coef, phase = _build_freq_constants(D, bound)
    tile_n = _pick_tile_n(N, tile_n)
    grid = (pl.cdiv(N, tile_n),)

    out_bytes = np.dtype(out_dtype).itemsize
    cost = pl.CostEstimate(
        flops=N * out_dim * (2 * D + 16),          # fan-out FMAs + reduction + poly
        transcendentals=0,                         # polynomial sin, no EUP calls
        bytes_accessed=N * (D * 4 + out_dim * out_bytes),
    )

    return pl.pallas_call(
        freq_encoder_kernel,
        out_shape=jax.ShapeDtypeStruct((N, out_dim), out_dtype),
        grid=grid,
        in_specs=[
            pl.BlockSpec((tile_n, D), lambda i: (i, 0)),      # x tile
            pl.BlockSpec((D, out_dim), lambda i: (0, 0)),     # masked coef (resident)
            pl.BlockSpec((1, out_dim), lambda i: (0, 0)),     # phase (resident)
        ],
        out_specs=pl.BlockSpec((tile_n, out_dim), lambda i: (i, 0)),
        compiler_params=pltpu.CompilerParams(
            dimension_semantics=("parallel",)),
        cost_estimate=cost,
    )(x, coef, phase)


def freq_encoder_ref(x, bound):
    """float64 numpy reference matching tcnn FrequencyEncoding."""
    x = np.asarray(x, dtype=np.float64)
    normalized = (x + bound) / (2.0 * bound)
    freqs = (2.0 ** np.arange(N_FREQ, dtype=np.float64)) * PI       # (F,)
    ang = normalized[:, :, None] * freqs[None, None, :]             # (N, D, F)
    inter = np.stack([np.sin(ang), np.cos(ang)], axis=-1)           # (N, D, F, 2)
    return inter.reshape(x.shape[0], -1)


if __name__ == "__main__":
    key = jax.random.PRNGKey(0)
    N, D = 4096, 3
    bound = 2.0
    # coordinates in [-bound, bound], as fed to the encoder
    x = jax.random.uniform(key, (N, D), dtype=jnp.float32,
                           minval=-bound, maxval=bound)
    ref = freq_encoder_ref(x, bound)

    # Default path: 4 grid steps of 1024 rows ("parallel" axis).
    out = jax.block_until_ready(freq_encoder(x, bound))
    # f32 rounding of the 2^9-amplified argument limits abs accuracy to a few
    # 1e-4 vs the f64 reference (same as tcnn's f32 path); poly error ~1e-6.
    np.testing.assert_allclose(np.asarray(out), ref, rtol=2e-3, atol=2e-3)
    assert out.shape == (N, D * 2 * N_FREQ)

    # Smaller tiles -> deeper grid.
    out2 = jax.block_until_ready(freq_encoder(x, bound, tile_n=512))
    np.testing.assert_allclose(np.asarray(out2), ref, rtol=2e-3, atol=2e-3)

    # Ragged N (N % tile_n != 0): exercises read-padding / store-clipping.
    out3 = jax.block_until_ready(freq_encoder(x[:1000], bound))
    np.testing.assert_allclose(np.asarray(out3), ref[:1000], rtol=2e-3, atol=2e-3)

    # bf16 output option (halves writeback for a bf16 downstream MLP).
    out4 = jax.block_until_ready(freq_encoder(x, bound, out_dtype=jnp.bfloat16))
    assert out4.dtype == jnp.bfloat16
    np.testing.assert_allclose(np.asarray(out4.astype(jnp.float32)), ref,
                               rtol=2e-2, atol=2e-2)

    print("KERNEL_OK")
</pallas_src>

<mosaic_0001>
module attributes {stable_mosaic.version = 11 : i64} {
  func.func @freq_encoder_kernel(%arg0: i32, %arg1: memref<1024x3xf32, #tpu.memory_space<vmem>>, %arg2: memref<3x60xf32, #tpu.memory_space<vmem>>, %arg3: memref<1x60xf32, #tpu.memory_space<vmem>>, %arg4: memref<1024x60xf32, #tpu.memory_space<vmem>>) attributes {dimension_semantics = [#tpu.dimension_semantics<parallel>], iteration_bounds = array<i64: 4>, scalar_prefetch = 0 : i64, scratch_operands = 0 : i64, tpu.core_type = #tpu.core_type<tc>, window_params = [{transform_indices = @transform_0, window_bounds = array<i64: 1024, 3>}, {pipeline_mode = #tpu.pipeline_mode<synchronous>, transform_indices = @transform_1, window_bounds = array<i64: 3, 60>}, {pipeline_mode = #tpu.pipeline_mode<synchronous>, transform_indices = @transform_2, window_bounds = array<i64: 1, 60>}, {transform_indices = @transform_3, window_bounds = array<i64: 1024, 60>}]} {
    %c0 = arith.constant 0 : index
    %c0_0 = arith.constant 0 : index
    %0 = vector.load %arg1[%c0, %c0_0] : memref<1024x3xf32, #tpu.memory_space<vmem>>, vector<1024x1xf32>
    %c0_1 = arith.constant 0 : index
    %c0_2 = arith.constant 0 : index
    %1 = vector.load %arg2[%c0_1, %c0_2] : memref<3x60xf32, #tpu.memory_space<vmem>>, vector<1x60xf32>
    %2 = vector.broadcast %0 : vector<1024x1xf32> to vector<1024x60xf32>
    %3 = vector.broadcast %1 : vector<1x60xf32> to vector<1024x60xf32>
    %4 = arith.mulf %2, %3 : vector<1024x60xf32>
    %c0_3 = arith.constant 0 : index
    %c0_4 = arith.constant 0 : index
    %5 = vector.load %arg3[%c0_3, %c0_4] : memref<1x60xf32, #tpu.memory_space<vmem>>, vector<1x60xf32>
    %6 = vector.broadcast %5 : vector<1x60xf32> to vector<1024x60xf32>
    %7 = arith.addf %4, %6 : vector<1024x60xf32>
    %c0_5 = arith.constant 0 : index
    %c1 = arith.constant 1 : index
    %8 = vector.load %arg1[%c0_5, %c1] : memref<1024x3xf32, #tpu.memory_space<vmem>>, vector<1024x1xf32>
    %c1_6 = arith.constant 1 : index
    %c0_7 = arith.constant 0 : index
    %9 = vector.load %arg2[%c1_6, %c0_7] : memref<3x60xf32, #tpu.memory_space<vmem>>, vector<1x60xf32>
    %10 = vector.broadcast %8 : vector<1024x1xf32> to vector<1024x60xf32>
    %11 = vector.broadcast %9 : vector<1x60xf32> to vector<1024x60xf32>
    %12 = arith.mulf %10, %11 : vector<1024x60xf32>
    %13 = arith.addf %7, %12 : vector<1024x60xf32>
    %c0_8 = arith.constant 0 : index
    %c2 = arith.constant 2 : index
    %14 = vector.load %arg1[%c0_8, %c2] : memref<1024x3xf32, #tpu.memory_space<vmem>>, vector<1024x1xf32>
    %c2_9 = arith.constant 2 : index
    %c0_10 = arith.constant 0 : index
    %15 = vector.load %arg2[%c2_9, %c0_10] : memref<3x60xf32, #tpu.memory_space<vmem>>, vector<1x60xf32>
    %16 = vector.broadcast %14 : vector<1024x1xf32> to vector<1024x60xf32>
    %17 = vector.broadcast %15 : vector<1x60xf32> to vector<1024x60xf32>
    %18 = arith.mulf %16, %17 : vector<1024x60xf32>
    %19 = arith.addf %13, %18 : vector<1024x60xf32>
    %cst = arith.constant 5.000000e-01 : f32
    %20 = vector.broadcast %cst : f32 to vector<1024x60xf32>
    %21 = arith.addf %19, %20 : vector<1024x60xf32>
    %22 = math.floor %21 : vector<1024x60xf32>
    %23 = arith.subf %19, %22 : vector<1024x60xf32>
    %24 = arith.mulf %23, %23 : vector<1024x60xf32>
    %cst_11 = arith.constant -12.5759039 : f32
    %25 = vector.broadcast %cst_11 : f32 to vector<1024x60xf32>
    %26 = arith.mulf %25, %24 : vector<1024x60xf32>
    %cst_12 = arith.constant 41.4031792 : f32
    %27 = vector.broadcast %cst_12 : f32 to vector<1024x60xf32>
    %28 = arith.addf %26, %27 : vector<1024x60xf32>
    %29 = arith.mulf %28, %24 : vector<1024x60xf32>
    %cst_13 = arith.constant -7.662650e+01 : f32
    %30 = vector.broadcast %cst_13 : f32 to vector<1024x60xf32>
    %31 = arith.addf %29, %30 : vector<1024x60xf32>
    %32 = arith.mulf %31, %24 : vector<1024x60xf32>
    %cst_14 = arith.constant 81.6009063 : f32
    %33 = vector.broadcast %cst_14 : f32 to vector<1024x60xf32>
    %34 = arith.addf %32, %33 : vector<1024x60xf32>
    %35 = arith.mulf %34, %24 : vector<1024x60xf32>
    %cst_15 = arith.constant -41.3416176 : f32
    %36 = vector.broadcast %cst_15 : f32 to vector<1024x60xf32>
    %37 = arith.addf %35, %36 : vector<1024x60xf32>
    %38 = arith.mulf %37, %24 : vector<1024x60xf32>
    %cst_16 = arith.constant 6.283185 : f32
    %39 = vector.broadcast %cst_16 : f32 to vector<1024x60xf32>
    %40 = arith.addf %38, %39 : vector<1024x60xf32>
    %41 = arith.mulf %23, %40 : vector<1024x60xf32>
    %c0_17 = arith.constant 0 : index
    %c0_18 = arith.constant 0 : index
    %42 = vector.load %arg4[%c0_17, %c0_18] : memref<1024x60xf32, #tpu.memory_space<vmem>>, vector<1024x60xf32>
    tpu.vector_store %arg4[%c0_17, %c0_18], %41 {strides = array<i32>} : memref<1024x60xf32, #tpu.memory_space<vmem>>, vector<1024x60xf32>,
    return
  }
  func.func @transform_0(%arg0: i32) -> (i32, i32) {
    %c0_i32 = arith.constant 0 : i32
    %c0_i32_0 = arith.constant 0 : i32
    return %arg0, %c0_i32 : i32, i32
  }
  func.func @transform_1(%arg0: i32) -> (i32, i32) {
    %c0_i32 = arith.constant 0 : i32
    %c0_i32_0 = arith.constant 0 : i32
    %c0_i32_1 = arith.constant 0 : i32
    return %c0_i32, %c0_i32_0 : i32, i32
  }
  func.func @transform_2(%arg0: i32) -> (i32, i32) {
    %c0_i32 = arith.constant 0 : i32
    %c0_i32_0 = arith.constant 0 : i32
    %c0_i32_1 = arith.constant 0 : i32
    return %c0_i32, %c0_i32_0 : i32, i32
  }
  func.func @transform_3(%arg0: i32) -> (i32, i32) {
    %c0_i32 = arith.constant 0 : i32
    %c0_i32_0 = arith.constant 0 : i32
    return %arg0, %c0_i32 : i32, i32
  }
}

</mosaic_0001>

<bundles_post_ra>
// kernel: tpu_custom_call.1
= control target key start
LH: loop header
LB: loop body
LE: loop exit
PB: predicated region body
PF: predicated region fallthrough
CT: control target
= control target key end

     0   :  { %s5047_s12 = smov 0   ;;  %s9691_s0 = inlined_call_operand.vmem [shape: f32[4096,3], index: 0, kind: input, shape index: {}]   ;;  %s9692_s1 = inlined_call_operand.vmem [shape: f32[3,60], index: 1, kind: input, shape index: {}]   ;;  %s9693_s2 = inlined_call_operand.vmem [shape: f32[1,60], index: 2, kind: input, shape index: {}]   ;;  %s9694_s3 = inlined_call_operand.vmem [shape: f32[4096,60], index: 3, kind: output, shape index: {}]  }
   0x1 LB: > { %s4849_s13 = sadd.s32 4294967295, %s5022_s12   ;;  %p4853_p0 = scmp.ge.s32.totalorder %s5022_s12, 1  ;;  %s5022_s12 = sphi %s5047_s12, %s13_s12  }
   0x2   : > { %p138_p1 = scmp.lt.s32.totalorder %s5022_s12, 5 }
   0x4   : > { %p139_p2 = pnand %p4853_p0, %p138_p1 }
   0x6   : > { %142 = sbr.rel (%p139_p2) target bundleno = 1458 (0x5b2), region = 32 }
   0xb   : > { %s4854_s14 = sshll.u32 %s4849_s13, 7  ;;  %v5024_v0 = vmov 0   ;;  %vm4664_vm0 = vcmask 490496  }
   0xc   : > { %4873 = vset.pattern.permute.xlu2 %v5024_v0  ;;  %4872 = vset.pattern.permute.xlu1 %v5024_v0  ;;  %p163_p3 = scmp.lt.s32.totalorder %s4854_s14, 511 }
   0xd   : > { %4871 = vset.pattern.permute.xlu0 %v5024_v0 }
   0xe   : > { %s10703_s14 = smov (!%p163_p3, %s4854_s14), 511 }
   0xf   : > { %s4855_s15 = sshll.u32 %s10703_s14, 3 }
  0x10   : > { %s5063_s18 = scalar_lea.vmem %s9691_s0, %s4855_s15  ;;  %s7595_s29 = scalar_lea.vmem %s9694_s3, %s4855_s15 }
  0x11   : > { %v5066_v1 = vld [vmem:[%s5063_s18 + $0x20] sm:$0xff]  ;;  %v5069_v2 = vld [vmem:[%s5063_s18 + $0x10] sm:$0xff]  ;;  %v5078_v4 = vld [vmem:[%s5063_s18 + $0x28] sm:$0xff] }
  0x12   : > { %v5072_v3 = vld [vmem:[%s5063_s18] sm:$0xff]  ;;  %325 = vperm.xlu2 %4873, %v5066_v1   ;;  %315 = vperm.xlu1 %4872, %v5069_v2   ;;  %v5081_v5 = vld [vmem:[%s5063_s18 + $0x18] sm:$0xff]  ;;  %v5084_v6 = vld [vmem:[%s5063_s18 + $0x8] sm:$0xff] }
  0x13   : > { %305 = vperm.xlu0 %4871, %v5072_v3   ;;  %v5090_v7 = vld [vmem:[%s5063_s18 + $0x40] sm:$0xff]  ;;  %v5093_v8 = vld [vmem:[%s5063_s18 + $0x38] sm:$0xff]  ;;  %v5096_v9 = vld [vmem:[%s5063_s18 + $0x30] sm:$0xff] }
  0x14   : > { %v5102_v10 = vld [vmem:[%s5063_s18 + $0x58] sm:$0xff]  ;;  %v5105_v11 = vld [vmem:[%s5063_s18 + $0x50] sm:$0xff]  ;;  %v5108_v12 = vld [vmem:[%s5063_s18 + $0x48] sm:$0xff] }
  0x15   : > { %v5114_v13 = vld [vmem:[%s5063_s18 + $0x70] sm:$0xff]  ;;  %v5117_v14 = vld [vmem:[%s5063_s18 + $0x68] sm:$0xff]  ;;  %v5120_v15 = vld [vmem:[%s5063_s18 + $0x60] sm:$0xff] }
  0x16   : > { %v5126_v16 = vld [vmem:[%s5063_s18 + $0x88] sm:$0xff]  ;;  %v5129_v17 = vld [vmem:[%s5063_s18 + $0x80] sm:$0xff]  ;;  %v5132_v18 = vld [vmem:[%s5063_s18 + $0x78] sm:$0xff] }
  0x17   : > { %v5138_v19 = vld [vmem:[%s5063_s18 + $0xa0] sm:$0xff]  ;;  %v5141_v20 = vld [vmem:[%s5063_s18 + $0x98] sm:$0xff]  ;;  %v5144_v21 = vld [vmem:[%s5063_s18 + $0x90] sm:$0xff] }
  0x18   : > { %v5150_v22 = vld [vmem:[%s5063_s18 + $0xb8] sm:$0xff]  ;;  %v5153_v23 = vld [vmem:[%s5063_s18 + $0xb0] sm:$0xff]  ;;  %v5156_v24 = vld [vmem:[%s5063_s18 + $0xa8] sm:$0xff] }
  0x19   : > { %v5162_v25 = vld [vmem:[%s5063_s18 + $0xd0] sm:$0xff]  ;;  %v5165_v26 = vld [vmem:[%s5063_s18 + $0xc8] sm:$0xff]  ;;  %v5168_v27 = vld [vmem:[%s5063_s18 + $0xc0] sm:$0xff] }
  0x1a   : > { %330 = vperm.xlu2 %4873, %v5078_v4   ;;  %320 = vperm.xlu1 %4872, %v5081_v5   ;;  %v5174_v28 = vld [vmem:[%s5063_s18 + $0xe8] sm:$0xff]  ;;  %v5177_v29 = vld [vmem:[%s5063_s18 + $0xe0] sm:$0xff]  ;;  %v5180_v30 = vld [vmem:[%s5063_s18 + $0xd8] sm:$0xff] }
  0x1b   : > { %310 = vperm.xlu0 %4871, %v5084_v6   ;;  %v5186_v31 = vld [vmem:[%s5063_s18 + $0x100] sm:$0xff]  ;;  %v5189_v32 = vld [vmem:[%s5063_s18 + $0xf8] sm:$0xff]  ;;  %v5192_v33 = vld [vmem:[%s5063_s18 + $0xf0] sm:$0xff] }
  0x1c   : > { %v5198_v34 = vld [vmem:[%s5063_s18 + $0x118] sm:$0xff]  ;;  %v5201_v35 = vld [vmem:[%s5063_s18 + $0x110] sm:$0xff]  ;;  %v5204_v36 = vld [vmem:[%s5063_s18 + $0x108] sm:$0xff] }
  0x1d   : > { %v5212_v38 = vld [vmem:[%s5063_s18 + $0x130] sm:$0xff]  ;;  %v5215_v39 = vld [vmem:[%s5063_s18 + $0x128] sm:$0xff]  ;;  %v5218_v40 = vld [vmem:[%s5063_s18 + $0x120] sm:$0xff] }
  0x1e   : > { %v5226_v42 = vld [vmem:[%s5063_s18 + $0x148] sm:$0xff]  ;;  %v5229_v43 = vld [vmem:[%s5063_s18 + $0x140] sm:$0xff]  ;;  %v5232_v44 = vld [vmem:[%s5063_s18 + $0x138] sm:$0xff] }
  0x1f   : > { %v5240_v46 = vld [vmem:[%s5063_s18 + $0x160] sm:$0xff]  ;;  %v5243_v47 = vld [vmem:[%s5063_s18 + $0x158] sm:$0xff]  ;;  %v5246_v48 = vld [vmem:[%s5063_s18 + $0x150] sm:$0xff] }
  0x20   : > { %v5258_v52 = vld [vmem:[%s5063_s18 + $0x178] sm:$0xff]  ;;  %v5261_v53 = vld [vmem:[%s5063_s18 + $0x170] sm:$0xff]  ;;  %v5264_v54 = vld [vmem:[%s5063_s18 + $0x168] sm:$0xff] }
  0x21   : > { %v5276_v58 = vld [vmem:[%s5063_s18 + $0x190] sm:$0xff]  ;;  %v5279_v59 = vld [vmem:[%s5063_s18 + $0x188] sm:$0xff]  ;;  %v5282_v60 = vld [vmem:[%s5063_s18 + $0x180] sm:$0xff] }
  0x22   : > { %345 = vperm.xlu2 %4873, %v5090_v7   ;;  %340 = vperm.xlu1 %4872, %v5093_v8   ;;  %v5294_v0 = vld [vmem:[%s5063_s18 + $0x1a8] sm:$0xff] }
  0x23   : > { %335 = vperm.xlu0 %4871, %v5096_v9  }
  0x2a   : > { %360 = vperm.xlu2 %4873, %v5102_v10   ;;  %355 = vperm.xlu1 %4872, %v5105_v11  }
  0x2b   : > { %350 = vperm.xlu0 %4871, %v5108_v12  }
  0x32   : > { %375 = vperm.xlu2 %4873, %v5114_v13   ;;  %370 = vperm.xlu1 %4872, %v5117_v14  }
  0x33   : > { %365 = vperm.xlu0 %4871, %v5120_v15  }
  0x3a   : > { %390 = vperm.xlu2 %4873, %v5126_v16   ;;  %385 = vperm.xlu1 %4872, %v5129_v17  }
  0x3b   : > { %380 = vperm.xlu0 %4871, %v5132_v18  }
  0x42   : > { %405 = vperm.xlu2 %4873, %v5138_v19   ;;  %400 = vperm.xlu1 %4872, %v5141_v20  }
  0x43   : > { %395 = vperm.xlu0 %4871, %v5144_v21  }
  0x4a   : > { %420 = vperm.xlu2 %4873, %v5150_v22   ;;  %415 = vperm.xlu1 %4872, %v5153_v23  }
  0x4b   : > { %410 = vperm.xlu0 %4871, %v5156_v24  }
  0x52   : > { %435 = vperm.xlu2 %4873, %v5162_v25   ;;  %430 = vperm.xlu1 %4872, %v5165_v26  }
  0x53   : > { %425 = vperm.xlu0 %4871, %v5168_v27  }
  0x5a   : > { %450 = vperm.xlu2 %4873, %v5174_v28   ;;  %445 = vperm.xlu1 %4872, %v5177_v29  }
  0x5b   : > { %440 = vperm.xlu0 %4871, %v5180_v30  }
  0x62   : > { %465 = vperm.xlu2 %4873, %v5186_v31   ;;  %460 = vperm.xlu1 %4872, %v5189_v32  }
  0x63   : > { %455 = vperm.xlu0 %4871, %v5192_v33  }
  0x6a   : > { %480 = vperm.xlu2 %4873, %v5198_v34   ;;  %475 = vperm.xlu1 %4872, %v5201_v35  }
  0x6b   : > { %470 = vperm.xlu0 %4871, %v5204_v36  }
  0x6c   : > { %v5209_v37 = vpop.permute.xlu2 %325 }
  0x6d   : > { %9766 = vst [vmem:[#allocation2_spill] sm:$0xff] %v5209_v37  ;;  %v5348_v37 = vld [vmem:[%s5063_s18 + $0x1f0] sm:$0xff] }
  0x6e   : > { %9792 = vst [vmem:[#allocation28_spill] sm:$0xff] %v5348_v37 }
  0x72   : > { %495 = vperm.xlu2 %4873, %v5212_v38   ;;  %490 = vperm.xlu1 %4872, %v5215_v39  }
  0x73   : > { %485 = vperm.xlu0 %4871, %v5218_v40  }
  0x74   : > { %v5223_v41 = vpop.permute.xlu2 %330 }
  0x75   : > { %9767 = vst [vmem:[#allocation3_spill] sm:$0xff] %v5223_v41  ;;  %v5336_v41 = vld [vmem:[%s5063_s18 + $0x1c8] sm:$0xff] }
  0x76   : > { %9788 = vst [vmem:[#allocation24_spill] sm:$0xff] %v5336_v41 }
  0x7a   : > { %510 = vperm.xlu2 %4873, %v5226_v42   ;;  %505 = vperm.xlu1 %4872, %v5229_v43  }
  0x7b   : > { %500 = vperm.xlu0 %4871, %v5232_v44  }
  0x7c   : > { %v5237_v45 = vpop.permute.xlu2 %345 }
  0x7d   : > { %9768 = vst [vmem:[#allocation4_spill] sm:$0xff] %v5237_v45  ;;  %v5333_v45 = vld [vmem:[%s5063_s18 + $0x1d0] sm:$0xff] }
  0x7e   : > { %9787 = vst [vmem:[#allocation23_spill] sm:$0xff] %v5333_v45 }
  0x82   : > { %525 = vperm.xlu2 %4873, %v5240_v46   ;;  %520 = vperm.xlu1 %4872, %v5243_v47  }
  0x83   : > { %515 = vperm.xlu0 %4871, %v5246_v48  }
  0x84   : > { %v5251_v49 = vpop.permute.xlu2 %360  ;;  %v5253_v50 = vpop.permute.xlu1 %315 }
  0x85   : > { %9769 = vst [vmem:[#allocation5_spill] sm:$0xff] %v5251_v49  ;;  %v5255_v51 = vpop.permute.xlu0 %305  ;;  %v5330_v49 = vld [vmem:[%s5063_s18 + $0x1d8] sm:$0xff] }
  0x86   : > { %9770 = vst [vmem:[#allocation6_spill] sm:$0xff] %v5253_v50  ;;  %v5318_v50 = vld [vmem:[%s5063_s18 + $0x1b0] sm:$0xff] }
  0x87   : > { %9771 = vst [vmem:[#allocation7_spill] sm:$0xff] %v5255_v51  ;;  %v5315_v51 = vld [vmem:[%s5063_s18 + $0x1b8] sm:$0xff] }
  0x88   : > { %9782 = vst [vmem:[#allocation18_spill] sm:$0xff] %v5315_v51 }
  0x89   : > { %9786 = vst [vmem:[#allocation22_spill] sm:$0xff] %v5330_v49 }
  0x8a   : > { %540 = vperm.xlu2 %4873, %v5258_v52   ;;  %535 = vperm.xlu1 %4872, %v5261_v53  }
  0x8b   : > { %530 = vperm.xlu0 %4871, %v5264_v54  }
  0x8c   : > { %v5269_v55 = vpop.permute.xlu2 %375  ;;  %v5271_v56 = vpop.permute.xlu1 %320 }
  0x8d   : > { %9772 = vst [vmem:[#allocation8_spill] sm:$0xff] %v5269_v55  ;;  %v5273_v57 = vpop.permute.xlu0 %310  ;;  %v5312_v55 = vld [vmem:[%s5063_s18 + $0x1c0] sm:$0xff] }
  0x8e   : > { %9773 = vst [vmem:[#allocation9_spill] sm:$0xff] %v5271_v56  ;;  %v5300_v56 = vld [vmem:[%s5063_s18 + $0x198] sm:$0xff] }
  0x8f   : > { %9774 = vst [vmem:[#allocation10_spill] sm:$0xff] %v5273_v57  ;;  %v5297_v57 = vld [vmem:[%s5063_s18 + $0x1a0] sm:$0xff] }
  0x90   : > { %9781 = vst [vmem:[#allocation17_spill] sm:$0xff] %v5312_v55 }
  0x92   : > { %555 = vperm.xlu2 %4873, %v5276_v58   ;;  %550 = vperm.xlu1 %4872, %v5279_v59  }
  0x93   : > { %545 = vperm.xlu0 %4871, %v5282_v60  }
  0x94   : > { %v5287_v61 = vpop.permute.xlu2 %390  ;;  %v5289_v62 = vpop.permute.xlu1 %340 }
  0x95   : > { %9775 = vst [vmem:[#allocation11_spill] sm:$0xff] %v5287_v61  ;;  %v5291_v63 = vpop.permute.xlu0 %335 }
  0x96   : > { %9776 = vst [vmem:[#allocation12_spill] sm:$0xff] %v5289_v62 }
  0x97   : > { %9777 = vst [vmem:[#allocation13_spill] sm:$0xff] %v5291_v63 }
  0x9a   : > { %570 = vperm.xlu2 %4873, %v5294_v0   ;;  %565 = vperm.xlu1 %4872, %v5297_v57  }
  0x9b   : > { %560 = vperm.xlu0 %4871, %v5300_v56  }
  0x9c   : > { %v5305_v61 = vpop.permute.xlu2 %405  ;;  %v5307_v62 = vpop.permute.xlu1 %355 }
  0x9d   : > { %9778 = vst [vmem:[#allocation14_spill] sm:$0xff] %v5305_v61  ;;  %v5309_v63 = vpop.permute.xlu0 %350 }
  0x9e   : > { %9779 = vst [vmem:[#allocation15_spill] sm:$0xff] %v5307_v62 }
  0x9f   : > { %9780 = vst [vmem:[#allocation16_spill] sm:$0xff] %v5309_v63 }
  0xa2   : > { %585 = vperm.xlu2 %4873, %v5312_v55   ;;  %580 = vperm.xlu1 %4872, %v5315_v51   ;;  %v5351_v55 = vld [vmem:[%s5063_s18 + $0x1e8] sm:$0xff]  ;;  %v5354_v51 = vld [vmem:[%s5063_s18 + $0x1e0] sm:$0xff] }
  0xa3   : > { %575 = vperm.xlu0 %4871, %v5318_v50   ;;  %9793 = vst [vmem:[#allocation29_spill] sm:$0xff] %v5351_v55 }
  0xa4   : > { %v5323_v61 = vpop.permute.xlu2 %420  ;;  %v5325_v62 = vpop.permute.xlu1 %370  ;;  %9794 = vst [vmem:[#allocation30_spill] sm:$0xff] %v5354_v51 }
  0xa5   : > { %9783 = vst [vmem:[#allocation19_spill] sm:$0xff] %v5323_v61  ;;  %v5327_v63 = vpop.permute.xlu0 %365 }
  0xa6   : > { %9784 = vst [vmem:[#allocation20_spill] sm:$0xff] %v5325_v62 }
  0xa7   : > { %9785 = vst [vmem:[#allocation21_spill] sm:$0xff] %v5327_v63 }
  0xaa   : > { %600 = vperm.xlu2 %4873, %v5330_v49   ;;  %595 = vperm.xlu1 %4872, %v5333_v45   ;;  %v5366_v49 = vld [vmem:[%s5063_s18 + $0x208] sm:$0xff]  ;;  %v5369_v45 = vld [vmem:[%s5063_s18 + $0x200] sm:$0xff] }
  0xab   : > { %590 = vperm.xlu0 %4871, %v5336_v41   ;;  %9798 = vst [vmem:[#allocation34_spill] sm:$0xff] %v5366_v49  ;;  %v5372_v41 = vld [vmem:[%s5063_s18 + $0x1f8] sm:$0xff] }
  0xac   : > { %v5341_v61 = vpop.permute.xlu2 %435  ;;  %v5343_v62 = vpop.permute.xlu1 %385  ;;  %9799 = vst [vmem:[#allocation35_spill] sm:$0xff] %v5369_v45 }
  0xad   : > { %9789 = vst [vmem:[#allocation25_spill] sm:$0xff] %v5341_v61  ;;  %v5345_v63 = vpop.permute.xlu0 %380 }
  0xae   : > { %9790 = vst [vmem:[#allocation26_spill] sm:$0xff] %v5343_v62 }
  0xaf   : > { %9791 = vst [vmem:[#allocation27_spill] sm:$0xff] %v5345_v63 }
  0xb0   : > { %9800 = vst [vmem:[#allocation36_spill] sm:$0xff] %v5372_v41 }
  0xb2   : > { %615 = vperm.xlu2 %4873, %v5348_v37   ;;  %610 = vperm.xlu1 %4872, %v5351_v55   ;;  %v5384_v37 = vld [vmem:[%s5063_s18 + $0x220] sm:$0xff]  ;;  %v5387_v55 = vld [vmem:[%s5063_s18 + $0x218] sm:$0xff] }
  0xb3   : > { %605 = vperm.xlu0 %4871, %v5354_v51   ;;  %9804 = vst [vmem:[#allocation40_spill] sm:$0xff] %v5384_v37  ;;  %v5390_v51 = vld [vmem:[%s5063_s18 + $0x210] sm:$0xff] }
  0xb4   : > { %v5359_v61 = vpop.permute.xlu2 %450  ;;  %v5361_v62 = vpop.permute.xlu1 %400  ;;  %9805 = vst [vmem:[#allocation41_spill] sm:$0xff] %v5387_v55 }
  0xb5   : > { %9795 = vst [vmem:[#allocation31_spill] sm:$0xff] %v5359_v61  ;;  %v5363_v63 = vpop.permute.xlu0 %395 }
  0xb6   : > { %9796 = vst [vmem:[#allocation32_spill] sm:$0xff] %v5361_v62 }
  0xb7   : > { %9797 = vst [vmem:[#allocation33_spill] sm:$0xff] %v5363_v63 }
  0xb8   : > { %9806 = vst [vmem:[#allocation42_spill] sm:$0xff] %v5390_v51 }
  0xba   : > { %630 = vperm.xlu2 %4873, %v5366_v49   ;;  %625 = vperm.xlu1 %4872, %v5369_v45   ;;  %v5402_v49 = vld [vmem:[%s5063_s18 + $0x238] sm:$0xff]  ;;  %v5405_v45 = vld [vmem:[%s5063_s18 + $0x230] sm:$0xff] }
  0xbb   : > { %620 = vperm.xlu0 %4871, %v5372_v41   ;;  %9810 = vst [vmem:[#allocation46_spill] sm:$0xff] %v5402_v49  ;;  %v5408_v41 = vld [vmem:[%s5063_s18 + $0x228] sm:$0xff] }
  0xbc   : > { %v5377_v61 = vpop.permute.xlu2 %465  ;;  %v5379_v62 = vpop.permute.xlu1 %415  ;;  %9811 = vst [vmem:[#allocation47_spill] sm:$0xff] %v5405_v45 }
  0xbd   : > { %9801 = vst [vmem:[#allocation37_spill] sm:$0xff] %v5377_v61  ;;  %v5381_v63 = vpop.permute.xlu0 %410 }
  0xbe   : > { %9802 = vst [vmem:[#allocation38_spill] sm:$0xff] %v5379_v62 }
  0xbf   : > { %9803 = vst [vmem:[#allocation39_spill] sm:$0xff] %v5381_v63 }
  0xc0   : > { %9812 = vst [vmem:[#allocation48_spill] sm:$0xff] %v5408_v41 }
  0xc2   : > { %645 = vperm.xlu2 %4873, %v5384_v37   ;;  %640 = vperm.xlu1 %4872, %v5387_v55   ;;  %v5420_v37 = vld [vmem:[%s5063_s18 + $0x250] sm:$0xff]  ;;  %v5423_v55 = vld [vmem:[%s5063_s18 + $0x248] sm:$0xff] }
  0xc3   : > { %635 = vperm.xlu0 %4871, %v5390_v51   ;;  %9816 = vst [vmem:[#allocation52_spill] sm:$0xff] %v5420_v37  ;;  %v5426_v51 = vld [vmem:[%s5063_s18 + $0x240] sm:$0xff] }
  0xc4   : > { %v5395_v61 = vpop.permute.xlu2 %480  ;;  %v5397_v62 = vpop.permute.xlu1 %430  ;;  %9817 = vst [vmem:[#allocation53_spill] sm:$0xff] %v5423_v55 }
  0xc5   : > { %9807 = vst [vmem:[#allocation43_spill] sm:$0xff] %v5395_v61  ;;  %v5399_v63 = vpop.permute.xlu0 %425 }
  0xc6   : > { %9808 = vst [vmem:[#allocation44_spill] sm:$0xff] %v5397_v62 }
  0xc7   : > { %9809 = vst [vmem:[#allocation45_spill] sm:$0xff] %v5399_v63 }
  0xc8   : > { %9818 = vst [vmem:[#allocation54_spill] sm:$0xff] %v5426_v51 }
  0xca   : > { %660 = vperm.xlu2 %4873, %v5402_v49   ;;  %655 = vperm.xlu1 %4872, %v5405_v45   ;;  %v5438_v49 = vld [vmem:[%s5063_s18 + $0x268] sm:$0xff]  ;;  %v5441_v45 = vld [vmem:[%s5063_s18 + $0x260] sm:$0xff] }
  0xcb   : > { %650 = vperm.xlu0 %4871, %v5408_v41   ;;  %9822 = vst [vmem:[#allocation58_spill] sm:$0xff] %v5438_v49  ;;  %v5444_v41 = vld [vmem:[%s5063_s18 + $0x258] sm:$0xff] }
  0xcc   : > { %v5413_v61 = vpop.permute.xlu2 %495  ;;  %v5415_v62 = vpop.permute.xlu1 %445  ;;  %9823 = vst [vmem:[#allocation59_spill] sm:$0xff] %v5441_v45 }
  0xcd   : > { %9813 = vst [vmem:[#allocation49_spill] sm:$0xff] %v5413_v61  ;;  %v5417_v63 = vpop.permute.xlu0 %440 }
  0xce   : > { %9814 = vst [vmem:[#allocation50_spill] sm:$0xff] %v5415_v62 }
  0xcf   : > { %9815 = vst [vmem:[#allocation51_spill] sm:$0xff] %v5417_v63 }
  0xd0   : > { %9824 = vst [vmem:[#allocation60_spill] sm:$0xff] %v5444_v41 }
  0xd2   : > { %675 = vperm.xlu2 %4873, %v5420_v37   ;;  %670 = vperm.xlu1 %4872, %v5423_v55   ;;  %v5456_v37 = vld [vmem:[%s5063_s18 + $0x280] sm:$0xff]  ;;  %v5459_v55 = vld [vmem:[%s5063_s18 + $0x278] sm:$0xff] }
  0xd3   : > { %665 = vperm.xlu0 %4871, %v5426_v51   ;;  %9828 = vst [vmem:[#allocation64_spill] sm:$0xff] %v5456_v37  ;;  %v5462_v51 = vld [vmem:[%s5063_s18 + $0x270] sm:$0xff] }
  0xd4   : > { %v5431_v61 = vpop.permute.xlu2 %510  ;;  %v5433_v62 = vpop.permute.xlu1 %460  ;;  %9829 = vst [vmem:[#allocation65_spill] sm:$0xff] %v5459_v55 }
  0xd5   : > { %9819 = vst [vmem:[#allocation55_spill] sm:$0xff] %v5431_v61  ;;  %v5435_v63 = vpop.permute.xlu0 %455 }
  0xd6   : > { %9820 = vst [vmem:[#allocation56_spill] sm:$0xff] %v5433_v62 }
  0xd7   : > { %9821 = vst [vmem:[#allocation57_spill] sm:$0xff] %v5435_v63 }
  0xd8   : > { %9830 = vst [vmem:[#allocation66_spill] sm:$0xff] %v5462_v51 }
  0xda   : > { %690 = vperm.xlu2 %4873, %v5438_v49   ;;  %685 = vperm.xlu1 %4872, %v5441_v45   ;;  %v5474_v49 = vld [vmem:[%s5063_s18 + $0x298] sm:$0xff]  ;;  %v5477_v45 = vld [vmem:[%s5063_s18 + $0x290] sm:$0xff] }
  0xdb   : > { %680 = vperm.xlu0 %4871, %v5444_v41   ;;  %9834 = vst [vmem:[#allocation70_spill] sm:$0xff] %v5474_v49  ;;  %v5480_v41 = vld [vmem:[%s5063_s18 + $0x288] sm:$0xff] }
  0xdc   : > { %v5449_v61 = vpop.permute.xlu2 %525  ;;  %v5451_v62 = vpop.permute.xlu1 %475  ;;  %9835 = vst [vmem:[#allocation71_spill] sm:$0xff] %v5477_v45 }
  0xdd   : > { %9825 = vst [vmem:[#allocation61_spill] sm:$0xff] %v5449_v61  ;;  %v5453_v63 = vpop.permute.xlu0 %470 }
  0xde   : > { %9826 = vst [vmem:[#allocation62_spill] sm:$0xff] %v5451_v62 }
  0xdf   : > { %9827 = vst [vmem:[#allocation63_spill] sm:$0xff] %v5453_v63 }
  0xe0   : > { %9836 = vst [vmem:[#allocation72_spill] sm:$0xff] %v5480_v41 }
  0xe2   : > { %705 = vperm.xlu2 %4873, %v5456_v37   ;;  %700 = vperm.xlu1 %4872, %v5459_v55   ;;  %v5492_v37 = vld [vmem:[%s5063_s18 + $0x2b0] sm:$0xff]  ;;  %v5495_v55 = vld [vmem:[%s5063_s18 + $0x2a8] sm:$0xff] }
  0xe3   : > { %695 = vperm.xlu0 %4871, %v5462_v51   ;;  %9840 = vst [vmem:[#allocation76_spill] sm:$0xff] %v5492_v37  ;;  %v5498_v51 = vld [vmem:[%s5063_s18 + $0x2a0] sm:$0xff] }
  0xe4   : > { %v5467_v61 = vpop.permute.xlu2 %540  ;;  %v5469_v62 = vpop.permute.xlu1 %490  ;;  %9841 = vst [vmem:[#allocation77_spill] sm:$0xff] %v5495_v55 }
  0xe5   : > { %9831 = vst [vmem:[#allocation67_spill] sm:$0xff] %v5467_v61  ;;  %v5471_v63 = vpop.permute.xlu0 %485 }
  0xe6   : > { %9832 = vst [vmem:[#allocation68_spill] sm:$0xff] %v5469_v62 }
  0xe7   : > { %9833 = vst [vmem:[#allocation69_spill] sm:$0xff] %v5471_v63 }
  0xe8   : > { %9842 = vst [vmem:[#allocation78_spill] sm:$0xff] %v5498_v51 }
  0xea   : > { %720 = vperm.xlu2 %4873, %v5474_v49   ;;  %715 = vperm.xlu1 %4872, %v5477_v45   ;;  %v5510_v49 = vld [vmem:[%s5063_s18 + $0x2c8] sm:$0xff]  ;;  %v5513_v45 = vld [vmem:[%s5063_s18 + $0x2c0] sm:$0xff] }
  0xeb   : > { %710 = vperm.xlu0 %4871, %v5480_v41   ;;  %9846 = vst [vmem:[#allocation82_spill] sm:$0xff] %v5510_v49  ;;  %v5516_v41 = vld [vmem:[%s5063_s18 + $0x2b8] sm:$0xff] }
  0xec   : > { %v5485_v61 = vpop.permute.xlu2 %555  ;;  %v5487_v62 = vpop.permute.xlu1 %505  ;;  %9847 = vst [vmem:[#allocation83_spill] sm:$0xff] %v5513_v45 }
  0xed   : > { %9837 = vst [vmem:[#allocation73_spill] sm:$0xff] %v5485_v61  ;;  %v5489_v63 = vpop.permute.xlu0 %500 }
  0xee   : > { %9838 = vst [vmem:[#allocation74_spill] sm:$0xff] %v5487_v62 }
  0xef   : > { %9839 = vst [vmem:[#allocation75_spill] sm:$0xff] %v5489_v63 }
  0xf0   : > { %9848 = vst [vmem:[#allocation84_spill] sm:$0xff] %v5516_v41 }
  0xf2   : > { %735 = vperm.xlu2 %4873, %v5492_v37   ;;  %730 = vperm.xlu1 %4872, %v5495_v55   ;;  %v5528_v37 = vld [vmem:[%s5063_s18 + $0x2e0] sm:$0xff]  ;;  %v5531_v55 = vld [vmem:[%s5063_s18 + $0x2d8] sm:$0xff] }
  0xf3   : > { %725 = vperm.xlu0 %4871, %v5498_v51   ;;  %9852 = vst [vmem:[#allocation88_spill] sm:$0xff] %v5528_v37  ;;  %v5534_v51 = vld [vmem:[%s5063_s18 + $0x2d0] sm:$0xff] }
  0xf4   : > { %v5503_v61 = vpop.permute.xlu2 %570  ;;  %v5505_v62 = vpop.permute.xlu1 %520  ;;  %9853 = vst [vmem:[#allocation89_spill] sm:$0xff] %v5531_v55 }
  0xf5   : > { %9843 = vst [vmem:[#allocation79_spill] sm:$0xff] %v5503_v61  ;;  %v5507_v63 = vpop.permute.xlu0 %515 }
  0xf6   : > { %9844 = vst [vmem:[#allocation80_spill] sm:$0xff] %v5505_v62 }
  0xf7   : > { %9845 = vst [vmem:[#allocation81_spill] sm:$0xff] %v5507_v63 }
  0xf8   : > { %9854 = vst [vmem:[#allocation90_spill] sm:$0xff] %v5534_v51 }
  0xfa   : > { %750 = vperm.xlu2 %4873, %v5510_v49   ;;  %745 = vperm.xlu1 %4872, %v5513_v45   ;;  %v5546_v49 = vld [vmem:[%s5063_s18 + $0x2f8] sm:$0xff]  ;;  %v5549_v45 = vld [vmem:[%s5063_s18 + $0x2f0] sm:$0xff] }
  0xfb   : > { %740 = vperm.xlu0 %4871, %v5516_v41   ;;  %9858 = vst [vmem:[#allocation94_spill] sm:$0xff] %v5546_v49  ;;  %v5552_v41 = vld [vmem:[%s5063_s18 + $0x2e8] sm:$0xff] }
  0xfc   : > { %v5521_v61 = vpop.permute.xlu2 %585  ;;  %v5523_v62 = vpop.permute.xlu1 %535  ;;  %9859 = vst [vmem:[#allocation95_spill] sm:$0xff] %v5549_v45 }
  0xfd   : > { %9849 = vst [vmem:[#allocation85_spill] sm:$0xff] %v5521_v61  ;;  %v5525_v63 = vpop.permute.xlu0 %530 }
  0xfe   : > { %9850 = vst [vmem:[#allocation86_spill] sm:$0xff] %v5523_v62 }
  0xff   : > { %9851 = vst [vmem:[#allocation87_spill] sm:$0xff] %v5525_v63 }
 0x100   : > { %9860 = vst [vmem:[#allocation96_spill] sm:$0xff] %v5552_v41 }
 0x102   : > { %765 = vperm.xlu2 %4873, %v5528_v37   ;;  %760 = vperm.xlu1 %4872, %v5531_v55   ;;  %v5564_v37 = vld [vmem:[%s5063_s18 + $0x310] sm:$0xff]  ;;  %v5567_v55 = vld [vmem:[%s5063_s18 + $0x308] sm:$0xff] }
 0x103   : > { %755 = vperm.xlu0 %4871, %v5534_v51   ;;  %9864 = vst [vmem:[#allocation100_spill] sm:$0xff] %v5564_v37  ;;  %v5570_v51 = vld [vmem:[%s5063_s18 + $0x300] sm:$0xff] }
 0x104   : > { %v5539_v61 = vpop.permute.xlu2 %600  ;;  %v5541_v62 = vpop.permute.xlu1 %550  ;;  %9865 = vst [vmem:[#allocation101_spill] sm:$0xff] %v5567_v55 }
 0x105   : > { %9855 = vst [vmem:[#allocation91_spill] sm:$0xff] %v5539_v61  ;;  %v5543_v63 = vpop.permute.xlu0 %545 }
 0x106   : > { %9856 = vst [vmem:[#allocation92_spill] sm:$0xff] %v5541_v62 }
 0x107   : > { %9857 = vst [vmem:[#allocation93_spill] sm:$0xff] %v5543_v63 }
 0x108   : > { %9866 = vst [vmem:[#allocation102_spill] sm:$0xff] %v5570_v51 }
 0x10a   : > { %780 = vperm.xlu2 %4873, %v5546_v49   ;;  %775 = vperm.xlu1 %4872, %v5549_v45   ;;  %v5582_v49 = vld [vmem:[%s5063_s18 + $0x328] sm:$0xff]  ;;  %v5585_v45 = vld [vmem:[%s5063_s18 + $0x320] sm:$0xff] }
 0x10b   : > { %770 = vperm.xlu0 %4871, %v5552_v41   ;;  %9870 = vst [vmem:[#allocation106_spill] sm:$0xff] %v5582_v49  ;;  %v5588_v41 = vld [vmem:[%s5063_s18 + $0x318] sm:$0xff] }
 0x10c   : > { %v5557_v61 = vpop.permute.xlu2 %615  ;;  %v5559_v62 = vpop.permute.xlu1 %565  ;;  %9871 = vst [vmem:[#allocation107_spill] sm:$0xff] %v5585_v45 }
 0x10d   : > { %9861 = vst [vmem:[#allocation97_spill] sm:$0xff] %v5557_v61  ;;  %v5561_v63 = vpop.permute.xlu0 %560 }
 0x10e   : > { %9862 = vst [vmem:[#allocation98_spill] sm:$0xff] %v5559_v62 }
 0x10f   : > { %9863 = vst [vmem:[#allocation99_spill] sm:$0xff] %v5561_v63 }
 0x110   : > { %9872 = vst [vmem:[#allocation108_spill] sm:$0xff] %v5588_v41 }
 0x112   : > { %795 = vperm.xlu2 %4873, %v5564_v37   ;;  %790 = vperm.xlu1 %4872, %v5567_v55   ;;  %v5600_v37 = vld [vmem:[%s5063_s18 + $0x340] sm:$0xff]  ;;  %v5603_v55 = vld [vmem:[%s5063_s18 + $0x338] sm:$0xff] }
 0x113   : > { %785 = vperm.xlu0 %4871, %v5570_v51   ;;  %9876 = vst [vmem:[#allocation112_spill] sm:$0xff] %v5600_v37  ;;  %v5606_v51 = vld [vmem:[%s5063_s18 + $0x330] sm:$0xff] }
 0x114   : > { %v5575_v61 = vpop.permute.xlu2 %630  ;;  %v5577_v62 = vpop.permute.xlu1 %580  ;;  %9877 = vst [vmem:[#allocation113_spill] sm:$0xff] %v5603_v55 }
 0x115   : > { %9867 = vst [vmem:[#allocation103_spill] sm:$0xff] %v5575_v61  ;;  %v5579_v63 = vpop.permute.xlu0 %575 }
 0x116   : > { %9868 = vst [vmem:[#allocation104_spill] sm:$0xff] %v5577_v62 }
 0x117   : > { %9869 = vst [vmem:[#allocation105_spill] sm:$0xff] %v5579_v63 }
 0x118   : > { %9878 = vst [vmem:[#allocation114_spill] sm:$0xff] %v5606_v51 }
 0x11a   : > { %810 = vperm.xlu2 %4873, %v5582_v49   ;;  %805 = vperm.xlu1 %4872, %v5585_v45   ;;  %v5618_v49 = vld [vmem:[%s5063_s18 + $0x358] sm:$0xff]  ;;  %v5621_v45 = vld [vmem:[%s5063_s18 + $0x350] sm:$0xff] }
 0x11b   : > { %800 = vperm.xlu0 %4871, %v5588_v41   ;;  %9882 = vst [vmem:[#allocation118_spill] sm:$0xff] %v5618_v49  ;;  %v5624_v41 = vld [vmem:[%s5063_s18 + $0x348] sm:$0xff] }
 0x11c   : > { %v5593_v61 = vpop.permute.xlu2 %645  ;;  %v5595_v62 = vpop.permute.xlu1 %595  ;;  %9883 = vst [vmem:[#allocation119_spill] sm:$0xff] %v5621_v45 }
 0x11d   : > { %9873 = vst [vmem:[#allocation109_spill] sm:$0xff] %v5593_v61  ;;  %v5597_v63 = vpop.permute.xlu0 %590 }
 0x11e   : > { %9874 = vst [vmem:[#allocation110_spill] sm:$0xff] %v5595_v62 }
 0x11f   : > { %9875 = vst [vmem:[#allocation111_spill] sm:$0xff] %v5597_v63 }
 0x120   : > { %9884 = vst [vmem:[#allocation120_spill] sm:$0xff] %v5624_v41 }
 0x122   : > { %825 = vperm.xlu2 %4873, %v5600_v37   ;;  %820 = vperm.xlu1 %4872, %v5603_v55   ;;  %v5636_v37 = vld [vmem:[%s5063_s18 + $0x370] sm:$0xff]  ;;  %v5639_v55 = vld [vmem:[%s5063_s18 + $0x368] sm:$0xff] }
 0x123   : > { %815 = vperm.xlu0 %4871, %v5606_v51   ;;  %9888 = vst [vmem:[#allocation124_spill] sm:$0xff] %v5636_v37  ;;  %v5642_v51 = vld [vmem:[%s5063_s18 + $0x360] sm:$0xff] }
 0x124   : > { %v5611_v61 = vpop.permute.xlu2 %660  ;;  %v5613_v62 = vpop.permute.xlu1 %610  ;;  %9889 = vst [vmem:[#allocation125_spill] sm:$0xff] %v5639_v55 }
 0x125   : > { %9879 = vst [vmem:[#allocation115_spill] sm:$0xff] %v5611_v61  ;;  %v5615_v63 = vpop.permute.xlu0 %605 }
 0x126   : > { %9880 = vst [vmem:[#allocation116_spill] sm:$0xff] %v5613_v62 }
 0x127   : > { %9881 = vst [vmem:[#allocation117_spill] sm:$0xff] %v5615_v63 }
 0x128   : > { %9890 = vst [vmem:[#allocation126_spill] sm:$0xff] %v5642_v51 }
 0x12a   : > { %840 = vperm.xlu2 %4873, %v5618_v49   ;;  %835 = vperm.xlu1 %4872, %v5621_v45   ;;  %v5654_v49 = vld [vmem:[%s5063_s18 + $0x388] sm:$0xff]  ;;  %v5657_v45 = vld [vmem:[%s5063_s18 + $0x380] sm:$0xff] }
 0x12b   : > { %830 = vperm.xlu0 %4871, %v5624_v41   ;;  %9894 = vst [vmem:[#allocation130_spill] sm:$0xff] %v5654_v49  ;;  %v5660_v41 = vld [vmem:[%s5063_s18 + $0x378] sm:$0xff] }
 0x12c   : > { %v5629_v61 = vpop.permute.xlu2 %675  ;;  %v5631_v62 = vpop.permute.xlu1 %625  ;;  %9895 = vst [vmem:[#allocation131_spill] sm:$0xff] %v5657_v45 }
 0x12d   : > { %9885 = vst [vmem:[#allocation121_spill] sm:$0xff] %v5629_v61  ;;  %v5633_v63 = vpop.permute.xlu0 %620 }
 0x12e   : > { %9886 = vst [vmem:[#allocation122_spill] sm:$0xff] %v5631_v62 }
 0x12f   : > { %9887 = vst [vmem:[#allocation123_spill] sm:$0xff] %v5633_v63 }
 0x130   : > { %9896 = vst [vmem:[#allocation132_spill] sm:$0xff] %v5660_v41 }
 0x132   : > { %855 = vperm.xlu2 %4873, %v5636_v37   ;;  %850 = vperm.xlu1 %4872, %v5639_v55   ;;  %v5672_v37 = vld [vmem:[%s5063_s18 + $0x3a0] sm:$0xff]  ;;  %v5675_v55 = vld [vmem:[%s5063_s18 + $0x398] sm:$0xff] }
 0x133   : > { %845 = vperm.xlu0 %4871, %v5642_v51   ;;  %9900 = vst [vmem:[#allocation136_spill] sm:$0xff] %v5672_v37  ;;  %v5678_v51 = vld [vmem:[%s5063_s18 + $0x390] sm:$0xff] }
 0x134   : > { %v5647_v61 = vpop.permute.xlu2 %690  ;;  %v5649_v62 = vpop.permute.xlu1 %640  ;;  %9901 = vst [vmem:[#allocation137_spill] sm:$0xff] %v5675_v55 }
 0x135   : > { %9891 = vst [vmem:[#allocation127_spill] sm:$0xff] %v5647_v61  ;;  %v5651_v63 = vpop.permute.xlu0 %635 }
 0x136   : > { %9892 = vst [vmem:[#allocation128_spill] sm:$0xff] %v5649_v62 }
 0x137   : > { %9893 = vst [vmem:[#allocation129_spill] sm:$0xff] %v5651_v63 }
 0x138   : > { %9902 = vst [vmem:[#allocation138_spill] sm:$0xff] %v5678_v51 }
 0x13a   : > { %870 = vperm.xlu2 %4873, %v5654_v49   ;;  %865 = vperm.xlu1 %4872, %v5657_v45   ;;  %v5690_v49 = vld [vmem:[%s5063_s18 + $0x3b8] sm:$0xff]  ;;  %v5693_v45 = vld [vmem:[%s5063_s18 + $0x3b0] sm:$0xff] }
 0x13b   : > { %860 = vperm.xlu0 %4871, %v5660_v41   ;;  %9906 = vst [vmem:[#allocation142_spill] sm:$0xff] %v5690_v49  ;;  %v5696_v41 = vld [vmem:[%s5063_s18 + $0x3a8] sm:$0xff] }
 0x13c   : > { %v5665_v61 = vpop.permute.xlu2 %705  ;;  %v5667_v62 = vpop.permute.xlu1 %655  ;;  %9907 = vst [vmem:[#allocation143_spill] sm:$0xff] %v5693_v45 }
 0x13d   : > { %9897 = vst [vmem:[#allocation133_spill] sm:$0xff] %v5665_v61  ;;  %v5669_v63 = vpop.permute.xlu0 %650 }
 0x13e   : > { %9898 = vst [vmem:[#allocation134_spill] sm:$0xff] %v5667_v62 }
 0x13f   : > { %9899 = vst [vmem:[#allocation135_spill] sm:$0xff] %v5669_v63 }
 0x140   : > { %9908 = vst [vmem:[#allocation144_spill] sm:$0xff] %v5696_v41 }
 0x142   : > { %885 = vperm.xlu2 %4873, %v5672_v37   ;;  %880 = vperm.xlu1 %4872, %v5675_v55   ;;  %v5708_v37 = vld [vmem:[%s5063_s18 + $0x3d0] sm:$0xff]  ;;  %v5711_v55 = vld [vmem:[%s5063_s18 + $0x3c8] sm:$0xff] }
 0x143   : > { %875 = vperm.xlu0 %4871, %v5678_v51   ;;  %9912 = vst [vmem:[#allocation148_spill] sm:$0xff] %v5708_v37  ;;  %v5714_v51 = vld [vmem:[%s5063_s18 + $0x3c0] sm:$0xff] }
 0x144   : > { %v5683_v61 = vpop.permute.xlu2 %720  ;;  %v5685_v62 = vpop.permute.xlu1 %670  ;;  %9913 = vst [vmem:[#allocation149_spill] sm:$0xff] %v5711_v55 }
 0x145   : > { %9903 = vst [vmem:[#allocation139_spill] sm:$0xff] %v5683_v61  ;;  %v5687_v63 = vpop.permute.xlu0 %665 }
 0x146   : > { %9904 = vst [vmem:[#allocation140_spill] sm:$0xff] %v5685_v62 }
 0x147   : > { %9905 = vst [vmem:[#allocation141_spill] sm:$0xff] %v5687_v63 }
 0x148   : > { %9914 = vst [vmem:[#allocation150_spill] sm:$0xff] %v5714_v51 }
 0x14a   : > { %900 = vperm.xlu2 %4873, %v5690_v49   ;;  %895 = vperm.xlu1 %4872, %v5693_v45   ;;  %v5729_v45 = vld [vmem:[%s5063_s18 + $0x3e0] sm:$0xff] }
 0x14b   : > { %890 = vperm.xlu0 %4871, %v5696_v41   ;;  %9919 = vst [vmem:[#allocation155_spill] sm:$0xff] %v5729_v45  ;;  %v5732_v41 = vld [vmem:[%s5063_s18 + $0x3d8] sm:$0xff] }
 0x14c   : > { %v5701_v61 = vpop.permute.xlu2 %735  ;;  %v5703_v62 = vpop.permute.xlu1 %685 }
 0x14d   : > { %9909 = vst [vmem:[#allocation145_spill] sm:$0xff] %v5701_v61  ;;  %v5705_v63 = vpop.permute.xlu0 %680 }
 0x14e   : > { %9910 = vst [vmem:[#allocation146_spill] sm:$0xff] %v5703_v62 }
 0x14f   : > { %9911 = vst [vmem:[#allocation147_spill] sm:$0xff] %v5705_v63  ;;  %v5726_v63 = vld [vmem:[%s5063_s18 + $0x3e8] sm:$0xff] }
 0x150   : > { %9918 = vst [vmem:[#allocation154_spill] sm:$0xff] %v5726_v63 }
 0x152   : > { %915 = vperm.xlu2 %4873, %v5708_v37   ;;  %910 = vperm.xlu1 %4872, %v5711_v55  }
 0x153   : > { %905 = vperm.xlu0 %4871, %v5714_v51   ;;  %v5025_v51 = vmov 1  }
 0x154   : > { %v5719_v49 = vpop.permute.xlu2 %750  ;;  %v5721_v61 = vpop.permute.xlu1 %700 }
 0x155   : > { %9915 = vst [vmem:[#allocation151_spill] sm:$0xff] %v5719_v49  ;;  %v5723_v62 = vpop.permute.xlu0 %695 }
 0x156   : > { %9916 = vst [vmem:[#allocation152_spill] sm:$0xff] %v5721_v61  ;;  %v5744_v61 = vld [vmem:[%s5063_s18 + $0x3f8] sm:$0xff] }
 0x157   : > { %9917 = vst [vmem:[#allocation153_spill] sm:$0xff] %v5723_v62  ;;  %v5747_v62 = vld [vmem:[%s5063_s18 + $0x3f0] sm:$0xff] }
 0x158   : > { %9923 = vst [vmem:[#allocation159_spill] sm:$0xff] %v5744_v61 }
 0x15a   : > { %930 = vperm.xlu2 %4873, %v5726_v63   ;;  %925 = vperm.xlu1 %4872, %v5729_v45  }
 0x15b   : > { %920 = vperm.xlu0 %4871, %v5732_v41  }
 0x15c   : > { %v5737_v37 = vpop.permute.xlu2 %765  ;;  %v5739_v55 = vpop.permute.xlu1 %715 }
 0x15d   : > { %9920 = vst [vmem:[#allocation156_spill] sm:$0xff] %v5737_v37  ;;  %v5741_v49 = vpop.permute.xlu0 %710 }
 0x15e   : > { %9921 = vst [vmem:[#allocation157_spill] sm:$0xff] %v5739_v55 }
 0x15f   : > { %9922 = vst [vmem:[#allocation158_spill] sm:$0xff] %v5741_v49 }
 0x162   : > { %4874 = vset.pattern.permute.xlu2 %v5025_v51  ;;  %940 = vperm.xlu1 %4872, %v5744_v61  }
 0x163   : > { %935 = vperm.xlu0 %4871, %v5747_v62   ;;  %1206 = vperm.xlu2 %4874, %v5072_v3  }
 0x164   : > { %v5752_v63 = vpop.permute.xlu2 %780  ;;  %v5754_v45 = vpop.permute.xlu1 %730 }
 0x165   : > { %v5756_v37 = vpop.permute.xlu0 %725 }
 0x16a   : > { %4876 = vset.pattern.permute.xlu1 %v5025_v51 }
 0x16b   : > { %4875 = vset.pattern.permute.xlu0 %v5025_v51  ;;  %1214 = vperm.xlu1 %4876, %v5069_v2  }
 0x16c   : > { %1218 = vperm.xlu2 %4874, %v5081_v5   ;;  %1210 = vperm.xlu0 %4875, %v5084_v6   ;;  %v5761_v49 = vpop.permute.xlu2 %795  ;;  %v5763_v55 = vpop.permute.xlu1 %745 }
 0x16d   : > { %v5765_v61 = vpop.permute.xlu0 %740 }
 0x173   : > { %1222 = vperm.xlu1 %4876, %v5066_v1  }
 0x174   : > { %1226 = vperm.xlu2 %4874, %v5078_v4   ;;  %1230 = vperm.xlu0 %4875, %v5096_v9   ;;  %v5770_v3 = vpop.permute.xlu2 %810  ;;  %v5772_v51 = vpop.permute.xlu1 %760 }
 0x175   : > { %v5774_v2 = vpop.permute.xlu0 %755 }
 0x17b   : > { %1234 = vperm.xlu1 %4876, %v5093_v8  }
 0x17c   : > { %1238 = vperm.xlu2 %4874, %v5090_v7   ;;  %1242 = vperm.xlu0 %4875, %v5108_v12   ;;  %v5779_v5 = vpop.permute.xlu2 %825  ;;  %v5781_v6 = vpop.permute.xlu1 %775 }
 0x17d   : > { %v5783_v1 = vpop.permute.xlu0 %770 }
 0x183   : > { %1246 = vperm.xlu1 %4876, %v5105_v11  }
 0x184   : > { %1250 = vperm.xlu2 %4874, %v5102_v10   ;;  %1254 = vperm.xlu0 %4875, %v5120_v15   ;;  %v5788_v4 = vpop.permute.xlu2 %840  ;;  %v5790_v9 = vpop.permute.xlu1 %790 }
 0x185   : > { %v5792_v8 = vpop.permute.xlu0 %785 }
 0x18b   : > { %1258 = vperm.xlu1 %4876, %v5117_v14  }
 0x18c   : > { %1262 = vperm.xlu2 %4874, %v5114_v13   ;;  %1266 = vperm.xlu0 %4875, %v5132_v18   ;;  %v5797_v7 = vpop.permute.xlu2 %855  ;;  %v5799_v12 = vpop.permute.xlu1 %805 }
 0x18d   : > { %v5801_v11 = vpop.permute.xlu0 %800 }
 0x193   : > { %1270 = vperm.xlu1 %4876, %v5129_v17  }
 0x194   : > { %1274 = vperm.xlu2 %4874, %v5126_v16   ;;  %1278 = vperm.xlu0 %4875, %v5144_v21   ;;  %v5806_v10 = vpop.permute.xlu2 %870  ;;  %v5808_v15 = vpop.permute.xlu1 %820 }
 0x195   : > { %v5810_v14 = vpop.permute.xlu0 %815 }
 0x19b   : > { %1282 = vperm.xlu1 %4876, %v5141_v20  }
 0x19c   : > { %1286 = vperm.xlu2 %4874, %v5138_v19   ;;  %1290 = vperm.xlu0 %4875, %v5156_v24   ;;  %v5815_v13 = vpop.permute.xlu2 %885  ;;  %v5817_v18 = vpop.permute.xlu1 %835 }
 0x19d   : > { %v5819_v17 = vpop.permute.xlu0 %830 }
 0x1a3   : > { %1294 = vperm.xlu1 %4876, %v5153_v23  }
 0x1a4   : > { %1298 = vperm.xlu2 %4874, %v5150_v22   ;;  %1302 = vperm.xlu0 %4875, %v5168_v27   ;;  %v5824_v16 = vpop.permute.xlu2 %900  ;;  %v5826_v21 = vpop.permute.xlu1 %850 }
 0x1a5   : > { %v5828_v20 = vpop.permute.xlu0 %845 }
 0x1ab   : > { %1306 = vperm.xlu1 %4876, %v5165_v26  }
 0x1ac   : > { %1310 = vperm.xlu2 %4874, %v5162_v25   ;;  %1314 = vperm.xlu0 %4875, %v5180_v30   ;;  %v5833_v19 = vpop.permute.xlu2 %915  ;;  %v5835_v24 = vpop.permute.xlu1 %865 }
 0x1ad   : > { %v5837_v23 = vpop.permute.xlu0 %860 }
 0x1b3   : > { %1318 = vperm.xlu1 %4876, %v5177_v29  }
 0x1b4   : > { %1322 = vperm.xlu2 %4874, %v5174_v28   ;;  %1326 = vperm.xlu0 %4875, %v5192_v33   ;;  %v5842_v22 = vpop.permute.xlu2 %930  ;;  %v5844_v27 = vpop.permute.xlu1 %880 }
 0x1b5   : > { %v5846_v26 = vpop.permute.xlu0 %875 }
 0x1bb   : > { %1330 = vperm.xlu1 %4876, %v5189_v32  }
 0x1bc   : > { %1334 = vperm.xlu2 %4874, %v5186_v31   ;;  %1338 = vperm.xlu0 %4875, %v5204_v36   ;;  %v5851_v25 = vpop.permute.xlu1 %895 }
 0x1bd   : > { %v5853_v30 = vpop.permute.xlu0 %890  ;;  %v5855_v29 = vpop.permute.xlu2 %1206 }
 0x1c3   : > { %1342 = vperm.xlu1 %4876, %v5201_v35  }
 0x1c4   : > { %1346 = vperm.xlu2 %4874, %v5198_v34   ;;  %1350 = vperm.xlu0 %4875, %v5218_v40   ;;  %v5860_v28 = vpop.permute.xlu1 %910 }
 0x1c5   : > { %9924 = vst [vmem:[#allocation160_spill] sm:$0xff] %v5860_v28  ;;  %v5862_v33 = vpop.permute.xlu0 %905 }
 0x1c6   : > { %9925 = vst [vmem:[#allocation161_spill] sm:$0xff] %v5862_v33  ;;  %v5864_v32 = vpop.permute.xlu2 %1218 }
 0x1c7   : > { %9926 = vst [vmem:[#allocation162_spill] sm:$0xff] %v5864_v32  ;;  %v10094_v32 = vld [vmem:[#allocation148_spill] sm:$0xff] }
 0x1cb   : > { %1354 = vperm.xlu1 %4876, %v5215_v39  }
 0x1cc   : > { %1358 = vperm.xlu2 %4874, %v5212_v38   ;;  %1362 = vperm.xlu0 %4875, %v5232_v44   ;;  %v5869_v31 = vpop.permute.xlu1 %925 }
 0x1cd   : > { %9927 = vst [vmem:[#allocation163_spill] sm:$0xff] %v5869_v31  ;;  %v5871_v36 = vpop.permute.xlu0 %920  ;;  %v10093_v31 = vld [vmem:[#allocation16_spill] sm:$0xff] }
 0x1ce   : > { %9928 = vst [vmem:[#allocation164_spill] sm:$0xff] %v5871_v36  ;;  %v5873_v35 = vpop.permute.xlu2 %1226  ;;  %v10092_v36 = vld [vmem:[#allocation15_spill] sm:$0xff] }
 0x1cf   : > { %9929 = vst [vmem:[#allocation165_spill] sm:$0xff] %v5873_v35  ;;  %v10090_v35 = vld [vmem:[#allocation149_spill] sm:$0xff] }
 0x1d3   : > { %1366 = vperm.xlu1 %4876, %v5229_v43  }
 0x1d4   : > { %1370 = vperm.xlu2 %4874, %v5226_v42   ;;  %1374 = vperm.xlu0 %4875, %v5246_v48   ;;  %v5878_v34 = vpop.permute.xlu1 %940 }
 0x1d5   : > { %9930 = vst [vmem:[#allocation166_spill] sm:$0xff] %v5878_v34  ;;  %v5880_v40 = vpop.permute.xlu0 %935  ;;  %v10089_v34 = vld [vmem:[#allocation13_spill] sm:$0xff] }
 0x1d6   : > { %9931 = vst [vmem:[#allocation167_spill] sm:$0xff] %v5880_v40  ;;  %v5882_v39 = vpop.permute.xlu2 %1238  ;;  %v10088_v40 = vld [vmem:[#allocation12_spill] sm:$0xff] }
 0x1d7   : > { %9932 = vst [vmem:[#allocation168_spill] sm:$0xff] %v5882_v39  ;;  %v10087_v39 = vld [vmem:[#allocation11_spill] sm:$0xff] }
 0x1db   : > { %1378 = vperm.xlu1 %4876, %v5243_v47  }
 0x1dc   : > { %1382 = vperm.xlu2 %4874, %v5240_v46   ;;  %1386 = vperm.xlu0 %4875, %v5264_v54  }
 0x1dd   : > { %v5887_v38 = vpop.permute.xlu1 %1214 }
 0x1de   : > { %9933 = vst [vmem:[#allocation169_spill] sm:$0xff] %v5887_v38  ;;  %v5889_v44 = vpop.permute.xlu2 %1250  ;;  %v5891_v43 = vpop.permute.xlu0 %1210  ;;  %v10086_v38 = vld [vmem:[#allocation10_spill] sm:$0xff] }
 0x1df   : > { %9934 = vst [vmem:[#allocation170_spill] sm:$0xff] %v5889_v44 }
 0x1e0   : > { %9935 = vst [vmem:[#allocation171_spill] sm:$0xff] %v5891_v43  ;;  %v10084_v43 = vld [vmem:[#allocation8_spill] sm:$0xff] }
 0x1e3   : > { %1390 = vperm.xlu1 %4876, %v5261_v53  }
 0x1e4   : > { %1394 = vperm.xlu2 %4874, %v5258_v52   ;;  %1398 = vperm.xlu0 %4875, %v5282_v60  }
 0x1e5   : > { %v5896_v42 = vpop.permute.xlu1 %1222 }
 0x1e6   : > { %9936 = vst [vmem:[#allocation172_spill] sm:$0xff] %v5896_v42  ;;  %v5898_v48 = vpop.permute.xlu2 %1262  ;;  %v5900_v47 = vpop.permute.xlu0 %1230 }
 0x1e7   : > { %9937 = vst [vmem:[#allocation173_spill] sm:$0xff] %v5898_v48  ;;  %v10083_v48 = vld [vmem:[#allocation7_spill] sm:$0xff] }
 0x1e8   : > { %9938 = vst [vmem:[#allocation174_spill] sm:$0xff] %v5900_v47  ;;  %v10081_v47 = vld [vmem:[#allocation5_spill] sm:$0xff] }
 0x1eb   : > { %1402 = vperm.xlu1 %4876, %v5279_v59  }
 0x1ec   : > { %1406 = vperm.xlu2 %4874, %v5276_v58   ;;  %1410 = vperm.xlu0 %4875, %v5300_v56   ;;  %v9945_v58 = vld [vmem:[#allocation18_spill] sm:$0xff]  ;;  %v9946_v56 = vld [vmem:[#allocation17_spill] sm:$0xff] }
 0x1ed   : > { %v5905_v46 = vpop.permute.xlu1 %1234 }
 0x1ee   : > { %9939 = vst [vmem:[#allocation175_spill] sm:$0xff] %v5905_v46  ;;  %v5907_v54 = vpop.permute.xlu2 %1274  ;;  %v5909_v53 = vpop.permute.xlu0 %1242  ;;  %v9947_v46 = vld [vmem:[#allocation24_spill] sm:$0xff] }
 0x1ef   : > { %9940 = vst [vmem:[#allocation176_spill] sm:$0xff] %v5907_v54 }
 0x1f0   : > { %9941 = vst [vmem:[#allocation177_spill] sm:$0xff] %v5909_v53 }
 0x1f3   : > { %1414 = vperm.xlu1 %4876, %v5297_v57  }
 0x1f4   : > { %1418 = vperm.xlu2 %4874, %v5294_v0   ;;  %1422 = vperm.xlu0 %4875, %v5318_v50   ;;  %v9951_v0 = vld [vmem:[#allocation23_spill] sm:$0xff]  ;;  %v9952_v50 = vld [vmem:[#allocation22_spill] sm:$0xff] }
 0x1f5   : > { %v5914_v52 = vpop.permute.xlu1 %1246 }
 0x1f6   : > { %9942 = vst [vmem:[#allocation178_spill] sm:$0xff] %v5914_v52  ;;  %v5916_v60 = vpop.permute.xlu2 %1286  ;;  %v5918_v59 = vpop.permute.xlu0 %1254  ;;  %v9953_v52 = vld [vmem:[#allocation30_spill] sm:$0xff] }
 0x1f7   : > { %9943 = vst [vmem:[#allocation179_spill] sm:$0xff] %v5916_v60 }
 0x1f8   : > { %9944 = vst [vmem:[#allocation180_spill] sm:$0xff] %v5918_v59 }
 0x1fb   : > { %1426 = vperm.xlu1 %4876, %v9945_v58  }
 0x1fc   : > { %1430 = vperm.xlu2 %4874, %v9946_v56   ;;  %1434 = vperm.xlu0 %4875, %v9947_v46   ;;  %v9957_v56 = vld [vmem:[#allocation29_spill] sm:$0xff]  ;;  %v9958_v46 = vld [vmem:[#allocation28_spill] sm:$0xff] }
 0x1fd   : > { %v5923_v54 = vpop.permute.xlu1 %1258 }
 0x1fe   : > { %9948 = vst [vmem:[#allocation18_spill] sm:$0xff] %v5923_v54  ;;  %v5925_v53 = vpop.permute.xlu2 %1298  ;;  %v5927_v57 = vpop.permute.xlu0 %1266  ;;  %v9959_v54 = vld [vmem:[#allocation36_spill] sm:$0xff] }
 0x1ff   : > { %9949 = vst [vmem:[#allocation17_spill] sm:$0xff] %v5925_v53 }
 0x200   : > { %9950 = vst [vmem:[#allocation24_spill] sm:$0xff] %v5927_v57 }
 0x203   : > { %1438 = vperm.xlu1 %4876, %v9951_v0  }
 0x204   : > { %1442 = vperm.xlu2 %4874, %v9952_v50   ;;  %1446 = vperm.xlu0 %4875, %v9953_v52   ;;  %v9963_v50 = vld [vmem:[#allocation35_spill] sm:$0xff]  ;;  %v9964_v52 = vld [vmem:[#allocation34_spill] sm:$0xff] }
 0x205   : > { %v5932_v60 = vpop.permute.xlu1 %1270 }
 0x206   : > { %9954 = vst [vmem:[#allocation23_spill] sm:$0xff] %v5932_v60  ;;  %v5934_v59 = vpop.permute.xlu2 %1310  ;;  %v5936_v58 = vpop.permute.xlu0 %1278  ;;  %v9965_v60 = vld [vmem:[#allocation42_spill] sm:$0xff] }
 0x207   : > { %9955 = vst [vmem:[#allocation22_spill] sm:$0xff] %v5934_v59 }
 0x208   : > { %9956 = vst [vmem:[#allocation30_spill] sm:$0xff] %v5936_v58 }
 0x20b   : > { %1450 = vperm.xlu1 %4876, %v9957_v56  }
 0x20c   : > { %1454 = vperm.xlu2 %4874, %v9958_v46   ;;  %1458 = vperm.xlu0 %4875, %v9959_v54   ;;  %v9969_v46 = vld [vmem:[#allocation41_spill] sm:$0xff]  ;;  %v9970_v54 = vld [vmem:[#allocation40_spill] sm:$0xff] }
 0x20d   : > { %v5941_v53 = vpop.permute.xlu1 %1282 }
 0x20e   : > { %9960 = vst [vmem:[#allocation29_spill] sm:$0xff] %v5941_v53  ;;  %v5943_v57 = vpop.permute.xlu2 %1322  ;;  %v5945_v0 = vpop.permute.xlu0 %1290  ;;  %v9971_v53 = vld [vmem:[#allocation48_spill] sm:$0xff] }
 0x20f   : > { %9961 = vst [vmem:[#allocation28_spill] sm:$0xff] %v5943_v57 }
 0x210   : > { %9962 = vst [vmem:[#allocation36_spill] sm:$0xff] %v5945_v0 }
 0x213   : > { %1462 = vperm.xlu1 %4876, %v9963_v50  }
 0x214   : > { %1466 = vperm.xlu2 %4874, %v9964_v52   ;;  %1470 = vperm.xlu0 %4875, %v9965_v60   ;;  %v9975_v52 = vld [vmem:[#allocation47_spill] sm:$0xff]  ;;  %v9976_v60 = vld [vmem:[#allocation46_spill] sm:$0xff] }
 0x215   : > { %v5950_v59 = vpop.permute.xlu1 %1294 }
 0x216   : > { %9966 = vst [vmem:[#allocation35_spill] sm:$0xff] %v5950_v59  ;;  %v5952_v58 = vpop.permute.xlu2 %1334  ;;  %v5954_v56 = vpop.permute.xlu0 %1302  ;;  %v9977_v59 = vld [vmem:[#allocation54_spill] sm:$0xff] }
 0x217   : > { %9967 = vst [vmem:[#allocation34_spill] sm:$0xff] %v5952_v58 }
 0x218   : > { %9968 = vst [vmem:[#allocation42_spill] sm:$0xff] %v5954_v56 }
 0x21b   : > { %1474 = vperm.xlu1 %4876, %v9969_v46  }
 0x21c   : > { %1478 = vperm.xlu2 %4874, %v9970_v54   ;;  %1482 = vperm.xlu0 %4875, %v9971_v53   ;;  %v9981_v54 = vld [vmem:[#allocation53_spill] sm:$0xff]  ;;  %v9982_v53 = vld [vmem:[#allocation52_spill] sm:$0xff] }
 0x21d   : > { %v5959_v57 = vpop.permute.xlu1 %1306 }
 0x21e   : > { %9972 = vst [vmem:[#allocation41_spill] sm:$0xff] %v5959_v57  ;;  %v5961_v0 = vpop.permute.xlu2 %1346  ;;  %v5963_v50 = vpop.permute.xlu0 %1314  ;;  %v9983_v57 = vld [vmem:[#allocation60_spill] sm:$0xff] }
 0x21f   : > { %9973 = vst [vmem:[#allocation40_spill] sm:$0xff] %v5961_v0 }
 0x220   : > { %9974 = vst [vmem:[#allocation48_spill] sm:$0xff] %v5963_v50 }
 0x223   : > { %1486 = vperm.xlu1 %4876, %v9975_v52  }
 0x224   : > { %1490 = vperm.xlu2 %4874, %v9976_v60   ;;  %1494 = vperm.xlu0 %4875, %v9977_v59   ;;  %v9987_v60 = vld [vmem:[#allocation59_spill] sm:$0xff]  ;;  %v9988_v59 = vld [vmem:[#allocation58_spill] sm:$0xff] }
 0x225   : > { %v5968_v58 = vpop.permute.xlu1 %1318 }
 0x226   : > { %9978 = vst [vmem:[#allocation47_spill] sm:$0xff] %v5968_v58  ;;  %v5970_v56 = vpop.permute.xlu2 %1358  ;;  %v5972_v46 = vpop.permute.xlu0 %1326  ;;  %v9989_v58 = vld [vmem:[#allocation66_spill] sm:$0xff] }
 0x227   : > { %9979 = vst [vmem:[#allocation46_spill] sm:$0xff] %v5970_v56 }
 0x228   : > { %9980 = vst [vmem:[#allocation54_spill] sm:$0xff] %v5972_v46 }
 0x22b   : > { %1498 = vperm.xlu1 %4876, %v9981_v54  }
 0x22c   : > { %1502 = vperm.xlu2 %4874, %v9982_v53   ;;  %1506 = vperm.xlu0 %4875, %v9983_v57   ;;  %v9993_v53 = vld [vmem:[#allocation65_spill] sm:$0xff]  ;;  %v9994_v57 = vld [vmem:[#allocation64_spill] sm:$0xff] }
 0x22d   : > { %v5977_v0 = vpop.permute.xlu1 %1330 }
 0x22e   : > { %9984 = vst [vmem:[#allocation53_spill] sm:$0xff] %v5977_v0  ;;  %v5979_v50 = vpop.permute.xlu2 %1370  ;;  %v5981_v52 = vpop.permute.xlu0 %1338  ;;  %v9995_v0 = vld [vmem:[#allocation72_spill] sm:$0xff] }
 0x22f   : > { %9985 = vst [vmem:[#allocation52_spill] sm:$0xff] %v5979_v50 }
 0x230   : > { %9986 = vst [vmem:[#allocation60_spill] sm:$0xff] %v5981_v52 }
 0x233   : > { %1510 = vperm.xlu1 %4876, %v9987_v60  }
 0x234   : > { %1514 = vperm.xlu2 %4874, %v9988_v59   ;;  %1518 = vperm.xlu0 %4875, %v9989_v58   ;;  %v9999_v59 = vld [vmem:[#allocation71_spill] sm:$0xff]  ;;  %v10000_v58 = vld [vmem:[#allocation70_spill] sm:$0xff] }
 0x235   : > { %v5986_v56 = vpop.permute.xlu1 %1342 }
 0x236   : > { %9990 = vst [vmem:[#allocation59_spill] sm:$0xff] %v5986_v56  ;;  %v5988_v46 = vpop.permute.xlu2 %1382  ;;  %v5990_v54 = vpop.permute.xlu0 %1350  ;;  %v10001_v56 = vld [vmem:[#allocation78_spill] sm:$0xff] }
 0x237   : > { %9991 = vst [vmem:[#allocation58_spill] sm:$0xff] %v5988_v46 }
 0x238   : > { %9992 = vst [vmem:[#allocation66_spill] sm:$0xff] %v5990_v54 }
 0x23b   : > { %1522 = vperm.xlu1 %4876, %v9993_v53  }
 0x23c   : > { %1526 = vperm.xlu2 %4874, %v9994_v57   ;;  %1530 = vperm.xlu0 %4875, %v9995_v0   ;;  %v10005_v57 = vld [vmem:[#allocation77_spill] sm:$0xff]  ;;  %v10006_v0 = vld [vmem:[#allocation76_spill] sm:$0xff] }
 0x23d   : > { %v5995_v50 = vpop.permute.xlu1 %1354 }
 0x23e   : > { %9996 = vst [vmem:[#allocation65_spill] sm:$0xff] %v5995_v50  ;;  %v5997_v52 = vpop.permute.xlu2 %1394  ;;  %v5999_v60 = vpop.permute.xlu0 %1362  ;;  %v10007_v50 = vld [vmem:[#allocation84_spill] sm:$0xff] }
 0x23f   : > { %9997 = vst [vmem:[#allocation64_spill] sm:$0xff] %v5997_v52 }
 0x240   : > { %9998 = vst [vmem:[#allocation72_spill] sm:$0xff] %v5999_v60 }
 0x243   : > { %1534 = vperm.xlu1 %4876, %v9999_v59  }
 0x244   : > { %1538 = vperm.xlu2 %4874, %v10000_v58   ;;  %1542 = vperm.xlu0 %4875, %v10001_v56   ;;  %v10011_v58 = vld [vmem:[#allocation83_spill] sm:$0xff]  ;;  %v10012_v56 = vld [vmem:[#allocation82_spill] sm:$0xff] }
 0x245   : > { %v6004_v46 = vpop.permute.xlu1 %1366 }
 0x246   : > { %10002 = vst [vmem:[#allocation71_spill] sm:$0xff] %v6004_v46  ;;  %v6006_v54 = vpop.permute.xlu2 %1406  ;;  %v6008_v53 = vpop.permute.xlu0 %1374  ;;  %v10013_v46 = vld [vmem:[#allocation90_spill] sm:$0xff] }
 0x247   : > { %10003 = vst [vmem:[#allocation70_spill] sm:$0xff] %v6006_v54 }
 0x248   : > { %10004 = vst [vmem:[#allocation78_spill] sm:$0xff] %v6008_v53 }
 0x24b   : > { %1546 = vperm.xlu1 %4876, %v10005_v57  }
 0x24c   : > { %1550 = vperm.xlu2 %4874, %v10006_v0   ;;  %1554 = vperm.xlu0 %4875, %v10007_v50   ;;  %v10017_v0 = vld [vmem:[#allocation89_spill] sm:$0xff]  ;;  %v10018_v50 = vld [vmem:[#allocation88_spill] sm:$0xff] }
 0x24d   : > { %v6013_v52 = vpop.permute.xlu1 %1378 }
 0x24e   : > { %10008 = vst [vmem:[#allocation77_spill] sm:$0xff] %v6013_v52  ;;  %v6015_v60 = vpop.permute.xlu2 %1418  ;;  %v6017_v59 = vpop.permute.xlu0 %1386  ;;  %v10019_v52 = vld [vmem:[#allocation96_spill] sm:$0xff] }
 0x24f   : > { %10009 = vst [vmem:[#allocation76_spill] sm:$0xff] %v6015_v60 }
 0x250   : > { %10010 = vst [vmem:[#allocation84_spill] sm:$0xff] %v6017_v59 }
 0x253   : > { %1558 = vperm.xlu1 %4876, %v10011_v58  }
 0x254   : > { %1562 = vperm.xlu2 %4874, %v10012_v56   ;;  %1566 = vperm.xlu0 %4875, %v10013_v46   ;;  %v10023_v56 = vld [vmem:[#allocation95_spill] sm:$0xff]  ;;  %v10024_v46 = vld [vmem:[#allocation94_spill] sm:$0xff] }
 0x255   : > { %v6022_v54 = vpop.permute.xlu1 %1390 }
 0x256   : > { %10014 = vst [vmem:[#allocation83_spill] sm:$0xff] %v6022_v54  ;;  %v6024_v53 = vpop.permute.xlu2 %1430  ;;  %v6026_v57 = vpop.permute.xlu0 %1398  ;;  %v10025_v54 = vld [vmem:[#allocation102_spill] sm:$0xff] }
 0x257   : > { %10015 = vst [vmem:[#allocation82_spill] sm:$0xff] %v6024_v53 }
 0x258   : > { %10016 = vst [vmem:[#allocation90_spill] sm:$0xff] %v6026_v57 }
 0x25b   : > { %1570 = vperm.xlu1 %4876, %v10017_v0  }
 0x25c   : > { %1574 = vperm.xlu2 %4874, %v10018_v50   ;;  %1578 = vperm.xlu0 %4875, %v10019_v52   ;;  %v10029_v50 = vld [vmem:[#allocation101_spill] sm:$0xff]  ;;  %v10030_v52 = vld [vmem:[#allocation100_spill] sm:$0xff] }
 0x25d   : > { %v6031_v60 = vpop.permute.xlu1 %1402 }
 0x25e   : > { %10020 = vst [vmem:[#allocation89_spill] sm:$0xff] %v6031_v60  ;;  %v6033_v59 = vpop.permute.xlu2 %1442  ;;  %v6035_v58 = vpop.permute.xlu0 %1410  ;;  %v10031_v60 = vld [vmem:[#allocation108_spill] sm:$0xff] }
 0x25f   : > { %10021 = vst [vmem:[#allocation88_spill] sm:$0xff] %v6033_v59 }
 0x260   : > { %10022 = vst [vmem:[#allocation96_spill] sm:$0xff] %v6035_v58 }
 0x263   : > { %1582 = vperm.xlu1 %4876, %v10023_v56  }
 0x264   : > { %1586 = vperm.xlu2 %4874, %v10024_v46   ;;  %1590 = vperm.xlu0 %4875, %v10025_v54   ;;  %v10035_v46 = vld [vmem:[#allocation107_spill] sm:$0xff]  ;;  %v10036_v54 = vld [vmem:[#allocation106_spill] sm:$0xff] }
 0x265   : > { %v6040_v53 = vpop.permute.xlu1 %1414 }
 0x266   : > { %10026 = vst [vmem:[#allocation95_spill] sm:$0xff] %v6040_v53  ;;  %v6042_v57 = vpop.permute.xlu2 %1454  ;;  %v6044_v0 = vpop.permute.xlu0 %1422  ;;  %v10037_v53 = vld [vmem:[#allocation114_spill] sm:$0xff] }
 0x267   : > { %10027 = vst [vmem:[#allocation94_spill] sm:$0xff] %v6042_v57 }
 0x268   : > { %10028 = vst [vmem:[#allocation102_spill] sm:$0xff] %v6044_v0 }
 0x26b   : > { %1594 = vperm.xlu1 %4876, %v10029_v50  }
 0x26c   : > { %1598 = vperm.xlu2 %4874, %v10030_v52   ;;  %1602 = vperm.xlu0 %4875, %v10031_v60   ;;  %v10041_v52 = vld [vmem:[#allocation113_spill] sm:$0xff]  ;;  %v10042_v60 = vld [vmem:[#allocation112_spill] sm:$0xff] }
 0x26d   : > { %v6049_v59 = vpop.permute.xlu1 %1426 }
 0x26e   : > { %10032 = vst [vmem:[#allocation101_spill] sm:$0xff] %v6049_v59  ;;  %v6051_v58 = vpop.permute.xlu2 %1466  ;;  %v6053_v56 = vpop.permute.xlu0 %1434  ;;  %v10043_v59 = vld [vmem:[#allocation120_spill] sm:$0xff] }
 0x26f   : > { %10033 = vst [vmem:[#allocation100_spill] sm:$0xff] %v6051_v58 }
 0x270   : > { %10034 = vst [vmem:[#allocation108_spill] sm:$0xff] %v6053_v56 }
 0x273   : > { %1606 = vperm.xlu1 %4876, %v10035_v46  }
 0x274   : > { %1610 = vperm.xlu2 %4874, %v10036_v54   ;;  %1614 = vperm.xlu0 %4875, %v10037_v53   ;;  %v10047_v54 = vld [vmem:[#allocation119_spill] sm:$0xff]  ;;  %v10048_v53 = vld [vmem:[#allocation118_spill] sm:$0xff] }
 0x275   : > { %v6058_v57 = vpop.permute.xlu1 %1438 }
 0x276   : > { %10038 = vst [vmem:[#allocation107_spill] sm:$0xff] %v6058_v57  ;;  %v6060_v0 = vpop.permute.xlu2 %1478  ;;  %v6062_v50 = vpop.permute.xlu0 %1446  ;;  %v10049_v57 = vld [vmem:[#allocation126_spill] sm:$0xff] }
 0x277   : > { %10039 = vst [vmem:[#allocation106_spill] sm:$0xff] %v6060_v0 }
 0x278   : > { %10040 = vst [vmem:[#allocation114_spill] sm:$0xff] %v6062_v50 }
 0x27b   : > { %1618 = vperm.xlu1 %4876, %v10041_v52  }
 0x27c   : > { %1622 = vperm.xlu2 %4874, %v10042_v60   ;;  %1626 = vperm.xlu0 %4875, %v10043_v59   ;;  %v10053_v60 = vld [vmem:[#allocation125_spill] sm:$0xff]  ;;  %v10054_v59 = vld [vmem:[#allocation124_spill] sm:$0xff] }
 0x27d   : > { %v6067_v58 = vpop.permute.xlu1 %1450 }
 0x27e   : > { %10044 = vst [vmem:[#allocation113_spill] sm:$0xff] %v6067_v58  ;;  %v6069_v56 = vpop.permute.xlu2 %1490  ;;  %v6071_v46 = vpop.permute.xlu0 %1458  ;;  %v10055_v58 = vld [vmem:[#allocation132_spill] sm:$0xff] }
 0x27f   : > { %10045 = vst [vmem:[#allocation112_spill] sm:$0xff] %v6069_v56 }
 0x280   : > { %10046 = vst [vmem:[#allocation120_spill] sm:$0xff] %v6071_v46 }
 0x283   : > { %1630 = vperm.xlu1 %4876, %v10047_v54  }
 0x284   : > { %1634 = vperm.xlu2 %4874, %v10048_v53   ;;  %1638 = vperm.xlu0 %4875, %v10049_v57   ;;  %v10059_v53 = vld [vmem:[#allocation131_spill] sm:$0xff]  ;;  %v10060_v57 = vld [vmem:[#allocation130_spill] sm:$0xff] }
 0x285   : > { %v6076_v0 = vpop.permute.xlu1 %1462 }
 0x286   : > { %10050 = vst [vmem:[#allocation119_spill] sm:$0xff] %v6076_v0  ;;  %v6078_v50 = vpop.permute.xlu2 %1502  ;;  %v6080_v52 = vpop.permute.xlu0 %1470  ;;  %v10061_v0 = vld [vmem:[#allocation138_spill] sm:$0xff] }
 0x287   : > { %10051 = vst [vmem:[#allocation118_spill] sm:$0xff] %v6078_v50 }
 0x288   : > { %10052 = vst [vmem:[#allocation126_spill] sm:$0xff] %v6080_v52 }
 0x28b   : > { %1642 = vperm.xlu1 %4876, %v10053_v60  }
 0x28c   : > { %1646 = vperm.xlu2 %4874, %v10054_v59   ;;  %1650 = vperm.xlu0 %4875, %v10055_v58   ;;  %v10065_v59 = vld [vmem:[#allocation137_spill] sm:$0xff]  ;;  %v10066_v58 = vld [vmem:[#allocation136_spill] sm:$0xff] }
 0x28d   : > { %v6085_v56 = vpop.permute.xlu1 %1474 }
 0x28e   : > { %10056 = vst [vmem:[#allocation125_spill] sm:$0xff] %v6085_v56  ;;  %v6087_v46 = vpop.permute.xlu2 %1514  ;;  %v6089_v54 = vpop.permute.xlu0 %1482  ;;  %v10067_v56 = vld [vmem:[#allocation144_spill] sm:$0xff] }
 0x28f   : > { %10057 = vst [vmem:[#allocation124_spill] sm:$0xff] %v6087_v46 }
 0x290   : > { %10058 = vst [vmem:[#allocation132_spill] sm:$0xff] %v6089_v54 }
 0x293   : > { %1654 = vperm.xlu1 %4876, %v10059_v53  }
 0x294   : > { %1658 = vperm.xlu2 %4874, %v10060_v57   ;;  %1662 = vperm.xlu0 %4875, %v10061_v0   ;;  %v6112_v0 = vld [vmem:[%s9692_s1] ss:$0 sm:$0xff]  ;;  %v10071_v57 = vld [vmem:[#allocation143_spill] sm:$0xff] }
 0x295   : > { %v6094_v50 = vpop.permute.xlu1 %1486  ;;  %v944_v42 = vmul.f32 %v6112_v0, %v10083_v48  ;;  %v958_v44 = vmul.f32 %v6112_v0, %v10084_v43  ;;  %v10091_v48 = vld [vmem:[#allocation14_spill] sm:$0xff] }
 0x296   : > { %10062 = vst [vmem:[#allocation131_spill] sm:$0xff] %v6094_v50  ;;  %v6096_v52 = vpop.permute.xlu2 %1526  ;;  %v6098_v60 = vpop.permute.xlu0 %1494  ;;  %v10080_v50 = vld [vmem:[#allocation4_spill] sm:$0xff]  ;;  %v964_v43 = vmul.f32 %v6112_v0, %v10091_v48 }
 0x297   : > { %10063 = vst [vmem:[#allocation130_spill] sm:$0xff] %v6096_v52  ;;  %v10098_v48 = vld [vmem:[#allocation20_spill] sm:$0xff] }
 0x298   : > { %10064 = vst [vmem:[#allocation138_spill] sm:$0xff] %v6098_v60  ;;  %v10072_v60 = vld [vmem:[#allocation142_spill] sm:$0xff]  ;;  %v957_v33 = vmul.f32 %v6112_v0, %v10098_v48 }
 0x29b   : > { %1666 = vperm.xlu1 %4876, %v10065_v59   ;;  %v10073_v59 = vld [vmem:[#allocation150_spill] sm:$0xff] }
 0x29c   : > { %1670 = vperm.xlu2 %4874, %v10066_v58   ;;  %1674 = vperm.xlu0 %4875, %v10067_v56   ;;  %v10074_v58 = vld [vmem:[#allocation2_spill] sm:$0xff] }
 0x29d   : > { %v6103_v46 = vpop.permute.xlu1 %1498  ;;  %v948_v56 = vmul.f32 %v6112_v0, %v10074_v58  ;;  %v952_v58 = vmul.f32 %v6112_v0, %v10080_v50  ;;  %v961_v50 = vmul.f32 %v6112_v0, %v10087_v39 }
 0x29e   : > { %10068 = vst [vmem:[#allocation137_spill] sm:$0xff] %v6103_v46  ;;  %v6105_v54 = vpop.permute.xlu2 %1538  ;;  %v6107_v53 = vpop.permute.xlu0 %1506 }
 0x29f   : > { %10069 = vst [vmem:[#allocation136_spill] sm:$0xff] %v6105_v54 }
 0x2a0   : > { %10070 = vst [vmem:[#allocation144_spill] sm:$0xff] %v6107_v53  ;;  %v6128_v53 = vld [vmem:[%s9693_s2] ss:$0 sm:$0xff] }
 0x2a3   : > { %1678 = vperm.xlu1 %4876, %v10071_v57   ;;  %v6131_v57 = vadd.f32 %v6128_v53, %v948_v56  ;;  %v10085_v56 = vld [vmem:[#allocation9_spill] sm:$0xff] }
 0x2a4   : > { %1682 = vperm.xlu2 %4874, %v10072_v60   ;;  %1686 = vperm.xlu0 %4875, %v10073_v59   ;;  %v10079_v60 = vld [vmem:[#allocation3_spill] sm:$0xff] }
 0x2a5   : > { %v6119_v52 = vpop.permute.xlu1 %1510  ;;  %10078 = vst [vmem:[#allocation2_spill] sm:$0xff] %v6131_v57  ;;  %v949_v59 = vmul.f32 %v6112_v0, %v10079_v60  ;;  %v947_v57 = vmul.f32 %v6112_v0, %v10085_v56  ;;  %v945_v60 = vmul.f32 %v6112_v0, %v10086_v38  ;;  %v954_v56 = vmul.f32 %v6112_v0, %v10092_v36 }
 0x2a6   : > { %10075 = vst [vmem:[#allocation143_spill] sm:$0xff] %v6119_v52  ;;  %v6121_v46 = vpop.permute.xlu2 %1550  ;;  %v6123_v54 = vpop.permute.xlu0 %1518  ;;  %v955_v52 = vmul.f32 %v6112_v0, %v10081_v47  ;;  %v951_v47 = vmul.f32 %v6112_v0, %v10088_v40  ;;  %v953_v38 = vmul.f32 %v6112_v0, %v10093_v31 }
 0x2a7   : > { %10076 = vst [vmem:[#allocation142_spill] sm:$0xff] %v6121_v46  ;;  %v10082_v46 = vld [vmem:[#allocation6_spill] sm:$0xff]  ;;  %v6165_v40 = vadd.f32 %v6128_v53, %v949_v59  ;;  %v6186_v59 = vadd.f32 %v6128_v53, %v958_v44  ;;  %v6193_v48 = vadd.f32 %v6128_v53, %v947_v57  ;;  %v6208_v44 = vadd.f32 %v6128_v53, %v964_v43 }
 0x2a8   : > { %10077 = vst [vmem:[#allocation150_spill] sm:$0xff] %v6123_v54  ;;  %v946_v54 = vmul.f32 %v6112_v0, %v10082_v46  ;;  %v950_v46 = vmul.f32 %v6112_v0, %v10089_v34  ;;  %v6168_v34 = vadd.f32 %v6128_v53, %v952_v58  ;;  %v6177_v31 = vadd.f32 %v6128_v53, %v955_v52  ;;  %v10118_v43 = vld [vmem:[#allocation26_spill] sm:$0xff] }
 0x2a9   : > { %10095 = vst [vmem:[#allocation3_spill] sm:$0xff] %v6165_v40  ;;  %v6199_v52 = vadd.f32 %v6128_v53, %v961_v50  ;;  %v6214_v57 = vadd.f32 %v6128_v53, %v953_v38  ;;  %v6220_v50 = vadd.f32 %v6128_v53, %v957_v33  ;;  %v10120_v38 = vld [vmem:[#allocation31_spill] sm:$0xff]  ;;  %v10122_v33 = vld [vmem:[#allocation33_spill] sm:$0xff] }
 0x2aa   : > { %10096 = vst [vmem:[#allocation4_spill] sm:$0xff] %v6168_v34  ;;  %v10130_v34 = vld [vmem:[#allocation154_spill] sm:$0xff] }
 0x2ab   : > { %1690 = vperm.xlu1 %4876, %v10090_v35   ;;  %v10097_v35 = vld [vmem:[#allocation19_spill] sm:$0xff]  ;;  %10100 = vst [vmem:[#allocation6_spill] sm:$0xff] %v6177_v31  ;;  %v10128_v31 = vld [vmem:[#allocation44_spill] sm:$0xff] }
 0x2ac   : > { %1694 = vperm.xlu2 %4874, %v10094_v32   ;;  %1698 = vperm.xlu0 %4875, %v5732_v41   ;;  %v967_v39 = vmul.f32 %v6112_v0, %v10097_v35  ;;  %v6180_v32 = vadd.f32 %v6128_v53, %v946_v54  ;;  %v6183_v41 = vadd.f32 %v6128_v53, %v944_v42 }
 0x2ad   : > { %v6174_v36 = vpop.permute.xlu1 %1522  ;;  %10103 = vst [vmem:[#allocation9_spill] sm:$0xff] %v6186_v59  ;;  %v6202_v54 = vadd.f32 %v6128_v53, %v951_v47  ;;  %v6205_v42 = vadd.f32 %v6128_v53, %v950_v46  ;;  %v10116_v47 = vld [vmem:[#allocation21_spill] sm:$0xff]  ;;  %v10125_v59 = vld [vmem:[#allocation39_spill] sm:$0xff] }
 0x2ae   : > { %10099 = vst [vmem:[#allocation5_spill] sm:$0xff] %v6174_v36  ;;  %v6188_v58 = vpop.permute.xlu2 %1562  ;;  %v6190_v35 = vpop.permute.xlu0 %1530  ;;  %v6196_v36 = vadd.f32 %v6128_v53, %v945_v60  ;;  %v6217_v60 = vadd.f32 %v6128_v53, %v967_v39  ;;  %v10117_v46 = vld [vmem:[#allocation25_spill] sm:$0xff]  ;;  %v10121_v39 = vld [vmem:[#allocation32_spill] sm:$0xff] }
 0x2af   : > { %10101 = vst [vmem:[#allocation7_spill] sm:$0xff] %v6180_v32  ;;  %v10129_v32 = vld [vmem:[#allocation45_spill] sm:$0xff] }
 0x2b0   : > { %10102 = vst [vmem:[#allocation8_spill] sm:$0xff] %v6183_v41 }
 0x2b1   : > { %10104 = vst [vmem:[#allocation10_spill] sm:$0xff] %v6188_v58  ;;  %v956_v58 = vmul.f32 %v6112_v0, %v10116_v47 }
 0x2b2   : > { %10105 = vst [vmem:[#allocation11_spill] sm:$0xff] %v6190_v35  ;;  %v6211_v35 = vadd.f32 %v6128_v53, %v954_v56  ;;  %v10119_v56 = vld [vmem:[#allocation27_spill] sm:$0xff] }
 0x2b3   : > { %10106 = vst [vmem:[#allocation12_spill] sm:$0xff] %v6193_v48  ;;  %v4884_v48 = vld [vmem:[%s5063_s18] sm:$0xff] }
 0x2b4   : > { %10107 = vst [vmem:[#allocation13_spill] sm:$0xff] %v6196_v36  ;;  %v10126_v36 = vld [vmem:[#allocation155_spill] sm:$0xff]  ;;  %1706 = vperm.xlu2 %4874, %v10130_v34   ;;  %1710 = vperm.xlu0 %4875, %v5747_v62  }
 0x2b5   : > { %10108 = vst [vmem:[#allocation149_spill] sm:$0xff] %v6199_v52  ;;  %v970_v52 = vmul.f32 %v6112_v0, %v10117_v46  ;;  %1702 = vperm.xlu1 %4876, %v10126_v36   ;;  %v10133_v36 = vld [vmem:[#allocation49_spill] sm:$0xff] }
 0x2b6   : > { %10109 = vst [vmem:[#allocation14_spill] sm:$0xff] %v6202_v54  ;;  %v10123_v54 = vld [vmem:[#allocation37_spill] sm:$0xff] }
 0x2b7   : > { %10110 = vst [vmem:[#allocation15_spill] sm:$0xff] %v6205_v42  ;;  %v976_v47 = vmul.f32 %v6112_v0, %v10123_v54  ;;  %v10124_v42 = vld [vmem:[#allocation38_spill] sm:$0xff]  ;;  %v6252_v54 = vadd.f32 %v6128_v53, %v956_v58 }
 0x2b8   : > { %10111 = vst [vmem:[#allocation16_spill] sm:$0xff] %v6208_v44  ;;  %v960_v44 = vmul.f32 %v6112_v0, %v10118_v43  ;;  %v966_v46 = vmul.f32 %v6112_v0, %v10124_v42  ;;  %v965_v43 = vmul.f32 %v6112_v0, %v10125_v59  ;;  %v6255_v59 = vadd.f32 %v6128_v53, %v970_v52  ;;  %v6275_v52 = vpop.permute.xlu2 %1574 }
 0x2b9   : > { %10112 = vst [vmem:[#allocation148_spill] sm:$0xff] %v6211_v35  ;;  %v959_v35 = vmul.f32 %v6112_v0, %v10119_v56  ;;  %v10127_v56 = vld [vmem:[#allocation43_spill] sm:$0xff]  ;;  %v982_v42 = vmul.f32 %v6112_v0, %v10133_v36  ;;  %v6277_v36 = vpop.permute.xlu0 %1542 }
 0x2ba   : > { %10113 = vst [vmem:[#allocation19_spill] sm:$0xff] %v6214_v57  ;;  %v973_v57 = vmul.f32 %v6112_v0, %v10120_v38  ;;  %v979_v38 = vmul.f32 %v6112_v0, %v10127_v56  ;;  %v10134_v56 = vld [vmem:[#allocation50_spill] sm:$0xff] }
 0x2bb   : > { %10114 = vst [vmem:[#allocation20_spill] sm:$0xff] %v6217_v60  ;;  %v963_v60 = vmul.f32 %v6112_v0, %v10121_v39  ;;  %v969_v39 = vmul.f32 %v6112_v0, %v10128_v31  ;;  %v972_v40 = vmul.f32 %v6112_v0, %v10134_v56  ;;  %v6261_v31 = vpop.permute.xlu1 %1534  ;;  %v6267_v34 = vadd.f32 %v6128_v53, %v959_v35 }
 0x2bc   : > { %10115 = vst [vmem:[#allocation181_spill] sm:$0xff] %v6220_v50  ;;  %v962_v50 = vmul.f32 %v6112_v0, %v10122_v33  ;;  %v968_v33 = vmul.f32 %v6112_v0, %v10129_v32  ;;  %v6264_v32 = vadd.f32 %v6128_v53, %v960_v44  ;;  %v6270_v62 = vadd.f32 %v6128_v53, %v973_v57 }
 0x2bd   : > { %10131 = vst [vmem:[#allocation21_spill] sm:$0xff] %v6252_v54  ;;  %v6273_v58 = vadd.f32 %v6128_v53, %v963_v60  ;;  %v6286_v44 = vadd.f32 %v6128_v53, %v966_v46  ;;  %v6289_v35 = vadd.f32 %v6128_v53, %v965_v43  ;;  %v6292_v57 = vadd.f32 %v6128_v53, %v979_v38  ;;  %v10152_v43 = vld [vmem:[#allocation55_spill] sm:$0xff]  ;;  %v10153_v38 = vld [vmem:[#allocation56_spill] sm:$0xff]  ;;  %v10167_v54 = vld [vmem:[#allocation81_spill] sm:$0xff] }
 0x2be   : > { %10132 = vst [vmem:[#allocation25_spill] sm:$0xff] %v6255_v59  ;;  %v6280_v56 = vadd.f32 %v6128_v53, %v962_v50  ;;  %v6295_v60 = vadd.f32 %v6128_v53, %v969_v39  ;;  %v10149_v50 = vld [vmem:[#allocation51_spill] sm:$0xff]  ;;  %v6306_v46 = vadd.f32 %v6128_v53, %v972_v40  ;;  %v10154_v39 = vld [vmem:[#allocation57_spill] sm:$0xff] }
 0x2bf   : > { %10135 = vst [vmem:[#allocation26_spill] sm:$0xff] %v6261_v31  ;;  %v6283_v31 = vadd.f32 %v6128_v53, %v976_v47  ;;  %v6303_v47 = vadd.f32 %v6128_v53, %v982_v42  ;;  %v10164_v59 = vld [vmem:[#allocation75_spill] sm:$0xff] }
 0x2c0   : > { %10136 = vst [vmem:[#allocation27_spill] sm:$0xff] %v6264_v32  ;;  %v5026_v32 = vmov 2   ;;  %v6355_v28 = vpop.permute.xlu2 %1586 }
 0x2c1   : > { %10137 = vst [vmem:[#allocation31_spill] sm:$0xff] %v6267_v34  ;;  %4877 = vset.pattern.permute.xlu2 %v5026_v32  ;;  %4878 = vset.pattern.permute.xlu0 %v5026_v32  ;;  %v10166_v34 = vld [vmem:[#allocation80_spill] sm:$0xff] }
 0x2c2   : > { %10138 = vst [vmem:[#allocation32_spill] sm:$0xff] %v6270_v62  ;;  %v10161_v62 = vld [vmem:[#allocation159_spill] sm:$0xff]  ;;  %1976 = vperm.xlu2 %4877, %v4884_v48  }
 0x2c3   : > { %10139 = vst [vmem:[#allocation33_spill] sm:$0xff] %v6273_v58  ;;  %1714 = vperm.xlu1 %4876, %v10161_v62   ;;  %v986_v62 = vmul.f32 %v6112_v0, %v10167_v54  ;;  %v6357_v54 = vpop.permute.xlu0 %1554 }
 0x2c4   : > { %10140 = vst [vmem:[#allocation37_spill] sm:$0xff] %v6275_v52  ;;  %v971_v52 = vmul.f32 %v6112_v0, %v10149_v50  ;;  %v10157_v50 = vld [vmem:[#allocation63_spill] sm:$0xff] }
 0x2c5   : > { %10141 = vst [vmem:[#allocation38_spill] sm:$0xff] %v6277_v36  ;;  %v6298_v36 = vadd.f32 %v6128_v53, %v968_v33  ;;  %v10155_v33 = vld [vmem:[#allocation61_spill] sm:$0xff]  ;;  %v977_v40 = vmul.f32 %v6112_v0, %v10157_v50  ;;  %v983_v50 = vmul.f32 %v6112_v0, %v10164_v59 }
 0x2c6   : > { %10142 = vst [vmem:[#allocation39_spill] sm:$0xff] %v6280_v56  ;;  %v10163_v56 = vld [vmem:[#allocation74_spill] sm:$0xff]  ;;  %v6344_v59 = vadd.f32 %v6128_v53, %v971_v52 }
 0x2c7   : > { %10143 = vst [vmem:[#allocation155_spill] sm:$0xff] %v6283_v31  ;;  %v985_v31 = vmul.f32 %v6112_v0, %v10152_v43  ;;  %v6366_v52 = vadd.f32 %v6128_v53, %v977_v40 }
 0x2c8   : > { %10144 = vst [vmem:[#allocation43_spill] sm:$0xff] %v6286_v44  ;;  %v10156_v44 = vld [vmem:[#allocation62_spill] sm:$0xff] }
 0x2c9   : > { %10145 = vst [vmem:[#allocation44_spill] sm:$0xff] %v6289_v35  ;;  %v978_v42 = vmul.f32 %v6112_v0, %v10156_v44  ;;  %v10160_v35 = vld [vmem:[#allocation69_spill] sm:$0xff]  ;;  %v984_v44 = vmul.f32 %v6112_v0, %v10163_v56  ;;  %v6341_v56 = vpop.permute.xlu1 %1546  ;;  %v6347_v41 = vadd.f32 %v6128_v53, %v985_v31 }
 0x2ca   : > { %10146 = vst [vmem:[#allocation45_spill] sm:$0xff] %v6292_v57  ;;  %v975_v57 = vmul.f32 %v6112_v0, %v10153_v38 }
 0x2cb   : > { %10147 = vst [vmem:[#allocation154_spill] sm:$0xff] %v6295_v60  ;;  %v974_v60 = vmul.f32 %v6112_v0, %v10154_v39  ;;  %v980_v39 = vmul.f32 %v6112_v0, %v10160_v35  ;;  %v987_v35 = vmul.f32 %v6112_v0, %v10166_v34  ;;  %4879 = vset.pattern.permute.xlu1 %v5026_v32 }
 0x2cc   : > { %10148 = vst [vmem:[#allocation49_spill] sm:$0xff] %v6298_v36  ;;  %v988_v36 = vmul.f32 %v6112_v0, %v10155_v33  ;;  %v10162_v33 = vld [vmem:[#allocation73_spill] sm:$0xff] }
 0x2cd   : > { %10150 = vst [vmem:[#allocation50_spill] sm:$0xff] %v6303_v47  ;;  %v10158_v47 = vld [vmem:[#allocation67_spill] sm:$0xff]  ;;  %v994_v58 = vmul.f32 %v6112_v0, %v10162_v33  ;;  %v6353_v34 = vadd.f32 %v6128_v53, %v974_v60  ;;  %v6375_v60 = vadd.f32 %v6128_v53, %v980_v39  ;;  %v10186_v39 = vld [vmem:[#allocation85_spill] sm:$0xff] }
 0x2ce   : > { %10151 = vst [vmem:[#allocation51_spill] sm:$0xff] %v6306_v46  ;;  %v991_v43 = vmul.f32 %v6112_v0, %v10158_v47  ;;  %v10159_v46 = vld [vmem:[#allocation68_spill] sm:$0xff]  ;;  %v10165_v47 = vld [vmem:[#allocation79_spill] sm:$0xff]  ;;  %v6360_v48 = vadd.f32 %v6128_v53, %v988_v36  ;;  %v6381_v36 = vadd.f32 %v6128_v53, %v984_v44 }
 0x2cf   : > { %v981_v38 = vmul.f32 %v6112_v0, %v10159_v46  ;;  %v997_v46 = vmul.f32 %v6112_v0, %v10165_v47  ;;  %v4885_v33 = vld [vmem:[%s5063_s18 + $0x8] sm:$0xff]  ;;  %10168 = vst [vmem:[#allocation55_spill] sm:$0xff] %v6341_v56  ;;  %v6350_v47 = vadd.f32 %v6128_v53, %v975_v57 }
 0x2d0   : > { %1980 = vperm.xlu0 %4878, %v4885_v33   ;;  %10169 = vst [vmem:[#allocation56_spill] sm:$0xff] %v6347_v41  ;;  %v6363_v33 = vadd.f32 %v6128_v53, %v978_v42  ;;  %v6369_v31 = vadd.f32 %v6128_v53, %v991_v43  ;;  %v6384_v42 = vadd.f32 %v6128_v53, %v983_v50  ;;  %v10188_v56 = vld [vmem:[#allocation87_spill] sm:$0xff]  ;;  %v4887_v41 = vld [vmem:[%s5063_s18 + $0x18] sm:$0xff] }
 0x2d1   : > { %10170 = vst [vmem:[#allocation57_spill] sm:$0xff] %v6350_v47  ;;  %v6372_v57 = vadd.f32 %v6128_v53, %v981_v38  ;;  %v6387_v40 = vadd.f32 %v6128_v53, %v997_v46  ;;  %v6390_v43 = vadd.f32 %v6128_v53, %v987_v35  ;;  %v6393_v38 = vadd.f32 %v6128_v53, %v986_v62  ;;  %v6428_v47 = vpop.permute.xlu1 %1558 }
 0x2d2   : > { %10171 = vst [vmem:[#allocation61_spill] sm:$0xff] %v6353_v34  ;;  %v989_v50 = vmul.f32 %v6112_v0, %v10188_v56  ;;  %1988 = vperm.xlu2 %4877, %v4887_v41   ;;  %v6441_v34 = vpop.permute.xlu2 %1598 }
 0x2d3   : > { %10172 = vst [vmem:[#allocation62_spill] sm:$0xff] %v6355_v28  ;;  %v10187_v28 = vld [vmem:[#allocation86_spill] sm:$0xff] }
 0x2d4   : > { %10173 = vst [vmem:[#allocation63_spill] sm:$0xff] %v6357_v54  ;;  %v6378_v54 = vadd.f32 %v6128_v53, %v994_v58  ;;  %v1000_v58 = vmul.f32 %v6112_v0, %v10186_v39  ;;  %v990_v44 = vmul.f32 %v6112_v0, %v10187_v28 }
 0x2d5   : > { %10174 = vst [vmem:[#allocation67_spill] sm:$0xff] %v6360_v48 }
 0x2d6   : > { %10175 = vst [vmem:[#allocation68_spill] sm:$0xff] %v6363_v33  ;;  %v10198_v33 = vld [vmem:[#allocation109_spill] sm:$0xff] }
 0x2d7   : > { %10176 = vst [vmem:[#allocation69_spill] sm:$0xff] %v6366_v52  ;;  %v10199_v52 = vld [vmem:[#allocation110_spill] sm:$0xff] }
 0x2d8   : > { %10177 = vst [vmem:[#allocation159_spill] sm:$0xff] %v6369_v31  ;;  %v10195_v31 = vld [vmem:[#allocation103_spill] sm:$0xff]  ;;  %v1002_v32 = vmul.f32 %v6112_v0, %v10199_v52 }
 0x2d9   : > { %10178 = vst [vmem:[#allocation73_spill] sm:$0xff] %v6372_v57  ;;  %v10196_v57 = vld [vmem:[#allocation104_spill] sm:$0xff] }
 0x2da   : > { %10179 = vst [vmem:[#allocation74_spill] sm:$0xff] %v6375_v60  ;;  %v10197_v60 = vld [vmem:[#allocation105_spill] sm:$0xff] }
 0x2db   : > { %10180 = vst [vmem:[#allocation75_spill] sm:$0xff] %v6378_v54  ;;  %v10189_v54 = vld [vmem:[#allocation91_spill] sm:$0xff]  ;;  %v998_v48 = vmul.f32 %v6112_v0, %v10197_v60  ;;  %v6434_v60 = vadd.f32 %v6128_v53, %v990_v44 }
 0x2dc   : > { %10181 = vst [vmem:[#allocation79_spill] sm:$0xff] %v6381_v36  ;;  %v1003_v46 = vmul.f32 %v6112_v0, %v10189_v54  ;;  %v10193_v36 = vld [vmem:[#allocation98_spill] sm:$0xff]  ;;  %v1009_v54 = vmul.f32 %v6112_v0, %v10195_v31  ;;  %v4888_v31 = vld [vmem:[%s5063_s18 + $0x30] sm:$0xff] }
 0x2dd   : > { %10182 = vst [vmem:[#allocation80_spill] sm:$0xff] %v6384_v42  ;;  %v996_v28 = vmul.f32 %v6112_v0, %v10193_v36  ;;  %v10194_v42 = vld [vmem:[#allocation99_spill] sm:$0xff]  ;;  %2000 = vperm.xlu0 %4878, %v4888_v31  }
 0x2de   : > { %10183 = vst [vmem:[#allocation81_spill] sm:$0xff] %v6387_v40  ;;  %v10190_v40 = vld [vmem:[#allocation92_spill] sm:$0xff]  ;;  %v995_v56 = vmul.f32 %v6112_v0, %v10194_v42  ;;  %v10200_v36 = vld [vmem:[#allocation111_spill] sm:$0xff]  ;;  %v6446_v41 = vadd.f32 %v6128_v53, %v1003_v46 }
 0x2df   : > { %10184 = vst [vmem:[#allocation182_spill] sm:$0xff] %v6390_v43  ;;  %v993_v35 = vmul.f32 %v6112_v0, %v10190_v40  ;;  %v10191_v43 = vld [vmem:[#allocation93_spill] sm:$0xff]  ;;  %v999_v40 = vmul.f32 %v6112_v0, %v10196_v57  ;;  %v1001_v42 = vmul.f32 %v6112_v0, %v10200_v36  ;;  %v6431_v57 = vadd.f32 %v6128_v53, %v1000_v58  ;;  %v6443_v36 = vpop.permute.xlu0 %1566 }
 0x2e0   : > { %10185 = vst [vmem:[#allocation183_spill] sm:$0xff] %v6393_v38  ;;  %v992_v62 = vmul.f32 %v6112_v0, %v10191_v43  ;;  %v10192_v38 = vld [vmem:[#allocation97_spill] sm:$0xff]  ;;  %v4886_v43 = vld [vmem:[%s5063_s18 + $0x10] sm:$0xff] }
 0x2e1   : > { %v1006_v39 = vmul.f32 %v6112_v0, %v10192_v38  ;;  %1984 = vperm.xlu1 %4879, %v4886_v43   ;;  %v1012_v38 = vmul.f32 %v6112_v0, %v10198_v33  ;;  %10201 = vst [vmem:[#allocation85_spill] sm:$0xff] %v6428_v47  ;;  %v6437_v33 = vadd.f32 %v6128_v53, %v989_v50  ;;  %v10205_v43 = vld [vmem:[#allocation115_spill] sm:$0xff]  ;;  %v10223_v47 = vld [vmem:[#allocation121_spill] sm:$0xff] }
 0x2e2   : > { %10202 = vst [vmem:[#allocation86_spill] sm:$0xff] %v6431_v57  ;;  %v1015_v52 = vmul.f32 %v6112_v0, %v10205_v43  ;;  %v6449_v31 = vadd.f32 %v6128_v53, %v993_v35  ;;  %v6452_v58 = vadd.f32 %v6128_v53, %v992_v62  ;;  %v6458_v50 = vadd.f32 %v6128_v53, %v996_v28  ;;  %v6515_v57 = vpop.permute.xlu1 %1570 }
 0x2e3   : > { %10203 = vst [vmem:[#allocation87_spill] sm:$0xff] %v6434_v60  ;;  %v6455_v44 = vadd.f32 %v6128_v53, %v1006_v39  ;;  %v6461_v43 = vadd.f32 %v6128_v53, %v995_v56  ;;  %v6467_v46 = vadd.f32 %v6128_v53, %v999_v40  ;;  %v6470_v35 = vadd.f32 %v6128_v53, %v998_v48  ;;  %v10237_v60 = vld [vmem:[#allocation146_spill] sm:$0xff] }
 0x2e4   : > { %10204 = vst [vmem:[#allocation91_spill] sm:$0xff] %v6437_v33  ;;  %v6473_v62 = vadd.f32 %v6128_v53, %v1012_v38  ;;  %v6476_v39 = vadd.f32 %v6128_v53, %v1002_v32  ;;  %v6479_v28 = vadd.f32 %v6128_v53, %v1001_v42  ;;  %v6482_v56 = vadd.f32 %v6128_v53, %v1015_v52  ;;  %v6527_v33 = vpop.permute.xlu2 %1610 }
 0x2e5   : > { %10206 = vst [vmem:[#allocation92_spill] sm:$0xff] %v6441_v34  ;;  %v10222_v34 = vld [vmem:[#allocation117_spill] sm:$0xff]  ;;  %v1018_v38 = vmul.f32 %v6112_v0, %v10223_v47  ;;  %v10230_v47 = vld [vmem:[#allocation134_spill] sm:$0xff] }
 0x2e6   : > { %10207 = vst [vmem:[#allocation93_spill] sm:$0xff] %v6443_v36  ;;  %v6464_v36 = vadd.f32 %v6128_v53, %v1009_v54  ;;  %v10221_v54 = vld [vmem:[#allocation116_spill] sm:$0xff]  ;;  %v1004_v48 = vmul.f32 %v6112_v0, %v10222_v34  ;;  %v10229_v34 = vld [vmem:[#allocation133_spill] sm:$0xff] }
 0x2e7   : > { %10208 = vst [vmem:[#allocation97_spill] sm:$0xff] %v6446_v41  ;;  %v1005_v40 = vmul.f32 %v6112_v0, %v10221_v54  ;;  %v10233_v41 = vld [vmem:[#allocation140_spill] sm:$0xff] }
 0x2e8   : > { %10209 = vst [vmem:[#allocation98_spill] sm:$0xff] %v6449_v31  ;;  %v10234_v31 = vld [vmem:[#allocation141_spill] sm:$0xff] }
 0x2e9   : > { %10210 = vst [vmem:[#allocation99_spill] sm:$0xff] %v6452_v58  ;;  %v4890_v58 = vld [vmem:[%s5063_s18 + $0x28] sm:$0xff] }
 0x2ea   : > { %10211 = vst [vmem:[#allocation103_spill] sm:$0xff] %v6455_v44  ;;  %v1014_v44 = vmul.f32 %v6112_v0, %v10230_v47  ;;  %1996 = vperm.xlu2 %4877, %v4890_v58   ;;  %v6518_v47 = vadd.f32 %v6128_v53, %v1005_v40  ;;  %v6532_v58 = vadd.f32 %v6128_v53, %v1018_v38 }
 0x2eb   : > { %10212 = vst [vmem:[#allocation104_spill] sm:$0xff] %v6458_v50  ;;  %v10231_v50 = vld [vmem:[#allocation135_spill] sm:$0xff] }
 0x2ec   : > { %10213 = vst [vmem:[#allocation105_spill] sm:$0xff] %v6461_v43  ;;  %v4889_v43 = vld [vmem:[%s5063_s18 + $0x20] sm:$0xff]  ;;  %v6553_v38 = vadd.f32 %v6128_v53, %v1014_v44  ;;  %v10247_v44 = vld [vmem:[#allocation147_spill] sm:$0xff] }
 0x2ed   : > { %10214 = vst [vmem:[#allocation109_spill] sm:$0xff] %v6464_v36  ;;  %v10228_v36 = vld [vmem:[#allocation129_spill] sm:$0xff]  ;;  %1992 = vperm.xlu1 %4879, %v4889_v43  }
 0x2ee   : > { %10215 = vst [vmem:[#allocation110_spill] sm:$0xff] %v6467_v46  ;;  %v1010_v46 = vmul.f32 %v6112_v0, %v10228_v36  ;;  %v1016_v36 = vmul.f32 %v6112_v0, %v10234_v31  ;;  %v10236_v43 = vld [vmem:[#allocation145_spill] sm:$0xff]  ;;  %v6529_v31 = vpop.permute.xlu0 %1578 }
 0x2ef   : > { %10216 = vst [vmem:[#allocation111_spill] sm:$0xff] %v6470_v35  ;;  %v1024_v35 = vmul.f32 %v6112_v0, %v10229_v34  ;;  %v4891_v34 = vld [vmem:[%s5063_s18 + $0x48] sm:$0xff] }
 0x2f0   : > { %10217 = vst [vmem:[#allocation115_spill] sm:$0xff] %v6473_v62  ;;  %v10224_v62 = vld [vmem:[#allocation122_spill] sm:$0xff]  ;;  %2012 = vperm.xlu0 %4878, %v4891_v34  }
 0x2f1   : > { %10218 = vst [vmem:[#allocation184_spill] sm:$0xff] %v6476_v39  ;;  %v1008_v32 = vmul.f32 %v6112_v0, %v10224_v62  ;;  %v10225_v39 = vld [vmem:[#allocation123_spill] sm:$0xff]  ;;  %v1013_v62 = vmul.f32 %v6112_v0, %v10231_v50  ;;  %v6521_v50 = vadd.f32 %v6128_v53, %v1004_v48 }
 0x2f2   : > { %10219 = vst [vmem:[#allocation185_spill] sm:$0xff] %v6479_v28  ;;  %v1007_v42 = vmul.f32 %v6112_v0, %v10225_v39  ;;  %v10226_v28 = vld [vmem:[#allocation127_spill] sm:$0xff] }
 0x2f3   : > { %10220 = vst [vmem:[#allocation186_spill] sm:$0xff] %v6482_v56  ;;  %v1021_v52 = vmul.f32 %v6112_v0, %v10226_v28  ;;  %v10227_v56 = vld [vmem:[#allocation128_spill] sm:$0xff]  ;;  %v10232_v39 = vld [vmem:[#allocation139_spill] sm:$0xff]  ;;  %v6535_v34 = vadd.f32 %v6128_v53, %v1008_v32  ;;  %v6556_v32 = vadd.f32 %v6128_v53, %v1013_v62  ;;  %v1019_v62 = vmul.f32 %v6112_v0, %v10247_v44 }
 0x2f4   : > { %v1011_v54 = vmul.f32 %v6112_v0, %v10227_v56  ;;  %v1027_v28 = vmul.f32 %v6112_v0, %v10232_v39  ;;  %v1017_v56 = vmul.f32 %v6112_v0, %v10233_v41  ;;  %10235 = vst [vmem:[#allocation116_spill] sm:$0xff] %v6515_v57  ;;  %v1030_v39 = vmul.f32 %v6112_v0, %v10236_v43  ;;  %v10249_v57 = vld [vmem:[#allocation152_spill] sm:$0xff] }
 0x2f5   : > { %v1020_v41 = vmul.f32 %v6112_v0, %v10237_v60  ;;  %10238 = vst [vmem:[#allocation117_spill] sm:$0xff] %v6527_v33  ;;  %v6538_v40 = vadd.f32 %v6128_v53, %v1007_v42  ;;  %v6541_v48 = vadd.f32 %v6128_v53, %v1021_v52  ;;  %v6547_v60 = vadd.f32 %v6128_v53, %v1010_v46  ;;  %v10248_v33 = vld [vmem:[#allocation151_spill] sm:$0xff] }
 0x2f6   : > { %10239 = vst [vmem:[#allocation121_spill] sm:$0xff] %v6529_v31  ;;  %v6544_v43 = vadd.f32 %v6128_v53, %v1011_v54  ;;  %v6550_v31 = vadd.f32 %v6128_v53, %v1024_v35  ;;  %v6559_v42 = vadd.f32 %v6128_v53, %v1027_v28  ;;  %v6562_v52 = vadd.f32 %v6128_v53, %v1017_v56 }
 0x2f7   : > { %10241 = vst [vmem:[#allocation123_spill] sm:$0xff] %v6553_v38  ;;  %v6565_v54 = vadd.f32 %v6128_v53, %v1016_v36  ;;  %v6568_v46 = vadd.f32 %v6128_v53, %v1030_v39  ;;  %v6571_v35 = vadd.f32 %v6128_v53, %v1020_v41  ;;  %v1033_v28 = vmul.f32 %v6112_v0, %v10248_v33  ;;  %v6602_v38 = vpop.permute.xlu1 %1582 }
 0x2f8   : > { %10240 = vst [vmem:[#allocation122_spill] sm:$0xff] %v6550_v31  ;;  %v1023_v56 = vmul.f32 %v6112_v0, %v10249_v57  ;;  %v1039_v44 = vmul.f32 %v6112_v0, %v5752_v63  ;;  %v1029_v33 = vmul.f32 %v6112_v0, %v5754_v45  ;;  %v1028_v57 = vmul.f32 %v6112_v0, %v5756_v37  ;;  %v4892_v31 = vld [vmem:[%s5063_s18 + $0x38] sm:$0xff]  ;;  %v4894_v63 = vld [vmem:[%s5063_s18 + $0x60] sm:$0xff] }
 0x2f9   : > { %10242 = vst [vmem:[#allocation127_spill] sm:$0xff] %v6559_v42  ;;  %v10250_v42 = vld [vmem:[#allocation153_spill] sm:$0xff]  ;;  %2004 = vperm.xlu1 %4879, %v4892_v31   ;;  %2024 = vperm.xlu0 %4878, %v4894_v63   ;;  %v6605_v45 = vadd.f32 %v6128_v53, %v1019_v62  ;;  %v6608_v37 = vadd.f32 %v6128_v53, %v1033_v28  ;;  %v6614_v31 = vpop.permute.xlu2 %1622 }
 0x2fa   : > { %10243 = vst [vmem:[#allocation128_spill] sm:$0xff] %v6562_v52  ;;  %v1022_v36 = vmul.f32 %v6112_v0, %v10250_v42  ;;  %v10251_v52 = vld [vmem:[#allocation156_spill] sm:$0xff]  ;;  %v1042_v42 = vmul.f32 %v6112_v0, %v5761_v49  ;;  %v1045_v49 = vmul.f32 %v6112_v0, %v5770_v3 }
 0x2fb   : > { %10244 = vst [vmem:[#allocation129_spill] sm:$0xff] %v6565_v54  ;;  %v1036_v39 = vmul.f32 %v6112_v0, %v10251_v52  ;;  %v1032_v52 = vmul.f32 %v6112_v0, %v5763_v55  ;;  %v1035_v55 = vmul.f32 %v6112_v0, %v5772_v51  ;;  %v6634_v51 = vadd.f32 %v6128_v53, %v1039_v44 }
 0x2fc   : > { %10245 = vst [vmem:[#allocation133_spill] sm:$0xff] %v6568_v46  ;;  %v10252_v46 = vld [vmem:[#allocation157_spill] sm:$0xff]  ;;  %v6622_v63 = vadd.f32 %v6128_v53, %v1022_v36  ;;  %v6643_v36 = vadd.f32 %v6128_v53, %v1042_v42  ;;  %v6654_v44 = vadd.f32 %v6128_v53, %v1045_v49  ;;  %v1038_v42 = vmul.f32 %v6112_v0, %v5781_v6 }
 0x2fd   : > { %10246 = vst [vmem:[#allocation134_spill] sm:$0xff] %v6571_v35  ;;  %v1026_v41 = vmul.f32 %v6112_v0, %v10252_v46  ;;  %v10253_v35 = vld [vmem:[#allocation158_spill] sm:$0xff]  ;;  %v1031_v46 = vmul.f32 %v6112_v0, %v5765_v61  ;;  %v6616_v61 = vpop.permute.xlu0 %1590  ;;  %v6625_v62 = vadd.f32 %v6128_v53, %v1036_v39  ;;  %v6646_v39 = vadd.f32 %v6128_v53, %v1032_v52 }
 0x2fe   : > { %v1025_v54 = vmul.f32 %v6112_v0, %v10253_v35  ;;  %v4893_v35 = vld [vmem:[%s5063_s18 + $0x40] sm:$0xff]  ;;  %10254 = vst [vmem:[#allocation135_spill] sm:$0xff] %v6616_v61  ;;  %v6637_v61 = vadd.f32 %v6128_v53, %v1029_v33  ;;  %v6657_v33 = vadd.f32 %v6128_v53, %v1035_v55  ;;  %v1037_v52 = vmul.f32 %v6112_v0, %v5783_v1 }
 0x2ff   : > { %2008 = vperm.xlu2 %4877, %v4893_v35   ;;  %v6619_v35 = vadd.f32 %v6128_v53, %v1023_v56  ;;  %v6628_v28 = vadd.f32 %v6128_v53, %v1026_v41  ;;  %v6640_v56 = vadd.f32 %v6128_v53, %v1028_v57  ;;  %v6649_v41 = vadd.f32 %v6128_v53, %v1031_v46 }
 0x300   : > { %v6631_v3 = vadd.f32 %v6128_v53, %v1025_v54  ;;  %v1034_v54 = vmul.f32 %v6112_v0, %v5774_v2  ;;  %10255 = vst [vmem:[#allocation139_spill] sm:$0xff] %v6654_v44  ;;  %v1048_v57 = vmul.f32 %v6112_v0, %v5779_v5  ;;  %v1051_v2 = vmul.f32 %v6112_v0, %v5788_v4  ;;  %v4895_v44 = vld [vmem:[%s5063_s18 + $0x50] sm:$0xff] }
 0x301   : > { %10256 = vst [vmem:[#allocation140_spill] sm:$0xff] %v6657_v33  ;;  %v1041_v46 = vmul.f32 %v6112_v0, %v5790_v9  ;;  %v1040_v49 = vmul.f32 %v6112_v0, %v5792_v8  ;;  %v1054_v55 = vmul.f32 %v6112_v0, %v5797_v7  ;;  %v1044_v5 = vmul.f32 %v6112_v0, %v5799_v12  ;;  %v4896_v7 = vld [vmem:[%s5063_s18 + $0x58] sm:$0xff]  ;;  %v6688_v33 = vpop.permute.xlu1 %1594 }
 0x302   : > { %v1043_v6 = vmul.f32 %v6112_v0, %v5801_v11  ;;  %v1057_v1 = vmul.f32 %v6112_v0, %v5806_v10  ;;  %2016 = vperm.xlu1 %4879, %v4895_v44   ;;  %v1047_v4 = vmul.f32 %v6112_v0, %v5808_v15  ;;  %v1046_v9 = vmul.f32 %v6112_v0, %v5810_v14  ;;  %v4897_v12 = vld [vmem:[%s5063_s18 + $0x78] sm:$0xff]  ;;  %v6701_v44 = vpop.permute.xlu2 %1634 }
 0x303   : > { %v1060_v8 = vmul.f32 %v6112_v0, %v5815_v13  ;;  %2036 = vperm.xlu0 %4878, %v4897_v12   ;;  %v6691_v11 = vadd.f32 %v6128_v53, %v1034_v54  ;;  %v6694_v10 = vadd.f32 %v6128_v53, %v1048_v57  ;;  %v6697_v15 = vadd.f32 %v6128_v53, %v1038_v42 }
 0x304   : > { %v1050_v14 = vmul.f32 %v6112_v0, %v5817_v18  ;;  %v6709_v12 = vadd.f32 %v6128_v53, %v1051_v2  ;;  %v6712_v54 = vadd.f32 %v6128_v53, %v1041_v46  ;;  %v6715_v57 = vadd.f32 %v6128_v53, %v1040_v49 }
 0x305   : > { %10257 = vst [vmem:[#allocation141_spill] sm:$0xff] %v6694_v10  ;;  %v6703_v13 = vpop.permute.xlu0 %1602  ;;  %v6718_v42 = vadd.f32 %v6128_v53, %v1054_v55  ;;  %v6721_v18 = vadd.f32 %v6128_v53, %v1044_v5  ;;  %v6724_v10 = vadd.f32 %v6128_v53, %v1043_v6  ;;  %v6730_v2 = vadd.f32 %v6128_v53, %v1047_v4  ;;  %v6743_v5 = vld [vmem:[%s9692_s1 + $0x1] ss:$0 sm:$0xff] }
 0x306   : > { %10258 = vst [vmem:[#allocation145_spill] sm:$0xff] %v6709_v12  ;;  %v6733_v46 = vadd.f32 %v6128_v53, %v1046_v9  ;;  %v6736_v49 = vadd.f32 %v6128_v53, %v1060_v8  ;;  %v1049_v55 = vmul.f32 %v6112_v0, %v5819_v17  ;;  %v6746_v6 = vadd.f32 %v6128_v53, %v1050_v14  ;;  %v10307_v12 = vld [vmem:[#allocation177_spill] sm:$0xff] }
 0x307   : > { %2020 = vperm.xlu2 %4877, %v4896_v7   ;;  %v6706_v7 = vadd.f32 %v6128_v53, %v1037_v52  ;;  %10259 = vst [vmem:[#allocation146_spill] sm:$0xff] %v6712_v54  ;;  %v6727_v52 = vadd.f32 %v6128_v53, %v1057_v1  ;;  %v1063_v1 = vmul.f32 %v6112_v0, %v5824_v16 }
 0x308   : > { %10260 = vst [vmem:[#allocation147_spill] sm:$0xff] %v6718_v42  ;;  %v1053_v4 = vmul.f32 %v6112_v0, %v5826_v21  ;;  %v1052_v9 = vmul.f32 %v6112_v0, %v5828_v20  ;;  %v1066_v17 = vmul.f32 %v6112_v0, %v5833_v19  ;;  %v1056_v8 = vmul.f32 %v6112_v0, %v5835_v24 }
 0x309   : > { %10261 = vst [vmem:[#allocation151_spill] sm:$0xff] %v6721_v18  ;;  %v1055_v14 = vmul.f32 %v6112_v0, %v5837_v23  ;;  %v1069_v16 = vmul.f32 %v6112_v0, %v5842_v22  ;;  %v1058_v21 = vmul.f32 %v6112_v0, %v5846_v26  ;;  %v1062_v20 = vmul.f32 %v6112_v0, %v5851_v25  ;;  %v10268_v23 = vld [vmem:[#allocation160_spill] sm:$0xff]  ;;  %v4902_v18 = vld [vmem:[%s5063_s18 + $0x88] sm:$0xff] }
 0x30a   : > { %10262 = vst [vmem:[#allocation152_spill] sm:$0xff] %v6724_v10  ;;  %v1061_v19 = vmul.f32 %v6112_v0, %v5853_v30  ;;  %v1718_v24 = vmul.f32 %v6743_v5, %v5855_v29  ;;  %v1065_v22 = vmul.f32 %v6112_v0, %v10268_v23  ;;  %v4900_v26 = vld [vmem:[%s5063_s18 + $0x90] sm:$0xff]  ;;  %v6782_v25 = vadd.f32 %v6128_v53, %v1049_v55  ;;  %v6792_v42 = vpop.permute.xlu2 %1646 }
 0x30b   : > { %10263 = vst [vmem:[#allocation153_spill] sm:$0xff] %v6727_v52  ;;  %v10269_v52 = vld [vmem:[#allocation161_spill] sm:$0xff]  ;;  %2048 = vperm.xlu0 %4878, %v4900_v26   ;;  %v6785_v30 = vadd.f32 %v6128_v53, %v1063_v1  ;;  %v6788_v29 = vadd.f32 %v6128_v53, %v1053_v4  ;;  %v6800_v26 = vadd.f32 %v6128_v53, %v1066_v17 }
 0x30c   : > { %10264 = vst [vmem:[#allocation156_spill] sm:$0xff] %v6730_v2  ;;  %v4899_v2 = vld [vmem:[%s5063_s18 + $0x70] sm:$0xff]  ;;  %v6803_v55 = vadd.f32 %v6128_v53, %v1056_v8  ;;  %v6806_v1 = vadd.f32 %v6128_v53, %v1055_v14  ;;  %v6809_v4 = vadd.f32 %v6128_v53, %v1069_v16  ;;  %v6821_v17 = vadd.f32 %v6128_v53, %v1061_v19 }
 0x30d   : > { %10265 = vst [vmem:[#allocation157_spill] sm:$0xff] %v6733_v46  ;;  %v6779_v46 = vpop.permute.xlu1 %1606  ;;  %v10283_v8 = vld [vmem:[#allocation8_spill] sm:$0xff]  ;;  %v6827_v14 = vadd.f32 %v6128_v53, %v1065_v22 }
 0x30e   : > { %10266 = vst [vmem:[#allocation158_spill] sm:$0xff] %v6736_v49  ;;  %v1059_v49 = vmul.f32 %v6112_v0, %v5844_v27  ;;  %v1064_v27 = vmul.f32 %v6112_v0, %v10269_v52  ;;  %v6794_v52 = vpop.permute.xlu0 %1614 }
 0x30f   : > { %10267 = vst [vmem:[#allocation187_spill] sm:$0xff] %v6746_v6  ;;  %v4898_v6 = vld [vmem:[%s5063_s18 + $0x68] sm:$0xff]  ;;  %2032 = vperm.xlu2 %4877, %v4899_v2   ;;  %v6797_v2 = vadd.f32 %v6128_v53, %v1052_v9  ;;  %v6818_v9 = vadd.f32 %v6128_v53, %v1062_v20 }
 0x310   : > { %2028 = vperm.xlu1 %4879, %v4898_v6   ;;  %10270 = vst [vmem:[#allocation160_spill] sm:$0xff] %v6782_v25  ;;  %v10273_v6 = vld [vmem:[#allocation162_spill] sm:$0xff]  ;;  %v6830_v16 = vadd.f32 %v6128_v53, %v1064_v27  ;;  %v10301_v25 = vld [vmem:[#allocation176_spill] sm:$0xff] }
 0x311   : > { %10271 = vst [vmem:[#allocation161_spill] sm:$0xff] %v6785_v30  ;;  %v1721_v23 = vmul.f32 %v6743_v5, %v10273_v6  ;;  %v6812_v6 = vadd.f32 %v6128_v53, %v1059_v49  ;;  %v6815_v30 = vadd.f32 %v6128_v53, %v1058_v21  ;;  %v10286_v49 = vld [vmem:[#allocation12_spill] sm:$0xff]  ;;  %v10288_v21 = vld [vmem:[#allocation163_spill] sm:$0xff] }
 0x312   : > { %10272 = vst [vmem:[#allocation188_spill] sm:$0xff] %v6788_v29  ;;  %v1068_v20 = vmul.f32 %v6112_v0, %v10288_v21  ;;  %v10298_v29 = vld [vmem:[#allocation173_spill] sm:$0xff] }
 0x313   : > { %10274 = vst [vmem:[#allocation162_spill] sm:$0xff] %v6797_v2  ;;  %v4901_v2 = vld [vmem:[%s5063_s18 + $0x80] sm:$0xff] }
 0x314   : > { %10275 = vst [vmem:[#allocation189_spill] sm:$0xff] %v6800_v26  ;;  %v6824_v26 = vadd.f32 %v1718_v24, %v10283_v8  ;;  %v10291_v8 = vld [vmem:[#allocation166_spill] sm:$0xff] }
 0x315   : > { %10276 = vst [vmem:[#allocation190_spill] sm:$0xff] %v6803_v55  ;;  %v1071_v22 = vmul.f32 %v6112_v0, %v10291_v8  ;;  %v1732_v8 = vmul.f32 %v6743_v5, %v10298_v29  ;;  %v6866_v10 = vpop.permute.xlu1 %1618 }
 0x316   : > { %10277 = vst [vmem:[#allocation191_spill] sm:$0xff] %v6806_v1 }
 0x317   : > { %10278 = vst [vmem:[#allocation192_spill] sm:$0xff] %v6809_v4  ;;  %v6833_v4 = vadd.f32 %v1721_v23, %v10286_v49  ;;  %v10294_v49 = vld [vmem:[#allocation169_spill] sm:$0xff]  ;;  %2044 = vperm.xlu2 %4877, %v4902_v18   ;;  %v6884_v18 = vadd.f32 %v6128_v53, %v1071_v22  ;;  %v10321_v22 = vld [vmem:[#allocation2_spill] sm:$0xff] }
 0x318   : > { %10279 = vst [vmem:[#allocation193_spill] sm:$0xff] %v6812_v6  ;;  %v1720_v21 = vmul.f32 %v6743_v5, %v10294_v49  ;;  %v10295_v6 = vld [vmem:[#allocation170_spill] sm:$0xff]  ;;  %2040 = vperm.xlu1 %4879, %v4901_v2   ;;  %v10305_v2 = vld [vmem:[#allocation3_spill] sm:$0xff] }
 0x319   : > { %10280 = vst [vmem:[#allocation194_spill] sm:$0xff] %v6815_v30  ;;  %v1729_v30 = vmul.f32 %v6743_v5, %v10295_v6  ;;  %v1735_v6 = vmul.f32 %v6743_v5, %v10301_v25  ;;  %v6881_v25 = vpop.permute.xlu0 %1626 }
 0x31a   : > { %10281 = vst [vmem:[#allocation195_spill] sm:$0xff] %v6818_v9  ;;  %v10289_v9 = vld [vmem:[#allocation164_spill] sm:$0xff] }
 0x31b   : > { %10282 = vst [vmem:[#allocation196_spill] sm:$0xff] %v6821_v17  ;;  %v1067_v19 = vmul.f32 %v6112_v0, %v10289_v9  ;;  %v10290_v17 = vld [vmem:[#allocation165_spill] sm:$0xff]  ;;  %v10296_v9 = vld [vmem:[#allocation171_spill] sm:$0xff] }
 0x31c   : > { %10284 = vst [vmem:[#allocation8_spill] sm:$0xff] %v6827_v14  ;;  %v1723_v24 = vmul.f32 %v6743_v5, %v10290_v17  ;;  %v10292_v14 = vld [vmem:[#allocation167_spill] sm:$0xff]  ;;  %v1719_v55 = vmul.f32 %v6743_v5, %v10296_v9  ;;  %v10297_v17 = vld [vmem:[#allocation172_spill] sm:$0xff] }
 0x31d   : > { %10285 = vst [vmem:[#allocation197_spill] sm:$0xff] %v6830_v16  ;;  %v1070_v27 = vmul.f32 %v6112_v0, %v10292_v14  ;;  %v10293_v16 = vld [vmem:[#allocation168_spill] sm:$0xff]  ;;  %v1722_v1 = vmul.f32 %v6743_v5, %v10297_v17  ;;  %v10299_v0 = vld [vmem:[#allocation174_spill] sm:$0xff]  ;;  %v4903_v9 = vld [vmem:[%s5063_s18 + $0xa8] sm:$0xff]  ;;  %v6869_v17 = vadd.f32 %v6128_v53, %v1068_v20  ;;  %v6872_v29 = vadd.f32 %v6128_v53, %v1067_v19 }
 0x31e   : > { %10287 = vst [vmem:[#allocation12_spill] sm:$0xff] %v6833_v4  ;;  %v1726_v23 = vmul.f32 %v6743_v5, %v10293_v16  ;;  %v1724_v14 = vmul.f32 %v6743_v5, %v10299_v0  ;;  %v10300_v16 = vld [vmem:[#allocation175_spill] sm:$0xff]  ;;  %2060 = vperm.xlu0 %4878, %v4903_v9   ;;  %v6875_v0 = vadd.f32 %v1723_v24, %v10305_v2  ;;  %v6879_v4 = vpop.permute.xlu2 %1658  ;;  %v10312_v20 = vld [vmem:[#allocation4_spill] sm:$0xff]  ;;  %v10314_v19 = vld [vmem:[#allocation178_spill] sm:$0xff] }
 0x31f   : > { %v1725_v49 = vmul.f32 %v6743_v5, %v10300_v16  ;;  %10302 = vst [vmem:[#allocation163_spill] sm:$0xff] %v6866_v10  ;;  %v1727_v16 = vmul.f32 %v6743_v5, %v10307_v12  ;;  %v6887_v9 = vadd.f32 %v6128_v53, %v1070_v27  ;;  %v1728_v24 = vmul.f32 %v6743_v5, %v10314_v19  ;;  %v10315_v2 = vld [vmem:[#allocation7_spill] sm:$0xff]  ;;  %v10317_v12 = vld [vmem:[#allocation6_spill] sm:$0xff]  ;;  %v10323_v53 = vld [vmem:[#allocation9_spill] sm:$0xff] }
 0x320   : > { %10303 = vst [vmem:[#allocation164_spill] sm:$0xff] %v6869_v17  ;;  %v6890_v17 = vadd.f32 %v1726_v23, %v10312_v20  ;;  %v6907_v27 = vadd.f32 %v1732_v8, %v10323_v53  ;;  %v10325_v23 = vld [vmem:[#allocation15_spill] sm:$0xff]  ;;  %v10327_v19 = vld [vmem:[#allocation14_spill] sm:$0xff]  ;;  %v10336_v53 = vld [vmem:[#allocation148_spill] sm:$0xff] }
 0x321   : > { %10304 = vst [vmem:[#allocation165_spill] sm:$0xff] %v6872_v29  ;;  %v6895_v29 = vadd.f32 %v1720_v21, %v10315_v2  ;;  %v6910_v20 = vadd.f32 %v1724_v14, %v10325_v23  ;;  %v10329_v21 = vld [vmem:[#allocation149_spill] sm:$0xff] }
 0x322   : > { %10306 = vst [vmem:[#allocation166_spill] sm:$0xff] %v6875_v0  ;;  %v6898_v0 = vadd.f32 %v1729_v30, %v10317_v12  ;;  %v6916_v2 = vadd.f32 %v1735_v6, %v10329_v21  ;;  %v10331_v30 = vld [vmem:[#allocation19_spill] sm:$0xff]  ;;  %v10338_v23 = vld [vmem:[#allocation17_spill] sm:$0xff] }
 0x323   : > { %10308 = vst [vmem:[#allocation167_spill] sm:$0xff] %v6879_v4  ;;  %v10319_v4 = vld [vmem:[#allocation13_spill] sm:$0xff]  ;;  %v6919_v12 = vadd.f32 %v1727_v16, %v10331_v30  ;;  %v1741_v6 = vmul.f32 %v6743_v5, %v10338_v23  ;;  %v10340_v21 = vld [vmem:[#allocation23_spill] sm:$0xff]  ;;  %v10345_v23 = vld [vmem:[#allocation36_spill] sm:$0xff] }
 0x324   : > { %10309 = vst [vmem:[#allocation168_spill] sm:$0xff] %v6881_v25  ;;  %v6901_v25 = vadd.f32 %v1719_v55, %v10319_v4  ;;  %v10333_v55 = vld [vmem:[#allocation179_spill] sm:$0xff]  ;;  %v10334_v4 = vld [vmem:[#allocation180_spill] sm:$0xff]  ;;  %v1734_v30 = vmul.f32 %v6743_v5, %v10340_v21 }
 0x325   : > { %10310 = vst [vmem:[#allocation169_spill] sm:$0xff] %v6884_v18  ;;  %v6904_v18 = vadd.f32 %v1722_v1, %v10321_v22  ;;  %v1738_v1 = vmul.f32 %v6743_v5, %v10333_v55  ;;  %v1730_v8 = vmul.f32 %v6743_v5, %v10334_v4  ;;  %v10335_v22 = vld [vmem:[#allocation18_spill] sm:$0xff] }
 0x326   : > { %10311 = vst [vmem:[#allocation170_spill] sm:$0xff] %v6887_v9  ;;  %v6913_v9 = vadd.f32 %v1725_v49, %v10327_v19  ;;  %v1731_v14 = vmul.f32 %v6743_v5, %v10335_v22  ;;  %v6928_v49 = vadd.f32 %v1728_v24, %v10336_v53  ;;  %v10339_v19 = vld [vmem:[#allocation24_spill] sm:$0xff]  ;;  %v10341_v55 = vld [vmem:[#allocation22_spill] sm:$0xff]  ;;  %v10343_v22 = vld [vmem:[#allocation29_spill] sm:$0xff]  ;;  %v6966_v10 = vpop.permute.xlu2 %1670 }
 0x327   : > { %10313 = vst [vmem:[#allocation171_spill] sm:$0xff] %v6890_v17  ;;  %v1733_v16 = vmul.f32 %v6743_v5, %v10339_v19  ;;  %v10342_v4 = vld [vmem:[#allocation30_spill] sm:$0xff]  ;;  %v10344_v24 = vld [vmem:[#allocation28_spill] sm:$0xff]  ;;  %v1739_v19 = vmul.f32 %v6743_v5, %v10345_v23 }
 0x328   : > { %10316 = vst [vmem:[#allocation172_spill] sm:$0xff] %v6895_v29  ;;  %v1747_v53 = vmul.f32 %v6743_v5, %v10344_v24  ;;  %v10351_v24 = vld [vmem:[#allocation21_spill] sm:$0xff]  ;;  %v10355_v17 = vld [vmem:[#allocation42_spill] sm:$0xff] }
 0x329   : > { %10318 = vst [vmem:[#allocation173_spill] sm:$0xff] %v6898_v0  ;;  %v6953_v0 = vpop.permute.xlu1 %1630 }
 0x32a   : > { %10320 = vst [vmem:[#allocation174_spill] sm:$0xff] %v6901_v25  ;;  %v10353_v25 = vld [vmem:[#allocation181_spill] sm:$0xff] }
 0x32b   : > { %10322 = vst [vmem:[#allocation175_spill] sm:$0xff] %v6904_v18  ;;  %v10347_v18 = vld [vmem:[#allocation34_spill] sm:$0xff]  ;;  %v6962_v23 = vadd.f32 %v1731_v14, %v10353_v25  ;;  %v10363_v14 = vld [vmem:[#allocation25_spill] sm:$0xff] }
 0x32c   : > { %10324 = vst [vmem:[#allocation176_spill] sm:$0xff] %v6907_v27  ;;  %v10346_v27 = vld [vmem:[#allocation35_spill] sm:$0xff] }
 0x32d   : > { %10326 = vst [vmem:[#allocation3_spill] sm:$0xff] %v6910_v20  ;;  %v1740_v21 = vmul.f32 %v6743_v5, %v10346_v27  ;;  %v4905_v20 = vld [vmem:[%s5063_s18 + $0xa0] sm:$0xff]  ;;  %v1742_v27 = vmul.f32 %v6743_v5, %v10355_v17  ;;  %v10365_v17 = vld [vmem:[#allocation39_spill] sm:$0xff] }
 0x32e   : > { %10328 = vst [vmem:[#allocation177_spill] sm:$0xff] %v6913_v9  ;;  %v1736_v9 = vmul.f32 %v6743_v5, %v10342_v4  ;;  %2056 = vperm.xlu2 %4877, %v4905_v20   ;;  %v4906_v4 = vld [vmem:[%s5063_s18 + $0xc0] sm:$0xff]  ;;  %v10356_v20 = vld [vmem:[#allocation20_spill] sm:$0xff] }
 0x32f   : > { %10330 = vst [vmem:[#allocation4_spill] sm:$0xff] %v6916_v2  ;;  %v1744_v2 = vmul.f32 %v6743_v5, %v10341_v55  ;;  %v1750_v55 = vmul.f32 %v6743_v5, %v10347_v18  ;;  %2072 = vperm.xlu0 %4878, %v4906_v4   ;;  %v6968_v18 = vpop.permute.xlu0 %1638  ;;  %v6971_v4 = vadd.f32 %v1741_v6, %v10356_v20  ;;  %v10369_v6 = vld [vmem:[#allocation40_spill] sm:$0xff] }
 0x330   : > { %10332 = vst [vmem:[#allocation178_spill] sm:$0xff] %v6919_v12  ;;  %v1737_v12 = vmul.f32 %v6743_v5, %v10343_v22  ;;  %v10349_v22 = vld [vmem:[#allocation16_spill] sm:$0xff]  ;;  %v1753_v20 = vmul.f32 %v6743_v5, %v10369_v6  ;;  %v10381_v6 = vld [vmem:[#allocation47_spill] sm:$0xff] }
 0x331   : > { %10337 = vst [vmem:[#allocation7_spill] sm:$0xff] %v6928_v49  ;;  %v4904_v49 = vld [vmem:[%s5063_s18 + $0x98] sm:$0xff]  ;;  %v6956_v29 = vadd.f32 %v1738_v1, %v10349_v22  ;;  %v10360_v1 = vld [vmem:[#allocation27_spill] sm:$0xff] }
 0x332   : > { %2052 = vperm.xlu1 %4879, %v4904_v49   ;;  %10348 = vst [vmem:[#allocation6_spill] sm:$0xff] %v6953_v0  ;;  %v6959_v49 = vadd.f32 %v1730_v8, %v10351_v24  ;;  %v10358_v0 = vld [vmem:[#allocation31_spill] sm:$0xff]  ;;  %v6977_v22 = vadd.f32 %v1734_v30, %v10360_v1  ;;  %v10362_v8 = vld [vmem:[#allocation41_spill] sm:$0xff]  ;;  %v6982_v24 = vadd.f32 %v1744_v2, %v10363_v14  ;;  %v10372_v30 = vld [vmem:[#allocation44_spill] sm:$0xff] }
 0x333   : > { %10350 = vst [vmem:[#allocation13_spill] sm:$0xff] %v6956_v29  ;;  %v6974_v54 = vadd.f32 %v1733_v16, %v10358_v0  ;;  %v1743_v25 = vmul.f32 %v6743_v5, %v10362_v8  ;;  %v10367_v29 = vld [vmem:[#allocation33_spill] sm:$0xff]  ;;  %v10370_v0 = vld [vmem:[#allocation32_spill] sm:$0xff]  ;;  %v6996_v1 = vadd.f32 %v1739_v19, %v10372_v30  ;;  %v10374_v8 = vld [vmem:[#allocation43_spill] sm:$0xff] }
 0x334   : > { %10352 = vst [vmem:[#allocation2_spill] sm:$0xff] %v6959_v49  ;;  %v6988_v49 = vadd.f32 %v1737_v12, %v10367_v29  ;;  %v6993_v16 = vadd.f32 %v1747_v53, %v10370_v0  ;;  %v10376_v2 = vld [vmem:[#allocation155_spill] sm:$0xff]  ;;  %v10380_v29 = vld [vmem:[#allocation48_spill] sm:$0xff]  ;;  %v1746_v53 = vmul.f32 %v6743_v5, %v10381_v6  ;;  %v10382_v0 = vld [vmem:[#allocation46_spill] sm:$0xff] }
 0x335   : > { %10354 = vst [vmem:[#allocation9_spill] sm:$0xff] %v6962_v23  ;;  %v6985_v23 = vadd.f32 %v1736_v9, %v10365_v17  ;;  %v7002_v14 = vadd.f32 %v1750_v55, %v10376_v2  ;;  %v10378_v9 = vld [vmem:[#allocation49_spill] sm:$0xff]  ;;  %v1745_v12 = vmul.f32 %v6743_v5, %v10380_v29  ;;  %v1756_v19 = vmul.f32 %v6743_v5, %v10382_v0  ;;  %v10383_v30 = vld [vmem:[#allocation154_spill] sm:$0xff]  ;;  %v10390_v6 = vld [vmem:[#allocation60_spill] sm:$0xff] }
 0x336   : > { %10357 = vst [vmem:[#allocation15_spill] sm:$0xff] %v6971_v4  ;;  %v7005_v17 = vadd.f32 %v1742_v27, %v10378_v9  ;;  %v10386_v2 = vld [vmem:[#allocation53_spill] sm:$0xff]  ;;  %v10387_v9 = vld [vmem:[#allocation52_spill] sm:$0xff]  ;;  %v10391_v0 = vld [vmem:[#allocation59_spill] sm:$0xff]  ;;  %v7053_v4 = vpop.permute.xlu2 %1682 }
 0x337   : > { %10359 = vst [vmem:[#allocation14_spill] sm:$0xff] %v6974_v54  ;;  %v1749_v27 = vmul.f32 %v6743_v5, %v10386_v2  ;;  %v1759_v29 = vmul.f32 %v6743_v5, %v10387_v9  ;;  %v10406_v54 = vld [vmem:[#allocation57_spill] sm:$0xff] }
 0x338   : > { %10361 = vst [vmem:[#allocation149_spill] sm:$0xff] %v6977_v22  ;;  %v6999_v22 = vadd.f32 %v1740_v21, %v10374_v8  ;;  %v7014_v21 = vadd.f32 %v1743_v25, %v10383_v30  ;;  %v10385_v8 = vld [vmem:[#allocation54_spill] sm:$0xff] }
 0x339   : > { %10364 = vst [vmem:[#allocation19_spill] sm:$0xff] %v6982_v24  ;;  %v1748_v55 = vmul.f32 %v6743_v5, %v10385_v8  ;;  %v10392_v25 = vld [vmem:[#allocation58_spill] sm:$0xff] }
 0x33a   : > { %10366 = vst [vmem:[#allocation179_spill] sm:$0xff] %v6985_v23  ;;  %v1762_v30 = vmul.f32 %v6743_v5, %v10392_v25  ;;  %v10393_v8 = vld [vmem:[#allocation66_spill] sm:$0xff]  ;;  %v10398_v25 = vld [vmem:[#allocation51_spill] sm:$0xff]  ;;  %v10402_v23 = vld [vmem:[#allocation72_spill] sm:$0xff] }
 0x33b   : > { %10368 = vst [vmem:[#allocation180_spill] sm:$0xff] %v6988_v49  ;;  %v1754_v2 = vmul.f32 %v6743_v5, %v10393_v8  ;;  %v10394_v49 = vld [vmem:[#allocation65_spill] sm:$0xff]  ;;  %v10400_v24 = vld [vmem:[#allocation50_spill] sm:$0xff] }
 0x33c   : > { %10371 = vst [vmem:[#allocation18_spill] sm:$0xff] %v6993_v16  ;;  %v1752_v16 = vmul.f32 %v6743_v5, %v10391_v0  ;;  %v1755_v9 = vmul.f32 %v6743_v5, %v10394_v49  ;;  %v7043_v0 = vadd.f32 %v1745_v12, %v6344_v59  ;;  %v7049_v8 = vadd.f32 %v1756_v19, %v10400_v24  ;;  %v10408_v59 = vld [vmem:[#allocation56_spill] sm:$0xff]  ;;  %v10411_v19 = vld [vmem:[#allocation69_spill] sm:$0xff] }
 0x33d   : > { %10373 = vst [vmem:[#allocation148_spill] sm:$0xff] %v6996_v1  ;;  %v10395_v1 = vld [vmem:[#allocation64_spill] sm:$0xff]  ;;  %v1757_v49 = vmul.f32 %v6743_v5, %v10402_v23  ;;  %v7064_v12 = vadd.f32 %v1759_v29, %v10408_v59  ;;  %v10419_v29 = vld [vmem:[#allocation74_spill] sm:$0xff] }
 0x33e   : > { %10375 = vst [vmem:[#allocation17_spill] sm:$0xff] %v6999_v22  ;;  %v10413_v23 = vld [vmem:[#allocation68_spill] sm:$0xff]  ;;  %v7082_v59 = vadd.f32 %v1754_v2, %v10419_v29  ;;  %v10430_v29 = vld [vmem:[#allocation79_spill] sm:$0xff] }
 0x33f   : > { %10377 = vst [vmem:[#allocation24_spill] sm:$0xff] %v7002_v14  ;;  %v10388_v14 = vld [vmem:[#allocation45_spill] sm:$0xff] }
 0x340   : > { %10379 = vst [vmem:[#allocation23_spill] sm:$0xff] %v7005_v17  ;;  %v7023_v22 = vadd.f32 %v1753_v20, %v10388_v14  ;;  %v1751_v17 = vmul.f32 %v6743_v5, %v10390_v6  ;;  %v1765_v20 = vmul.f32 %v6743_v5, %v10395_v1  ;;  %v4908_v14 = vld [vmem:[%s5063_s18 + $0xb8] sm:$0xff]  ;;  %v7055_v1 = vpop.permute.xlu0 %1650 }
 0x341   : > { %10384 = vst [vmem:[#allocation22_spill] sm:$0xff] %v7014_v21  ;;  %v4907_v21 = vld [vmem:[%s5063_s18 + $0xb0] sm:$0xff]  ;;  %2068 = vperm.xlu2 %4877, %v4908_v14   ;;  %v4909_v6 = vld [vmem:[%s5063_s18 + $0xd8] sm:$0xff] }
 0x342   : > { %10389 = vst [vmem:[#allocation30_spill] sm:$0xff] %v7023_v22  ;;  %2064 = vperm.xlu1 %4879, %v4907_v21   ;;  %2084 = vperm.xlu0 %4878, %v4909_v6   ;;  %v7040_v22 = vpop.permute.xlu1 %1642  ;;  %v7046_v21 = vadd.f32 %v1746_v53, %v10398_v25  ;;  %v10404_v14 = vld [vmem:[#allocation61_spill] sm:$0xff]  ;;  %v10410_v53 = vld [vmem:[#allocation71_spill] sm:$0xff]  ;;  %v7069_v25 = vadd.f32 %v1751_v17, %v10411_v19 }
 0x343   : > { %10396 = vst [vmem:[#allocation29_spill] sm:$0xff] %v7040_v22  ;;  %v7058_v6 = vadd.f32 %v1748_v55, %v10404_v14  ;;  %v7061_v22 = vadd.f32 %v1749_v27, %v10406_v54  ;;  %v1758_v24 = vmul.f32 %v6743_v5, %v10410_v53  ;;  %v10416_v55 = vld [vmem:[#allocation78_spill] sm:$0xff]  ;;  %v10417_v54 = vld [vmem:[#allocation67_spill] sm:$0xff]  ;;  %v10421_v53 = vld [vmem:[#allocation73_spill] sm:$0xff] }
 0x344   : > { %10397 = vst [vmem:[#allocation28_spill] sm:$0xff] %v7043_v0  ;;  %v1760_v14 = vmul.f32 %v6743_v5, %v10416_v55  ;;  %v7079_v27 = vadd.f32 %v1762_v30, %v10417_v54  ;;  %v10423_v17 = vld [vmem:[#allocation159_spill] sm:$0xff]  ;;  %v10428_v55 = vld [vmem:[#allocation76_spill] sm:$0xff] }
 0x345   : > { %10399 = vst [vmem:[#allocation36_spill] sm:$0xff] %v7046_v21  ;;  %v10415_v21 = vld [vmem:[#allocation70_spill] sm:$0xff]  ;;  %v7088_v19 = vadd.f32 %v1765_v20, %v10423_v17  ;;  %v1771_v30 = vmul.f32 %v6743_v5, %v10428_v55  ;;  %v10429_v54 = vld [vmem:[#allocation84_spill] sm:$0xff]  ;;  %v10437_v55 = vld [vmem:[#allocation183_spill] sm:$0xff] }
 0x346   : > { %10401 = vst [vmem:[#allocation35_spill] sm:$0xff] %v7049_v8  ;;  %v7072_v8 = vadd.f32 %v1752_v16, %v10413_v23  ;;  %v1768_v0 = vmul.f32 %v6743_v5, %v10415_v21  ;;  %v10425_v16 = vld [vmem:[#allocation80_spill] sm:$0xff]  ;;  %v10427_v21 = vld [vmem:[#allocation77_spill] sm:$0xff]  ;;  %v1763_v2 = vmul.f32 %v6743_v5, %v10429_v54  ;;  %v10433_v17 = vld [vmem:[#allocation82_spill] sm:$0xff] }
 0x347   : > { %10403 = vst [vmem:[#allocation34_spill] sm:$0xff] %v7055_v1  ;;  %v7091_v23 = vadd.f32 %v1757_v49, %v10425_v16  ;;  %v1774_v49 = vmul.f32 %v6743_v5, %v10433_v17  ;;  %v10434_v16 = vld [vmem:[#allocation90_spill] sm:$0xff]  ;;  %v10439_v54 = vld [vmem:[#allocation89_spill] sm:$0xff] }
 0x348   : > { %10405 = vst [vmem:[#allocation16_spill] sm:$0xff] %v7058_v6  ;;  %v7140_v6 = vpop.permute.xlu2 %1694 }
 0x349   : > { %10407 = vst [vmem:[#allocation21_spill] sm:$0xff] %v7061_v22  ;;  %v10443_v22 = vld [vmem:[#allocation94_spill] sm:$0xff] }
 0x34a   : > { %10409 = vst [vmem:[#allocation181_spill] sm:$0xff] %v7064_v12  ;;  %v7085_v12 = vadd.f32 %v1755_v9, %v10421_v53  ;;  %v7100_v9 = vadd.f32 %v1758_v24, %v10430_v29  ;;  %v10432_v53 = vld [vmem:[#allocation83_spill] sm:$0xff]  ;;  %v10440_v24 = vld [vmem:[#allocation88_spill] sm:$0xff] }
 0x34b   : > { %10412 = vst [vmem:[#allocation42_spill] sm:$0xff] %v7069_v25  ;;  %v1764_v20 = vmul.f32 %v6743_v5, %v10432_v53  ;;  %v1777_v29 = vmul.f32 %v6743_v5, %v10440_v24  ;;  %v10441_v53 = vld [vmem:[#allocation96_spill] sm:$0xff]  ;;  %v10447_v24 = vld [vmem:[#allocation81_spill] sm:$0xff]  ;;  %v10451_v25 = vld [vmem:[#allocation102_spill] sm:$0xff] }
 0x34c   : > { %10414 = vst [vmem:[#allocation20_spill] sm:$0xff] %v7072_v8  ;;  %v1761_v8 = vmul.f32 %v6743_v5, %v10427_v21  ;;  %v1766_v21 = vmul.f32 %v6743_v5, %v10434_v16  ;;  %v1769_v17 = vmul.f32 %v6743_v5, %v10441_v53 }
 0x34d   : > { %10418 = vst [vmem:[#allocation31_spill] sm:$0xff] %v7079_v27  ;;  %v1767_v27 = vmul.f32 %v6743_v5, %v10439_v54  ;;  %v10445_v54 = vld [vmem:[#allocation182_spill] sm:$0xff] }
 0x34e   : > { %10420 = vst [vmem:[#allocation27_spill] sm:$0xff] %v7082_v59  ;;  %v10442_v59 = vld [vmem:[#allocation95_spill] sm:$0xff] }
 0x34f   : > { %10422 = vst [vmem:[#allocation41_spill] sm:$0xff] %v7085_v12  ;;  %v1770_v16 = vmul.f32 %v6743_v5, %v10442_v59  ;;  %v1772_v59 = vmul.f32 %v6743_v5, %v10451_v25  ;;  %v10461_v25 = vld [vmem:[#allocation100_spill] sm:$0xff] }
 0x350   : > { %10424 = vst [vmem:[#allocation25_spill] sm:$0xff] %v7088_v19  ;;  %v10435_v19 = vld [vmem:[#allocation75_spill] sm:$0xff] }
 0x351   : > { %10426 = vst [vmem:[#allocation39_spill] sm:$0xff] %v7091_v23  ;;  %v7109_v12 = vadd.f32 %v1768_v0, %v10435_v19  ;;  %v7112_v23 = vadd.f32 %v1760_v14, %v10437_v55  ;;  %v1780_v0 = vmul.f32 %v6743_v5, %v10443_v22  ;;  %v4911_v19 = vld [vmem:[%s5063_s18 + $0xd0] sm:$0xff]  ;;  %v7127_v55 = vpop.permute.xlu1 %1654  ;;  %v7142_v22 = vpop.permute.xlu0 %1662 }
 0x352   : > { %10431 = vst [vmem:[#allocation33_spill] sm:$0xff] %v7100_v9  ;;  %v4910_v9 = vld [vmem:[%s5063_s18 + $0xc8] sm:$0xff]  ;;  %2080 = vperm.xlu2 %4877, %v4911_v19   ;;  %v4912_v14 = vld [vmem:[%s5063_s18 + $0xf0] sm:$0xff] }
 0x353   : > { %10436 = vst [vmem:[#allocation40_spill] sm:$0xff] %v7109_v12  ;;  %2076 = vperm.xlu1 %4879, %v4910_v9   ;;  %2096 = vperm.xlu0 %4878, %v4912_v14   ;;  %v7130_v12 = vadd.f32 %v1761_v8, %v10445_v54  ;;  %v7133_v9 = vadd.f32 %v1771_v30, %v10447_v24  ;;  %v10452_v19 = vld [vmem:[#allocation87_spill] sm:$0xff]  ;;  %v10458_v30 = vld [vmem:[#allocation101_spill] sm:$0xff] }
 0x354   : > { %10438 = vst [vmem:[#allocation32_spill] sm:$0xff] %v7112_v23  ;;  %v10449_v23 = vld [vmem:[#allocation91_spill] sm:$0xff]  ;;  %v7145_v14 = vadd.f32 %v1764_v20, %v10452_v19 }
 0x355   : > { %10444 = vst [vmem:[#allocation44_spill] sm:$0xff] %v7127_v55  ;;  %v7136_v53 = vadd.f32 %v1763_v2, %v10449_v23  ;;  %v10454_v55 = vld [vmem:[#allocation86_spill] sm:$0xff]  ;;  %v10456_v8 = vld [vmem:[#allocation99_spill] sm:$0xff]  ;;  %v1773_v23 = vmul.f32 %v6743_v5, %v10458_v30  ;;  %v10468_v30 = vld [vmem:[#allocation104_spill] sm:$0xff] }
 0x356   : > { %10446 = vst [vmem:[#allocation43_spill] sm:$0xff] %v7130_v12  ;;  %v7148_v1 = vadd.f32 %v1774_v49, %v10454_v55  ;;  %v7151_v54 = vadd.f32 %v1766_v21, %v10456_v8  ;;  %v10459_v2 = vld [vmem:[#allocation98_spill] sm:$0xff]  ;;  %v10462_v12 = vld [vmem:[#allocation108_spill] sm:$0xff]  ;;  %v10463_v20 = vld [vmem:[#allocation107_spill] sm:$0xff] }
 0x357   : > { %10448 = vst [vmem:[#allocation155_spill] sm:$0xff] %v7133_v9  ;;  %v7156_v24 = vadd.f32 %v1767_v27, %v10459_v2  ;;  %v1783_v9 = vmul.f32 %v6743_v5, %v10461_v25  ;;  %v1776_v19 = vmul.f32 %v6743_v5, %v10463_v20  ;;  %v10464_v49 = vld [vmem:[#allocation97_spill] sm:$0xff]  ;;  %v10470_v27 = vld [vmem:[#allocation103_spill] sm:$0xff]  ;;  %v10475_v20 = vld [vmem:[#allocation114_spill] sm:$0xff] }
 0x358   : > { %10450 = vst [vmem:[#allocation49_spill] sm:$0xff] %v7136_v53  ;;  %v1775_v53 = vmul.f32 %v6743_v5, %v10462_v12  ;;  %v7165_v55 = vadd.f32 %v1777_v29, %v10464_v49  ;;  %v10466_v21 = vld [vmem:[#allocation105_spill] sm:$0xff]  ;;  %v7174_v2 = vadd.f32 %v1780_v0, %v10470_v27  ;;  %v10472_v25 = vld [vmem:[#allocation111_spill] sm:$0xff]  ;;  %v10474_v12 = vld [vmem:[#allocation106_spill] sm:$0xff]  ;;  %v1778_v29 = vmul.f32 %v6743_v5, %v10475_v20 }
 0x359   : > { %10453 = vst [vmem:[#allocation48_spill] sm:$0xff] %v7145_v14  ;;  %v7168_v8 = vadd.f32 %v1769_v17, %v10466_v21  ;;  %v1786_v14 = vmul.f32 %v6743_v5, %v10474_v12  ;;  %v10476_v49 = vld [vmem:[#allocation113_spill] sm:$0xff]  ;;  %v10477_v21 = vld [vmem:[#allocation110_spill] sm:$0xff]  ;;  %v10480_v27 = vld [vmem:[#allocation120_spill] sm:$0xff] }
 0x35a   : > { %10455 = vst [vmem:[#allocation47_spill] sm:$0xff] %v7148_v1  ;;  %v7171_v1 = vadd.f32 %v1770_v16, %v10468_v30  ;;  %v1779_v17 = vmul.f32 %v6743_v5, %v10476_v49  ;;  %v7186_v16 = vadd.f32 %v1773_v23, %v10477_v21  ;;  %v10479_v30 = vld [vmem:[#allocation112_spill] sm:$0xff]  ;;  %v10484_v20 = vld [vmem:[#allocation185_spill] sm:$0xff]  ;;  %v10487_v23 = vld [vmem:[#allocation118_spill] sm:$0xff] }
 0x35b   : > { %10457 = vst [vmem:[#allocation46_spill] sm:$0xff] %v7151_v54  ;;  %v1789_v0 = vmul.f32 %v6743_v5, %v10479_v30  ;;  %v10485_v49 = vld [vmem:[#allocation184_spill] sm:$0xff]  ;;  %v1792_v21 = vmul.f32 %v6743_v5, %v10487_v23  ;;  %v10488_v30 = vld [vmem:[#allocation126_spill] sm:$0xff] }
 0x35c   : > { %10460 = vst [vmem:[#allocation154_spill] sm:$0xff] %v7156_v24  ;;  %v7177_v24 = vadd.f32 %v1772_v59, %v10472_v25  ;;  %v1781_v59 = vmul.f32 %v6743_v5, %v10480_v27  ;;  %v10481_v25 = vld [vmem:[#allocation119_spill] sm:$0xff]  ;;  %v1784_v27 = vmul.f32 %v6743_v5, %v10488_v30  ;;  %v10490_v54 = vld [vmem:[#allocation124_spill] sm:$0xff]  ;;  %v7223_v23 = vadd.f32 %v1779_v17, %v6518_v47 }
 0x35d   : > { %10465 = vst [vmem:[#allocation54_spill] sm:$0xff] %v7165_v55  ;;  %v1782_v12 = vmul.f32 %v6743_v5, %v10481_v25  ;;  %v7201_v55 = vadd.f32 %v1776_v19, %v10485_v49  ;;  %v7214_v19 = vpop.permute.xlu1 %1666  ;;  %v10494_v30 = vld [vmem:[#allocation132_spill] sm:$0xff] }
 0x35e   : > { %10467 = vst [vmem:[#allocation53_spill] sm:$0xff] %v7168_v8  ;;  %v10489_v8 = vld [vmem:[#allocation125_spill] sm:$0xff] }
 0x35f   : > { %10469 = vst [vmem:[#allocation52_spill] sm:$0xff] %v7171_v1  ;;  %v1785_v25 = vmul.f32 %v6743_v5, %v10489_v8  ;;  %v1787_v8 = vmul.f32 %v6743_v5, %v10494_v30 }
 0x360   : > { %10471 = vst [vmem:[#allocation45_spill] sm:$0xff] %v7174_v2  ;;  %v10482_v2 = vld [vmem:[#allocation109_spill] sm:$0xff] }
 0x361   : > { %10473 = vst [vmem:[#allocation60_spill] sm:$0xff] %v7177_v24  ;;  %v7195_v1 = vadd.f32 %v1783_v9, %v10482_v2  ;;  %v7198_v24 = vadd.f32 %v1775_v53, %v10484_v20  ;;  %v1795_v9 = vmul.f32 %v6743_v5, %v10490_v54  ;;  %v4914_v2 = vld [vmem:[%s5063_s18 + $0xe8] sm:$0xff]  ;;  %v7229_v54 = vpop.permute.xlu0 %1674 }
 0x362   : > { %10478 = vst [vmem:[#allocation59_spill] sm:$0xff] %v7186_v16  ;;  %v4913_v16 = vld [vmem:[%s5063_s18 + $0xe0] sm:$0xff]  ;;  %2092 = vperm.xlu2 %4877, %v4914_v2   ;;  %v4915_v53 = vld [vmem:[%s5063_s18 + $0x108] sm:$0xff] }
 0x363   : > { %10483 = vst [vmem:[#allocation58_spill] sm:$0xff] %v7195_v1  ;;  %2088 = vperm.xlu1 %4879, %v4913_v16   ;;  %2108 = vperm.xlu0 %4878, %v4915_v53   ;;  %v10491_v20 = vld [vmem:[#allocation115_spill] sm:$0xff]  ;;  %v7220_v16 = vadd.f32 %v1778_v29, %v6521_v50  ;;  %v10495_v2 = vld [vmem:[#allocation186_spill] sm:$0xff]  ;;  %v7235_v1 = vadd.f32 %v1781_v59, %v6538_v40 }
 0x364   : > { %10486 = vst [vmem:[#allocation66_spill] sm:$0xff] %v7201_v55  ;;  %v7217_v49 = vadd.f32 %v1786_v14, %v10491_v20  ;;  %v7227_v55 = vpop.permute.xlu2 %1706  ;;  %v7232_v53 = vadd.f32 %v1789_v0, %v10495_v2  ;;  %v7238_v14 = vadd.f32 %v1782_v12, %v6535_v34  ;;  %v10496_v50 = vld [vmem:[#allocation131_spill] sm:$0xff]  ;;  %v10497_v29 = vld [vmem:[#allocation130_spill] sm:$0xff]  ;;  %v10500_v0 = vld [vmem:[#allocation136_spill] sm:$0xff]  ;;  %v7251_v40 = vadd.f32 %v1792_v21, %v6532_v58 }
 0x365   : > { %10493 = vst [vmem:[#allocation64_spill] sm:$0xff] %v7223_v23  ;;  %v1788_v47 = vmul.f32 %v6743_v5, %v10496_v50  ;;  %v1798_v17 = vmul.f32 %v6743_v5, %v10497_v29  ;;  %v10498_v20 = vld [vmem:[#allocation138_spill] sm:$0xff]  ;;  %v10499_v23 = vld [vmem:[#allocation137_spill] sm:$0xff]  ;;  %v1801_v2 = vmul.f32 %v6743_v5, %v10500_v0  ;;  %v7254_v34 = vadd.f32 %v1784_v27, %v6547_v60  ;;  %v10507_v27 = vld [vmem:[#allocation123_spill] sm:$0xff] }
 0x366   : > { %10492 = vst [vmem:[#allocation65_spill] sm:$0xff] %v7217_v49  ;;  %v1790_v30 = vmul.f32 %v6743_v5, %v10498_v20  ;;  %v1791_v49 = vmul.f32 %v6743_v5, %v10499_v23  ;;  %v7257_v59 = vadd.f32 %v1785_v25, %v6544_v43  ;;  %v7260_v12 = vadd.f32 %v1795_v9, %v6541_v48  ;;  %v10504_v23 = vld [vmem:[#allocation144_spill] sm:$0xff]  ;;  %v10505_v20 = vld [vmem:[#allocation143_spill] sm:$0xff]  ;;  %v10506_v21 = vld [vmem:[#allocation142_spill] sm:$0xff] }
 0x367   : > { %v7263_v50 = vadd.f32 %v1787_v8, %v6556_v32  ;;  %v1793_v29 = vmul.f32 %v6743_v5, %v10504_v23  ;;  %v1794_v58 = vmul.f32 %v6743_v5, %v10505_v20  ;;  %v1804_v60 = vmul.f32 %v6743_v5, %v10506_v21  ;;  %v10509_v43 = vld [vmem:[#allocation150_spill] sm:$0xff]  ;;  %v10510_v25 = vld [vmem:[#allocation5_spill] sm:$0xff]  ;;  %v10516_v21 = vld [vmem:[#allocation128_spill] sm:$0xff] }
 0x368   : > { %10501 = vst [vmem:[#allocation51_spill] sm:$0xff] %v7257_v59  ;;  %v7272_v0 = vadd.f32 %v1788_v47, %v10507_v27  ;;  %v1796_v48 = vmul.f32 %v6743_v5, %v10509_v43  ;;  %v1797_v32 = vmul.f32 %v6743_v5, %v10510_v25  ;;  %v10511_v9 = vld [vmem:[#allocation10_spill] sm:$0xff]  ;;  %v10514_v20 = vld [vmem:[#allocation129_spill] sm:$0xff]  ;;  %v10518_v47 = vld [vmem:[#allocation127_spill] sm:$0xff] }
 0x369   : > { %10502 = vst [vmem:[#allocation50_spill] sm:$0xff] %v7260_v12  ;;  %v1807_v8 = vmul.f32 %v6743_v5, %v10511_v9  ;;  %v10512_v23 = vld [vmem:[#allocation122_spill] sm:$0xff]  ;;  %v7284_v59 = vadd.f32 %v1790_v30, %v10514_v20  ;;  %v7290_v27 = vadd.f32 %v1801_v2, %v10518_v47  ;;  %v10520_v25 = vld [vmem:[#allocation11_spill] sm:$0xff] }
 0x36a   : > { %10503 = vst [vmem:[#allocation72_spill] sm:$0xff] %v7263_v50  ;;  %v7281_v12 = vadd.f32 %v1798_v17, %v10512_v23  ;;  %v7287_v50 = vadd.f32 %v1791_v49, %v10516_v21  ;;  %v7296_v43 = vld [vmem:[%s9692_s1 + $0x2] ss:$0 sm:$0xff]  ;;  %v1799_v17 = vmul.f32 %v6743_v5, %v10520_v25  ;;  %v10522_v23 = vld [vmem:[#allocation37_spill] sm:$0xff]  ;;  %v7306_v21 = vpop.permute.xlu1 %1678 }
 0x36b   : > { %10508 = vst [vmem:[#allocation61_spill] sm:$0xff] %v7272_v0  ;;  %v4916_v0 = vld [vmem:[%s5063_s18 + $0xf8] sm:$0xff]  ;;  %v10521_v9 = vld [vmem:[#allocation26_spill] sm:$0xff]  ;;  %v1810_v49 = vmul.f32 %v6743_v5, %v10522_v23  ;;  %v7322_v23 = vadd.f32 %v1796_v48, %v6622_v63 }
 0x36c   : > { %10513 = vst [vmem:[#allocation57_spill] sm:$0xff] %v7281_v12  ;;  %2100 = vperm.xlu1 %4879, %v4916_v0   ;;  %v1800_v30 = vmul.f32 %v6743_v5, %v10521_v9  ;;  %v4917_v20 = vld [vmem:[%s5063_s18 + $0x100] sm:$0xff]  ;;  %v7309_v0 = vadd.f32 %v1793_v29, %v6605_v45  ;;  %v7328_v45 = vadd.f32 %v1807_v8, %v6608_v37  ;;  %v10527_v29 = vld [vmem:[#allocation55_spill] sm:$0xff]  ;;  %v10531_v8 = vld [vmem:[#allocation92_spill] sm:$0xff] }
 0x36d   : > { %10515 = vst [vmem:[#allocation56_spill] sm:$0xff] %v7284_v59  ;;  %2104 = vperm.xlu2 %4877, %v4917_v20   ;;  %v4918_v2 = vld [vmem:[%s5063_s18 + $0x120] sm:$0xff]  ;;  %v7319_v59 = vpop.permute.xlu0 %1686  ;;  %v7325_v20 = vadd.f32 %v1797_v32, %v6619_v35  ;;  %v7340_v35 = vadd.f32 %v1799_v17, %v6631_v3  ;;  %v7346_v32 = vadd.f32 %v1810_v49, %v6625_v62  ;;  %v10534_v62 = vld [vmem:[#allocation117_spill] sm:$0xff] }
 0x36e   : > { %10517 = vst [vmem:[#allocation71_spill] sm:$0xff] %v7287_v50  ;;  %2120 = vperm.xlu0 %4878, %v4918_v2   ;;  %v10523_v47 = vld [vmem:[#allocation134_spill] sm:$0xff]  ;;  %v10524_v50 = vld [vmem:[#allocation133_spill] sm:$0xff]  ;;  %v1977_v2 = vpop.permute.xlu2 %1976  ;;  %v7343_v37 = vadd.f32 %v1800_v30, %v6628_v28  ;;  %v1819_v30 = vmul.f32 %v6743_v5, %v10534_v62  ;;  %v10536_v62 = vld [vmem:[#allocation135_spill] sm:$0xff] }
 0x36f   : > { %10519 = vst [vmem:[#allocation69_spill] sm:$0xff] %v7290_v27  ;;  %v7312_v27 = vadd.f32 %v1794_v58, %v10523_v47  ;;  %v7315_v25 = vadd.f32 %v1804_v60, %v10524_v50  ;;  %v10526_v12 = vld [vmem:[#allocation38_spill] sm:$0xff]  ;;  %v1803_v58 = vmul.f32 %v6743_v5, %v10527_v29  ;;  %v10529_v47 = vld [vmem:[#allocation63_spill] sm:$0xff]  ;;  %v2488_v48 = vmul.f32 %v7296_v43, %v1977_v2  ;;  %v10533_v2 = vld [vmem:[#allocation116_spill] sm:$0xff] }
 0x370   : > { %v1802_v9 = vmul.f32 %v6743_v5, %v10526_v12  ;;  %v10528_v50 = vld [vmem:[#allocation62_spill] sm:$0xff]  ;;  %v1805_v12 = vmul.f32 %v6743_v5, %v10529_v47  ;;  %v1816_v29 = vmul.f32 %v6743_v5, %v10531_v8  ;;  %v10532_v47 = vld [vmem:[#allocation93_spill] sm:$0xff]  ;;  %v1809_v3 = vmul.f32 %v6743_v5, %v10533_v2 }
 0x371   : > { %10525 = vst [vmem:[#allocation68_spill] sm:$0xff] %v7315_v25  ;;  %v1813_v60 = vmul.f32 %v6743_v5, %v10528_v50  ;;  %v10530_v25 = vld [vmem:[#allocation85_spill] sm:$0xff]  ;;  %v2616_v17 = vadd.f32 %v2488_v48, %v6824_v26  ;;  %v7359_v28 = vadd.f32 %v1803_v58, %v6637_v61  ;;  %v4919_v58 = vld [vmem:[%s5063_s18 + $0x110] sm:$0xff]  ;;  %v1822_v2 = vmul.f32 %v6743_v5, %v6614_v31 }
 0x372   : > { %v1806_v63 = vmul.f32 %v6743_v5, %v10530_v25  ;;  %v7351_v50 = vadd.f32 %v1802_v9, %v6640_v56  ;;  %v1808_v25 = vmul.f32 %v6743_v5, %v10532_v47  ;;  %v10535_v49 = vld [vmem:[#allocation121_spill] sm:$0xff]  ;;  %v1812_v9 = vmul.f32 %v6743_v5, %v6602_v38 }
 0x373   : > { %v1811_v56 = vmul.f32 %v6743_v5, %v10535_v49  ;;  %v7368_v8 = vadd.f32 %v1813_v60, %v6634_v51  ;;  %v7371_v47 = vadd.f32 %v1805_v12, %v6649_v41  ;;  %v2744_v61 = vadd.f32 0.5, %v2616_v17  ;;  %v4920_v51 = vld [vmem:[%s5063_s18 + $0x118] sm:$0xff]  ;;  %v7386_v41 = vpop.permute.xlu1 %1690  ;;  %v10537_v12 = vld [vmem:[#allocation140_spill] sm:$0xff]  ;;  %v10538_v49 = vld [vmem:[#allocation139_spill] sm:$0xff] }
 0x374   : > { %v7374_v26 = vadd.f32 %v1806_v63, %v6646_v39  ;;  %2112 = vperm.xlu1 %4879, %v4919_v58   ;;  %v7378_v48 = vadd.f32 %v1816_v29, %v6643_v36  ;;  %v1814_v38 = vmul.f32 %v6743_v5, %v10536_v62  ;;  %v4921_v60 = vld [vmem:[%s5063_s18 + $0x138] sm:$0xff]  ;;  %v7389_v39 = vadd.f32 %v1808_v25, %v6691_v11 }
 0x375   : > { %2116 = vperm.xlu2 %4877, %v4920_v51   ;;  %v7392_v63 = vadd.f32 %v1809_v3, %v10537_v12  ;;  %v1815_v36 = vmul.f32 %v6743_v5, %v6688_v33  ;;  %v2872_v29 = vfloor.f32 %v2744_v61  ;;  %v7396_v31 = vpop.permute.xlu0 %1698  ;;  %v7399_v58 = vadd.f32 %v1819_v30, %v10538_v49  ;;  %v10545_v12 = vld [vmem:[#allocation12_spill] sm:$0xff] }
 0x376   : > { %2132 = vperm.xlu0 %4878, %v4921_v60   ;;  %v7402_v62 = vadd.f32 %v1811_v56, %v6706_v7  ;;  %v7405_v51 = vadd.f32 %v1812_v9, %v6697_v15  ;;  %v1825_v11 = vmul.f32 %v6743_v5, %v6701_v44  ;;  %v1989_v25 = vpop.permute.xlu2 %1988  ;;  %v1817_v3 = vmul.f32 %v6743_v5, %v6703_v13  ;;  %v10540_v60 = vld [vmem:[#allocation141_spill] sm:$0xff]  ;;  %v10542_v56 = vld [vmem:[#allocation146_spill] sm:$0xff]  ;;  %v10549_v49 = vld [vmem:[#allocation168_spill] sm:$0xff] }
 0x377   : > { %v1818_v33 = vmul.f32 %v6743_v5, %v6779_v46  ;;  %v7413_v61 = vsub.f32 %v2616_v17, %v2872_v29  ;;  %v2491_v30 = vmul.f32 %v7296_v43, %v1989_v25  ;;  %v7417_v7 = vadd.f32 %v1822_v2, %v10540_v60  ;;  %v10544_v46 = vld [vmem:[#allocation163_spill] sm:$0xff]  ;;  %v10550_v25 = vld [vmem:[#allocation6_spill] sm:$0xff] }
 0x378   : > { %10539 = vst [vmem:[#allocation70_spill] sm:$0xff] %v7405_v51  ;;  %v7420_v15 = vadd.f32 %v1814_v38, %v6715_v57  ;;  %v1828_v44 = vmul.f32 %v6743_v5, %v6792_v42  ;;  %v1820_v13 = vmul.f32 %v6743_v5, %v6794_v52  ;;  %v7427_v9 = vadd.f32 %v1815_v36, %v10542_v56  ;;  %v10546_v38 = vld [vmem:[#allocation145_spill] sm:$0xff]  ;;  %v10548_v42 = vld [vmem:[#allocation167_spill] sm:$0xff]  ;;  %v10551_v56 = vld [vmem:[#allocation152_spill] sm:$0xff] }
 0x379   : > { %10541 = vst [vmem:[#allocation78_spill] sm:$0xff] %v7417_v7  ;;  %v1821_v17 = vmul.f32 %v6743_v5, %v10544_v46  ;;  %v7433_v2 = vmul.f32 %v7413_v61, %v7413_v61  ;;  %v2619_v57 = vadd.f32 %v2491_v30, %v10545_v12  ;;  %v7437_v29 = vadd.f32 %v1825_v11, %v10546_v38  ;;  %v4922_v11 = vld [vmem:[%s5063_s18 + $0x128] sm:$0xff] }
 0x37a   : > { %10543 = vst [vmem:[#allocation67_spill] sm:$0xff] %v7427_v9  ;;  %v1831_v52 = vmul.f32 %v6743_v5, %v10548_v42  ;;  %v1823_v36 = vmul.f32 %v6743_v5, %v10549_v49  ;;  %v1824_v60 = vmul.f32 %v6743_v5, %v10550_v25  ;;  %v7446_v46 = vadd.f32 %v1817_v3, %v10551_v56  ;;  %v10552_v9 = vld [vmem:[#allocation151_spill] sm:$0xff]  ;;  %v10556_v42 = vld [vmem:[#allocation157_spill] sm:$0xff]  ;;  %v4923_v25 = vld [vmem:[%s5063_s18 + $0x130] sm:$0xff] }
 0x37b   : > { %10547 = vst [vmem:[#allocation74_spill] sm:$0xff] %v7437_v29  ;;  %v7449_v7 = vadd.f32 %v1818_v33, %v10552_v9  ;;  %v3256_v30 = vmul.f32 -12.575904, %v7433_v2  ;;  %v2747_v12 = vadd.f32 0.5, %v2619_v57  ;;  %v10554_v38 = vld [vmem:[#allocation147_spill] sm:$0xff]  ;;  %v7457_v51 = vadd.f32 %v1820_v13, %v10556_v42  ;;  %v4924_v3 = vld [vmem:[%s5063_s18 + $0x150] sm:$0xff]  ;;  %v7463_v33 = vpop.permute.xlu1 %1702 }
 0x37c   : > { %2124 = vperm.xlu1 %4879, %v4922_v11   ;;  %v7454_v29 = vadd.f32 %v1828_v44, %v10554_v38  ;;  %v1834_v49 = vmul.f32 %v6743_v5, %v6966_v10  ;;  %v10558_v9 = vld [vmem:[#allocation156_spill] sm:$0xff]  ;;  %v1826_v11 = vmul.f32 %v6743_v5, %v6968_v18  ;;  %v10560_v13 = vld [vmem:[#allocation153_spill] sm:$0xff]  ;;  %v1837_v18 = vmul.f32 %v6743_v5, %v7053_v4  ;;  %v10570_v4 = vld [vmem:[#allocation162_spill] sm:$0xff] }
 0x37d   : > { %10553 = vst [vmem:[#allocation73_spill] sm:$0xff] %v7449_v7  ;;  %2128 = vperm.xlu2 %4877, %v4923_v25   ;;  %v7466_v56 = vadd.f32 %v1821_v17, %v10558_v9  ;;  %v3384_v44 = vadd.f32 41.40318, %v3256_v30  ;;  %v2875_v38 = vfloor.f32 %v2747_v12  ;;  %v7473_v42 = vadd.f32 %v1831_v52, %v10560_v13  ;;  %v10562_v10 = vld [vmem:[#allocation160_spill] sm:$0xff]  ;;  %v10563_v25 = vld [vmem:[#allocation187_spill] sm:$0xff]  ;;  %v10566_v13 = vld [vmem:[#allocation158_spill] sm:$0xff] }
 0x37e   : > { %10555 = vst [vmem:[#allocation159_spill] sm:$0xff] %v7454_v29  ;;  %2144 = vperm.xlu0 %4878, %v4924_v3   ;;  %v7470_v29 = vpop.permute.xlu0 %1710  ;;  %v7476_v7 = vadd.f32 %v1823_v36, %v10562_v10  ;;  %v7479_v3 = vadd.f32 %v1824_v60, %v10563_v25  ;;  %v1997_v9 = vpop.permute.xlu2 %1996  ;;  %v10568_v36 = vld [vmem:[#allocation34_spill] sm:$0xff]  ;;  %v10569_v10 = vld [vmem:[#allocation44_spill] sm:$0xff]  ;;  %v1840_v25 = vmul.f32 %v6743_v5, %v7140_v6 }
 0x37f   : > { %10557 = vst [vmem:[#allocation80_spill] sm:$0xff] %v7457_v51  ;;  %v10565_v51 = vld [vmem:[#allocation29_spill] sm:$0xff]  ;;  %v3512_v30 = vmul.f32 %v3384_v44, %v7433_v2  ;;  %v7486_v12 = vsub.f32 %v2619_v57, %v2875_v38  ;;  %v2493_v52 = vmul.f32 %v7296_v43, %v1997_v9  ;;  %v1829_v60 = vmul.f32 %v6743_v5, %v10568_v36  ;;  %v10573_v9 = vld [vmem:[#allocation188_spill] sm:$0xff] }
 0x380   : > { %10559 = vst [vmem:[#allocation77_spill] sm:$0xff] %v7466_v56  ;;  %v1827_v17 = vmul.f32 %v6743_v5, %v10565_v51  ;;  %v1830_v51 = vmul.f32 %v6743_v5, %v10569_v10  ;;  %v1832_v36 = vmul.f32 %v6743_v5, %v7142_v22  ;;  %v1833_v6 = vmul.f32 %v6743_v5, %v7214_v19  ;;  %v10579_v22 = vld [vmem:[#allocation190_spill] sm:$0xff]  ;;  %v10581_v19 = vld [vmem:[#allocation189_spill] sm:$0xff] }
 0x381   : > { %10561 = vst [vmem:[#allocation76_spill] sm:$0xff] %v7473_v42  ;;  %v7490_v42 = vadd.f32 %v1834_v49, %v10566_v13  ;;  %v3640_v57 = vadd.f32 -76.6265, %v3512_v30  ;;  %v7503_v44 = vmul.f32 %v7486_v12, %v7486_v12  ;;  %v10572_v49 = vld [vmem:[#allocation166_spill] sm:$0xff]  ;;  %v10575_v30 = vld [vmem:[#allocation161_spill] sm:$0xff] }
 0x382   : > { %10564 = vst [vmem:[#allocation84_spill] sm:$0xff] %v7479_v3  ;;  %v7499_v3 = vadd.f32 %v1826_v11, %v10570_v4  ;;  %v2621_v38 = vadd.f32 %v2493_v52, %v10572_v49  ;;  %v7507_v13 = vadd.f32 %v1827_v17, %v10573_v9  ;;  %v1843_v11 = vmul.f32 %v6743_v5, %v7227_v55  ;;  %v10577_v17 = vld [vmem:[#allocation191_spill] sm:$0xff] }
 0x383   : > { %10567 = vst [vmem:[#allocation79_spill] sm:$0xff] %v7490_v42  ;;  %v7516_v10 = vadd.f32 %v1837_v18, %v10575_v30  ;;  %v3768_v4 = vmul.f32 %v3640_v57, %v7433_v2  ;;  %v3259_v52 = vmul.f32 -12.575904, %v7503_v44  ;;  %v4925_v42 = vld [vmem:[%s5063_s18 + $0x140] sm:$0xff]  ;;  %v7522_v9 = vadd.f32 %v1829_v60, %v10577_v17  ;;  %v4926_v55 = vld [vmem:[%s5063_s18 + $0x148] sm:$0xff]  ;;  %v7532_v30 = vpop.permute.xlu1 %1714 }
 0x384   : > { %10571 = vst [vmem:[#allocation83_spill] sm:$0xff] %v7499_v3  ;;  %v2749_v49 = vadd.f32 0.5, %v2621_v38  ;;  %2136 = vperm.xlu1 %4879, %v4925_v42   ;;  %v7528_v3 = vadd.f32 %v1840_v25, %v10581_v19  ;;  %v4927_v18 = vld [vmem:[%s5063_s18 + $0x168] sm:$0xff]  ;;  %v1835_v57 = vmul.f32 %v6743_v5, %v7229_v54  ;;  %v10583_v60 = vld [vmem:[#allocation194_spill] sm:$0xff]  ;;  %v10587_v25 = vld [vmem:[#allocation192_spill] sm:$0xff]  ;;  %v1838_v54 = vmul.f32 %v6743_v5, %v7319_v59 }
 0x385   : > { %10574 = vst [vmem:[#allocation82_spill] sm:$0xff] %v7507_v13  ;;  %v7525_v13 = vadd.f32 %v1830_v51, %v10579_v22  ;;  %2140 = vperm.xlu2 %4877, %v4926_v55   ;;  %v3387_v42 = vadd.f32 41.40318, %v3259_v52  ;;  %v7537_v17 = vadd.f32 %v1832_v36, %v10583_v60  ;;  %v10585_v51 = vld [vmem:[#allocation193_spill] sm:$0xff]  ;;  %v7543_v19 = vadd.f32 %v1843_v11, %v10587_v25  ;;  %v10589_v60 = vld [vmem:[#allocation196_spill] sm:$0xff] }
 0x386   : > { %10576 = vst [vmem:[#allocation90_spill] sm:$0xff] %v7516_v10  ;;  %2156 = vperm.xlu0 %4878, %v4927_v18   ;;  %v3896_v10 = vadd.f32 81.60091, %v3768_v4  ;;  %v2877_v56 = vfloor.f32 %v2749_v49  ;;  %v7540_v22 = vadd.f32 %v1833_v6, %v10585_v51  ;;  %v1836_v55 = vmul.f32 %v6743_v5, %v7306_v21  ;;  %v2009_v18 = vpop.permute.xlu2 %2008 }
 0x387   : > { %10578 = vst [vmem:[#allocation75_spill] sm:$0xff] %v7522_v9  ;;  %v3515_v36 = vmul.f32 %v3387_v42, %v7503_v44  ;;  %v1839_v6 = vmul.f32 %v6743_v5, %v7386_v41  ;;  %v1841_v11 = vmul.f32 %v6743_v5, %v7396_v31  ;;  %v2496_v21 = vmul.f32 %v7296_v43, %v2009_v18  ;;  %v10593_v42 = vld [vmem:[#allocation171_spill] sm:$0xff] }
 0x388   : > { %10580 = vst [vmem:[#allocation183_spill] sm:$0xff] %v7525_v13  ;;  %v4024_v4 = vmul.f32 %v3896_v10, %v7433_v2  ;;  %v7551_v52 = vsub.f32 %v2621_v38, %v2877_v56  ;;  %v7560_v51 = vadd.f32 %v1835_v57, %v10589_v60  ;;  %v10591_v38 = vld [vmem:[#allocation195_spill] sm:$0xff]  ;;  %v1842_v31 = vmul.f32 %v6743_v5, %v7463_v33  ;;  %v10595_v57 = vld [vmem:[#allocation197_spill] sm:$0xff] }
 0x389   : > { %10582 = vst [vmem:[#allocation89_spill] sm:$0xff] %v7528_v3  ;;  %v1981_v3 = vpop.permute.xlu0 %1980  ;;  %v3643_v10 = vadd.f32 -76.6265, %v3515_v36  ;;  %v7567_v41 = vadd.f32 %v1836_v55, %v10591_v38  ;;  %v2624_v25 = vadd.f32 %v2496_v21, %v10593_v42  ;;  %v7574_v60 = vadd.f32 %v1838_v54, %v10595_v57  ;;  %v4928_v55 = vld [vmem:[%s5063_s18 + $0x158] sm:$0xff]  ;;  %v10597_v38 = vld [vmem:[#allocation8_spill] sm:$0xff]  ;;  %v4929_v42 = vld [vmem:[%s5063_s18 + $0x160] sm:$0xff] }
 0x38a   : > { %10584 = vst [vmem:[#allocation88_spill] sm:$0xff] %v7537_v17  ;;  %v2489_v49 = vmul.f32 %v7296_v43, %v1981_v3  ;;  %v4152_v59 = vadd.f32 -41.341618, %v4024_v4  ;;  %v7564_v56 = vmul.f32 %v7551_v52, %v7551_v52  ;;  %v10594_v3 = vld [vmem:[#allocation174_spill] sm:$0xff]  ;;  %v10599_v33 = vld [vmem:[#allocation165_spill] sm:$0xff] }
 0x38b   : > { %10586 = vst [vmem:[#allocation96_spill] sm:$0xff] %v7540_v22  ;;  %v3771_v36 = vmul.f32 %v3643_v10, %v7503_v44  ;;  %v7584_v22 = vadd.f32 %v1841_v11, %v10599_v33  ;;  %v2752_v21 = vadd.f32 0.5, %v2624_v25  ;;  %v4930_v54 = vld [vmem:[%s5063_s18 + $0x180] sm:$0xff]  ;;  %v1844_v10 = vmul.f32 %v6743_v5, %v7470_v29  ;;  %v1985_v57 = vpop.permute.xlu1 %1984 }
 0x38c   : > { %10588 = vst [vmem:[#allocation95_spill] sm:$0xff] %v7543_v19  ;;  %v2617_v18 = vadd.f32 %v2489_v49, %v10594_v3  ;;  %v4280_v4 = vmul.f32 %v4152_v59, %v7433_v2  ;;  %v3261_v19 = vmul.f32 -12.575904, %v7564_v56  ;;  %2148 = vperm.xlu1 %4879, %v4928_v55  }
 0x38d   : > { %10590 = vst [vmem:[#allocation94_spill] sm:$0xff] %v7560_v51  ;;  %2152 = vperm.xlu2 %4877, %v4929_v42   ;;  %v3899_v59 = vadd.f32 81.60091, %v3771_v36  ;;  %v2880_v55 = vfloor.f32 %v2752_v21 }
 0x38e   : > { %10592 = vst [vmem:[#allocation182_spill] sm:$0xff] %v7567_v41  ;;  %v7581_v41 = vadd.f32 %v1839_v6, %v10597_v38  ;;  %v2745_v49 = vadd.f32 0.5, %v2617_v18  ;;  %2168 = vperm.xlu0 %4878, %v4930_v54   ;;  %v4408_v2 = vadd.f32 6.283185, %v4280_v4  ;;  %v3389_v3 = vadd.f32 41.40318, %v3261_v19  ;;  %v2021_v36 = vpop.permute.xlu2 %2020 }
 0x38f   : > { %10596 = vst [vmem:[#allocation81_spill] sm:$0xff] %v7574_v60  ;;  %v10601_v6 = vld [vmem:[#allocation164_spill] sm:$0xff]  ;;  %v2490_v4 = vmul.f32 %v7296_v43, %v1985_v57  ;;  %v4027_v19 = vmul.f32 %v3899_v59, %v7503_v44  ;;  %v2499_v54 = vmul.f32 %v7296_v43, %v2021_v36  ;;  %v10606_v36 = vld [vmem:[#allocation170_spill] sm:$0xff] }
 0x390   : > { %10598 = vst [vmem:[#allocation91_spill] sm:$0xff] %v7581_v41  ;;  %v7598_v11 = vadd.f32 %v1842_v31, %v10601_v6  ;;  %v2873_v38 = vfloor.f32 %v2745_v49  ;;  %v4536_v29 = vmul.f32 %v4408_v2, %v7413_v61  ;;  %v3517_v42 = vmul.f32 %v3389_v3, %v7564_v56  ;;  %v10603_v31 = vld [vmem:[#allocation172_spill] sm:$0xff]  ;;  %v10604_v2 = vld [vmem:[#allocation173_spill] sm:$0xff] }
 0x391   : > { %10600 = vst [vmem:[#allocation102_spill] sm:$0xff] %v7584_v22  ;;  %v2001_v33 = vpop.permute.xlu0 %2000  ;;  %v7605_v41 = vsub.f32 %v2624_v25, %v2880_v55  ;;  %v2618_v21 = vadd.f32 %v2490_v4, %v10603_v31  ;;  %v4155_v57 = vadd.f32 -41.341618, %v4027_v19  ;;  %v1845_v61 = vmul.f32 %v6743_v5, %v7532_v30  ;;  %v10605_v55 = vld [vmem:[#allocation3_spill] sm:$0xff] }
 0x392   : > { %10602 = vst [vmem:[#allocation87_spill] sm:$0xff] %v7598_v11  ;;  %v7607_v22 = vsub.f32 %v2617_v18, %v2873_v38  ;;  %v2494_v49 = vmul.f32 %v7296_v43, %v2001_v33  ;;  %v3645_v6 = vadd.f32 -76.6265, %v3517_v42  ;;  %v2627_v59 = vadd.f32 %v2499_v54, %v10604_v2  ;;  %v4932_v2 = vld [vmem:[%s5063_s18 + $0x178] sm:$0xff] }
 0x393   : > { %4665 = vst.msk [vmem:[%s7595_s29] sm:$0xff] %vm4664_vm0, %v4536_v29  ;;  %v7618_v25 = vmul.f32 %v7605_v41, %v7605_v41  ;;  %v2746_v3 = vadd.f32 0.5, %v2618_v21  ;;  %v4283_v4 = vmul.f32 %v4155_v57, %v7503_v44  ;;  %v7627_v33 = vadd.f32 %v1844_v10, %v10606_v36  ;;  %v4931_v29 = vld [vmem:[%s5063_s18 + $0x170] sm:$0xff]  ;;  %v4933_v11 = vld [vmem:[%s5063_s18 + $0x198] sm:$0xff] }
 0x394   : > { %v7622_v18 = vmul.f32 %v7607_v22, %v7607_v22  ;;  %v2622_v38 = vadd.f32 %v2494_v49, %v10605_v55  ;;  %v3773_v5 = vmul.f32 %v3645_v6, %v7564_v56  ;;  %v2755_v30 = vadd.f32 0.5, %v2627_v59  ;;  %2160 = vperm.xlu1 %4879, %v4931_v29   ;;  %v10608_v57 = vld [vmem:[#allocation169_spill] sm:$0xff]  ;;  %v1993_v55 = vpop.permute.xlu1 %1992 }
 0x395   : > { %10607 = vst [vmem:[#allocation86_spill] sm:$0xff] %v7627_v33  ;;  %v3264_v19 = vmul.f32 -12.575904, %v7618_v25  ;;  %v2874_v54 = vfloor.f32 %v2746_v3  ;;  %2164 = vperm.xlu2 %4877, %v4932_v2   ;;  %v4411_v49 = vadd.f32 6.283185, %v4283_v4  ;;  %v7636_v10 = vadd.f32 %v1845_v61, %v10608_v57 }
 0x396   : > { %v3257_v42 = vmul.f32 -12.575904, %v7622_v18  ;;  %v2750_v31 = vadd.f32 0.5, %v2622_v38  ;;  %2180 = vperm.xlu0 %4878, %v4933_v11   ;;  %v3901_v44 = vadd.f32 81.60091, %v3773_v5  ;;  %v2883_v6 = vfloor.f32 %v2755_v30  ;;  %v2033_v51 = vpop.permute.xlu2 %2032  ;;  %v10610_v30 = vld [vmem:[#allocation175_spill] sm:$0xff] }
 0x397   : > { %10609 = vst [vmem:[#allocation99_spill] sm:$0xff] %v7636_v10  ;;  %v3392_v36 = vadd.f32 41.40318, %v3264_v19  ;;  %v7638_v33 = vsub.f32 %v2618_v21, %v2874_v54  ;;  %v4539_v3 = vmul.f32 %v4411_v49, %v7486_v12  ;;  %v2492_v11 = vmul.f32 %v7296_v43, %v1993_v55 }
 0x398   : > { %v3385_v29 = vadd.f32 41.40318, %v3257_v42  ;;  %v2878_v60 = vfloor.f32 %v2750_v31  ;;  %v4029_v2 = vmul.f32 %v3901_v44, %v7564_v56  ;;  %v7642_v13 = vsub.f32 %v2627_v59, %v2883_v6  ;;  %v10611_v6 = vld [vmem:[#allocation176_spill] sm:$0xff] }
 0x399   : > { %v3520_v61 = vmul.f32 %v3392_v36, %v7618_v25  ;;  %v7649_v5 = vmul.f32 %v7638_v33, %v7638_v33  ;;  %4668 = vst.msk [vmem:[%s7595_s29 + $0x18] sm:$0xff] %vm4664_vm0, %v4539_v3  ;;  %v2620_v19 = vadd.f32 %v2492_v11, %v10610_v30  ;;  %v2502_v42 = vmul.f32 %v7296_v43, %v2033_v51  ;;  %v4934_v36 = vld [vmem:[%s5063_s18 + $0x188] sm:$0xff]  ;;  %v4935_v11 = vld [vmem:[%s5063_s18 + $0x190] sm:$0xff] }
 0x39a   : > { %v3513_v4 = vmul.f32 %v3385_v29, %v7622_v18  ;;  %v7651_v21 = vsub.f32 %v2622_v38, %v2878_v60  ;;  %v4157_v12 = vadd.f32 -41.341618, %v4029_v2  ;;  %v7657_v59 = vmul.f32 %v7642_v13, %v7642_v13 }
 0x39b   : > { %v3648_v54 = vadd.f32 -76.6265, %v3520_v61  ;;  %v3258_v49 = vmul.f32 -12.575904, %v7649_v5  ;;  %v2748_v57 = vadd.f32 0.5, %v2620_v19  ;;  %v2630_v55 = vadd.f32 %v2502_v42, %v10611_v6  ;;  %v4936_v61 = vld [vmem:[%s5063_s18 + $0x1b0] sm:$0xff] }
 0x39c   : > { %v3641_v31 = vadd.f32 -76.6265, %v3513_v4  ;;  %v7664_v60 = vmul.f32 %v7651_v21, %v7651_v21  ;;  %v4285_v38 = vmul.f32 %v4157_v12, %v7564_v56  ;;  %v3267_v44 = vmul.f32 -12.575904, %v7657_v59  ;;  %2172 = vperm.xlu1 %4879, %v4934_v36  }
 0x39d   : > { %v3776_v51 = vmul.f32 %v3648_v54, %v7618_v25  ;;  %v3386_v3 = vadd.f32 41.40318, %v3258_v49  ;;  %2176 = vperm.xlu2 %4877, %v4935_v11   ;;  %v2876_v12 = vfloor.f32 %v2748_v57  ;;  %v2758_v30 = vadd.f32 0.5, %v2630_v55  ;;  %v2013_v54 = vpop.permute.xlu0 %2012 }
 0x39e   : > { %v3769_v29 = vmul.f32 %v3641_v31, %v7622_v18  ;;  %v3262_v2 = vmul.f32 -12.575904, %v7664_v60  ;;  %2192 = vperm.xlu0 %4878, %v4936_v61   ;;  %v4413_v4 = vadd.f32 6.283185, %v4285_v38  ;;  %v3395_v56 = vadd.f32 41.40318, %v3267_v44 }
 0x39f   : > { %v3904_v10 = vadd.f32 81.60091, %v3776_v51  ;;  %v3514_v6 = vmul.f32 %v3386_v3, %v7649_v5  ;;  %v7678_v17 = vsub.f32 %v2620_v19, %v2876_v12  ;;  %v2886_v11 = vfloor.f32 %v2758_v30 }
 0x3a0   : > { %v3897_v42 = vadd.f32 81.60091, %v3769_v29  ;;  %v3390_v36 = vadd.f32 41.40318, %v3262_v2  ;;  %v4541_v31 = vmul.f32 %v4413_v4, %v7551_v52  ;;  %v3523_v49 = vmul.f32 %v3395_v56, %v7657_v59  ;;  %v2005_v56 = vpop.permute.xlu1 %2004 }
 0x3a1   : > { %v4032_v61 = vmul.f32 %v3904_v10, %v7618_v25  ;;  %v3642_v44 = vadd.f32 -76.6265, %v3514_v6  ;;  %v7687_v29 = vmul.f32 %v7678_v17, %v7678_v17  ;;  %v7689_v52 = vsub.f32 %v2630_v55, %v2886_v11  ;;  %v10612_v55 = vld [vmem:[#allocation178_spill] sm:$0xff] }
 0x3a2   : > { %v4025_v38 = vmul.f32 %v3897_v42, %v7622_v18  ;;  %v3518_v57 = vmul.f32 %v3390_v36, %v7664_v60  ;;  %4670 = vst.msk [vmem:[%s7595_s29 + $0x28] sm:$0xff] %vm4664_vm0, %v4541_v31  ;;  %v3651_v51 = vadd.f32 -76.6265, %v3523_v49  ;;  %v2497_v19 = vmul.f32 %v7296_v43, %v2013_v54  ;;  %v4937_v36 = vld [vmem:[%s5063_s18 + $0x1a0] sm:$0xff] }
 0x3a3   : > { %v4160_v3 = vadd.f32 -41.341618, %v4032_v61  ;;  %v3770_v2 = vmul.f32 %v3642_v44, %v7649_v5  ;;  %v3260_v30 = vmul.f32 -12.575904, %v7687_v29  ;;  %v7697_v42 = vmul.f32 %v7689_v52, %v7689_v52  ;;  %v4938_v61 = vld [vmem:[%s5063_s18 + $0x1a8] sm:$0xff] }
 0x3a4   : > { %v4153_v10 = vadd.f32 -41.341618, %v4025_v38  ;;  %v3646_v4 = vadd.f32 -76.6265, %v3518_v57  ;;  %v3779_v12 = vmul.f32 %v3651_v51, %v7657_v59  ;;  %v2625_v6 = vadd.f32 %v2497_v19, %v10612_v55  ;;  %2184 = vperm.xlu1 %4879, %v4937_v36   ;;  %v4939_v38 = vld [vmem:[%s5063_s18 + $0x1c8] sm:$0xff]  ;;  %v2045_v19 = vpop.permute.xlu2 %2044 }
 0x3a5   : > { %v4288_v54 = vmul.f32 %v4160_v3, %v7618_v25  ;;  %v3898_v49 = vadd.f32 81.60091, %v3770_v2  ;;  %2188 = vperm.xlu2 %4877, %v4938_v61   ;;  %v3388_v57 = vadd.f32 41.40318, %v3260_v30  ;;  %v3270_v51 = vmul.f32 -12.575904, %v7697_v42 }
 0x3a6   : > { %v4281_v31 = vmul.f32 %v4153_v10, %v7622_v18  ;;  %v3774_v11 = vmul.f32 %v3646_v4, %v7664_v60  ;;  %2204 = vperm.xlu0 %4878, %v4939_v38   ;;  %v3907_v44 = vadd.f32 81.60091, %v3779_v12  ;;  %v2495_v9 = vmul.f32 %v7296_v43, %v2005_v56 }
 0x3a7   : > { %v4416_v55 = vadd.f32 6.283185, %v4288_v54  ;;  %v4026_v25 = vmul.f32 %v3898_v49, %v7649_v5  ;;  %v3516_v10 = vmul.f32 %v3388_v57, %v7687_v29  ;;  %v3398_v2 = vadd.f32 41.40318, %v3270_v51  ;;  %v10613_v57 = vld [vmem:[#allocation177_spill] sm:$0xff] }
 0x3a8   : > { %v4409_v36 = vadd.f32 6.283185, %v4281_v31  ;;  %v3902_v18 = vadd.f32 81.60091, %v3774_v11  ;;  %v4035_v3 = vmul.f32 %v3907_v44, %v7657_v59  ;;  %v2753_v4 = vadd.f32 0.5, %v2625_v6 }
 0x3a9   : > { %v4544_v12 = vmul.f32 %v4416_v55, %v7605_v41  ;;  %v4154_v61 = vadd.f32 -41.341618, %v4026_v25  ;;  %v3644_v31 = vadd.f32 -76.6265, %v3516_v10  ;;  %v3526_v49 = vmul.f32 %v3398_v2, %v7697_v42  ;;  %v10614_v2 = vld [vmem:[#allocation4_spill] sm:$0xff] }
 0x3aa   : > { %v4537_v30 = vmul.f32 %v4409_v36, %v7607_v22  ;;  %v4030_v56 = vmul.f32 %v3902_v18, %v7664_v60  ;;  %v4163_v54 = vadd.f32 -41.341618, %v4035_v3  ;;  %v2881_v11 = vfloor.f32 %v2753_v4  ;;  %v4940_v18 = vld [vmem:[%s5063_s18 + $0x1b8] sm:$0xff]  ;;  %v2025_v4 = vpop.permute.xlu0 %2024 }
 0x3ab   : > { %4673 = vst.msk [vmem:[%s7595_s29 + $0x40] sm:$0xff] %vm4664_vm0, %v4544_v12  ;;  %v4282_v38 = vmul.f32 %v4154_v61, %v7649_v5  ;;  %v2623_v51 = vadd.f32 %v2495_v9, %v10613_v57  ;;  %v2505_v22 = vmul.f32 %v7296_v43, %v2045_v19  ;;  %v3772_v55 = vmul.f32 %v3644_v31, %v7687_v29  ;;  %v4941_v12 = vld [vmem:[%s5063_s18 + $0x1c0] sm:$0xff] }
 0x3ac   : > { %v4158_v44 = vadd.f32 -41.341618, %v4030_v56  ;;  %4666 = vst.msk [vmem:[%s7595_s29 + $0x8] sm:$0xff] %vm4664_vm0, %v4537_v30  ;;  %v4291_v41 = vmul.f32 %v4163_v54, %v7657_v59  ;;  %v3654_v36 = vadd.f32 -76.6265, %v3526_v49  ;;  %v7724_v25 = vsub.f32 %v2625_v6, %v2881_v11  ;;  %2196 = vperm.xlu1 %4879, %v4940_v18   ;;  %v4942_v19 = vld [vmem:[%s5063_s18 + $0x1e0] sm:$0xff]  ;;  %v2017_v49 = vpop.permute.xlu1 %2016 }
 0x3ad   : > { %v4410_v3 = vadd.f32 6.283185, %v4282_v38  ;;  %v2751_v10 = vadd.f32 0.5, %v2623_v51  ;;  %v2633_v9 = vadd.f32 %v2505_v22, %v10614_v2  ;;  %2200 = vperm.xlu2 %4877, %v4941_v12   ;;  %v3900_v30 = vadd.f32 81.60091, %v3772_v55  ;;  %v2057_v22 = vpop.permute.xlu2 %2056 }
 0x3ae   : > { %v4286_v5 = vmul.f32 %v4158_v44, %v7664_v60  ;;  %2216 = vperm.xlu0 %4878, %v4942_v19   ;;  %v4419_v59 = vadd.f32 6.283185, %v4291_v41  ;;  %v3782_v61 = vmul.f32 %v3654_v36, %v7697_v42  ;;  %v7734_v6 = vmul.f32 %v7724_v25, %v7724_v25 }
 0x3af   : > { %v4538_v60 = vmul.f32 %v4410_v3, %v7638_v33  ;;  %v2879_v54 = vfloor.f32 %v2751_v10  ;;  %v2761_v31 = vadd.f32 0.5, %v2633_v9  ;;  %v4028_v38 = vmul.f32 %v3900_v30, %v7687_v29  ;;  %v10615_v10 = vld [vmem:[#allocation2_spill] sm:$0xff]  ;;  %v10616_v30 = vld [vmem:[#allocation7_spill] sm:$0xff] }
 0x3b0   : > { %v4414_v56 = vadd.f32 6.283185, %v4286_v5  ;;  %v4547_v11 = vmul.f32 %v4419_v59, %v7642_v13  ;;  %v3910_v44 = vadd.f32 81.60091, %v3782_v61  ;;  %v3265_v57 = vmul.f32 -12.575904, %v7734_v6 }
 0x3b1   : > { %4667 = vst.msk [vmem:[%s7595_s29 + $0x10] sm:$0xff] %vm4664_vm0, %v4538_v60  ;;  %v7743_v55 = vsub.f32 %v2623_v51, %v2879_v54  ;;  %v2889_v33 = vfloor.f32 %v2761_v31  ;;  %v2500_v36 = vmul.f32 %v7296_v43, %v2025_v4  ;;  %v4156_v18 = vadd.f32 -41.341618, %v4028_v38  ;;  %v4943_v60 = vld [vmem:[%s5063_s18 + $0x1d0] sm:$0xff]  ;;  %v10617_v31 = vld [vmem:[#allocation13_spill] sm:$0xff] }
 0x3b2   : > { %v4542_v41 = vmul.f32 %v4414_v56, %v7651_v21  ;;  %4676 = vst.msk [vmem:[%s7595_s29 + $0x58] sm:$0xff] %vm4664_vm0, %v4547_v11  ;;  %v4038_v13 = vmul.f32 %v3910_v44, %v7697_v42  ;;  %v3393_v3 = vadd.f32 41.40318, %v3265_v57  ;;  %v2498_v5 = vmul.f32 %v7296_v43, %v2017_v49  ;;  %v4944_v11 = vld [vmem:[%s5063_s18 + $0x1d8] sm:$0xff] }
 0x3b3   : > { %v7754_v21 = vmul.f32 %v7743_v55, %v7743_v55  ;;  %v7756_v51 = vsub.f32 %v2633_v9, %v2889_v33  ;;  %v2628_v2 = vadd.f32 %v2500_v36, %v10615_v10  ;;  %v2508_v4 = vmul.f32 %v7296_v43, %v2057_v22  ;;  %v4945_v38 = vld [vmem:[%s5063_s18 + $0x1f8] sm:$0xff] }
 0x3b4   : > { %4671 = vst.msk [vmem:[%s7595_s29 + $0x30] sm:$0xff] %vm4664_vm0, %v4542_v41  ;;  %v4284_v12 = vmul.f32 %v4156_v18, %v7687_v29  ;;  %v4166_v19 = vadd.f32 -41.341618, %v4038_v13  ;;  %v3521_v59 = vmul.f32 %v3393_v3, %v7734_v6  ;;  %v2626_v61 = vadd.f32 %v2498_v5, %v10616_v30  ;;  %2208 = vperm.xlu1 %4879, %v4943_v60   ;;  %v2037_v13 = vpop.permute.xlu0 %2036 }
 0x3b5   : > { %v3263_v56 = vmul.f32 -12.575904, %v7754_v21  ;;  %v7767_v54 = vmul.f32 %v7756_v51, %v7756_v51  ;;  %v2756_v9 = vadd.f32 0.5, %v2628_v2  ;;  %v2636_v49 = vadd.f32 %v2508_v4, %v10617_v31  ;;  %2212 = vperm.xlu2 %4877, %v4944_v11  }
 0x3b6   : > { %2228 = vperm.xlu0 %4878, %v4945_v38   ;;  %v4412_v29 = vadd.f32 6.283185, %v4284_v12  ;;  %v4294_v44 = vmul.f32 %v4166_v19, %v7697_v42  ;;  %v3649_v57 = vadd.f32 -76.6265, %v3521_v59  ;;  %v2754_v22 = vadd.f32 0.5, %v2626_v61  ;;  %v2029_v59 = vpop.permute.xlu1 %2028 }
 0x3b7   : > { %v3391_v41 = vadd.f32 41.40318, %v3263_v56  ;;  %v3273_v33 = vmul.f32 -12.575904, %v7767_v54  ;;  %v2884_v36 = vfloor.f32 %v2756_v9  ;;  %v2764_v18 = vadd.f32 0.5, %v2636_v49 }
 0x3b8   : > { %v4540_v3 = vmul.f32 %v4412_v29, %v7678_v17  ;;  %v4422_v5 = vadd.f32 6.283185, %v4294_v44  ;;  %v3777_v10 = vmul.f32 %v3649_v57, %v7734_v6  ;;  %v2882_v4 = vfloor.f32 %v2754_v22  ;;  %v10618_v29 = vld [vmem:[#allocation14_spill] sm:$0xff] }
 0x3b9   : > { %v3519_v12 = vmul.f32 %v3391_v41, %v7754_v21  ;;  %v3401_v30 = vadd.f32 41.40318, %v3273_v33  ;;  %v7777_v42 = vsub.f32 %v2628_v2, %v2884_v36  ;;  %v2892_v19 = vfloor.f32 %v2764_v18  ;;  %v4946_v36 = vld [vmem:[%s5063_s18 + $0x1e8] sm:$0xff]  ;;  %v4947_v18 = vld [vmem:[%s5063_s18 + $0x1f0] sm:$0xff] }
 0x3ba   : > { %4669 = vst.msk [vmem:[%s7595_s29 + $0x20] sm:$0xff] %vm4664_vm0, %v4540_v3  ;;  %v4550_v60 = vmul.f32 %v4422_v5, %v7689_v52  ;;  %v3905_v56 = vadd.f32 81.60091, %v3777_v10  ;;  %v7782_v9 = vsub.f32 %v2626_v61, %v2882_v4  ;;  %v2503_v17 = vmul.f32 %v7296_v43, %v2037_v13  ;;  %v10619_v10 = vld [vmem:[#allocation9_spill] sm:$0xff] }
 0x3bb   : > { %v3647_v31 = vadd.f32 -76.6265, %v3519_v12  ;;  %v3529_v11 = vmul.f32 %v3401_v30, %v7767_v54  ;;  %v7788_v2 = vmul.f32 %v7777_v42, %v7777_v42  ;;  %v7790_v38 = vsub.f32 %v2636_v49, %v2892_v19  ;;  %v4948_v12 = vld [vmem:[%s5063_s18 + $0x210] sm:$0xff] }
 0x3bc   : > { %4679 = vst.msk [vmem:[%s7595_s29 + $0x70] sm:$0xff] %vm4664_vm0, %v4550_v60  ;;  %v4033_v52 = vmul.f32 %v3905_v56, %v7734_v6  ;;  %v7797_v61 = vmul.f32 %v7782_v9, %v7782_v9  ;;  %v2631_v44 = vadd.f32 %v2503_v17, %v10618_v29  ;;  %v2501_v57 = vmul.f32 %v7296_v43, %v2029_v59 }
 0x3bd   : > { %v3775_v22 = vmul.f32 %v3647_v31, %v7754_v21  ;;  %v3657_v41 = vadd.f32 -76.6265, %v3529_v11  ;;  %v3268_v33 = vmul.f32 -12.575904, %v7788_v2  ;;  %v7805_v49 = vmul.f32 %v7790_v38, %v7790_v38  ;;  %2220 = vperm.xlu1 %4879, %v4946_v36   ;;  %2224 = vperm.xlu2 %4877, %v4947_v18  }
 0x3be   : > { %v4161_v13 = vadd.f32 -41.341618, %v4033_v52  ;;  %v3266_v3 = vmul.f32 -12.575904, %v7797_v61  ;;  %v2759_v5 = vadd.f32 0.5, %v2631_v44  ;;  %v2629_v4 = vadd.f32 %v2501_v57, %v10619_v10  ;;  %2240 = vperm.xlu0 %4878, %v4948_v12  }
 0x3bf   : > { %v3903_v30 = vadd.f32 81.60091, %v3775_v22  ;;  %v3785_v19 = vmul.f32 %v3657_v41, %v7767_v54  ;;  %v3396_v59 = vadd.f32 41.40318, %v3268_v33  ;;  %v3276_v60 = vmul.f32 -12.575904, %v7805_v49 }
 0x3c0   : > { %v4289_v56 = vmul.f32 %v4161_v13, %v7734_v6  ;;  %v3394_v17 = vadd.f32 41.40318, %v3266_v3  ;;  %v2887_v31 = vfloor.f32 %v2759_v5  ;;  %v2757_v11 = vadd.f32 0.5, %v2629_v4  ;;  %v2069_v5 = vpop.permute.xlu2 %2068 }
 0x3c1   : > { %v4031_v52 = vmul.f32 %v3903_v30, %v7754_v21  ;;  %v3913_v29 = vadd.f32 81.60091, %v3785_v19  ;;  %v3524_v36 = vmul.f32 %v3396_v59, %v7788_v2  ;;  %v3404_v18 = vadd.f32 41.40318, %v3276_v60 }
 0x3c2   : > { %v4417_v57 = vadd.f32 6.283185, %v4289_v56  ;;  %v3522_v10 = vmul.f32 %v3394_v17, %v7797_v61  ;;  %v7818_v22 = vsub.f32 %v2631_v44, %v2887_v31  ;;  %v2885_v41 = vfloor.f32 %v2757_v11  ;;  %v4949_v31 = vld [vmem:[%s5063_s18 + $0x200] sm:$0xff]  ;;  %v4950_v11 = vld [vmem:[%s5063_s18 + $0x208] sm:$0xff] }
 0x3c3   : > { %v4159_v33 = vadd.f32 -41.341618, %v4031_v52  ;;  %v4041_v6 = vmul.f32 %v3913_v29, %v7767_v54  ;;  %v3652_v13 = vadd.f32 -76.6265, %v3524_v36  ;;  %v3532_v3 = vmul.f32 %v3404_v18, %v7805_v49  ;;  %v4951_v29 = vld [vmem:[%s5063_s18 + $0x228] sm:$0xff] }
 0x3c4   : > { %v4545_v12 = vmul.f32 %v4417_v57, %v7724_v25  ;;  %v3650_v30 = vadd.f32 -76.6265, %v3522_v10  ;;  %v7825_v19 = vmul.f32 %v7818_v22, %v7818_v22  ;;  %v7827_v44 = vsub.f32 %v2629_v4, %v2885_v41  ;;  %v2049_v41 = vpop.permute.xlu0 %2048 }
 0x3c5   : > { %v4287_v59 = vmul.f32 %v4159_v33, %v7754_v21  ;;  %v4169_v60 = vadd.f32 -41.341618, %v4041_v6  ;;  %v3780_v56 = vmul.f32 %v3652_v13, %v7788_v2  ;;  %v3660_v17 = vadd.f32 -76.6265, %v3532_v3  ;;  %2232 = vperm.xlu1 %4879, %v4949_v31   ;;  %2236 = vperm.xlu2 %4877, %v4950_v11   ;;  %v10620_v3 = vld [vmem:[#allocation15_spill] sm:$0xff] }
 0x3c6   : > { %4674 = vst.msk [vmem:[%s7595_s29 + $0x48] sm:$0xff] %vm4664_vm0, %v4545_v12  ;;  %v3778_v25 = vmul.f32 %v3650_v30, %v7797_v61  ;;  %v3271_v52 = vmul.f32 -12.575904, %v7825_v19  ;;  %v7839_v4 = vmul.f32 %v7827_v44, %v7827_v44  ;;  %v2511_v21 = vmul.f32 %v7296_v43, %v2069_v5  ;;  %2252 = vperm.xlu0 %4878, %v4951_v29   ;;  %v2041_v30 = vpop.permute.xlu1 %2040 }
 0x3c7   : > { %v4415_v36 = vadd.f32 6.283185, %v4287_v59  ;;  %v4297_v18 = vmul.f32 %v4169_v60, %v7767_v54  ;;  %v3908_v57 = vadd.f32 81.60091, %v3780_v56  ;;  %v3788_v10 = vmul.f32 %v3660_v17, %v7805_v49 }
 0x3c8   : > { %v3906_v33 = vadd.f32 81.60091, %v3778_v25  ;;  %v3399_v6 = vadd.f32 41.40318, %v3271_v52  ;;  %v3269_v13 = vmul.f32 -12.575904, %v7839_v4  ;;  %v2639_v12 = vadd.f32 %v2511_v21, %v10620_v3 }
 0x3c9   : > { %v4543_v31 = vmul.f32 %v4415_v36, %v7743_v55  ;;  %v4425_v5 = vadd.f32 6.283185, %v4297_v18  ;;  %v4036_v59 = vmul.f32 %v3908_v57, %v7788_v2  ;;  %v3916_v11 = vadd.f32 81.60091, %v3788_v10  ;;  %v4952_v3 = vld [vmem:[%s5063_s18 + $0x218] sm:$0xff] }
 0x3ca   : > { %v4034_v54 = vmul.f32 %v3906_v33, %v7797_v61  ;;  %v3527_v60 = vmul.f32 %v3399_v6, %v7825_v19  ;;  %v3397_v56 = vadd.f32 41.40318, %v3269_v13  ;;  %v2767_v17 = vadd.f32 0.5, %v2639_v12  ;;  %v10621_v6 = vld [vmem:[#allocation179_spill] sm:$0xff] }
 0x3cb   : > { %4672 = vst.msk [vmem:[%s7595_s29 + $0x38] sm:$0xff] %vm4664_vm0, %v4543_v31  ;;  %v4553_v25 = vmul.f32 %v4425_v5, %v7756_v51  ;;  %v4164_v52 = vadd.f32 -41.341618, %v4036_v59  ;;  %v4044_v21 = vmul.f32 %v3916_v11, %v7805_v49  ;;  %v2506_v55 = vmul.f32 %v7296_v43, %v2049_v41  ;;  %v4953_v11 = vld [vmem:[%s5063_s18 + $0x220] sm:$0xff] }
 0x3cc   : > { %v4162_v29 = vadd.f32 -41.341618, %v4034_v54  ;;  %v3655_v36 = vadd.f32 -76.6265, %v3527_v60  ;;  %v3525_v18 = vmul.f32 %v3397_v56, %v7839_v4  ;;  %v2895_v57 = vfloor.f32 %v2767_v17  ;;  %v4954_v54 = vld [vmem:[%s5063_s18 + $0x240] sm:$0xff]  ;;  %v10622_v17 = vld [vmem:[#allocation149_spill] sm:$0xff] }
 0x3cd   : > { %4682 = vst.msk [vmem:[%s7595_s29 + $0x88] sm:$0xff] %vm4664_vm0, %v4553_v25  ;;  %v4292_v10 = vmul.f32 %v4164_v52, %v7788_v2  ;;  %v4172_v33 = vadd.f32 -41.341618, %v4044_v21  ;;  %v2634_v13 = vadd.f32 %v2506_v55, %v10621_v6  ;;  %v2504_v51 = vmul.f32 %v7296_v43, %v2041_v30  ;;  %2244 = vperm.xlu1 %4879, %v4952_v3   ;;  %v2081_v30 = vpop.permute.xlu2 %2080 }
 0x3ce   : > { %v4290_v41 = vmul.f32 %v4162_v29, %v7797_v61  ;;  %v3783_v31 = vmul.f32 %v3655_v36, %v7825_v19  ;;  %v3653_v5 = vadd.f32 -76.6265, %v3525_v18  ;;  %v7865_v59 = vsub.f32 %v2639_v12, %v2895_v57  ;;  %2248 = vperm.xlu2 %4877, %v4953_v11   ;;  %2264 = vperm.xlu0 %4878, %v4954_v54  }
 0x3cf   : > { %v4420_v60 = vadd.f32 6.283185, %v4292_v10  ;;  %v4300_v2 = vmul.f32 %v4172_v33, %v7805_v49  ;;  %v2762_v56 = vadd.f32 0.5, %v2634_v13  ;;  %v2632_v25 = vadd.f32 %v2504_v51, %v10622_v17  ;;  %v2061_v49 = vpop.permute.xlu0 %2060  ;;  %v2053_v51 = vpop.permute.xlu1 %2052 }
 0x3d0   : > { %v4418_v52 = vadd.f32 6.283185, %v4290_v41  ;;  %v3911_v21 = vadd.f32 81.60091, %v3783_v31  ;;  %v3781_v61 = vmul.f32 %v3653_v5, %v7839_v4  ;;  %v7874_v12 = vmul.f32 %v7865_v59, %v7865_v59 }
 0x3d1   : > { %v4548_v55 = vmul.f32 %v4420_v60, %v7777_v42  ;;  %v4428_v29 = vadd.f32 6.283185, %v4300_v2  ;;  %v2890_v36 = vfloor.f32 %v2762_v56  ;;  %v2760_v18 = vadd.f32 0.5, %v2632_v25  ;;  %v10623_v60 = vld [vmem:[#allocation19_spill] sm:$0xff] }
 0x3d2   : > { %v4546_v57 = vmul.f32 %v4418_v52, %v7782_v9  ;;  %v4039_v10 = vmul.f32 %v3911_v21, %v7825_v19  ;;  %v3909_v33 = vadd.f32 81.60091, %v3781_v61  ;;  %v3279_v6 = vmul.f32 -12.575904, %v7874_v12  ;;  %v10624_v21 = vld [vmem:[#allocation148_spill] sm:$0xff] }
 0x3d3   : > { %4677 = vst.msk [vmem:[%s7595_s29 + $0x60] sm:$0xff] %vm4664_vm0, %v4548_v55  ;;  %v4556_v3 = vmul.f32 %v4428_v29, %v7790_v38  ;;  %v7883_v41 = vsub.f32 %v2634_v13, %v2890_v36  ;;  %v2888_v42 = vfloor.f32 %v2760_v18  ;;  %v2514_v31 = vmul.f32 %v7296_v43, %v2081_v30  ;;  %v4955_v55 = vld [vmem:[%s5063_s18 + $0x230] sm:$0xff]  ;;  %v4956_v29 = vld [vmem:[%s5063_s18 + $0x238] sm:$0xff] }
 0x3d4   : > { %4675 = vst.msk [vmem:[%s7595_s29 + $0x50] sm:$0xff] %vm4664_vm0, %v4546_v57  ;;  %v4167_v9 = vadd.f32 -41.341618, %v4039_v10  ;;  %v4037_v5 = vmul.f32 %v3909_v33, %v7839_v4  ;;  %v3407_v11 = vadd.f32 41.40318, %v3279_v6  ;;  %v2509_v54 = vmul.f32 %v7296_v43, %v2061_v49  ;;  %v10625_v49 = vld [vmem:[#allocation180_spill] sm:$0xff] }
 0x3d5   : > { %4685 = vst.msk [vmem:[%s7595_s29 + $0xa0] sm:$0xff] %vm4664_vm0, %v4556_v3  ;;  %v7894_v38 = vmul.f32 %v7883_v41, %v7883_v41  ;;  %v7896_v13 = vsub.f32 %v2632_v25, %v2888_v42  ;;  %v2642_v2 = vadd.f32 %v2514_v31, %v10623_v60  ;;  %v2507_v56 = vmul.f32 %v7296_v43, %v2053_v51  ;;  %v4957_v57 = vld [vmem:[%s5063_s18 + $0x258] sm:$0xff] }
 0x3d6   : > { %v4295_v17 = vmul.f32 %v4167_v9, %v7825_v19  ;;  %v4165_v30 = vadd.f32 -41.341618, %v4037_v5  ;;  %v3535_v52 = vmul.f32 %v3407_v11, %v7874_v12  ;;  %v2637_v61 = vadd.f32 %v2509_v54, %v10624_v21  ;;  %2256 = vperm.xlu1 %4879, %v4955_v55   ;;  %2260 = vperm.xlu2 %4877, %v4956_v29   ;;  %v2093_v9 = vpop.permute.xlu2 %2092 }
 0x3d7   : > { %v3274_v36 = vmul.f32 -12.575904, %v7894_v38  ;;  %v7908_v25 = vmul.f32 %v7896_v13, %v7896_v13  ;;  %v2770_v18 = vadd.f32 0.5, %v2642_v2  ;;  %v2635_v43 = vadd.f32 %v2507_v56, %v10625_v49  ;;  %2276 = vperm.xlu0 %4878, %v4957_v57  }
 0x3d8   : > { %v4423_v19 = vadd.f32 6.283185, %v4295_v17  ;;  %v4293_v10 = vmul.f32 %v4165_v30, %v7839_v4  ;;  %v3663_v33 = vadd.f32 -76.6265, %v3535_v52  ;;  %v2765_v6 = vadd.f32 0.5, %v2637_v61  ;;  %v2073_v52 = vpop.permute.xlu0 %2072 }
 0x3d9   : > { %v3402_v51 = vadd.f32 41.40318, %v3274_v36  ;;  %v3272_v3 = vmul.f32 -12.575904, %v7908_v25  ;;  %v2898_v42 = vfloor.f32 %v2770_v18  ;;  %v2763_v31 = vadd.f32 0.5, %v2635_v43 }
 0x3da   : > { %v4551_v5 = vmul.f32 %v4423_v19, %v7818_v22  ;;  %v4421_v11 = vadd.f32 6.283185, %v4293_v10  ;;  %v3791_v54 = vmul.f32 %v3663_v33, %v7874_v12  ;;  %v2893_v60 = vfloor.f32 %v2765_v6  ;;  %v7927_v22 = vld [vmem:[%s9692_s1 + $0x2] ss:$0 sm:$0xff] }
 0x3db   : > { %v3530_v56 = vmul.f32 %v3402_v51, %v7894_v38  ;;  %v3400_v17 = vadd.f32 41.40318, %v3272_v3  ;;  %v7917_v4 = vsub.f32 %v2642_v2, %v2898_v42  ;;  %v2891_v30 = vfloor.f32 %v2763_v31  ;;  %v10626_v19 = vld [vmem:[#allocation18_spill] sm:$0xff]  ;;  %v4959_v42 = vld [vmem:[%s5063_s18 + $0x248] sm:$0xff]  ;;  %v4960_v31 = vld [vmem:[%s5063_s18 + $0x250] sm:$0xff] }
 0x3dc   : > { %4680 = vst.msk [vmem:[%s7595_s29 + $0x78] sm:$0xff] %vm4664_vm0, %v4551_v5  ;;  %v4549_v21 = vmul.f32 %v4421_v11, %v7827_v44  ;;  %v3919_v55 = vadd.f32 81.60091, %v3791_v54  ;;  %v7922_v29 = vsub.f32 %v2637_v61, %v2893_v60  ;;  %v2517_v36 = vmul.f32 %v7927_v22, %v2093_v9  ;;  %v10627_v54 = vld [vmem:[#allocation23_spill] sm:$0xff] }
 0x3dd   : > { %v3658_v2 = vadd.f32 -76.6265, %v3530_v56  ;;  %v3528_v18 = vmul.f32 %v3400_v17, %v7908_v25  ;;  %v7933_v49 = vmul.f32 %v7917_v4, %v7917_v4  ;;  %v7935_v44 = vsub.f32 %v2635_v43, %v2891_v30  ;;  %v4961_v56 = vld [vmem:[%s5063_s18 + $0x270] sm:$0xff] }
 0x3de   : > { %4678 = vst.msk [vmem:[%s7595_s29 + $0x68] sm:$0xff] %vm4664_vm0, %v4549_v21  ;;  %v4047_v61 = vmul.f32 %v3919_v55, %v7874_v12  ;;  %v7942_v57 = vmul.f32 %v7922_v29, %v7922_v29  ;;  %v2645_v10 = vadd.f32 %v2517_v36, %v10626_v19  ;;  %v2512_v33 = vmul.f32 %v7927_v22, %v2073_v52 }
 0x3df   : > { %v3786_v6 = vmul.f32 %v3658_v2, %v7894_v38  ;;  %v3656_v51 = vadd.f32 -76.6265, %v3528_v18  ;;  %v3282_v3 = vmul.f32 -12.575904, %v7933_v49  ;;  %v7950_v43 = vmul.f32 %v7935_v44, %v7935_v44  ;;  %2268 = vperm.xlu1 %4879, %v4959_v42   ;;  %2272 = vperm.xlu2 %4877, %v4960_v31  }
 0x3e0   : > { %v4175_v9 = vadd.f32 -41.341618, %v4047_v61  ;;  %v3277_v5 = vmul.f32 -12.575904, %v7942_v57  ;;  %v2773_v11 = vadd.f32 0.5, %v2645_v10  ;;  %v2640_v60 = vadd.f32 %v2512_v33, %v10627_v54  ;;  %2288 = vperm.xlu0 %4878, %v4961_v56  }
 0x3e1   : > { %v3914_v17 = vadd.f32 81.60091, %v3786_v6  ;;  %v3784_v30 = vmul.f32 %v3656_v51, %v7908_v25  ;;  %v3410_v52 = vadd.f32 41.40318, %v3282_v3  ;;  %v3275_v21 = vmul.f32 -12.575904, %v7950_v43 }
 0x3e2   : > { %v4303_v55 = vmul.f32 %v4175_v9, %v7874_v12  ;;  %v3405_v36 = vadd.f32 41.40318, %v3277_v5  ;;  %v2901_v2 = vfloor.f32 %v2773_v11  ;;  %v2768_v18 = vadd.f32 0.5, %v2640_v60  ;;  %v2065_v11 = vpop.permute.xlu1 %2064 }
 0x3e3   : > { %v4042_v61 = vmul.f32 %v3914_v17, %v7894_v38  ;;  %v3912_v19 = vadd.f32 81.60091, %v3784_v30  ;;  %v3538_v42 = vmul.f32 %v3410_v52, %v7933_v49  ;;  %v3403_v31 = vadd.f32 41.40318, %v3275_v21 }
 0x3e4   : > { %v4431_v33 = vadd.f32 6.283185, %v4303_v55  ;;  %v3533_v54 = vmul.f32 %v3405_v36, %v7942_v57  ;;  %v7963_v6 = vsub.f32 %v2645_v10, %v2901_v2  ;;  %v2896_v51 = vfloor.f32 %v2768_v18  ;;  %v4962_v2 = vld [vmem:[%s5063_s18 + $0x260] sm:$0xff]  ;;  %v4963_v18 = vld [vmem:[%s5063_s18 + $0x268] sm:$0xff] }
 0x3e5   : > { %v4170_v3 = vadd.f32 -41.341618, %v4042_v61  ;;  %v4040_v12 = vmul.f32 %v3912_v19, %v7908_v25  ;;  %v3666_v9 = vadd.f32 -76.6265, %v3538_v42  ;;  %v3531_v5 = vmul.f32 %v3403_v31, %v7950_v43  ;;  %v4964_v19 = vld [vmem:[%s5063_s18 + $0x288] sm:$0xff] }
 0x3e6   : > { %v4559_v56 = vmul.f32 %v4431_v33, %v7865_v59  ;;  %v3661_v17 = vadd.f32 -76.6265, %v3533_v54  ;;  %v7970_v30 = vmul.f32 %v7963_v6, %v7963_v6  ;;  %v7972_v10 = vsub.f32 %v2640_v60, %v2896_v51  ;;  %v2105_v51 = vpop.permute.xlu2 %2104 }
 0x3e7   : > { %v4298_v52 = vmul.f32 %v4170_v3, %v7894_v38  ;;  %v4168_v21 = vadd.f32 -41.341618, %v4040_v12  ;;  %v3794_v55 = vmul.f32 %v3666_v9, %v7933_v49  ;;  %v3659_v36 = vadd.f32 -76.6265, %v3531_v5  ;;  %2280 = vperm.xlu1 %4879, %v4962_v2   ;;  %2284 = vperm.xlu2 %4877, %v4963_v18   ;;  %v10628_v5 = vld [vmem:[#allocation17_spill] sm:$0xff] }
 0x3e8   : > { %4688 = vst.msk [vmem:[%s7595_s29 + $0xb8] sm:$0xff] %vm4664_vm0, %v4559_v56  ;;  %v3789_v59 = vmul.f32 %v3661_v17, %v7942_v57  ;;  %v3285_v61 = vmul.f32 -12.575904, %v7970_v30  ;;  %v7984_v60 = vmul.f32 %v7972_v10, %v7972_v10  ;;  %v2510_v38 = vmul.f32 %v7927_v22, %v2065_v11  ;;  %2300 = vperm.xlu0 %4878, %v4964_v19   ;;  %v2085_v17 = vpop.permute.xlu0 %2084 }
 0x3e9   : > { %v4426_v42 = vadd.f32 6.283185, %v4298_v52  ;;  %v4296_v31 = vmul.f32 %v4168_v21, %v7908_v25  ;;  %v3922_v33 = vadd.f32 81.60091, %v3794_v55  ;;  %v3787_v54 = vmul.f32 %v3659_v36, %v7950_v43 }
 0x3ea   : > { %v3917_v3 = vadd.f32 81.60091, %v3789_v59  ;;  %v3413_v12 = vadd.f32 41.40318, %v3285_v61  ;;  %v3280_v9 = vmul.f32 -12.575904, %v7984_v60  ;;  %v2638_v56 = vadd.f32 %v2510_v38, %v10628_v5 }
 0x3eb   : > { %v4554_v2 = vmul.f32 %v4426_v42, %v7883_v41  ;;  %v4424_v11 = vadd.f32 6.283185, %v4296_v31  ;;  %v4050_v52 = vmul.f32 %v3922_v33, %v7933_v49  ;;  %v3915_v18 = vadd.f32 81.60091, %v3787_v54  ;;  %v4965_v5 = vld [vmem:[%s5063_s18 + $0x278] sm:$0xff] }
 0x3ec   : > { %v4045_v25 = vmul.f32 %v3917_v3, %v7942_v57  ;;  %v3541_v21 = vmul.f32 %v3413_v12, %v7970_v30  ;;  %v3408_v55 = vadd.f32 41.40318, %v3280_v9  ;;  %v2766_v36 = vadd.f32 0.5, %v2638_v56  ;;  %v10629_v12 = vld [vmem:[#allocation24_spill] sm:$0xff] }
 0x3ed   : > { %4683 = vst.msk [vmem:[%s7595_s29 + $0x90] sm:$0xff] %vm4664_vm0, %v4554_v2  ;;  %v4552_v59 = vmul.f32 %v4424_v11, %v7896_v13  ;;  %v4178_v61 = vadd.f32 -41.341618, %v4050_v52  ;;  %v4043_v38 = vmul.f32 %v3915_v18, %v7950_v43  ;;  %v2520_v41 = vmul.f32 %v7927_v22, %v2105_v51  ;;  %v4966_v18 = vld [vmem:[%s5063_s18 + $0x280] sm:$0xff] }
 0x3ee   : > { %v4173_v19 = vadd.f32 -41.341618, %v4045_v25  ;;  %v3669_v42 = vadd.f32 -76.6265, %v3541_v21  ;;  %v3536_v31 = vmul.f32 %v3408_v55, %v7984_v60  ;;  %v2894_v33 = vfloor.f32 %v2766_v36  ;;  %v4967_v25 = vld [vmem:[%s5063_s18 + $0x2a0] sm:$0xff]  ;;  %v10630_v36 = vld [vmem:[#allocation28_spill] sm:$0xff] }
 0x3ef   : > { %4681 = vst.msk [vmem:[%s7595_s29 + $0x80] sm:$0xff] %vm4664_vm0, %v4552_v59  ;;  %v4306_v54 = vmul.f32 %v4178_v61, %v7933_v49  ;;  %v4171_v3 = vadd.f32 -41.341618, %v4043_v38  ;;  %v2648_v9 = vadd.f32 %v2520_v41, %v10629_v12  ;;  %v2515_v13 = vmul.f32 %v7927_v22, %v2085_v17  ;;  %2292 = vperm.xlu1 %4879, %v4965_v5   ;;  %v2077_v17 = vpop.permute.xlu1 %2076 }
 0x3f0   : > { %v4301_v51 = vmul.f32 %v4173_v19, %v7942_v57  ;;  %v3797_v2 = vmul.f32 %v3669_v42, %v7970_v30  ;;  %v3664_v11 = vadd.f32 -76.6265, %v3536_v31  ;;  %v8010_v52 = vsub.f32 %v2638_v56, %v2894_v33  ;;  %2296 = vperm.xlu2 %4877, %v4966_v18   ;;  %2312 = vperm.xlu0 %4878, %v4967_v25  }
 0x3f1   : > { %v4434_v21 = vadd.f32 6.283185, %v4306_v54  ;;  %v4299_v49 = vmul.f32 %v4171_v3, %v7950_v43  ;;  %v2776_v55 = vadd.f32 0.5, %v2648_v9  ;;  %v2643_v59 = vadd.f32 %v2515_v13, %v10630_v36  ;;  %v2117_v43 = vpop.permute.xlu2 %2116  ;;  %v2097_v13 = vpop.permute.xlu0 %2096 }
 0x3f2   : > { %v4429_v61 = vadd.f32 6.283185, %v4301_v51  ;;  %v3925_v38 = vadd.f32 81.60091, %v3797_v2  ;;  %v3792_v57 = vmul.f32 %v3664_v11, %v7984_v60  ;;  %v8019_v56 = vmul.f32 %v8010_v52, %v8010_v52 }
 0x3f3   : > { %v4562_v41 = vmul.f32 %v4434_v21, %v7917_v4  ;;  %v4427_v19 = vadd.f32 6.283185, %v4299_v49  ;;  %v2904_v42 = vfloor.f32 %v2776_v55  ;;  %v2771_v31 = vadd.f32 0.5, %v2643_v59  ;;  %v10631_v21 = vld [vmem:[#allocation22_spill] sm:$0xff] }
 0x3f4   : > { %v4557_v33 = vmul.f32 %v4429_v61, %v7922_v29  ;;  %v4053_v54 = vmul.f32 %v3925_v38, %v7970_v30  ;;  %v3920_v3 = vadd.f32 81.60091, %v3792_v57  ;;  %v3278_v12 = vmul.f32 -12.575904, %v8019_v56  ;;  %v10632_v38 = vld [vmem:[#allocation30_spill] sm:$0xff] }
 0x3f5   : > { %4691 = vst.msk [vmem:[%s7595_s29 + $0xd0] sm:$0xff] %vm4664_vm0, %v4562_v41  ;;  %v4555_v5 = vmul.f32 %v4427_v19, %v7935_v44  ;;  %v8028_v51 = vsub.f32 %v2648_v9, %v2904_v42  ;;  %v2899_v4 = vfloor.f32 %v2771_v31  ;;  %v2513_v2 = vmul.f32 %v7927_v22, %v2077_v17  ;;  %v4968_v41 = vld [vmem:[%s5063_s18 + $0x290] sm:$0xff]  ;;  %v4969_v19 = vld [vmem:[%s5063_s18 + $0x298] sm:$0xff] }
 0x3f6   : > { %4686 = vst.msk [vmem:[%s7595_s29 + $0xa8] sm:$0xff] %vm4664_vm0, %v4557_v33  ;;  %v4181_v29 = vadd.f32 -41.341618, %v4053_v54  ;;  %v4048_v11 = vmul.f32 %v3920_v3, %v7984_v60  ;;  %v3406_v18 = vadd.f32 41.40318, %v3278_v12  ;;  %v2523_v25 = vmul.f32 %v7927_v22, %v2117_v43  ;;  %v10633_v43 = vld [vmem:[#allocation16_spill] sm:$0xff] }
 0x3f7   : > { %4684 = vst.msk [vmem:[%s7595_s29 + $0x98] sm:$0xff] %vm4664_vm0, %v4555_v5  ;;  %v8039_v44 = vmul.f32 %v8028_v51, %v8028_v51  ;;  %v8041_v9 = vsub.f32 %v2643_v59, %v2899_v4  ;;  %v2641_v49 = vadd.f32 %v2513_v2, %v10631_v21  ;;  %v2518_v55 = vmul.f32 %v7927_v22, %v2097_v13  ;;  %v4970_v54 = vld [vmem:[%s5063_s18 + $0x2b8] sm:$0xff] }
 0x3f8   : > { %v4309_v36 = vmul.f32 %v4181_v29, %v7970_v30  ;;  %v4176_v17 = vadd.f32 -41.341618, %v4048_v11  ;;  %v3534_v61 = vmul.f32 %v3406_v18, %v8019_v56  ;;  %v2651_v57 = vadd.f32 %v2523_v25, %v10632_v38  ;;  %2304 = vperm.xlu1 %4879, %v4968_v41   ;;  %2308 = vperm.xlu2 %4877, %v4969_v19   ;;  %v2089_v11 = vpop.permute.xlu1 %2088 }
 0x3f9   : > { %v3288_v42 = vmul.f32 -12.575904, %v8039_v44  ;;  %v8053_v59 = vmul.f32 %v8041_v9, %v8041_v9  ;;  %v2769_v31 = vadd.f32 0.5, %v2641_v49  ;;  %v2646_v33 = vadd.f32 %v2518_v55, %v10633_v43  ;;  %2324 = vperm.xlu0 %4878, %v4970_v54  }
 0x3fa   : > { %v4437_v30 = vadd.f32 6.283185, %v4309_v36  ;;  %v4304_v3 = vmul.f32 %v4176_v17, %v7984_v60  ;;  %v3662_v12 = vadd.f32 -76.6265, %v3534_v61  ;;  %v2779_v13 = vadd.f32 0.5, %v2651_v57  ;;  %v2129_v61 = vpop.permute.xlu2 %2128 }
 0x3fb   : > { %v3416_v5 = vadd.f32 41.40318, %v3288_v42  ;;  %v3283_v4 = vmul.f32 -12.575904, %v8053_v59  ;;  %v2897_v2 = vfloor.f32 %v2769_v31  ;;  %v2774_v29 = vadd.f32 0.5, %v2646_v33 }
 0x3fc   : > { %v4565_v18 = vmul.f32 %v4437_v30, %v7963_v6  ;;  %v4432_v25 = vadd.f32 6.283185, %v4304_v3  ;;  %v3790_v21 = vmul.f32 %v3662_v12, %v8019_v56  ;;  %v2907_v55 = vfloor.f32 %v2779_v13  ;;  %v10634_v30 = vld [vmem:[#allocation36_spill] sm:$0xff] }
 0x3fd   : > { %v3544_v36 = vmul.f32 %v3416_v5, %v8039_v44  ;;  %v3411_v38 = vadd.f32 41.40318, %v3283_v4  ;;  %v8062_v60 = vsub.f32 %v2641_v49, %v2897_v2  ;;  %v2902_v17 = vfloor.f32 %v2774_v29  ;;  %v4971_v2 = vld [vmem:[%s5063_s18 + $0x2a8] sm:$0xff]  ;;  %v4972_v29 = vld [vmem:[%s5063_s18 + $0x2b0] sm:$0xff] }
 0x3fe   : > { %4694 = vst.msk [vmem:[%s7595_s29 + $0xe8] sm:$0xff] %vm4664_vm0, %v4565_v18  ;;  %v4560_v41 = vmul.f32 %v4432_v25, %v7972_v10  ;;  %v3918_v19 = vadd.f32 81.60091, %v3790_v21  ;;  %v8067_v42 = vsub.f32 %v2651_v57, %v2907_v55  ;;  %v2516_v6 = vmul.f32 %v7927_v22, %v2089_v11  ;;  %v10635_v21 = vld [vmem:[#allocation35_spill] sm:$0xff] }
 0x3ff   : > { %v3672_v31 = vadd.f32 -76.6265, %v3544_v36  ;;  %v3539_v43 = vmul.f32 %v3411_v38, %v8053_v59  ;;  %v8073_v49 = vmul.f32 %v8062_v60, %v8062_v60  ;;  %v8075_v54 = vsub.f32 %v2646_v33, %v2902_v17  ;;  %v4973_v36 = vld [vmem:[%s5063_s18 + $0x2d0] sm:$0xff] }
 0x400   : > { %4689 = vst.msk [vmem:[%s7595_s29 + $0xc0] sm:$0xff] %vm4664_vm0, %v4560_v41  ;;  %v4046_v10 = vmul.f32 %v3918_v19, %v8019_v56  ;;  %v8082_v57 = vmul.f32 %v8067_v42, %v8067_v42  ;;  %v2644_v3 = vadd.f32 %v2516_v6, %v10634_v30  ;;  %v2526_v12 = vmul.f32 %v7927_v22, %v2129_v61 }
 0x401   : > { %v3800_v13 = vmul.f32 %v3672_v31, %v8039_v44  ;;  %v3667_v5 = vadd.f32 -76.6265, %v3539_v43  ;;  %v3281_v4 = vmul.f32 -12.575904, %v8073_v49  ;;  %v8090_v33 = vmul.f32 %v8075_v54, %v8075_v54  ;;  %2316 = vperm.xlu1 %4879, %v4971_v2   ;;  %2320 = vperm.xlu2 %4877, %v4972_v29  }
 0x402   : > { %v4174_v11 = vadd.f32 -41.341618, %v4046_v10  ;;  %v3291_v18 = vmul.f32 -12.575904, %v8082_v57  ;;  %v2772_v25 = vadd.f32 0.5, %v2644_v3  ;;  %v2654_v55 = vadd.f32 %v2526_v12, %v10635_v21  ;;  %2336 = vperm.xlu0 %4878, %v4973_v36  }
 0x403   : > { %v3928_v38 = vadd.f32 81.60091, %v3800_v13  ;;  %v3795_v17 = vmul.f32 %v3667_v5, %v8053_v59  ;;  %v3409_v61 = vadd.f32 41.40318, %v3281_v4  ;;  %v3286_v41 = vmul.f32 -12.575904, %v8090_v33 }
 0x404   : > { %v4302_v19 = vmul.f32 %v4174_v11, %v8019_v56  ;;  %v3419_v6 = vadd.f32 41.40318, %v3291_v18  ;;  %v2900_v31 = vfloor.f32 %v2772_v25  ;;  %v2782_v43 = vadd.f32 0.5, %v2654_v55  ;;  %v2109_v25 = vpop.permute.xlu0 %2108 }
 0x405   : > { %v4056_v10 = vmul.f32 %v3928_v38, %v8039_v44  ;;  %v3923_v30 = vadd.f32 81.60091, %v3795_v17  ;;  %v3537_v2 = vmul.f32 %v3409_v61, %v8073_v49  ;;  %v3414_v29 = vadd.f32 41.40318, %v3286_v41 }
 0x406   : > { %v4430_v12 = vadd.f32 6.283185, %v4302_v19  ;;  %v3547_v21 = vmul.f32 %v3419_v6, %v8082_v57  ;;  %v8103_v13 = vsub.f32 %v2644_v3, %v2900_v31  ;;  %v2910_v5 = vfloor.f32 %v2782_v43  ;;  %v4974_v31 = vld [vmem:[%s5063_s18 + $0x2c0] sm:$0xff]  ;;  %v4975_v43 = vld [vmem:[%s5063_s18 + $0x2c8] sm:$0xff] }
 0x407   : > { %v4184_v4 = vadd.f32 -41.341618, %v4056_v10  ;;  %v4051_v56 = vmul.f32 %v3923_v30, %v8053_v59  ;;  %v3665_v11 = vadd.f32 -76.6265, %v3537_v2  ;;  %v3542_v18 = vmul.f32 %v3414_v29, %v8090_v33  ;;  %v4976_v30 = vld [vmem:[%s5063_s18 + $0x2e8] sm:$0xff] }
 0x408   : > { %v4558_v36 = vmul.f32 %v4430_v12, %v8010_v52  ;;  %v3675_v38 = vadd.f32 -76.6265, %v3547_v21  ;;  %v8110_v17 = vmul.f32 %v8103_v13, %v8103_v13  ;;  %v8112_v3 = vsub.f32 %v2654_v55, %v2910_v5  ;;  %v2101_v5 = vpop.permute.xlu1 %2100 }
 0x409   : > { %v4312_v61 = vmul.f32 %v4184_v4, %v8039_v44  ;;  %v4179_v41 = vadd.f32 -41.341618, %v4051_v56  ;;  %v3793_v19 = vmul.f32 %v3665_v11, %v8073_v49  ;;  %v3670_v6 = vadd.f32 -76.6265, %v3542_v18  ;;  %2328 = vperm.xlu1 %4879, %v4974_v31   ;;  %2332 = vperm.xlu2 %4877, %v4975_v43   ;;  %v10636_v18 = vld [vmem:[#allocation42_spill] sm:$0xff] }
 0x40a   : > { %4687 = vst.msk [vmem:[%s7595_s29 + $0xb0] sm:$0xff] %vm4664_vm0, %v4558_v36  ;;  %v3803_v52 = vmul.f32 %v3675_v38, %v8082_v57  ;;  %v3284_v10 = vmul.f32 -12.575904, %v8110_v17  ;;  %v8124_v55 = vmul.f32 %v8112_v3, %v8112_v3  ;;  %v2521_v44 = vmul.f32 %v7927_v22, %v2109_v25  ;;  %2348 = vperm.xlu0 %4878, %v4976_v30   ;;  %v2141_v38 = vpop.permute.xlu2 %2140 }
 0x40b   : > { %v4440_v2 = vadd.f32 6.283185, %v4312_v61  ;;  %v4307_v29 = vmul.f32 %v4179_v41, %v8053_v59  ;;  %v3921_v12 = vadd.f32 81.60091, %v3793_v19  ;;  %v3798_v21 = vmul.f32 %v3670_v6, %v8090_v33 }
 0x40c   : > { %v3931_v4 = vadd.f32 81.60091, %v3803_v52  ;;  %v3412_v56 = vadd.f32 41.40318, %v3284_v10  ;;  %v3294_v11 = vmul.f32 -12.575904, %v8124_v55  ;;  %v2649_v36 = vadd.f32 %v2521_v44, %v10636_v18 }
 0x40d   : > { %v4568_v31 = vmul.f32 %v4440_v2, %v8028_v51  ;;  %v4435_v25 = vadd.f32 6.283185, %v4307_v29  ;;  %v4049_v61 = vmul.f32 %v3921_v12, %v8073_v49  ;;  %v3926_v43 = vadd.f32 81.60091, %v3798_v21  ;;  %v4977_v18 = vld [vmem:[%s5063_s18 + $0x2d8] sm:$0xff] }
 0x40e   : > { %v4059_v59 = vmul.f32 %v3931_v4, %v8082_v57  ;;  %v3540_v41 = vmul.f32 %v3412_v56, %v8110_v17  ;;  %v3422_v19 = vadd.f32 41.40318, %v3294_v11  ;;  %v2777_v6 = vadd.f32 0.5, %v2649_v36  ;;  %v10637_v56 = vld [vmem:[#allocation21_spill] sm:$0xff] }
 0x40f   : > { %4697 = vst.msk [vmem:[%s7595_s29 + $0x100] sm:$0xff] %vm4664_vm0, %v4568_v31  ;;  %v4563_v52 = vmul.f32 %v4435_v25, %v8041_v9  ;;  %v4177_v10 = vadd.f32 -41.341618, %v4049_v61  ;;  %v4054_v44 = vmul.f32 %v3926_v43, %v8090_v33  ;;  %v2519_v51 = vmul.f32 %v7927_v22, %v2101_v5  ;;  %v4978_v43 = vld [vmem:[%s5063_s18 + $0x2e0] sm:$0xff] }
 0x410   : > { %v4187_v30 = vadd.f32 -41.341618, %v4059_v59  ;;  %v3668_v2 = vadd.f32 -76.6265, %v3540_v41  ;;  %v3550_v29 = vmul.f32 %v3422_v19, %v8124_v55  ;;  %v2905_v12 = vfloor.f32 %v2777_v6  ;;  %v4979_v59 = vld [vmem:[%s5063_s18 + $0x300] sm:$0xff]  ;;  %v10638_v6 = vld [vmem:[#allocation181_spill] sm:$0xff] }
 0x411   : > { %4692 = vst.msk [vmem:[%s7595_s29 + $0xd8] sm:$0xff] %vm4664_vm0, %v4563_v52  ;;  %v4305_v21 = vmul.f32 %v4177_v10, %v8073_v49  ;;  %v4182_v4 = vadd.f32 -41.341618, %v4054_v44  ;;  %v2647_v11 = vadd.f32 %v2519_v51, %v10637_v56  ;;  %v2529_v9 = vmul.f32 %v7927_v22, %v2141_v38  ;;  %2340 = vperm.xlu1 %4879, %v4977_v18   ;;  %v2121_v38 = vpop.permute.xlu0 %2120 }
 0x412   : > { %v4315_v5 = vmul.f32 %v4187_v30, %v8082_v57  ;;  %v3796_v31 = vmul.f32 %v3668_v2, %v8110_v17  ;;  %v3678_v25 = vadd.f32 -76.6265, %v3550_v29  ;;  %v8150_v61 = vsub.f32 %v2649_v36, %v2905_v12  ;;  %2344 = vperm.xlu2 %4877, %v4978_v43   ;;  %2360 = vperm.xlu0 %4878, %v4979_v59  }
 0x413   : > { %v4433_v41 = vadd.f32 6.283185, %v4305_v21  ;;  %v4310_v49 = vmul.f32 %v4182_v4, %v8090_v33  ;;  %v2775_v19 = vadd.f32 0.5, %v2647_v11  ;;  %v2657_v52 = vadd.f32 %v2529_v9, %v10638_v6  ;;  %v2113_v33 = vpop.permute.xlu1 %2112  ;;  %v2153_v9 = vpop.permute.xlu2 %2152 }
 0x414   : > { %v4443_v10 = vadd.f32 6.283185, %v4315_v5  ;;  %v3924_v44 = vadd.f32 81.60091, %v3796_v31  ;;  %v3806_v57 = vmul.f32 %v3678_v25, %v8124_v55  ;;  %v8159_v36 = vmul.f32 %v8150_v61, %v8150_v61 }
 0x415   : > { %v4561_v51 = vmul.f32 %v4433_v41, %v8062_v60  ;;  %v4438_v30 = vadd.f32 6.283185, %v4310_v49  ;;  %v2903_v2 = vfloor.f32 %v2775_v19  ;;  %v2785_v29 = vadd.f32 0.5, %v2657_v52  ;;  %v10639_v41 = vld [vmem:[#allocation27_spill] sm:$0xff] }
 0x416   : > { %v4571_v12 = vmul.f32 %v4443_v10, %v8067_v42  ;;  %v4052_v21 = vmul.f32 %v3924_v44, %v8110_v17  ;;  %v3934_v4 = vadd.f32 81.60091, %v3806_v57  ;;  %v3289_v56 = vmul.f32 -12.575904, %v8159_v36  ;;  %v10640_v44 = vld [vmem:[#allocation20_spill] sm:$0xff] }
 0x417   : > { %4690 = vst.msk [vmem:[%s7595_s29 + $0xc8] sm:$0xff] %vm4664_vm0, %v4561_v51  ;;  %v4566_v18 = vmul.f32 %v4438_v30, %v8075_v54  ;;  %v8168_v5 = vsub.f32 %v2647_v11, %v2903_v2  ;;  %v2913_v60 = vfloor.f32 %v2785_v29  ;;  %v2524_v31 = vmul.f32 %v7927_v22, %v2121_v38  ;;  %v4980_v51 = vld [vmem:[%s5063_s18 + $0x2f0] sm:$0xff]  ;;  %v4981_v30 = vld [vmem:[%s5063_s18 + $0x2f8] sm:$0xff] }
 0x418   : > { %4700 = vst.msk [vmem:[%s7595_s29 + $0x118] sm:$0xff] %vm4664_vm0, %v4571_v12  ;;  %v4180_v42 = vadd.f32 -41.341618, %v4052_v21  ;;  %v4062_v25 = vmul.f32 %v3934_v4, %v8124_v55  ;;  %v3417_v43 = vadd.f32 41.40318, %v3289_v56  ;;  %v2522_v59 = vmul.f32 %v7927_v22, %v2113_v33  ;;  %v10641_v33 = vld [vmem:[#allocation31_spill] sm:$0xff] }
 0x419   : > { %4695 = vst.msk [vmem:[%s7595_s29 + $0xf0] sm:$0xff] %vm4664_vm0, %v4566_v18  ;;  %v8179_v54 = vmul.f32 %v8168_v5, %v8168_v5  ;;  %v8181_v11 = vsub.f32 %v2657_v52, %v2913_v60  ;;  %v2652_v49 = vadd.f32 %v2524_v31, %v10639_v41  ;;  %v2532_v19 = vmul.f32 %v7927_v22, %v2153_v9  ;;  %v4982_v21 = vld [vmem:[%s5063_s18 + $0x318] sm:$0xff] }
 0x41a   : > { %v4308_v6 = vmul.f32 %v4180_v42, %v8110_v17  ;;  %v4190_v38 = vadd.f32 -41.341618, %v4062_v25  ;;  %v3545_v10 = vmul.f32 %v3417_v43, %v8159_v36  ;;  %v2650_v57 = vadd.f32 %v2522_v59, %v10640_v44  ;;  %2352 = vperm.xlu1 %4879, %v4980_v51   ;;  %2356 = vperm.xlu2 %4877, %v4981_v30   ;;  %v2133_v25 = vpop.permute.xlu0 %2132 }
 0x41b   : > { %v3287_v2 = vmul.f32 -12.575904, %v8179_v54  ;;  %v8193_v52 = vmul.f32 %v8181_v11, %v8181_v11  ;;  %v2780_v29 = vadd.f32 0.5, %v2652_v49  ;;  %v2660_v12 = vadd.f32 %v2532_v19, %v10641_v33  ;;  %2372 = vperm.xlu0 %4878, %v4982_v21  }
 0x41c   : > { %v4436_v17 = vadd.f32 6.283185, %v4308_v6  ;;  %v4318_v4 = vmul.f32 %v4190_v38, %v8124_v55  ;;  %v3673_v56 = vadd.f32 -76.6265, %v3545_v10  ;;  %v2778_v9 = vadd.f32 0.5, %v2650_v57  ;;  %v2125_v10 = vpop.permute.xlu1 %2124 }
 0x41d   : > { %v3415_v18 = vadd.f32 41.40318, %v3287_v2  ;;  %v3297_v60 = vmul.f32 -12.575904, %v8193_v52  ;;  %v2908_v31 = vfloor.f32 %v2780_v29  ;;  %v2788_v42 = vadd.f32 0.5, %v2660_v12 }
 0x41e   : > { %v4564_v43 = vmul.f32 %v4436_v17, %v8103_v13  ;;  %v4446_v59 = vadd.f32 6.283185, %v4318_v4  ;;  %v3801_v41 = vmul.f32 %v3673_v56, %v8159_v36  ;;  %v2906_v19 = vfloor.f32 %v2778_v9  ;;  %v10642_v17 = vld [vmem:[#allocation39_spill] sm:$0xff] }
 0x41f   : > { %v3543_v6 = vmul.f32 %v3415_v18, %v8179_v54  ;;  %v3425_v44 = vadd.f32 41.40318, %v3297_v60  ;;  %v8202_v55 = vsub.f32 %v2652_v49, %v2908_v31  ;;  %v2916_v38 = vfloor.f32 %v2788_v42  ;;  %v4983_v31 = vld [vmem:[%s5063_s18 + $0x308] sm:$0xff]  ;;  %v4984_v42 = vld [vmem:[%s5063_s18 + $0x310] sm:$0xff] }
 0x420   : > { %4693 = vst.msk [vmem:[%s7595_s29 + $0xe0] sm:$0xff] %vm4664_vm0, %v4564_v43  ;;  %v4574_v51 = vmul.f32 %v4446_v59, %v8112_v3  ;;  %v3929_v30 = vadd.f32 81.60091, %v3801_v41  ;;  %v8207_v2 = vsub.f32 %v2650_v57, %v2906_v19  ;;  %v2527_v13 = vmul.f32 %v7927_v22, %v2133_v25  ;;  %v10643_v41 = vld [vmem:[#allocation41_spill] sm:$0xff] }
 0x421   : > { %v3671_v29 = vadd.f32 -76.6265, %v3543_v6  ;;  %v3553_v33 = vmul.f32 %v3425_v44, %v8193_v52  ;;  %v8213_v49 = vmul.f32 %v8202_v55, %v8202_v55  ;;  %v8215_v21 = vsub.f32 %v2660_v12, %v2916_v38  ;;  %v4985_v6 = vld [vmem:[%s5063_s18 + $0x330] sm:$0xff] }
 0x422   : > { %4703 = vst.msk [vmem:[%s7595_s29 + $0x130] sm:$0xff] %vm4664_vm0, %v4574_v51  ;;  %v4057_v3 = vmul.f32 %v3929_v30, %v8159_v36  ;;  %v8222_v57 = vmul.f32 %v8207_v2, %v8207_v2  ;;  %v2655_v4 = vadd.f32 %v2527_v13, %v10642_v17  ;;  %v2525_v56 = vmul.f32 %v7927_v22, %v2125_v10 }
 0x423   : > { %v3799_v9 = vmul.f32 %v3671_v29, %v8179_v54  ;;  %v3681_v18 = vadd.f32 -76.6265, %v3553_v33  ;;  %v3292_v60 = vmul.f32 -12.575904, %v8213_v49  ;;  %v8230_v12 = vmul.f32 %v8215_v21, %v8215_v21  ;;  %2364 = vperm.xlu1 %4879, %v4983_v31   ;;  %2368 = vperm.xlu2 %4877, %v4984_v42  }
 0x424   : > { %v4185_v25 = vadd.f32 -41.341618, %v4057_v3  ;;  %v3290_v43 = vmul.f32 -12.575904, %v8222_v57  ;;  %v2783_v59 = vadd.f32 0.5, %v2655_v4  ;;  %v2653_v19 = vadd.f32 %v2525_v56, %v10643_v41  ;;  %2384 = vperm.xlu0 %4878, %v4985_v6  }
 0x425   : > { %v3927_v44 = vadd.f32 81.60091, %v3799_v9  ;;  %v3809_v38 = vmul.f32 %v3681_v18, %v8193_v52  ;;  %v3420_v10 = vadd.f32 41.40318, %v3292_v60  ;;  %v3300_v51 = vmul.f32 -12.575904, %v8230_v12 }
 0x426   : > { %v4313_v30 = vmul.f32 %v4185_v25, %v8159_v36  ;;  %v3418_v13 = vadd.f32 41.40318, %v3290_v43  ;;  %v2911_v29 = vfloor.f32 %v2783_v59  ;;  %v2781_v33 = vadd.f32 0.5, %v2653_v19  ;;  %v2165_v59 = vpop.permute.xlu2 %2164 }
 0x427   : > { %v4055_v3 = vmul.f32 %v3927_v44, %v8179_v54  ;;  %v3937_v17 = vadd.f32 81.60091, %v3809_v38  ;;  %v3548_v31 = vmul.f32 %v3420_v10, %v8213_v49  ;;  %v3428_v42 = vadd.f32 41.40318, %v3300_v51 }
 0x428   : > { %v4441_v56 = vadd.f32 6.283185, %v4313_v30  ;;  %v3546_v41 = vmul.f32 %v3418_v13, %v8222_v57  ;;  %v8243_v9 = vsub.f32 %v2655_v4, %v2911_v29  ;;  %v2909_v18 = vfloor.f32 %v2781_v33  ;;  %v4986_v29 = vld [vmem:[%s5063_s18 + $0x320] sm:$0xff]  ;;  %v4987_v33 = vld [vmem:[%s5063_s18 + $0x328] sm:$0xff] }
 0x429   : > { %v4183_v60 = vadd.f32 -41.341618, %v4055_v3  ;;  %v4065_v36 = vmul.f32 %v3937_v17, %v8193_v52  ;;  %v3676_v25 = vadd.f32 -76.6265, %v3548_v31  ;;  %v3556_v43 = vmul.f32 %v3428_v42, %v8230_v12  ;;  %v4988_v17 = vld [vmem:[%s5063_s18 + $0x348] sm:$0xff] }
 0x42a   : > { %v4569_v6 = vmul.f32 %v4441_v56, %v8150_v61  ;;  %v3674_v44 = vadd.f32 -76.6265, %v3546_v41  ;;  %v8250_v38 = vmul.f32 %v8243_v9, %v8243_v9  ;;  %v8252_v4 = vsub.f32 %v2653_v19, %v2909_v18  ;;  %v2145_v18 = vpop.permute.xlu0 %2144 }
 0x42b   : > { %v4311_v10 = vmul.f32 %v4183_v60, %v8179_v54  ;;  %v4193_v51 = vadd.f32 -41.341618, %v4065_v36  ;;  %v3804_v30 = vmul.f32 %v3676_v25, %v8213_v49  ;;  %v3684_v13 = vadd.f32 -76.6265, %v3556_v43  ;;  %2376 = vperm.xlu1 %4879, %v4986_v29   ;;  %2380 = vperm.xlu2 %4877, %v4987_v33   ;;  %v10644_v43 = vld [vmem:[#allocation25_spill] sm:$0xff] }
 0x42c   : > { %4698 = vst.msk [vmem:[%s7595_s29 + $0x108] sm:$0xff] %vm4664_vm0, %v4569_v6  ;;  %v3802_v61 = vmul.f32 %v3674_v44, %v8222_v57  ;;  %v3295_v3 = vmul.f32 -12.575904, %v8250_v38  ;;  %v8264_v19 = vmul.f32 %v8252_v4, %v8252_v4  ;;  %v2535_v54 = vmul.f32 %v7927_v22, %v2165_v59  ;;  %2396 = vperm.xlu0 %4878, %v4988_v17   ;;  %v2137_v44 = vpop.permute.xlu1 %2136 }
 0x42d   : > { %v4439_v31 = vadd.f32 6.283185, %v4311_v10  ;;  %v4321_v42 = vmul.f32 %v4193_v51, %v8193_v52  ;;  %v3932_v56 = vadd.f32 81.60091, %v3804_v30  ;;  %v3812_v41 = vmul.f32 %v3684_v13, %v8230_v12 }
 0x42e   : > { %v3930_v60 = vadd.f32 81.60091, %v3802_v61  ;;  %v3423_v36 = vadd.f32 41.40318, %v3295_v3  ;;  %v3293_v25 = vmul.f32 -12.575904, %v8264_v19  ;;  %v2663_v6 = vadd.f32 %v2535_v54, %v10644_v43 }
 0x42f   : > { %v4567_v29 = vmul.f32 %v4439_v31, %v8168_v5  ;;  %v4449_v59 = vadd.f32 6.283185, %v4321_v42  ;;  %v4060_v10 = vmul.f32 %v3932_v56, %v8213_v49  ;;  %v3940_v33 = vadd.f32 81.60091, %v3812_v41  ;;  %v4989_v43 = vld [vmem:[%s5063_s18 + $0x338] sm:$0xff] }
 0x430   : > { %v4058_v52 = vmul.f32 %v3930_v60, %v8222_v57  ;;  %v3551_v51 = vmul.f32 %v3423_v36, %v8250_v38  ;;  %v3421_v30 = vadd.f32 41.40318, %v3293_v25  ;;  %v2791_v13 = vadd.f32 0.5, %v2663_v6  ;;  %v10645_v36 = vld [vmem:[#allocation32_spill] sm:$0xff] }
 0x431   : > { %4696 = vst.msk [vmem:[%s7595_s29 + $0xf8] sm:$0xff] %vm4664_vm0, %v4567_v29  ;;  %v4577_v61 = vmul.f32 %v4449_v59, %v8181_v11  ;;  %v4188_v3 = vadd.f32 -41.341618, %v4060_v10  ;;  %v4068_v54 = vmul.f32 %v3940_v33, %v8230_v12  ;;  %v2530_v5 = vmul.f32 %v7927_v22, %v2145_v18  ;;  %v4990_v33 = vld [vmem:[%s5063_s18 + $0x340] sm:$0xff] }
 0x432   : > { %v4186_v17 = vadd.f32 -41.341618, %v4058_v52  ;;  %v3679_v31 = vadd.f32 -76.6265, %v3551_v51  ;;  %v3549_v42 = vmul.f32 %v3421_v30, %v8264_v19  ;;  %v2919_v56 = vfloor.f32 %v2791_v13  ;;  %v4991_v52 = vld [vmem:[%s5063_s18 + $0x360] sm:$0xff]  ;;  %v10646_v13 = vld [vmem:[#allocation33_spill] sm:$0xff] }
 0x433   : > { %4706 = vst.msk [vmem:[%s7595_s29 + $0x148] sm:$0xff] %vm4664_vm0, %v4577_v61  ;;  %v4316_v41 = vmul.f32 %v4188_v3, %v8213_v49  ;;  %v4196_v60 = vadd.f32 -41.341618, %v4068_v54  ;;  %v2658_v25 = vadd.f32 %v2530_v5, %v10645_v36  ;;  %v2528_v11 = vmul.f32 %v7927_v22, %v2137_v44  ;;  %2388 = vperm.xlu1 %4879, %v4989_v43   ;;  %v2177_v44 = vpop.permute.xlu2 %2176 }
 0x434   : > { %v4314_v18 = vmul.f32 %v4186_v17, %v8222_v57  ;;  %v3807_v29 = vmul.f32 %v3679_v31, %v8250_v38  ;;  %v3677_v59 = vadd.f32 -76.6265, %v3549_v42  ;;  %v8290_v10 = vsub.f32 %v2663_v6, %v2919_v56  ;;  %2392 = vperm.xlu2 %4877, %v4990_v33   ;;  %2408 = vperm.xlu0 %4878, %v4991_v52  }
 0x435   : > { %v4444_v51 = vadd.f32 6.283185, %v4316_v41  ;;  %v4324_v49 = vmul.f32 %v4196_v60, %v8230_v12  ;;  %v2786_v30 = vadd.f32 0.5, %v2658_v25  ;;  %v2656_v61 = vadd.f32 %v2528_v11, %v10646_v13  ;;  %v2157_v12 = vpop.permute.xlu0 %2156  ;;  %v2149_v11 = vpop.permute.xlu1 %2148 }
 0x436   : > { %v4442_v3 = vadd.f32 6.283185, %v4314_v18  ;;  %v3935_v54 = vadd.f32 81.60091, %v3807_v29  ;;  %v3805_v57 = vmul.f32 %v3677_v59, %v8264_v19  ;;  %v8299_v6 = vmul.f32 %v8290_v10, %v8290_v10 }
 0x437   : > { %v4572_v5 = vmul.f32 %v4444_v51, %v8202_v55  ;;  %v4452_v17 = vadd.f32 6.283185, %v4324_v49  ;;  %v2914_v31 = vfloor.f32 %v2786_v30  ;;  %v2784_v42 = vadd.f32 0.5, %v2656_v61  ;;  %v10647_v51 = vld [vmem:[#allocation40_spill] sm:$0xff] }
 0x438   : > { %v4570_v56 = vmul.f32 %v4442_v3, %v8207_v2  ;;  %v4063_v41 = vmul.f32 %v3935_v54, %v8250_v38  ;;  %v3933_v60 = vadd.f32 81.60091, %v3805_v57  ;;  %v3303_v36 = vmul.f32 -12.575904, %v8299_v6  ;;  %v10648_v54 = vld [vmem:[#allocation49_spill] sm:$0xff] }
 0x439   : > { %4701 = vst.msk [vmem:[%s7595_s29 + $0x120] sm:$0xff] %vm4664_vm0, %v4572_v5  ;;  %v4580_v43 = vmul.f32 %v4452_v17, %v8215_v21  ;;  %v8308_v18 = vsub.f32 %v2658_v25, %v2914_v31  ;;  %v2912_v55 = vfloor.f32 %v2784_v42  ;;  %v2538_v29 = vmul.f32 %v7927_v22, %v2177_v44  ;;  %v4992_v5 = vld [vmem:[%s5063_s18 + $0x350] sm:$0xff]  ;;  %v4993_v17 = vld [vmem:[%s5063_s18 + $0x358] sm:$0xff] }
 0x43a   : > { %4699 = vst.msk [vmem:[%s7595_s29 + $0x110] sm:$0xff] %vm4664_vm0, %v4570_v56  ;;  %v4191_v2 = vadd.f32 -41.341618, %v4063_v41  ;;  %v4061_v59 = vmul.f32 %v3933_v60, %v8264_v19  ;;  %v3431_v33 = vadd.f32 41.40318, %v3303_v36  ;;  %v2533_v52 = vmul.f32 %v7927_v22, %v2157_v12  ;;  %v10649_v12 = vld [vmem:[#allocation43_spill] sm:$0xff] }
 0x43b   : > { %4709 = vst.msk [vmem:[%s7595_s29 + $0x160] sm:$0xff] %vm4664_vm0, %v4580_v43  ;;  %v8319_v21 = vmul.f32 %v8308_v18, %v8308_v18  ;;  %v8321_v25 = vsub.f32 %v2656_v61, %v2912_v55  ;;  %v2666_v49 = vadd.f32 %v2538_v29, %v10647_v51  ;;  %v2531_v30 = vmul.f32 %v7927_v22, %v2149_v11  ;;  %v4994_v41 = vld [vmem:[%s5063_s18 + $0x378] sm:$0xff] }
 0x43c   : > { %v4319_v13 = vmul.f32 %v4191_v2, %v8250_v38  ;;  %v4189_v44 = vadd.f32 -41.341618, %v4061_v59  ;;  %v3559_v3 = vmul.f32 %v3431_v33, %v8299_v6  ;;  %v2661_v57 = vadd.f32 %v2533_v52, %v10648_v54  ;;  %2400 = vperm.xlu1 %4879, %v4992_v5   ;;  %2404 = vperm.xlu2 %4877, %v4993_v17   ;;  %v2189_v59 = vpop.permute.xlu2 %2188 }
 0x43d   : > { %v3298_v31 = vmul.f32 -12.575904, %v8319_v21  ;;  %v8333_v61 = vmul.f32 %v8321_v25, %v8321_v25  ;;  %v2794_v42 = vadd.f32 0.5, %v2666_v49  ;;  %v2659_v56 = vadd.f32 %v2531_v30, %v10649_v12  ;;  %2420 = vperm.xlu0 %4878, %v4994_v41  }
 0x43e   : > { %v4447_v38 = vadd.f32 6.283185, %v4319_v13  ;;  %v4317_v60 = vmul.f32 %v4189_v44, %v8264_v19  ;;  %v3687_v36 = vadd.f32 -76.6265, %v3559_v3  ;;  %v2789_v11 = vadd.f32 0.5, %v2661_v57  ;;  %v2169_v3 = vpop.permute.xlu0 %2168 }
 0x43f   : > { %v3426_v43 = vadd.f32 41.40318, %v3298_v31  ;;  %v3296_v55 = vmul.f32 -12.575904, %v8333_v61  ;;  %v2922_v29 = vfloor.f32 %v2794_v42  ;;  %v2787_v2 = vadd.f32 0.5, %v2659_v56 }
 0x440   : > { %v4575_v33 = vmul.f32 %v4447_v38, %v8243_v9  ;;  %v4445_v52 = vadd.f32 6.283185, %v4317_v60  ;;  %v3815_v51 = vmul.f32 %v3687_v36, %v8299_v6  ;;  %v2917_v30 = vfloor.f32 %v2789_v11  ;;  %v10650_v38 = vld [vmem:[#allocation155_spill] sm:$0xff] }
 0x441   : > { %v3554_v13 = vmul.f32 %v3426_v43, %v8319_v21  ;;  %v3424_v54 = vadd.f32 41.40318, %v3296_v55  ;;  %v8342_v19 = vsub.f32 %v2666_v49, %v2922_v29  ;;  %v2915_v44 = vfloor.f32 %v2787_v2  ;;  %v4995_v29 = vld [vmem:[%s5063_s18 + $0x368] sm:$0xff]  ;;  %v4996_v2 = vld [vmem:[%s5063_s18 + $0x370] sm:$0xff] }
 0x442   : > { %4704 = vst.msk [vmem:[%s7595_s29 + $0x138] sm:$0xff] %vm4664_vm0, %v4575_v33  ;;  %v4573_v5 = vmul.f32 %v4445_v52, %v8252_v4  ;;  %v3943_v17 = vadd.f32 81.60091, %v3815_v51  ;;  %v8347_v31 = vsub.f32 %v2661_v57, %v2917_v30  ;;  %v2541_v9 = vmul.f32 %v7927_v22, %v2189_v59  ;;  %v10651_v51 = vld [vmem:[#allocation46_spill] sm:$0xff] }
 0x443   : > { %v3682_v42 = vadd.f32 -76.6265, %v3554_v13  ;;  %v3552_v12 = vmul.f32 %v3424_v54, %v8333_v61  ;;  %v8353_v49 = vmul.f32 %v8342_v19, %v8342_v19  ;;  %v8355_v41 = vsub.f32 %v2659_v56, %v2915_v44 }
 0x444   : > { %4702 = vst.msk [vmem:[%s7595_s29 + $0x128] sm:$0xff] %vm4664_vm0, %v4573_v5  ;;  %v4071_v4 = vmul.f32 %v3943_v17, %v8299_v6  ;;  %v8362_v57 = vmul.f32 %v8347_v31, %v8347_v31  ;;  %v2669_v60 = vadd.f32 %v2541_v9, %v10650_v38  ;;  %v2536_v36 = vmul.f32 %v7927_v22, %v2169_v3  ;;  %v4997_v22 = vld [vmem:[%s5063_s18 + $0x390] sm:$0xff] }
 0x445   : > { %v3810_v11 = vmul.f32 %v3682_v42, %v8319_v21  ;;  %v3680_v43 = vadd.f32 -76.6265, %v3552_v12  ;;  %v3306_v55 = vmul.f32 -12.575904, %v8353_v49  ;;  %v8370_v56 = vmul.f32 %v8355_v41, %v8355_v41  ;;  %2412 = vperm.xlu1 %4879, %v4995_v29   ;;  %2416 = vperm.xlu2 %4877, %v4996_v2  }
 0x446   : > { %v4199_v59 = vadd.f32 -41.341618, %v4071_v4  ;;  %v3301_v33 = vmul.f32 -12.575904, %v8362_v57  ;;  %v2797_v52 = vadd.f32 0.5, %v2669_v60  ;;  %v2664_v30 = vadd.f32 %v2536_v36, %v10651_v51  ;;  %2432 = vperm.xlu0 %4878, %v4997_v22  }
 0x447   : > { %v3938_v13 = vadd.f32 81.60091, %v3810_v11  ;;  %v3808_v54 = vmul.f32 %v3680_v43, %v8333_v61  ;;  %v3434_v44 = vadd.f32 41.40318, %v3306_v55  ;;  %v3299_v3 = vmul.f32 -12.575904, %v8370_v56 }
 0x448   : > { %v4327_v5 = vmul.f32 %v4199_v59, %v8299_v6  ;;  %v3429_v17 = vadd.f32 41.40318, %v3301_v33  ;;  %v2925_v9 = vfloor.f32 %v2797_v52  ;;  %v2792_v42 = vadd.f32 0.5, %v2664_v30  ;;  %v2161_v52 = vpop.permute.xlu1 %2160 }
 0x449   : > { %v4066_v12 = vmul.f32 %v3938_v13, %v8319_v21  ;;  %v3936_v4 = vadd.f32 81.60091, %v3808_v54  ;;  %v3562_v38 = vmul.f32 %v3434_v44, %v8353_v49  ;;  %v3427_v29 = vadd.f32 41.40318, %v3299_v3 }
 0x44a   : > { %v4455_v36 = vadd.f32 6.283185, %v4327_v5  ;;  %v3557_v2 = vmul.f32 %v3429_v17, %v8362_v57  ;;  %v8383_v11 = vsub.f32 %v2669_v60, %v2925_v9  ;;  %v2920_v43 = vfloor.f32 %v2792_v42  ;;  %v4998_v17 = vld [vmem:[%s5063_s18 + $0x380] sm:$0xff]  ;;  %v4999_v9 = vld [vmem:[%s5063_s18 + $0x388] sm:$0xff] }
 0x44b   : > { %v4194_v55 = vadd.f32 -41.341618, %v4066_v12  ;;  %v4064_v6 = vmul.f32 %v3936_v4, %v8333_v61  ;;  %v3690_v59 = vadd.f32 -76.6265, %v3562_v38  ;;  %v3555_v33 = vmul.f32 %v3427_v29, %v8370_v56  ;;  %v5001_v4 = vld [vmem:[%s5063_s18 + $0x3a8] sm:$0xff] }
 0x44c   : > { %v4583_v51 = vmul.f32 %v4455_v36, %v8290_v10  ;;  %v3685_v22 = vadd.f32 -76.6265, %v3557_v2  ;;  %v8390_v13 = vmul.f32 %v8383_v11, %v8383_v11  ;;  %v8392_v60 = vsub.f32 %v2664_v30, %v2920_v43  ;;  %v2201_v43 = vpop.permute.xlu2 %2200 }
 0x44d   : > { %v4322_v54 = vmul.f32 %v4194_v55, %v8319_v21  ;;  %v4192_v44 = vadd.f32 -41.341618, %v4064_v6  ;;  %v3818_v3 = vmul.f32 %v3690_v59, %v8353_v49  ;;  %v3683_v5 = vadd.f32 -76.6265, %v3555_v33  ;;  %2424 = vperm.xlu1 %4879, %v4998_v17   ;;  %2428 = vperm.xlu2 %4877, %v4999_v9   ;;  %v8409_v21 = vld [vmem:[%s9692_s1 + $0x2] ss:$0 sm:$0xff] }
 0x44e   : > { %4712 = vst.msk [vmem:[%s7595_s29 + $0x178] sm:$0xff] %vm4664_vm0, %v4583_v51  ;;  %v3813_v10 = vmul.f32 %v3685_v22, %v8362_v57  ;;  %v3309_v42 = vmul.f32 -12.575904, %v8390_v13  ;;  %v8404_v30 = vmul.f32 %v8392_v60, %v8392_v60  ;;  %v2534_v12 = vmul.f32 %v8409_v21, %v2161_v52  ;;  %2444 = vperm.xlu0 %4878, %v5001_v4   ;;  %v10652_v33 = vld [vmem:[#allocation48_spill] sm:$0xff]  ;;  %v2181_v22 = vpop.permute.xlu0 %2180 }
 0x44f   : > { %v4450_v38 = vadd.f32 6.283185, %v4322_v54  ;;  %v4320_v29 = vmul.f32 %v4192_v44, %v8333_v61  ;;  %v3946_v36 = vadd.f32 81.60091, %v3818_v3  ;;  %v3811_v2 = vmul.f32 %v3683_v5, %v8370_v56 }
 0x450   : > { %v3941_v55 = vadd.f32 81.60091, %v3813_v10  ;;  %v3437_v6 = vadd.f32 41.40318, %v3309_v42  ;;  %v3304_v59 = vmul.f32 -12.575904, %v8404_v30  ;;  %v2662_v51 = vadd.f32 %v2534_v12, %v10652_v33 }
 0x451   : > { %v4578_v17 = vmul.f32 %v4450_v38, %v8308_v18  ;;  %v4448_v52 = vadd.f32 6.283185, %v4320_v29  ;;  %v4074_v54 = vmul.f32 %v3946_v36, %v8353_v49  ;;  %v3939_v9 = vadd.f32 81.60091, %v3811_v2  ;;  %v5002_v33 = vld [vmem:[%s5063_s18 + $0x398] sm:$0xff] }
 0x452   : > { %v4069_v61 = vmul.f32 %v3941_v55, %v8362_v57  ;;  %v3565_v44 = vmul.f32 %v3437_v6, %v8390_v13  ;;  %v3432_v3 = vadd.f32 41.40318, %v3304_v59  ;;  %v2790_v5 = vadd.f32 0.5, %v2662_v51  ;;  %v10653_v6 = vld [vmem:[#allocation47_spill] sm:$0xff] }
 0x453   : > { %4707 = vst.msk [vmem:[%s7595_s29 + $0x150] sm:$0xff] %vm4664_vm0, %v4578_v17  ;;  %v4576_v10 = vmul.f32 %v4448_v52, %v8321_v25  ;;  %v4202_v42 = vadd.f32 -41.341618, %v4074_v54  ;;  %v4067_v12 = vmul.f32 %v3939_v9, %v8370_v56  ;;  %v2544_v18 = vmul.f32 %v8409_v21, %v2201_v43  ;;  %v5003_v9 = vld [vmem:[%s5063_s18 + $0x3a0] sm:$0xff] }
 0x454   : > { %v4197_v4 = vadd.f32 -41.341618, %v4069_v61  ;;  %v3693_v38 = vadd.f32 -76.6265, %v3565_v44  ;;  %v3560_v29 = vmul.f32 %v3432_v3, %v8404_v30  ;;  %v2918_v36 = vfloor.f32 %v2790_v5  ;;  %v5004_v61 = vld [vmem:[%s5063_s18 + $0x3c0] sm:$0xff]  ;;  %v10654_v5 = vld [vmem:[#allocation53_spill] sm:$0xff] }
 0x455   : > { %4705 = vst.msk [vmem:[%s7595_s29 + $0x140] sm:$0xff] %vm4664_vm0, %v4576_v10  ;;  %v4330_v2 = vmul.f32 %v4202_v42, %v8353_v49  ;;  %v4195_v55 = vadd.f32 -41.341618, %v4067_v12  ;;  %v2672_v59 = vadd.f32 %v2544_v18, %v10653_v6  ;;  %v2539_v25 = vmul.f32 %v8409_v21, %v2181_v22  ;;  %2436 = vperm.xlu1 %4879, %v5002_v33   ;;  %v2173_v22 = vpop.permute.xlu1 %2172 }
 0x456   : > { %v4325_v43 = vmul.f32 %v4197_v4, %v8362_v57  ;;  %v3821_v17 = vmul.f32 %v3693_v38, %v8390_v13  ;;  %v3688_v52 = vadd.f32 -76.6265, %v3560_v29  ;;  %v8435_v54 = vsub.f32 %v2662_v51, %v2918_v36  ;;  %2440 = vperm.xlu2 %4877, %v5003_v9   ;;  %2456 = vperm.xlu0 %4878, %v5004_v61  }
 0x457   : > { %v4458_v44 = vadd.f32 6.283185, %v4330_v2  ;;  %v4323_v49 = vmul.f32 %v4195_v55, %v8370_v56  ;;  %v2800_v3 = vadd.f32 0.5, %v2672_v59  ;;  %v2667_v10 = vadd.f32 %v2539_v25, %v10654_v5  ;;  %v2213_v56 = vpop.permute.xlu2 %2212  ;;  %v2193_v25 = vpop.permute.xlu0 %2192 }
 0x458   : > { %v4453_v42 = vadd.f32 6.283185, %v4325_v43  ;;  %v3949_v12 = vadd.f32 81.60091, %v3821_v17  ;;  %v3816_v57 = vmul.f32 %v3688_v52, %v8404_v30  ;;  %v8444_v51 = vmul.f32 %v8435_v54, %v8435_v54 }
 0x459   : > { %v4586_v18 = vmul.f32 %v4458_v44, %v8342_v19  ;;  %v4451_v4 = vadd.f32 6.283185, %v4323_v49  ;;  %v2928_v38 = vfloor.f32 %v2800_v3  ;;  %v2795_v29 = vadd.f32 0.5, %v2667_v10  ;;  %v10655_v44 = vld [vmem:[#allocation154_spill] sm:$0xff] }
 0x45a   : > { %v4581_v36 = vmul.f32 %v4453_v42, %v8347_v31  ;;  %v4077_v2 = vmul.f32 %v3949_v12, %v8390_v13  ;;  %v3944_v55 = vadd.f32 81.60091, %v3816_v57  ;;  %v3302_v6 = vmul.f32 -12.575904, %v8444_v51  ;;  %v10656_v12 = vld [vmem:[#allocation54_spill] sm:$0xff] }
 0x45b   : > { %4715 = vst.msk [vmem:[%s7595_s29 + $0x190] sm:$0xff] %vm4664_vm0, %v4586_v18  ;;  %v4579_v33 = vmul.f32 %v4451_v4, %v8355_v41  ;;  %v8453_v43 = vsub.f32 %v2672_v59, %v2928_v38  ;;  %v2923_v19 = vfloor.f32 %v2795_v29  ;;  %v2537_v17 = vmul.f32 %v8409_v21, %v2173_v22  ;;  %v5005_v18 = vld [vmem:[%s5063_s18 + $0x3b0] sm:$0xff]  ;;  %v5006_v4 = vld [vmem:[%s5063_s18 + $0x3b8] sm:$0xff] }
 0x45c   : > { %4710 = vst.msk [vmem:[%s7595_s29 + $0x168] sm:$0xff] %vm4664_vm0, %v4581_v36  ;;  %v4205_v31 = vadd.f32 -41.341618, %v4077_v2  ;;  %v4072_v52 = vmul.f32 %v3944_v55, %v8404_v30  ;;  %v3430_v9 = vadd.f32 41.40318, %v3302_v6  ;;  %v2547_v61 = vmul.f32 %v8409_v21, %v2213_v56  ;;  %v10657_v56 = vld [vmem:[#allocation60_spill] sm:$0xff] }
 0x45d   : > { %4708 = vst.msk [vmem:[%s7595_s29 + $0x158] sm:$0xff] %vm4664_vm0, %v4579_v33  ;;  %v8464_v41 = vmul.f32 %v8453_v43, %v8453_v43  ;;  %v8466_v59 = vsub.f32 %v2667_v10, %v2923_v19  ;;  %v2665_v49 = vadd.f32 %v2537_v17, %v10655_v44  ;;  %v2542_v3 = vmul.f32 %v8409_v21, %v2193_v25  ;;  %v5007_v2 = vld [vmem:[%s5063_s18 + $0x3d8] sm:$0xff] }
 0x45e   : > { %v4333_v5 = vmul.f32 %v4205_v31, %v8390_v13  ;;  %v4200_v22 = vadd.f32 -41.341618, %v4072_v52  ;;  %v3558_v42 = vmul.f32 %v3430_v9, %v8444_v51  ;;  %v2675_v57 = vadd.f32 %v2547_v61, %v10656_v12  ;;  %2448 = vperm.xlu1 %4879, %v5005_v18   ;;  %2452 = vperm.xlu2 %4877, %v5006_v4   ;;  %v2185_v52 = vpop.permute.xlu1 %2184 }
 0x45f   : > { %v3312_v38 = vmul.f32 -12.575904, %v8464_v41  ;;  %v8478_v10 = vmul.f32 %v8466_v59, %v8466_v59  ;;  %v2793_v29 = vadd.f32 0.5, %v2665_v49  ;;  %v2670_v36 = vadd.f32 %v2542_v3, %v10657_v56  ;;  %2468 = vperm.xlu0 %4878, %v5007_v2  }
 0x460   : > { %v4461_v13 = vadd.f32 6.283185, %v4333_v5  ;;  %v4328_v55 = vmul.f32 %v4200_v22, %v8404_v30  ;;  %v3686_v6 = vadd.f32 -76.6265, %v3558_v42  ;;  %v2803_v25 = vadd.f32 0.5, %v2675_v57  ;;  %v2225_v42 = vpop.permute.xlu2 %2224 }
 0x461   : > { %v3440_v33 = vadd.f32 41.40318, %v3312_v38  ;;  %v3307_v19 = vmul.f32 -12.575904, %v8478_v10  ;;  %v2921_v17 = vfloor.f32 %v2793_v29  ;;  %v2798_v31 = vadd.f32 0.5, %v2670_v36 }
 0x462   : > { %v4589_v9 = vmul.f32 %v4461_v13, %v8383_v11  ;;  %v4456_v61 = vadd.f32 6.283185, %v4328_v55  ;;  %v3814_v44 = vmul.f32 %v3686_v6, %v8444_v51  ;;  %v2931_v3 = vfloor.f32 %v2803_v25  ;;  %v10658_v13 = vld [vmem:[#allocation52_spill] sm:$0xff] }
 0x463   : > { %v3568_v5 = vmul.f32 %v3440_v33, %v8464_v41  ;;  %v3435_v12 = vadd.f32 41.40318, %v3307_v19  ;;  %v8487_v30 = vsub.f32 %v2665_v49, %v2921_v17  ;;  %v2926_v22 = vfloor.f32 %v2798_v31  ;;  %v5008_v17 = vld [vmem:[%s5063_s18 + $0x3c8] sm:$0xff]  ;;  %v5009_v31 = vld [vmem:[%s5063_s18 + $0x3d0] sm:$0xff] }
 0x464   : > { %4718 = vst.msk [vmem:[%s7595_s29 + $0x1a8] sm:$0xff] %vm4664_vm0, %v4589_v9  ;;  %v4584_v18 = vmul.f32 %v4456_v61, %v8392_v60  ;;  %v3942_v4 = vadd.f32 81.60091, %v3814_v44  ;;  %v8492_v38 = vsub.f32 %v2675_v57, %v2931_v3  ;;  %v2540_v11 = vmul.f32 %v8409_v21, %v2185_v52  ;;  %v10659_v44 = vld [vmem:[#allocation45_spill] sm:$0xff] }
 0x465   : > { %v3696_v29 = vadd.f32 -76.6265, %v3568_v5  ;;  %v3563_v56 = vmul.f32 %v3435_v12, %v8478_v10  ;;  %v8498_v49 = vmul.f32 %v8487_v30, %v8487_v30  ;;  %v8500_v2 = vsub.f32 %v2670_v36, %v2926_v22  ;;  %v5010_v5 = vld [vmem:[%s5063_s18 + $0x3f0] sm:$0xff] }
 0x466   : > { %4713 = vst.msk [vmem:[%s7595_s29 + $0x180] sm:$0xff] %vm4664_vm0, %v4584_v18  ;;  %v4070_v60 = vmul.f32 %v3942_v4, %v8444_v51  ;;  %v8507_v57 = vmul.f32 %v8492_v38, %v8492_v38  ;;  %v2668_v55 = vadd.f32 %v2540_v11, %v10658_v13  ;;  %v2550_v6 = vmul.f32 %v8409_v21, %v2225_v42 }
 0x467   : > { %v3824_v25 = vmul.f32 %v3696_v29, %v8464_v41  ;;  %v3691_v33 = vadd.f32 -76.6265, %v3563_v56  ;;  %v3305_v19 = vmul.f32 -12.575904, %v8498_v49  ;;  %v8515_v36 = vmul.f32 %v8500_v2, %v8500_v2  ;;  %2460 = vperm.xlu1 %4879, %v5008_v17   ;;  %2464 = vperm.xlu2 %4877, %v5009_v31  }
 0x468   : > { %v4198_v52 = vadd.f32 -41.341618, %v4070_v60  ;;  %v3315_v9 = vmul.f32 -12.575904, %v8507_v57  ;;  %v2796_v61 = vadd.f32 0.5, %v2668_v55  ;;  %v2678_v3 = vadd.f32 %v2550_v6, %v10659_v44  ;;  %2480 = vperm.xlu0 %4878, %v5010_v5  }
 0x469   : > { %v3952_v12 = vadd.f32 81.60091, %v3824_v25  ;;  %v3819_v22 = vmul.f32 %v3691_v33, %v8478_v10  ;;  %v3433_v42 = vadd.f32 41.40318, %v3305_v19  ;;  %v3310_v18 = vmul.f32 -12.575904, %v8515_v36 }
 0x46a   : > { %v4326_v4 = vmul.f32 %v4198_v52, %v8444_v51  ;;  %v3443_v11 = vadd.f32 41.40318, %v3315_v9  ;;  %v2924_v29 = vfloor.f32 %v2796_v61  ;;  %v2806_v56 = vadd.f32 0.5, %v2678_v3  ;;  %v2205_v61 = vpop.permute.xlu0 %2204 }
 0x46b   : > { %v4080_v60 = vmul.f32 %v3952_v12, %v8464_v41  ;;  %v3947_v13 = vadd.f32 81.60091, %v3819_v22  ;;  %v3561_v17 = vmul.f32 %v3433_v42, %v8498_v49  ;;  %v3438_v31 = vadd.f32 41.40318, %v3310_v18 }
 0x46c   : > { %v4454_v6 = vadd.f32 6.283185, %v4326_v4  ;;  %v3571_v44 = vmul.f32 %v3443_v11, %v8507_v57  ;;  %v8528_v25 = vsub.f32 %v2668_v55, %v2924_v29  ;;  %v2934_v33 = vfloor.f32 %v2806_v56  ;;  %v5011_v29 = vld [vmem:[%s5063_s18 + $0x3e0] sm:$0xff]  ;;  %v5012_v56 = vld [vmem:[%s5063_s18 + $0x3e8] sm:$0xff] }
 0x46d   : > { %v4208_v19 = vadd.f32 -41.341618, %v4080_v60  ;;  %v4075_v51 = vmul.f32 %v3947_v13, %v8478_v10  ;;  %v3689_v52 = vadd.f32 -76.6265, %v3561_v17  ;;  %v3566_v9 = vmul.f32 %v3438_v31, %v8515_v36 }
 0x46e   : > { %v4582_v5 = vmul.f32 %v4454_v6, %v8435_v54  ;;  %v3699_v12 = vadd.f32 -76.6265, %v3571_v44  ;;  %v8535_v22 = vmul.f32 %v8528_v25, %v8528_v25  ;;  %v8537_v42 = vsub.f32 %v2678_v3, %v2934_v33  ;;  %v2197_v44 = vpop.permute.xlu1 %2196 }
 0x46f   : > { %v4336_v55 = vmul.f32 %v4208_v19, %v8464_v41  ;;  %v4203_v18 = vadd.f32 -41.341618, %v4075_v51  ;;  %v3817_v4 = vmul.f32 %v3689_v52, %v8498_v49  ;;  %v3694_v11 = vadd.f32 -76.6265, %v3566_v9  ;;  %2472 = vperm.xlu1 %4879, %v5011_v29   ;;  %2476 = vperm.xlu2 %4877, %v5012_v56   ;;  %v2237_v9 = vpop.permute.xlu2 %2236 }
 0x470   : > { %4711 = vst.msk [vmem:[%s7595_s29 + $0x170] sm:$0xff] %vm4664_vm0, %v4582_v5  ;;  %v3827_v54 = vmul.f32 %v3699_v12, %v8507_v57  ;;  %v3308_v60 = vmul.f32 -12.575904, %v8535_v22  ;;  %v8549_v3 = vmul.f32 %v8537_v42, %v8537_v42  ;;  %v2545_v41 = vmul.f32 %v8409_v21, %v2205_v61 }
 0x471   : > { %v4464_v13 = vadd.f32 6.283185, %v4336_v55  ;;  %v4331_v17 = vmul.f32 %v4203_v18, %v8478_v10  ;;  %v3945_v31 = vadd.f32 81.60091, %v3817_v4  ;;  %v3822_v6 = vmul.f32 %v3694_v11, %v8515_v36 }
 0x472   : > { %v3955_v33 = vadd.f32 81.60091, %v3827_v54  ;;  %v3436_v19 = vadd.f32 41.40318, %v3308_v60  ;;  %v3318_v51 = vmul.f32 -12.575904, %v8549_v3  ;;  %v2673_v52 = vadd.f32 %v2545_v41, %v7198_v24 }
 0x473   : > { %v4592_v5 = vmul.f32 %v4464_v13, %v8453_v43  ;;  %v4459_v12 = vadd.f32 6.283185, %v4331_v17  ;;  %v4073_v61 = vmul.f32 %v3945_v31, %v8498_v49  ;;  %v3950_v55 = vadd.f32 81.60091, %v3822_v6  ;;  %v10660_v6 = vld [vmem:[#allocation59_spill] sm:$0xff] }
 0x474   : > { %v4083_v10 = vmul.f32 %v3955_v33, %v8507_v57  ;;  %v3564_v18 = vmul.f32 %v3436_v19, %v8535_v22  ;;  %v3446_v4 = vadd.f32 41.40318, %v3318_v51  ;;  %v2801_v11 = vadd.f32 0.5, %v2673_v52 }
 0x475   : > { %4721 = vst.msk [vmem:[%s7595_s29 + $0x1c0] sm:$0xff] %vm4664_vm0, %v4592_v5  ;;  %v4587_v29 = vmul.f32 %v4459_v12, %v8466_v59  ;;  %v4201_v24 = vadd.f32 -41.341618, %v4073_v61  ;;  %v4078_v56 = vmul.f32 %v3950_v55, %v8515_v36  ;;  %v2543_v43 = vmul.f32 %v8409_v21, %v2197_v44  ;;  %v5013_v59 = vld [vmem:[%s5063_s18 + $0x3f8] sm:$0xff] }
 0x476   : > { %v4211_v54 = vadd.f32 -41.341618, %v4083_v10  ;;  %v3692_v60 = vadd.f32 -76.6265, %v3564_v18  ;;  %v3574_v41 = vmul.f32 %v3446_v4, %v8549_v3  ;;  %v2929_v13 = vfloor.f32 %v2801_v11  ;;  %v10661_v18 = vld [vmem:[#allocation58_spill] sm:$0xff]  ;;  %v2217_v4 = vpop.permute.xlu0 %2216 }
 0x477   : > { %4716 = vst.msk [vmem:[%s7595_s29 + $0x198] sm:$0xff] %vm4664_vm0, %v4587_v29  ;;  %v4329_v17 = vmul.f32 %v4201_v24, %v8498_v49  ;;  %v4206_v31 = vadd.f32 -41.341618, %v4078_v56  ;;  %v2671_v33 = vadd.f32 %v2543_v43, %v10660_v6  ;;  %v2553_v19 = vmul.f32 %v8409_v21, %v2237_v9  ;;  %2484 = vperm.xlu1 %4879, %v5013_v59  }
 0x478   : > { %v4339_v51 = vmul.f32 %v4211_v54, %v8507_v57  ;;  %v3820_v44 = vmul.f32 %v3692_v60, %v8535_v22  ;;  %v3702_v5 = vadd.f32 -76.6265, %v3574_v41  ;;  %v8574_v12 = vsub.f32 %v2673_v52, %v2929_v13 }
 0x479   : > { %v4457_v61 = vadd.f32 6.283185, %v4329_v17  ;;  %v4334_v55 = vmul.f32 %v4206_v31, %v8515_v36  ;;  %v2799_v10 = vadd.f32 0.5, %v2671_v33  ;;  %v2681_v49 = vadd.f32 %v2553_v19, %v10661_v18  ;;  %v2209_v36 = vpop.permute.xlu1 %2208  ;;  %v2249_v17 = vpop.permute.xlu2 %2248 }
 0x47a   : > { %v4467_v11 = vadd.f32 6.283185, %v4339_v51  ;;  %v3948_v29 = vadd.f32 81.60091, %v3820_v44  ;;  %v3830_v9 = vmul.f32 %v3702_v5, %v8549_v3  ;;  %v8581_v57 = vmul.f32 %v8574_v12, %v8574_v12 }
 0x47b   : > { %v4585_v52 = vmul.f32 %v4457_v61, %v8487_v30  ;;  %v4462_v24 = vadd.f32 6.283185, %v4334_v55  ;;  %v2927_v56 = vfloor.f32 %v2799_v10  ;;  %v2809_v43 = vadd.f32 0.5, %v2681_v49 }
 0x47c   : > { %v4595_v54 = vmul.f32 %v4467_v11, %v8492_v38  ;;  %v4076_v60 = vmul.f32 %v3948_v29, %v8535_v22  ;;  %v3958_v41 = vadd.f32 81.60091, %v3830_v9  ;;  %v3313_v13 = vmul.f32 -12.575904, %v8581_v57 }
 0x47d   : > { %4714 = vst.msk [vmem:[%s7595_s29 + $0x188] sm:$0xff] %vm4664_vm0, %v4585_v52  ;;  %v4590_v31 = vmul.f32 %v4462_v24, %v8500_v2  ;;  %v8590_v6 = vsub.f32 %v2671_v33, %v2927_v56  ;;  %v2937_v30 = vfloor.f32 %v2809_v43  ;;  %v2548_v19 = vmul.f32 %v8409_v21, %v2217_v4  ;;  %v10662_v4 = vld [vmem:[#allocation66_spill] sm:$0xff] }
 0x47e   : > { %4724 = vst.msk [vmem:[%s7595_s29 + $0x1d8] sm:$0xff] %vm4664_vm0, %v4595_v54  ;;  %v4204_v59 = vadd.f32 -41.341618, %v4076_v60  ;;  %v4086_v38 = vmul.f32 %v3958_v41, %v8549_v3  ;;  %v3441_v51 = vadd.f32 41.40318, %v3313_v13  ;;  %v2546_v44 = vmul.f32 %v8409_v21, %v2209_v36  ;;  %v2229_v13 = vpop.permute.xlu0 %2228 }
 0x47f   : > { %4719 = vst.msk [vmem:[%s7595_s29 + $0x1b0] sm:$0xff] %vm4664_vm0, %v4590_v31  ;;  %v8601_v5 = vmul.f32 %v8590_v6, %v8590_v6  ;;  %v8603_v2 = vsub.f32 %v2681_v49, %v2937_v30  ;;  %v2676_v33 = vadd.f32 %v2548_v19, %v7220_v16  ;;  %v2556_v61 = vmul.f32 %v8409_v21, %v2249_v17  ;;  %v10663_v49 = vld [vmem:[#allocation65_spill] sm:$0xff] }
 0x480   : > { %v4332_v55 = vmul.f32 %v4204_v59, %v8535_v22  ;;  %v4214_v10 = vadd.f32 -41.341618, %v4086_v38  ;;  %v3569_v18 = vmul.f32 %v3441_v51, %v8581_v57  ;;  %v2674_v11 = vadd.f32 %v2546_v44, %v10662_v4 }
 0x481   : > { %v3311_v29 = vmul.f32 -12.575904, %v8601_v5  ;;  %v8613_v9 = vmul.f32 %v8603_v2, %v8603_v2  ;;  %v2804_v52 = vadd.f32 0.5, %v2676_v33  ;;  %v2684_v24 = vadd.f32 %v2556_v61, %v10663_v49  ;;  %v2221_v44 = vpop.permute.xlu1 %2220 }
 0x482   : > { %v4460_v56 = vadd.f32 6.283185, %v4332_v55  ;;  %v4342_v16 = vmul.f32 %v4214_v10, %v8549_v3  ;;  %v3697_v43 = vadd.f32 -76.6265, %v3569_v18  ;;  %v2802_v22 = vadd.f32 0.5, %v2674_v11 }
 0x483   : > { %v3439_v36 = vadd.f32 41.40318, %v3311_v29  ;;  %v3321_v54 = vmul.f32 -12.575904, %v8613_v9  ;;  %v2932_v60 = vfloor.f32 %v2804_v52  ;;  %v2812_v41 = vadd.f32 0.5, %v2684_v24 }
 0x484   : > { %v4588_v17 = vmul.f32 %v4460_v56, %v8528_v25  ;;  %v4470_v31 = vadd.f32 6.283185, %v4342_v16  ;;  %v3825_v30 = vmul.f32 %v3697_v43, %v8581_v57  ;;  %v2930_v19 = vfloor.f32 %v2802_v22 }
 0x485   : > { %v3567_v59 = vmul.f32 %v3439_v36, %v8601_v5  ;;  %v3449_v38 = vadd.f32 41.40318, %v3321_v54  ;;  %v8621_v3 = vsub.f32 %v2676_v33, %v2932_v60  ;;  %v2940_v51 = vfloor.f32 %v2812_v41  ;;  %v10664_v60 = vld [vmem:[#allocation64_spill] sm:$0xff] }
 0x486   : > { %4717 = vst.msk [vmem:[%s7595_s29 + $0x1a0] sm:$0xff] %vm4664_vm0, %v4588_v17  ;;  %v4598_v61 = vmul.f32 %v4470_v31, %v8537_v42  ;;  %v3953_v55 = vadd.f32 81.60091, %v3825_v30  ;;  %v8626_v10 = vsub.f32 %v2674_v11, %v2930_v19  ;;  %v2551_v25 = vmul.f32 %v8409_v21, %v2229_v13 }
 0x487   : > { %v3695_v18 = vadd.f32 -76.6265, %v3567_v59  ;;  %v3577_v4 = vmul.f32 %v3449_v38, %v8613_v9  ;;  %v8632_v29 = vmul.f32 %v8621_v3, %v8621_v3  ;;  %v8634_v33 = vsub.f32 %v2684_v24, %v2940_v51 }
 0x488   : > { %4727 = vst.msk [vmem:[%s7595_s29 + $0x1f0] sm:$0xff] %vm4664_vm0, %v4598_v61  ;;  %v4081_v52 = vmul.f32 %v3953_v55, %v8581_v57  ;;  %v8641_v42 = vmul.f32 %v8626_v10, %v8626_v10  ;;  %v2679_v11 = vadd.f32 %v2551_v25, %v7235_v1  ;;  %v2549_v49 = vmul.f32 %v8409_v21, %v2221_v44 }
 0x489   : > { %v3823_v56 = vmul.f32 %v3695_v18, %v8601_v5  ;;  %v3705_v16 = vadd.f32 -76.6265, %v3577_v4  ;;  %v3316_v43 = vmul.f32 -12.575904, %v8632_v29  ;;  %v8649_v24 = vmul.f32 %v8634_v33, %v8634_v33 }
 0x48a   : > { %v4209_v22 = vadd.f32 -41.341618, %v4081_v52  ;;  %v3314_v36 = vmul.f32 -12.575904, %v8641_v42  ;;  %v2807_v54 = vadd.f32 0.5, %v2679_v11  ;;  %v2677_v41 = vadd.f32 %v2549_v49, %v10664_v60 }
 0x48b   : > { %v3951_v13 = vadd.f32 81.60091, %v3823_v56  ;;  %v3833_v1 = vmul.f32 %v3705_v16, %v8613_v9  ;;  %v3444_v17 = vadd.f32 41.40318, %v3316_v43  ;;  %v3324_v31 = vmul.f32 -12.575904, %v8649_v24  ;;  %v2261_v43 = vpop.permute.xlu2 %2260 }
 0x48c   : > { %v4337_v30 = vmul.f32 %v4209_v22, %v8581_v57  ;;  %v3442_v19 = vadd.f32 41.40318, %v3314_v36  ;;  %v2935_v59 = vfloor.f32 %v2807_v54  ;;  %v2805_v38 = vadd.f32 0.5, %v2677_v41 }
 0x48d   : > { %v4079_v51 = vmul.f32 %v3951_v13, %v8601_v5  ;;  %v3961_v44 = vadd.f32 81.60091, %v3833_v1  ;;  %v3572_v61 = vmul.f32 %v3444_v17, %v8632_v29  ;;  %v3452_v55 = vadd.f32 41.40318, %v3324_v31 }
 0x48e   : > { %v4465_v25 = vadd.f32 6.283185, %v4337_v30  ;;  %v3570_v18 = vmul.f32 %v3442_v19, %v8641_v42  ;;  %v8659_v4 = vsub.f32 %v2679_v11, %v2935_v59  ;;  %v2933_v52 = vfloor.f32 %v2805_v38 }
 0x48f   : > { %v4207_v49 = vadd.f32 -41.341618, %v4079_v51  ;;  %v4089_v56 = vmul.f32 %v3961_v44, %v8613_v9  ;;  %v3700_v57 = vadd.f32 -76.6265, %v3572_v61  ;;  %v3580_v16 = vmul.f32 %v3452_v55, %v8649_v24  ;;  %v2241_v51 = vpop.permute.xlu0 %2240 }
 0x490   : > { %v4593_v22 = vmul.f32 %v4465_v25, %v8574_v12  ;;  %v3698_v36 = vadd.f32 -76.6265, %v3570_v18  ;;  %v8666_v54 = vmul.f32 %v8659_v4, %v8659_v4  ;;  %v8668_v60 = vsub.f32 %v2677_v41, %v2933_v52  ;;  %v2233_v18 = vpop.permute.xlu1 %2232 }
 0x491   : > { %v4335_v11 = vmul.f32 %v4207_v49, %v8601_v5  ;;  %v4217_v13 = vadd.f32 -41.341618, %v4089_v56  ;;  %v3828_v1 = vmul.f32 %v3700_v57, %v8632_v29  ;;  %v3708_v17 = vadd.f32 -76.6265, %v3580_v16 }
 0x492   : > { %4722 = vst.msk [vmem:[%s7595_s29 + $0x1c8] sm:$0xff] %vm4664_vm0, %v4593_v22  ;;  %v3826_v31 = vmul.f32 %v3698_v36, %v8641_v42  ;;  %v3319_v30 = vmul.f32 -12.575904, %v8666_v54  ;;  %v8678_v12 = vmul.f32 %v8668_v60, %v8668_v60  ;;  %v2559_v19 = vmul.f32 %v8409_v21, %v2261_v43 }
 0x493   : > { %v4463_v41 = vadd.f32 6.283185, %v4335_v11  ;;  %v4345_v59 = vmul.f32 %v4217_v13, %v8613_v9  ;;  %v3956_v5 = vadd.f32 81.60091, %v3828_v1  ;;  %v3836_v38 = vmul.f32 %v3708_v17, %v8649_v24 }
 0x494   : > { %v3954_v44 = vadd.f32 81.60091, %v3826_v31  ;;  %v3447_v61 = vadd.f32 41.40318, %v3319_v30  ;;  %v3317_v55 = vmul.f32 -12.575904, %v8678_v12  ;;  %v2687_v25 = vadd.f32 %v2559_v19, %v7232_v53 }
 0x495   : > { %v4591_v52 = vmul.f32 %v4463_v41, %v8590_v6  ;;  %v4473_v49 = vadd.f32 6.283185, %v4345_v59  ;;  %v4084_v56 = vmul.f32 %v3956_v5, %v8632_v29  ;;  %v3964_v57 = vadd.f32 81.60091, %v3836_v38 }
 0x496   : > { %v4082_v9 = vmul.f32 %v3954_v44, %v8641_v42  ;;  %v3575_v16 = vmul.f32 %v3447_v61, %v8666_v54  ;;  %v3445_v43 = vadd.f32 41.40318, %v3317_v55  ;;  %v2815_v22 = vadd.f32 0.5, %v2687_v25 }
 0x497   : > { %4720 = vst.msk [vmem:[%s7595_s29 + $0x1b8] sm:$0xff] %vm4664_vm0, %v4591_v52  ;;  %v4601_v36 = vmul.f32 %v4473_v49, %v8603_v2  ;;  %v4212_v11 = vadd.f32 -41.341618, %v4084_v56  ;;  %v4092_v53 = vmul.f32 %v3964_v57, %v8649_v24  ;;  %v2554_v6 = vmul.f32 %v8409_v21, %v2241_v51 }
 0x498   : > { %v4210_v13 = vadd.f32 -41.341618, %v4082_v9  ;;  %v3703_v1 = vadd.f32 -76.6265, %v3575_v16  ;;  %v3573_v17 = vmul.f32 %v3445_v43, %v8678_v12  ;;  %v2943_v31 = vfloor.f32 %v2815_v22 }
 0x499   : > { %4730 = vst.msk [vmem:[%s7595_s29 + $0x208] sm:$0xff] %vm4664_vm0, %v4601_v36  ;;  %v4340_v30 = vmul.f32 %v4212_v11, %v8632_v29  ;;  %v4220_v19 = vadd.f32 -41.341618, %v4092_v53  ;;  %v2682_v41 = vadd.f32 %v2554_v6, %v7254_v34  ;;  %v2552_v59 = vmul.f32 %v8409_v21, %v2233_v18  ;;  %v2273_v29 = vpop.permute.xlu2 %2272  ;;  %v2245_v36 = vpop.permute.xlu1 %2244 }
 0x49a   : > { %v4338_v2 = vmul.f32 %v4210_v13, %v8641_v42  ;;  %v3831_v5 = vmul.f32 %v3703_v1, %v8666_v54  ;;  %v3701_v38 = vadd.f32 -76.6265, %v3573_v17  ;;  %v8702_v51 = vsub.f32 %v2687_v25, %v2943_v31 }
 0x49b   : > { %v4468_v44 = vadd.f32 6.283185, %v4340_v30  ;;  %v4348_v61 = vmul.f32 %v4220_v19, %v8649_v24  ;;  %v2810_v55 = vadd.f32 0.5, %v2682_v41  ;;  %v2680_v52 = vadd.f32 %v2552_v59, %v7238_v14  ;;  %v2253_v24 = vpop.permute.xlu0 %2252 }
 0x49c   : > { %v4466_v49 = vadd.f32 6.283185, %v4338_v2  ;;  %v3959_v56 = vadd.f32 81.60091, %v3831_v5  ;;  %v3829_v34 = vmul.f32 %v3701_v38, %v8678_v12  ;;  %v8709_v42 = vmul.f32 %v8702_v51, %v8702_v51  ;;  %v10665_v5 = vld [vmem:[#allocation72_spill] sm:$0xff] }
 0x49d   : > { %v4596_v25 = vmul.f32 %v4468_v44, %v8621_v3  ;;  %v4476_v18 = vadd.f32 6.283185, %v4348_v61  ;;  %v2938_v57 = vfloor.f32 %v2810_v55  ;;  %v2808_v9 = vadd.f32 0.5, %v2680_v52 }
 0x49e   : > { %v4594_v14 = vmul.f32 %v4466_v49, %v8626_v10  ;;  %v4087_v16 = vmul.f32 %v3959_v56, %v8666_v54  ;;  %v3957_v43 = vadd.f32 81.60091, %v3829_v34  ;;  %v3327_v22 = vmul.f32 -12.575904, %v8709_v42 }
 0x49f   : > { %4725 = vst.msk [vmem:[%s7595_s29 + $0x1e0] sm:$0xff] %vm4664_vm0, %v4596_v25  ;;  %v4604_v11 = vmul.f32 %v4476_v18, %v8634_v33  ;;  %v8718_v53 = vsub.f32 %v2682_v41, %v2938_v57  ;;  %v2936_v3 = vfloor.f32 %v2808_v9  ;;  %v2562_v6 = vmul.f32 %v8409_v21, %v2273_v29 }
 0x4a0   : > { %4723 = vst.msk [vmem:[%s7595_s29 + $0x1d0] sm:$0xff] %vm4664_vm0, %v4594_v14  ;;  %v4215_v13 = vadd.f32 -41.341618, %v4087_v16  ;;  %v4085_v10 = vmul.f32 %v3957_v43, %v8678_v12  ;;  %v3455_v1 = vadd.f32 41.40318, %v3327_v22  ;;  %v2557_v17 = vmul.f32 %v8409_v21, %v2253_v24 }
 0x4a1   : > { %4733 = vst.msk [vmem:[%s7595_s29 + $0x220] sm:$0xff] %vm4664_vm0, %v4604_v11  ;;  %v8729_v31 = vmul.f32 %v8718_v53, %v8718_v53  ;;  %v8731_v33 = vsub.f32 %v2680_v52, %v2936_v3  ;;  %v2690_v30 = vadd.f32 %v2562_v6, %v7251_v40  ;;  %v2555_v19 = vmul.f32 %v8409_v21, %v2245_v36  ;;  %v10666_v52 = vld [vmem:[#allocation51_spill] sm:$0xff]  ;;  %v2285_v9 = vpop.permute.xlu2 %2284 }
 0x4a2   : > { %v4343_v41 = vmul.f32 %v4215_v13, %v8666_v54  ;;  %v4213_v59 = vadd.f32 -41.341618, %v4085_v10  ;;  %v3583_v2 = vmul.f32 %v3455_v1, %v8709_v42  ;;  %v2685_v38 = vadd.f32 %v2557_v17, %v10665_v5 }
 0x4a3   : > { %v3322_v44 = vmul.f32 -12.575904, %v8729_v31  ;;  %v8741_v61 = vmul.f32 %v8731_v33, %v8731_v33  ;;  %v2818_v55 = vadd.f32 0.5, %v2690_v30  ;;  %v2683_v29 = vadd.f32 %v2555_v19, %v10666_v52  ;;  %v2265_v3 = vpop.permute.xlu0 %2264 }
 0x4a4   : > { %v4471_v49 = vadd.f32 6.283185, %v4343_v41  ;;  %v4341_v40 = vmul.f32 %v4213_v59, %v8678_v12  ;;  %v3711_v56 = vadd.f32 -76.6265, %v3583_v2  ;;  %v2813_v54 = vadd.f32 0.5, %v2685_v38  ;;  %v10667_v59 = vld [vmem:[#allocation50_spill] sm:$0xff] }
 0x4a5   : > { %v3450_v34 = vadd.f32 41.40318, %v3322_v44  ;;  %v3320_v25 = vmul.f32 -12.575904, %v8741_v61  ;;  %v2946_v18 = vfloor.f32 %v2818_v55  ;;  %v2811_v57 = vadd.f32 0.5, %v2683_v29 }
 0x4a6   : > { %v4599_v24 = vmul.f32 %v4471_v49, %v8659_v4  ;;  %v4469_v14 = vadd.f32 6.283185, %v4341_v40  ;;  %v3839_v16 = vmul.f32 %v3711_v56, %v8709_v42  ;;  %v2941_v43 = vfloor.f32 %v2813_v54  ;;  %v10668_v56 = vld [vmem:[#allocation56_spill] sm:$0xff] }
 0x4a7   : > { %v3578_v22 = vmul.f32 %v3450_v34, %v8729_v31  ;;  %v3448_v36 = vadd.f32 41.40318, %v3320_v25  ;;  %v8749_v12 = vsub.f32 %v2690_v30, %v2946_v18  ;;  %v2939_v11 = vfloor.f32 %v2811_v57 }
 0x4a8   : > { %4728 = vst.msk [vmem:[%s7595_s29 + $0x1f8] sm:$0xff] %vm4664_vm0, %v4599_v24  ;;  %v4597_v6 = vmul.f32 %v4469_v14, %v8668_v60  ;;  %v3967_v13 = vadd.f32 81.60091, %v3839_v16  ;;  %v8754_v10 = vsub.f32 %v2685_v38, %v2941_v43  ;;  %v2565_v4 = vmul.f32 %v8409_v21, %v2285_v9 }
 0x4a9   : > { %v3706_v1 = vadd.f32 -76.6265, %v3578_v22  ;;  %v3576_v17 = vmul.f32 %v3448_v36, %v8741_v61  ;;  %v8760_v19 = vmul.f32 %v8749_v12, %v8749_v12  ;;  %v8762_v30 = vsub.f32 %v2683_v29, %v2939_v11 }
 0x4aa   : > { %4726 = vst.msk [vmem:[%s7595_s29 + $0x1e8] sm:$0xff] %vm4664_vm0, %v4597_v6  ;;  %v4095_v41 = vmul.f32 %v3967_v13, %v8709_v42  ;;  %v8769_v60 = vmul.f32 %v8754_v10, %v8754_v10  ;;  %v2693_v2 = vadd.f32 %v2565_v4, %v10667_v59  ;;  %v2560_v5 = vmul.f32 %v8409_v21, %v2265_v3  ;;  %v2257_v59 = vpop.permute.xlu1 %2256 }
 0x4ab   : > { %v3834_v38 = vmul.f32 %v3706_v1, %v8729_v31  ;;  %v3704_v44 = vadd.f32 -76.6265, %v3576_v17  ;;  %v3330_v55 = vmul.f32 -12.575904, %v8760_v19  ;;  %v8777_v52 = vmul.f32 %v8762_v30, %v8762_v30 }
 0x4ac   : > { %v4223_v29 = vadd.f32 -41.341618, %v4095_v41  ;;  %v3325_v49 = vmul.f32 -12.575904, %v8769_v60  ;;  %v2821_v40 = vadd.f32 0.5, %v2693_v2  ;;  %v2688_v54 = vadd.f32 %v2560_v5, %v10668_v56 }
 0x4ad   : > { %v3962_v34 = vadd.f32 81.60091, %v3834_v38  ;;  %v3832_v25 = vmul.f32 %v3704_v44, %v8741_v61  ;;  %v3458_v18 = vadd.f32 41.40318, %v3330_v55  ;;  %v3323_v57 = vmul.f32 -12.575904, %v8777_v52 }
 0x4ae   : > { %v4351_v9 = vmul.f32 %v4223_v29, %v8709_v42  ;;  %v3453_v24 = vadd.f32 41.40318, %v3325_v49  ;;  %v2949_v14 = vfloor.f32 %v2821_v40  ;;  %v2816_v16 = vadd.f32 0.5, %v2688_v54 }
 0x4af   : > { %v4090_v43 = vmul.f32 %v3962_v34, %v8729_v31  ;;  %v3960_v22 = vadd.f32 81.60091, %v3832_v25  ;;  %v3586_v36 = vmul.f32 %v3458_v18, %v8760_v19  ;;  %v3451_v11 = vadd.f32 41.40318, %v3323_v57 }
 0x4b0   : > { %v4479_v3 = vadd.f32 6.283185, %v4351_v9  ;;  %v3581_v6 = vmul.f32 %v3453_v24, %v8769_v60  ;;  %v8787_v13 = vsub.f32 %v2693_v2, %v2949_v14  ;;  %v2944_v4 = vfloor.f32 %v2816_v16  ;;  %v2297_v9 = vpop.permute.xlu2 %2296 }
 0x4b1   : > { %v4218_v1 = vadd.f32 -41.341618, %v4090_v43  ;;  %v4088_v17 = vmul.f32 %v3960_v22, %v8741_v61  ;;  %v3714_v42 = vadd.f32 -76.6265, %v3586_v36  ;;  %v3579_v41 = vmul.f32 %v3451_v11, %v8777_v52  ;;  %v10669_v43 = vld [vmem:[#allocation61_spill] sm:$0xff]  ;;  %v2277_v36 = vpop.permute.xlu0 %2276 }
 0x4b2   : > { %v4607_v5 = vmul.f32 %v4479_v3, %v8702_v51  ;;  %v3709_v38 = vadd.f32 -76.6265, %v3581_v6  ;;  %v8794_v44 = vmul.f32 %v8787_v13, %v8787_v13  ;;  %v8796_v55 = vsub.f32 %v2688_v54, %v2944_v4 }
 0x4b3   : > { %v4346_v2 = vmul.f32 %v4218_v1, %v8729_v31  ;;  %v4216_v29 = vadd.f32 -41.341618, %v4088_v17  ;;  %v3842_v49 = vmul.f32 %v3714_v42, %v8760_v19  ;;  %v3707_v40 = vadd.f32 -76.6265, %v3579_v41 }
 0x4b4   : > { %4736 = vst.msk [vmem:[%s7595_s29 + $0x238] sm:$0xff] %vm4664_vm0, %v4607_v5  ;;  %v3837_v56 = vmul.f32 %v3709_v38, %v8769_v60  ;;  %v3333_v34 = vmul.f32 -12.575904, %v8794_v44  ;;  %v8806_v51 = vmul.f32 %v8796_v55, %v8796_v55  ;;  %v2558_v25 = vmul.f32 %v8409_v21, %v2257_v59 }
 0x4b5   : > { %v4474_v54 = vadd.f32 6.283185, %v4346_v2  ;;  %v4344_v18 = vmul.f32 %v4216_v29, %v8741_v61  ;;  %v3970_v31 = vadd.f32 81.60091, %v3842_v49  ;;  %v3835_v57 = vmul.f32 %v3707_v40, %v8777_v52 }
 0x4b6   : > { %v3965_v24 = vadd.f32 81.60091, %v3837_v56  ;;  %v3461_v14 = vadd.f32 41.40318, %v3333_v34  ;;  %v3328_v16 = vmul.f32 -12.575904, %v8806_v51  ;;  %v2686_v22 = vadd.f32 %v2558_v25, %v10669_v43 }
 0x4b7   : > { %v4602_v11 = vmul.f32 %v4474_v54, %v8718_v53  ;;  %v4472_v3 = vadd.f32 6.283185, %v4344_v18  ;;  %v4098_v6 = vmul.f32 %v3970_v31, %v8760_v19  ;;  %v3963_v4 = vadd.f32 81.60091, %v3835_v57  ;;  %v10670_v34 = vld [vmem:[#allocation57_spill] sm:$0xff] }
 0x4b8   : > { %v4093_v61 = vmul.f32 %v3965_v24, %v8769_v60  ;;  %v3589_v1 = vmul.f32 %v3461_v14, %v8794_v44  ;;  %v3456_v17 = vadd.f32 41.40318, %v3328_v16  ;;  %v2814_v42 = vadd.f32 0.5, %v2686_v22 }
 0x4b9   : > { %4731 = vst.msk [vmem:[%s7595_s29 + $0x210] sm:$0xff] %vm4664_vm0, %v4602_v11  ;;  %v4600_v41 = vmul.f32 %v4472_v3, %v8731_v33  ;;  %v4226_v59 = vadd.f32 -41.341618, %v4098_v6  ;;  %v4091_v5 = vmul.f32 %v3963_v4, %v8777_v52  ;;  %v2568_v53 = vmul.f32 %v8409_v21, %v2297_v9 }
 0x4ba   : > { %v4221_v38 = vadd.f32 -41.341618, %v4093_v61  ;;  %v3717_v2 = vadd.f32 -76.6265, %v3589_v1  ;;  %v3584_v29 = vmul.f32 %v3456_v17, %v8806_v51  ;;  %v2942_v49 = vfloor.f32 %v2814_v42  ;;  %v2289_v17 = vpop.permute.xlu0 %2288 }
 0x4bb   : > { %4729 = vst.msk [vmem:[%s7595_s29 + $0x200] sm:$0xff] %vm4664_vm0, %v4600_v41  ;;  %v4354_v40 = vmul.f32 %v4226_v59, %v8760_v19  ;;  %v4219_v56 = vadd.f32 -41.341618, %v4091_v5  ;;  %v2696_v25 = vadd.f32 %v2568_v53, %v10670_v34  ;;  %v2563_v54 = vmul.f32 %v8409_v21, %v2277_v36  ;;  %v2269_v19 = vpop.permute.xlu1 %2268  ;;  %v8851_v59 = vld [vmem:[%s9692_s1 + $0x2] ss:$0 sm:$0xff] }
 0x4bc   : > { %v4349_v33 = vmul.f32 %v4221_v38, %v8769_v60  ;;  %v3845_v18 = vmul.f32 %v3717_v2, %v8794_v44  ;;  %v3712_v31 = vadd.f32 -76.6265, %v3584_v29  ;;  %v8830_v57 = vsub.f32 %v2686_v22, %v2942_v49  ;;  %v10671_v49 = vld [vmem:[#allocation71_spill] sm:$0xff] }
 0x4bd   : > { %v4482_v9 = vadd.f32 6.283185, %v4354_v40  ;;  %v4347_v24 = vmul.f32 %v4219_v56, %v8777_v52  ;;  %v2824_v14 = vadd.f32 0.5, %v2696_v25  ;;  %v2691_v16 = vadd.f32 %v2563_v54, %v7309_v0  ;;  %v2309_v52 = vpop.permute.xlu2 %2308 }
 0x4be   : > { %v4477_v43 = vadd.f32 6.283185, %v4349_v33  ;;  %v3973_v11 = vadd.f32 81.60091, %v3845_v18  ;;  %v3840_v3 = vmul.f32 %v3712_v31, %v8806_v51  ;;  %v8837_v21 = vmul.f32 %v8830_v57, %v8830_v57  ;;  %v10672_v33 = vld [vmem:[#allocation69_spill] sm:$0xff] }
 0x4bf   : > { %v4610_v60 = vmul.f32 %v4482_v9, %v8749_v12  ;;  %v4475_v22 = vadd.f32 6.283185, %v4347_v24  ;;  %v2952_v36 = vfloor.f32 %v2824_v14  ;;  %v2819_v6 = vadd.f32 0.5, %v2691_v16 }
 0x4c0   : > { %v4605_v4 = vmul.f32 %v4477_v43, %v8754_v10  ;;  %v4101_v0 = vmul.f32 %v3973_v11, %v8794_v44  ;;  %v3968_v61 = vadd.f32 81.60091, %v3840_v3  ;;  %v3326_v1 = vmul.f32 -12.575904, %v8837_v21 }
 0x4c1   : > { %4739 = vst.msk [vmem:[%s7595_s29 + $0x250] sm:$0xff] %vm4664_vm0, %v4610_v60  ;;  %v4603_v42 = vmul.f32 %v4475_v22, %v8762_v30  ;;  %v8846_v41 = vsub.f32 %v2696_v25, %v2952_v36  ;;  %v2947_v12 = vfloor.f32 %v2819_v6  ;;  %v2561_v10 = vmul.f32 %v8851_v59, %v2269_v19 }
 0x4c2   : > { %4734 = vst.msk [vmem:[%s7595_s29 + $0x228] sm:$0xff] %vm4664_vm0, %v4605_v4  ;;  %v4229_v5 = vadd.f32 -41.341618, %v4101_v0  ;;  %v4096_v53 = vmul.f32 %v3968_v61, %v8806_v51  ;;  %v3454_v38 = vadd.f32 41.40318, %v3326_v1  ;;  %v2571_v2 = vmul.f32 %v8851_v59, %v2309_v52 }
 0x4c3   : > { %4732 = vst.msk [vmem:[%s7595_s29 + $0x218] sm:$0xff] %vm4664_vm0, %v4603_v42  ;;  %v8862_v30 = vmul.f32 %v8846_v41, %v8846_v41  ;;  %v8864_v29 = vsub.f32 %v2691_v16, %v2947_v12  ;;  %v2689_v40 = vadd.f32 %v2561_v10, %v10671_v49  ;;  %v2566_v56 = vmul.f32 %v8851_v59, %v2289_v17  ;;  %v2281_v36 = vpop.permute.xlu1 %2280 }
 0x4c4   : > { %v4357_v34 = vmul.f32 %v4229_v5, %v8794_v44  ;;  %v4224_v25 = vadd.f32 -41.341618, %v4096_v53  ;;  %v3582_v54 = vmul.f32 %v3454_v38, %v8837_v21  ;;  %v2699_v18 = vadd.f32 %v2571_v2, %v10672_v33 }
 0x4c5   : > { %v3336_v31 = vmul.f32 -12.575904, %v8862_v30  ;;  %v8874_v9 = vmul.f32 %v8864_v29, %v8864_v29  ;;  %v2817_v24 = vadd.f32 0.5, %v2689_v40  ;;  %v2694_v14 = vadd.f32 %v2566_v56, %v7322_v23  ;;  %v2321_v17 = vpop.permute.xlu2 %2320 }
 0x4c6   : > { %v4485_v16 = vadd.f32 6.283185, %v4357_v34  ;;  %v4352_v19 = vmul.f32 %v4224_v25, %v8806_v51  ;;  %v3710_v43 = vadd.f32 -76.6265, %v3582_v54  ;;  %v2827_v44 = vadd.f32 0.5, %v2699_v18 }
 0x4c7   : > { %v3464_v11 = vadd.f32 41.40318, %v3336_v31  ;;  %v3331_v3 = vmul.f32 -12.575904, %v8874_v9  ;;  %v2945_v60 = vfloor.f32 %v2817_v24  ;;  %v2822_v22 = vadd.f32 0.5, %v2694_v14 }
 0x4c8   : > { %v4613_v6 = vmul.f32 %v4485_v16, %v8787_v13  ;;  %v4480_v52 = vadd.f32 6.283185, %v4352_v19  ;;  %v3838_v4 = vmul.f32 %v3710_v43, %v8837_v21  ;;  %v2955_v0 = vfloor.f32 %v2827_v44 }
 0x4c9   : > { %v3592_v23 = vmul.f32 %v3464_v11, %v8862_v30  ;;  %v3459_v61 = vadd.f32 41.40318, %v3331_v3  ;;  %v8882_v51 = vsub.f32 %v2689_v40, %v2945_v60  ;;  %v2950_v1 = vfloor.f32 %v2822_v22 }
 0x4ca   : > { %4742 = vst.msk [vmem:[%s7595_s29 + $0x268] sm:$0xff] %vm4664_vm0, %v4613_v6  ;;  %v4608_v42 = vmul.f32 %v4480_v52, %v8796_v55  ;;  %v3966_v12 = vadd.f32 81.60091, %v3838_v4  ;;  %v8887_v10 = vsub.f32 %v2699_v18, %v2955_v0  ;;  %v2564_v13 = vmul.f32 %v8851_v59, %v2281_v36 }
 0x4cb   : > { %v3720_v5 = vadd.f32 -76.6265, %v3592_v23  ;;  %v3587_v53 = vmul.f32 %v3459_v61, %v8874_v9  ;;  %v8893_v38 = vmul.f32 %v8882_v51, %v8882_v51  ;;  %v8895_v2 = vsub.f32 %v2694_v14, %v2950_v1  ;;  %v10673_v14 = vld [vmem:[#allocation68_spill] sm:$0xff] }
 0x4cc   : > { %4737 = vst.msk [vmem:[%s7595_s29 + $0x240] sm:$0xff] %vm4664_vm0, %v4608_v42  ;;  %v4094_v49 = vmul.f32 %v3966_v12, %v8837_v21  ;;  %v8902_v55 = vmul.f32 %v8887_v10, %v8887_v10  ;;  %v2692_v40 = vadd.f32 %v2564_v13, %v7312_v27  ;;  %v2574_v56 = vmul.f32 %v8851_v59, %v2321_v17  ;;  %v2301_v13 = vpop.permute.xlu0 %2300 }
 0x4cd   : > { %v3848_v34 = vmul.f32 %v3720_v5, %v8862_v30  ;;  %v3715_v25 = vadd.f32 -76.6265, %v3587_v53  ;;  %v3329_v54 = vmul.f32 -12.575904, %v8893_v38  ;;  %v8910_v33 = vmul.f32 %v8895_v2, %v8895_v2 }
 0x4ce   : > { %v4222_v18 = vadd.f32 -41.341618, %v4094_v49  ;;  %v3339_v31 = vmul.f32 -12.575904, %v8902_v55  ;;  %v2820_v24 = vadd.f32 0.5, %v2692_v40  ;;  %v2702_v16 = vadd.f32 %v2574_v56, %v10673_v14 }
 0x4cf   : > { %v3976_v19 = vadd.f32 81.60091, %v3848_v34  ;;  %v3843_v27 = vmul.f32 %v3715_v25, %v8874_v9  ;;  %v3457_v43 = vadd.f32 41.40318, %v3329_v54  ;;  %v3334_v44 = vmul.f32 -12.575904, %v8910_v33 }
 0x4d0   : > { %v4350_v11 = vmul.f32 %v4222_v18, %v8837_v21  ;;  %v3467_v3 = vadd.f32 41.40318, %v3339_v31  ;;  %v2948_v60 = vfloor.f32 %v2820_v24  ;;  %v2830_v22 = vadd.f32 0.5, %v2702_v16 }
 0x4d1   : > { %v4104_v36 = vmul.f32 %v3976_v19, %v8862_v30  ;;  %v3971_v6 = vadd.f32 81.60091, %v3843_v27  ;;  %v3585_v52 = vmul.f32 %v3457_v43, %v8893_v38  ;;  %v3462_v4 = vadd.f32 41.40318, %v3334_v44  ;;  %v2293_v27 = vpop.permute.xlu1 %2292 }
 0x4d2   : > { %v4478_v0 = vadd.f32 6.283185, %v4350_v11  ;;  %v3595_v23 = vmul.f32 %v3467_v3, %v8902_v55  ;;  %v8920_v61 = vsub.f32 %v2692_v40, %v2948_v60  ;;  %v2958_v1 = vfloor.f32 %v2830_v22  ;;  %v2333_v60 = vpop.permute.xlu2 %2332 }
 0x4d3   : > { %v4232_v17 = vadd.f32 -41.341618, %v4104_v36  ;;  %v4099_v42 = vmul.f32 %v3971_v6, %v8874_v9  ;;  %v3713_v21 = vadd.f32 -76.6265, %v3585_v52  ;;  %v3590_v12 = vmul.f32 %v3462_v4, %v8910_v33 }
 0x4d4   : > { %v4606_v5 = vmul.f32 %v4478_v0, %v8830_v57  ;;  %v3723_v53 = vadd.f32 -76.6265, %v3595_v23  ;;  %v8927_v49 = vmul.f32 %v8920_v61, %v8920_v61  ;;  %v8929_v56 = vsub.f32 %v2702_v16, %v2958_v1 }
 0x4d5   : > { %v4360_v40 = vmul.f32 %v4232_v17, %v8862_v30  ;;  %v4227_v34 = vadd.f32 -41.341618, %v4099_v42  ;;  %v3841_v25 = vmul.f32 %v3713_v21, %v8893_v38  ;;  %v3718_v54 = vadd.f32 -76.6265, %v3590_v12 }
 0x4d6   : > { %4735 = vst.msk [vmem:[%s7595_s29 + $0x230] sm:$0xff] %vm4664_vm0, %v4606_v5  ;;  %v3851_v18 = vmul.f32 %v3723_v53, %v8902_v55  ;;  %v3332_v31 = vmul.f32 -12.575904, %v8927_v49  ;;  %v8939_v57 = vmul.f32 %v8929_v56, %v8929_v56  ;;  %v2569_v24 = vmul.f32 %v8851_v59, %v2301_v13 }
 0x4d7   : > { %v4488_v14 = vadd.f32 6.283185, %v4360_v40  ;;  %v4355_v16 = vmul.f32 %v4227_v34, %v8874_v9  ;;  %v3969_v30 = vadd.f32 81.60091, %v3841_v25  ;;  %v3846_v19 = vmul.f32 %v3718_v54, %v8910_v33 }
 0x4d8   : > { %v3979_v43 = vadd.f32 81.60091, %v3851_v18  ;;  %v3460_v44 = vadd.f32 41.40318, %v3332_v31  ;;  %v3342_v11 = vmul.f32 -12.575904, %v8939_v57  ;;  %v2697_v3 = vadd.f32 %v2569_v24, %v7340_v35 }
 0x4d9   : > { %v4616_v22 = vmul.f32 %v4488_v14, %v8846_v41  ;;  %v4483_v36 = vadd.f32 6.283185, %v4355_v16  ;;  %v4097_v6 = vmul.f32 %v3969_v30, %v8893_v38  ;;  %v3974_v52 = vadd.f32 81.60091, %v3846_v19 }
 0x4da   : > { %v4107_v9 = vmul.f32 %v3979_v43, %v8902_v55  ;;  %v3588_v4 = vmul.f32 %v3460_v44, %v8927_v49  ;;  %v3470_v0 = vadd.f32 41.40318, %v3342_v11  ;;  %v2825_v23 = vadd.f32 0.5, %v2697_v3 }
 0x4db   : > { %4745 = vst.msk [vmem:[%s7595_s29 + $0x280] sm:$0xff] %vm4664_vm0, %v4616_v22  ;;  %v4611_v1 = vmul.f32 %v4483_v36, %v8864_v29  ;;  %v4225_v17 = vadd.f32 -41.341618, %v4097_v6  ;;  %v4102_v35 = vmul.f32 %v3974_v52, %v8910_v33  ;;  %v2567_v41 = vmul.f32 %v8851_v59, %v2293_v27  ;;  %v2345_v36 = vpop.permute.xlu2 %2344 }
 0x4dc   : > { %v4235_v42 = vadd.f32 -41.341618, %v4107_v9  ;;  %v3716_v21 = vadd.f32 -76.6265, %v3588_v4  ;;  %v3598_v12 = vmul.f32 %v3470_v0, %v8939_v57  ;;  %v2953_v13 = vfloor.f32 %v2825_v23 }
 0x4dd   : > { %4740 = vst.msk [vmem:[%s7595_s29 + $0x258] sm:$0xff] %vm4664_vm0, %v4611_v1  ;;  %v4353_v5 = vmul.f32 %v4225_v17, %v8893_v38  ;;  %v4230_v53 = vadd.f32 -41.341618, %v4102_v35  ;;  %v2695_v40 = vadd.f32 %v2567_v41, %v7325_v20  ;;  %v2577_v34 = vmul.f32 %v8851_v59, %v2333_v60  ;;  %v2313_v38 = vpop.permute.xlu0 %2312 }
 0x4de   : > { %v4363_v29 = vmul.f32 %v4235_v42, %v8902_v55  ;;  %v3844_v25 = vmul.f32 %v3716_v21, %v8927_v49  ;;  %v3726_v54 = vadd.f32 -76.6265, %v3598_v12  ;;  %v8963_v18 = vsub.f32 %v2697_v3, %v2953_v13 }
 0x4df   : > { %v4481_v31 = vadd.f32 6.283185, %v4353_v5  ;;  %v4358_v24 = vmul.f32 %v4230_v53, %v8910_v33  ;;  %v2823_v14 = vadd.f32 0.5, %v2695_v40  ;;  %v2705_v16 = vadd.f32 %v2577_v34, %v7328_v45  ;;  %v2305_v33 = vpop.permute.xlu1 %2304 }
 0x4e0   : > { %v4491_v30 = vadd.f32 6.283185, %v4363_v29  ;;  %v3972_v19 = vadd.f32 81.60091, %v3844_v25  ;;  %v3854_v20 = vmul.f32 %v3726_v54, %v8939_v57  ;;  %v8970_v55 = vmul.f32 %v8963_v18, %v8963_v18 }
 0x4e1   : > { %v4609_v27 = vmul.f32 %v4481_v31, %v8882_v51  ;;  %v4486_v43 = vadd.f32 6.283185, %v4358_v24  ;;  %v2951_v44 = vfloor.f32 %v2823_v14  ;;  %v2833_v11 = vadd.f32 0.5, %v2705_v16 }
 0x4e2   : > { %v4619_v45 = vmul.f32 %v4491_v30, %v8887_v10  ;;  %v4100_v3 = vmul.f32 %v3972_v19, %v8927_v49  ;;  %v3982_v60 = vadd.f32 81.60091, %v3854_v20  ;;  %v3337_v22 = vmul.f32 -12.575904, %v8970_v55 }
 0x4e3   : > { %4738 = vst.msk [vmem:[%s7595_s29 + $0x248] sm:$0xff] %vm4664_vm0, %v4609_v27  ;;  %v4614_v6 = vmul.f32 %v4486_v43, %v8895_v2  ;;  %v8979_v52 = vsub.f32 %v2695_v40, %v2951_v44  ;;  %v2961_v51 = vfloor.f32 %v2833_v11  ;;  %v2572_v9 = vmul.f32 %v8851_v59, %v2313_v38 }
 0x4e4   : > { %4748 = vst.msk [vmem:[%s7595_s29 + $0x298] sm:$0xff] %vm4664_vm0, %v4619_v45  ;;  %v4228_v4 = vadd.f32 -41.341618, %v4100_v3  ;;  %v4110_v10 = vmul.f32 %v3982_v60, %v8939_v57  ;;  %v3465_v0 = vadd.f32 41.40318, %v3337_v22  ;;  %v2570_v23 = vmul.f32 %v8851_v59, %v2305_v33 }
 0x4e5   : > { %4743 = vst.msk [vmem:[%s7595_s29 + $0x270] sm:$0xff] %vm4664_vm0, %v4614_v6  ;;  %v8990_v1 = vmul.f32 %v8979_v52, %v8979_v52  ;;  %v8992_v2 = vsub.f32 %v2705_v16, %v2961_v51  ;;  %v2700_v17 = vadd.f32 %v2572_v9, %v7351_v50  ;;  %v2580_v35 = vmul.f32 %v8851_v59, %v2345_v36  ;;  %v2325_v24 = vpop.permute.xlu0 %2324 }
 0x4e6   : > { %v4356_v41 = vmul.f32 %v4228_v4, %v8927_v49  ;;  %v4238_v42 = vadd.f32 -41.341618, %v4110_v10  ;;  %v3593_v21 = vmul.f32 %v3465_v0, %v8970_v55  ;;  %v2698_v12 = vadd.f32 %v2570_v23, %v7343_v37 }
 0x4e7   : > { %v3335_v13 = vmul.f32 -12.575904, %v8990_v1  ;;  %v9002_v5 = vmul.f32 %v8992_v2, %v8992_v2  ;;  %v2828_v53 = vadd.f32 0.5, %v2700_v17  ;;  %v2708_v40 = vadd.f32 %v2580_v35, %v7346_v32  ;;  %v2317_v27 = vpop.permute.xlu1 %2316 }
 0x4e8   : > { %v4484_v34 = vadd.f32 6.283185, %v4356_v41  ;;  %v4366_v50 = vmul.f32 %v4238_v42, %v8939_v57  ;;  %v3721_v29 = vadd.f32 -76.6265, %v3593_v21  ;;  %v2826_v49 = vadd.f32 0.5, %v2698_v12 }
 0x4e9   : > { %v3463_v25 = vadd.f32 41.40318, %v3335_v13  ;;  %v3345_v54 = vmul.f32 -12.575904, %v9002_v5  ;;  %v2956_v31 = vfloor.f32 %v2828_v53  ;;  %v2836_v37 = vadd.f32 0.5, %v2708_v40 }
 0x4ea   : > { %v4612_v14 = vmul.f32 %v4484_v34, %v8920_v61  ;;  %v4494_v16 = vadd.f32 6.283185, %v4366_v50  ;;  %v3849_v38 = vmul.f32 %v3721_v29, %v8970_v55  ;;  %v2954_v30 = vfloor.f32 %v2826_v49 }
 0x4eb   : > { %v3591_v32 = vmul.f32 %v3463_v25, %v8990_v1  ;;  %v3473_v19 = vadd.f32 41.40318, %v3345_v54  ;;  %v9010_v57 = vsub.f32 %v2700_v17, %v2956_v31  ;;  %v2964_v20 = vfloor.f32 %v2836_v37 }
 0x4ec   : > { %4741 = vst.msk [vmem:[%s7595_s29 + $0x260] sm:$0xff] %vm4664_vm0, %v4612_v14  ;;  %v4622_v43 = vmul.f32 %v4494_v16, %v8929_v56  ;;  %v3977_v44 = vadd.f32 81.60091, %v3849_v38  ;;  %v9015_v11 = vsub.f32 %v2698_v12, %v2954_v30  ;;  %v2575_v61 = vmul.f32 %v8851_v59, %v2325_v24  ;;  %v2357_v16 = vpop.permute.xlu2 %2356 }
 0x4ed   : > { %v3719_v33 = vadd.f32 -76.6265, %v3591_v32  ;;  %v3601_v45 = vmul.f32 %v3473_v19, %v9002_v5  ;;  %v9021_v3 = vmul.f32 %v9010_v57, %v9010_v57  ;;  %v9023_v60 = vsub.f32 %v2708_v40, %v2964_v20 }
 0x4ee   : > { %4751 = vst.msk [vmem:[%s7595_s29 + $0x2b0] sm:$0xff] %vm4664_vm0, %v4622_v43  ;;  %v4105_v22 = vmul.f32 %v3977_v44, %v8970_v55  ;;  %v9030_v56 = vmul.f32 %v9015_v11, %v9015_v11  ;;  %v2703_v36 = vadd.f32 %v2575_v61, %v7371_v47  ;;  %v2573_v6 = vmul.f32 %v8851_v59, %v2317_v27 }
 0x4ef   : > { %v3847_v51 = vmul.f32 %v3719_v33, %v8990_v1  ;;  %v3729_v9 = vadd.f32 -76.6265, %v3601_v45  ;;  %v3340_v4 = vmul.f32 -12.575904, %v9021_v3  ;;  %v9038_v10 = vmul.f32 %v9023_v60, %v9023_v60 }
 0x4f0   : > { %v4233_v0 = vadd.f32 -41.341618, %v4105_v22  ;;  %v3338_v23 = vmul.f32 -12.575904, %v9030_v56  ;;  %v2831_v17 = vadd.f32 0.5, %v2703_v36  ;;  %v2701_v35 = vadd.f32 %v2573_v6, %v7359_v28 }
 0x4f1   : > { %v3975_v41 = vadd.f32 81.60091, %v3847_v51  ;;  %v3857_v47 = vmul.f32 %v3729_v9, %v9002_v5  ;;  %v3468_v42 = vadd.f32 41.40318, %v3340_v4  ;;  %v3348_v21 = vmul.f32 -12.575904, %v9038_v10  ;;  %v2337_v51 = vpop.permute.xlu0 %2336 }
 0x4f2   : > { %v4361_v12 = vmul.f32 %v4233_v0, %v8970_v55  ;;  %v3466_v13 = vadd.f32 41.40318, %v3338_v23  ;;  %v2959_v53 = vfloor.f32 %v2831_v17  ;;  %v2829_v40 = vadd.f32 0.5, %v2701_v35  ;;  %v2329_v17 = vpop.permute.xlu1 %2328 }
 0x4f3   : > { %v4103_v34 = vmul.f32 %v3975_v41, %v8990_v1  ;;  %v3985_v50 = vadd.f32 81.60091, %v3857_v47  ;;  %v3596_v29 = vmul.f32 %v3468_v42, %v9021_v3  ;;  %v3476_v49 = vadd.f32 41.40318, %v3348_v21 }
 0x4f4   : > { %v4489_v25 = vadd.f32 6.283185, %v4361_v12  ;;  %v3594_v28 = vmul.f32 %v3466_v13, %v9030_v56  ;;  %v9048_v54 = vsub.f32 %v2703_v36, %v2959_v53  ;;  %v2957_v31 = vfloor.f32 %v2829_v40 }
 0x4f5   : > { %v4231_v37 = vadd.f32 -41.341618, %v4103_v34  ;;  %v4113_v24 = vmul.f32 %v3985_v50, %v9002_v5  ;;  %v3724_v55 = vadd.f32 -76.6265, %v3596_v29  ;;  %v3604_v14 = vmul.f32 %v3476_v49, %v9038_v10 }
 0x4f6   : > { %v4617_v38 = vmul.f32 %v4489_v25, %v8963_v18  ;;  %v3722_v30 = vadd.f32 -76.6265, %v3594_v28  ;;  %v9055_v32 = vmul.f32 %v9048_v54, %v9048_v54  ;;  %v9057_v19 = vsub.f32 %v2701_v35, %v2957_v31 }
 0x4f7   : > { %v4359_v20 = vmul.f32 %v4231_v37, %v8990_v1  ;;  %v4241_v27 = vadd.f32 -41.341618, %v4113_v24  ;;  %v3852_v43 = vmul.f32 %v3724_v55, %v9021_v3  ;;  %v3732_v44 = vadd.f32 -76.6265, %v3604_v14 }
 0x4f8   : > { %4746 = vst.msk [vmem:[%s7595_s29 + $0x288] sm:$0xff] %vm4664_vm0, %v4617_v38  ;;  %v3850_v61 = vmul.f32 %v3722_v30, %v9030_v56  ;;  %v3343_v33 = vmul.f32 -12.575904, %v9055_v32  ;;  %v9067_v18 = vmul.f32 %v9057_v19, %v9057_v19  ;;  %v2583_v45 = vmul.f32 %v8851_v59, %v2357_v16 }
 0x4f9   : > { %v4487_v22 = vadd.f32 6.283185, %v4359_v20  ;;  %v4369_v36 = vmul.f32 %v4241_v27, %v9002_v5  ;;  %v3980_v1 = vadd.f32 81.60091, %v3852_v43  ;;  %v3860_v6 = vmul.f32 %v3732_v44, %v9038_v10 }
 0x4fa   : > { %v3978_v9 = vadd.f32 81.60091, %v3850_v61  ;;  %v3471_v4 = vadd.f32 41.40318, %v3343_v33  ;;  %v3341_v0 = vmul.f32 -12.575904, %v9067_v18  ;;  %v2711_v23 = vadd.f32 %v2583_v45, %v7368_v8 }
 0x4fb   : > { %v4615_v35 = vmul.f32 %v4487_v22, %v8979_v52  ;;  %v4497_v41 = vadd.f32 6.283185, %v4369_v36  ;;  %v4108_v47 = vmul.f32 %v3980_v1, %v9021_v3  ;;  %v3988_v42 = vadd.f32 81.60091, %v3860_v6  ;;  %v2341_v6 = vpop.permute.xlu1 %2340 }
 0x4fc   : > { %v4106_v5 = vmul.f32 %v3978_v9, %v9030_v56  ;;  %v3599_v21 = vmul.f32 %v3471_v4, %v9055_v32  ;;  %v3469_v12 = vadd.f32 41.40318, %v3341_v0  ;;  %v2839_v13 = vadd.f32 0.5, %v2711_v23 }
 0x4fd   : > { %4744 = vst.msk [vmem:[%s7595_s29 + $0x278] sm:$0xff] %vm4664_vm0, %v4615_v35  ;;  %v4625_v53 = vmul.f32 %v4497_v41, %v8992_v2  ;;  %v4236_v40 = vadd.f32 -41.341618, %v4108_v47  ;;  %v4116_v8 = vmul.f32 %v3988_v42, %v9038_v10  ;;  %v2578_v52 = vmul.f32 %v8851_v59, %v2337_v51 }
 0x4fe   : > { %v4234_v34 = vadd.f32 -41.341618, %v4106_v5  ;;  %v3727_v50 = vadd.f32 -76.6265, %v3599_v21  ;;  %v3597_v29 = vmul.f32 %v3469_v12, %v9067_v18  ;;  %v2967_v49 = vfloor.f32 %v2839_v13 }
 0x4ff   : > { %4754 = vst.msk [vmem:[%s7595_s29 + $0x2c8] sm:$0xff] %vm4664_vm0, %v4625_v53  ;;  %v4364_v25 = vmul.f32 %v4236_v40, %v9021_v3  ;;  %v4244_v28 = vadd.f32 -41.341618, %v4116_v8  ;;  %v2706_v31 = vadd.f32 %v2578_v52, %v7389_v39  ;;  %v2576_v37 = vmul.f32 %v8851_v59, %v2329_v17  ;;  %v2369_v3 = vpop.permute.xlu2 %2368 }
 0x500   : > { %v4362_v2 = vmul.f32 %v4234_v34, %v9030_v56  ;;  %v3855_v24 = vmul.f32 %v3727_v50, %v9055_v32  ;;  %v3725_v55 = vadd.f32 -76.6265, %v3597_v29  ;;  %v9091_v14 = vsub.f32 %v2711_v23, %v2967_v49 }
 0x501   : > { %v4492_v16 = vadd.f32 6.283185, %v4364_v25  ;;  %v4372_v38 = vmul.f32 %v4244_v28, %v9038_v10  ;;  %v2834_v30 = vadd.f32 0.5, %v2706_v31  ;;  %v2704_v20 = vadd.f32 %v2576_v37, %v7374_v26  ;;  %v2349_v10 = vpop.permute.xlu0 %2348 }
 0x502   : > { %v4490_v27 = vadd.f32 6.283185, %v4362_v2  ;;  %v3983_v43 = vadd.f32 81.60091, %v3855_v24  ;;  %v3853_v39 = vmul.f32 %v3725_v55, %v9067_v18  ;;  %v9098_v56 = vmul.f32 %v9091_v14, %v9091_v14 }
 0x503   : > { %v4620_v44 = vmul.f32 %v4492_v16, %v9010_v57  ;;  %v4500_v61 = vadd.f32 6.283185, %v4372_v38  ;;  %v2962_v33 = vfloor.f32 %v2834_v30  ;;  %v2832_v45 = vadd.f32 0.5, %v2704_v20 }
 0x504   : > { %v4618_v26 = vmul.f32 %v4490_v27, %v9015_v11  ;;  %v4111_v22 = vmul.f32 %v3983_v43, %v9055_v32  ;;  %v3981_v36 = vadd.f32 81.60091, %v3853_v39  ;;  %v3351_v1 = vmul.f32 -12.575904, %v9098_v56 }
 0x505   : > { %4749 = vst.msk [vmem:[%s7595_s29 + $0x2a0] sm:$0xff] %vm4664_vm0, %v4620_v44  ;;  %v4628_v51 = vmul.f32 %v4500_v61, %v9023_v60  ;;  %v9107_v9 = vsub.f32 %v2706_v31, %v2962_v33  ;;  %v2960_v57 = vfloor.f32 %v2832_v45  ;;  %v2586_v4 = vmul.f32 %v8851_v59, %v2369_v3 }
 0x506   : > { %4747 = vst.msk [vmem:[%s7595_s29 + $0x290] sm:$0xff] %vm4664_vm0, %v4618_v26  ;;  %v4239_v0 = vadd.f32 -41.341618, %v4111_v22  ;;  %v4109_v11 = vmul.f32 %v3981_v36, %v9067_v18  ;;  %v3479_v23 = vadd.f32 41.40318, %v3351_v1  ;;  %v2581_v17 = vmul.f32 %v8851_v59, %v2349_v10 }
 0x507   : > { %4757 = vst.msk [vmem:[%s7595_s29 + $0x2e0] sm:$0xff] %vm4664_vm0, %v4628_v51  ;;  %v9118_v35 = vmul.f32 %v9107_v9, %v9107_v9  ;;  %v9120_v60 = vsub.f32 %v2704_v20, %v2960_v57  ;;  %v2714_v41 = vadd.f32 %v2586_v4, %v7378_v48  ;;  %v2579_v47 = vmul.f32 %v8851_v59, %v2341_v6  ;;  %v2381_v25 = vpop.permute.xlu2 %2380 }
 0x508   : > { %v4367_v42 = vmul.f32 %v4239_v0, %v9055_v32  ;;  %v4237_v5 = vadd.f32 -41.341618, %v4109_v11  ;;  %v3607_v21 = vmul.f32 %v3479_v23, %v9098_v56  ;;  %v2709_v12 = vadd.f32 %v2581_v17, %v7402_v62 }
 0x509   : > { %v3346_v13 = vmul.f32 -12.575904, %v9118_v35  ;;  %v9130_v53 = vmul.f32 %v9120_v60, %v9120_v60  ;;  %v2842_v40 = vadd.f32 0.5, %v2714_v41  ;;  %v2707_v8 = vadd.f32 %v2579_v47, %v7392_v63  ;;  %v2361_v16 = vpop.permute.xlu0 %2360 }
 0x50a   : > { %v4495_v52 = vadd.f32 6.283185, %v4367_v42  ;;  %v4365_v48 = vmul.f32 %v4237_v5, %v9067_v18  ;;  %v3735_v34 = vadd.f32 -76.6265, %v3607_v21  ;;  %v2837_v32 = vadd.f32 0.5, %v2709_v12 }
 0x50b   : > { %v3474_v50 = vadd.f32 41.40318, %v3346_v13  ;;  %v3344_v29 = vmul.f32 -12.575904, %v9130_v53  ;;  %v2970_v49 = vfloor.f32 %v2842_v40  ;;  %v2835_v62 = vadd.f32 0.5, %v2707_v8 }
 0x50c   : > { %v4623_v28 = vmul.f32 %v4495_v52, %v9048_v54  ;;  %v4493_v31 = vadd.f32 6.283185, %v4365_v48  ;;  %v3863_v37 = vmul.f32 %v3735_v34, %v9098_v56  ;;  %v2965_v2 = vfloor.f32 %v2837_v32  ;;  %v2353_v34 = vpop.permute.xlu1 %2352 }
 0x50d   : > { %v3602_v63 = vmul.f32 %v3474_v50, %v9118_v35  ;;  %v3472_v24 = vadd.f32 41.40318, %v3344_v29  ;;  %v9138_v18 = vsub.f32 %v2714_v41, %v2970_v49  ;;  %v2963_v55 = vfloor.f32 %v2835_v62 }
 0x50e   : > { %4752 = vst.msk [vmem:[%s7595_s29 + $0x2b8] sm:$0xff] %vm4664_vm0, %v4623_v28  ;;  %v4621_v38 = vmul.f32 %v4493_v31, %v9057_v19  ;;  %v3991_v30 = vadd.f32 81.60091, %v3863_v37  ;;  %v9143_v20 = vsub.f32 %v2709_v12, %v2965_v2  ;;  %v2589_v54 = vmul.f32 %v8851_v59, %v2381_v25 }
 0x50f   : > { %v3730_v3 = vadd.f32 -76.6265, %v3602_v63  ;;  %v3600_v27 = vmul.f32 %v3472_v24, %v9130_v53  ;;  %v9149_v43 = vmul.f32 %v9138_v18, %v9138_v18  ;;  %v9151_v39 = vsub.f32 %v2707_v8, %v2963_v55 }
 0x510   : > { %4750 = vst.msk [vmem:[%s7595_s29 + $0x2a8] sm:$0xff] %vm4664_vm0, %v4621_v38  ;;  %v4119_v44 = vmul.f32 %v3991_v30, %v9098_v56  ;;  %v9158_v19 = vmul.f32 %v9143_v20, %v9143_v20  ;;  %v2717_v61 = vadd.f32 %v2589_v54, %v7399_v58  ;;  %v2584_v33 = vmul.f32 %v8851_v59, %v2361_v16  ;;  %v2393_v38 = vpop.permute.xlu2 %2392 }
 0x511   : > { %v3858_v45 = vmul.f32 %v3730_v3, %v9118_v35  ;;  %v3728_v10 = vadd.f32 -76.6265, %v3600_v27  ;;  %v3354_v26 = vmul.f32 -12.575904, %v9149_v43  ;;  %v9166_v22 = vmul.f32 %v9151_v39, %v9151_v39  ;;  %v10674_v27 = vld [vmem:[#allocation70_spill] sm:$0xff] }
 0x512   : > { %v4247_v36 = vadd.f32 -41.341618, %v4119_v44  ;;  %v3349_v1 = vmul.f32 -12.575904, %v9158_v19  ;;  %v2845_v6 = vadd.f32 0.5, %v2717_v61  ;;  %v2712_v51 = vadd.f32 %v2584_v33, %v7420_v15 }
 0x513   : > { %v3986_v57 = vadd.f32 81.60091, %v3858_v45  ;;  %v3856_v58 = vmul.f32 %v3728_v10, %v9130_v53  ;;  %v3482_v4 = vadd.f32 41.40318, %v3354_v26  ;;  %v3347_v0 = vmul.f32 -12.575904, %v9166_v22 }
 0x514   : > { %v4375_v11 = vmul.f32 %v4247_v36, %v9098_v56  ;;  %v3477_v23 = vadd.f32 41.40318, %v3349_v1  ;;  %v2973_v17 = vfloor.f32 %v2845_v6  ;;  %v2840_v41 = vadd.f32 0.5, %v2712_v51 }
 0x515   : > { %v4114_v47 = vmul.f32 %v3986_v57, %v9118_v35  ;;  %v3984_v42 = vadd.f32 81.60091, %v3856_v58  ;;  %v3610_v5 = vmul.f32 %v3482_v4, %v9149_v43  ;;  %v3475_v21 = vadd.f32 41.40318, %v3347_v0 }
 0x516   : > { %v4503_v12 = vadd.f32 6.283185, %v4375_v11  ;;  %v3605_v15 = vmul.f32 %v3477_v23, %v9158_v19  ;;  %v9176_v13 = vsub.f32 %v2717_v61, %v2973_v17  ;;  %v2968_v40 = vfloor.f32 %v2840_v41  ;;  %v2373_v61 = vpop.permute.xlu0 %2372 }
 0x517   : > { %v4242_v8 = vadd.f32 -41.341618, %v4114_v47  ;;  %v4112_v52 = vmul.f32 %v3984_v42, %v9130_v53  ;;  %v3738_v56 = vadd.f32 -76.6265, %v3610_v5  ;;  %v3603_v48 = vmul.f32 %v3475_v21, %v9166_v22  ;;  %v10675_v47 = vld [vmem:[#allocation78_spill] sm:$0xff] }
 0x518   : > { %v4631_v32 = vmul.f32 %v4503_v12, %v9091_v14  ;;  %v3733_v50 = vadd.f32 -76.6265, %v3605_v15  ;;  %v9183_v29 = vmul.f32 %v9176_v13, %v9176_v13  ;;  %v9185_v49 = vsub.f32 %v2712_v51, %v2968_v40 }
 0x519   : > { %v4370_v62 = vmul.f32 %v4242_v8, %v9118_v35  ;;  %v4240_v25 = vadd.f32 -41.341618, %v4112_v52  ;;  %v3866_v28 = vmul.f32 %v3738_v56, %v9149_v43  ;;  %v3731_v31 = vadd.f32 -76.6265, %v3603_v48 }
 0x51a   : > { %4760 = vst.msk [vmem:[%s7595_s29 + $0x2f8] sm:$0xff] %vm4664_vm0, %v4631_v32  ;;  %v3861_v37 = vmul.f32 %v3733_v50, %v9158_v19  ;;  %v3357_v2 = vmul.f32 -12.575904, %v9183_v29  ;;  %v9195_v14 = vmul.f32 %v9185_v49, %v9185_v49  ;;  %v2582_v63 = vmul.f32 %v8851_v59, %v2353_v34 }
 0x51b   : > { %v4498_v24 = vadd.f32 6.283185, %v4370_v62  ;;  %v4368_v55 = vmul.f32 %v4240_v25, %v9130_v53  ;;  %v3994_v35 = vadd.f32 81.60091, %v3866_v28  ;;  %v3859_v16 = vmul.f32 %v3731_v31, %v9166_v22 }
 0x51c   : > { %v3989_v30 = vadd.f32 81.60091, %v3861_v37  ;;  %v3485_v54 = vadd.f32 41.40318, %v3357_v2  ;;  %v3352_v3 = vmul.f32 -12.575904, %v9195_v14  ;;  %v2710_v44 = vadd.f32 %v2582_v63, %v10674_v27 }
 0x51d   : > { %v4626_v33 = vmul.f32 %v4498_v24, %v9107_v9  ;;  %v4496_v45 = vadd.f32 6.283185, %v4368_v55  ;;  %v4122_v10 = vmul.f32 %v3994_v35, %v9149_v43  ;;  %v3987_v26 = vadd.f32 81.60091, %v3859_v16 }
 0x51e   : > { %v4117_v53 = vmul.f32 %v3989_v30, %v9158_v19  ;;  %v3613_v36 = vmul.f32 %v3485_v54, %v9183_v29  ;;  %v3480_v1 = vadd.f32 41.40318, %v3352_v3  ;;  %v2838_v6 = vadd.f32 0.5, %v2710_v44  ;;  %v2385_v63 = vpop.permute.xlu0 %2384  ;;  %v10676_v3 = vld [vmem:[#allocation67_spill] sm:$0xff] }
 0x51f   : > { %4755 = vst.msk [vmem:[%s7595_s29 + $0x2d0] sm:$0xff] %vm4664_vm0, %v4626_v33  ;;  %v4624_v51 = vmul.f32 %v4496_v45, %v9120_v60  ;;  %v4250_v57 = vadd.f32 -41.341618, %v4122_v10  ;;  %v4115_v58 = vmul.f32 %v3987_v26, %v9166_v22  ;;  %v2592_v9 = vmul.f32 %v8851_v59, %v2393_v38  ;;  %v10677_v10 = vld [vmem:[#allocation74_spill] sm:$0xff] }
 0x520   : > { %v4245_v4 = vadd.f32 -41.341618, %v4117_v53  ;;  %v3741_v0 = vadd.f32 -76.6265, %v3613_v36  ;;  %v3608_v11 = vmul.f32 %v3480_v1, %v9195_v14  ;;  %v2966_v23 = vfloor.f32 %v2838_v6  ;;  %v10678_v6 = vld [vmem:[#allocation80_spill] sm:$0xff] }
 0x521   : > { %4753 = vst.msk [vmem:[%s7595_s29 + $0x2c0] sm:$0xff] %vm4664_vm0, %v4624_v51  ;;  %v4378_v17 = vmul.f32 %v4250_v57, %v9149_v43  ;;  %v4243_v41 = vadd.f32 -41.341618, %v4115_v58  ;;  %v2720_v42 = vadd.f32 %v2592_v9, %v10675_v47  ;;  %v2587_v5 = vmul.f32 %v8851_v59, %v2373_v61  ;;  %v2365_v43 = vpop.permute.xlu1 %2364 }
 0x522   : > { %v4373_v60 = vmul.f32 %v4245_v4, %v9158_v19  ;;  %v3869_v21 = vmul.f32 %v3741_v0, %v9183_v29  ;;  %v3736_v12 = vadd.f32 -76.6265, %v3608_v11  ;;  %v9219_v15 = vsub.f32 %v2710_v44, %v2966_v23 }
 0x523   : > { %v4506_v40 = vadd.f32 6.283185, %v4378_v17  ;;  %v4371_v8 = vmul.f32 %v4243_v41, %v9166_v22  ;;  %v2848_v52 = vadd.f32 0.5, %v2720_v42  ;;  %v2715_v56 = vadd.f32 %v2587_v5, %v7446_v46  ;;  %v2405_v22 = vpop.permute.xlu2 %2404 }
 0x524   : > { %v4501_v48 = vadd.f32 6.283185, %v4373_v60  ;;  %v3997_v34 = vadd.f32 81.60091, %v3869_v21  ;;  %v3864_v32 = vmul.f32 %v3736_v12, %v9195_v14  ;;  %v9226_v19 = vmul.f32 %v9219_v15, %v9219_v15 }
 0x525   : > { %v4634_v50 = vmul.f32 %v4506_v40, %v9138_v18  ;;  %v4499_v62 = vadd.f32 6.283185, %v4371_v8  ;;  %v2976_v25 = vfloor.f32 %v2848_v52  ;;  %v2843_v28 = vadd.f32 0.5, %v2715_v56 }
 0x526   : > { %v4629_v46 = vmul.f32 %v4501_v48, %v9143_v20  ;;  %v4125_v31 = vmul.f32 %v3997_v34, %v9183_v29  ;;  %v3992_v37 = vadd.f32 81.60091, %v3864_v32  ;;  %v3350_v2 = vmul.f32 -12.575904, %v9226_v19 }
 0x527   : > { %4763 = vst.msk [vmem:[%s7595_s29 + $0x310] sm:$0xff] %vm4664_vm0, %v4634_v50  ;;  %v4627_v24 = vmul.f32 %v4499_v62, %v9151_v39  ;;  %v9235_v55 = vsub.f32 %v2720_v42, %v2976_v25  ;;  %v2971_v18 = vfloor.f32 %v2843_v28  ;;  %v2585_v35 = vmul.f32 %v8851_v59, %v2365_v43  ;;  %v10679_v62 = vld [vmem:[#allocation73_spill] sm:$0xff] }
 0x528   : > { %4758 = vst.msk [vmem:[%s7595_s29 + $0x2e8] sm:$0xff] %vm4664_vm0, %v4629_v46  ;;  %v4253_v16 = vadd.f32 -41.341618, %v4125_v31  ;;  %v4120_v20 = vmul.f32 %v3992_v37, %v9195_v14  ;;  %v3478_v38 = vadd.f32 41.40318, %v3350_v2  ;;  %v2595_v30 = vmul.f32 %v8851_v59, %v2405_v22 }
 0x529   : > { %4756 = vst.msk [vmem:[%s7595_s29 + $0x2d8] sm:$0xff] %vm4664_vm0, %v4627_v24  ;;  %v9246_v54 = vmul.f32 %v9235_v55, %v9235_v55  ;;  %v9248_v39 = vsub.f32 %v2715_v56, %v2971_v18  ;;  %v2713_v27 = vadd.f32 %v2585_v35, %v10676_v3  ;;  %v2590_v44 = vmul.f32 %v8851_v59, %v2385_v63  ;;  %v2377_v17 = vpop.permute.xlu1 %2376  ;;  %v10680_v18 = vld [vmem:[#allocation159_spill] sm:$0xff] }
 0x52a   : > { %v4381_v61 = vmul.f32 %v4253_v16, %v9183_v29  ;;  %v4248_v33 = vadd.f32 -41.341618, %v4120_v20  ;;  %v3606_v45 = vmul.f32 %v3478_v38, %v9226_v19  ;;  %v2723_v26 = vadd.f32 %v2595_v30, %v10677_v10 }
 0x52b   : > { %v3360_v53 = vmul.f32 -12.575904, %v9246_v54  ;;  %v9258_v36 = vmul.f32 %v9248_v39, %v9248_v39  ;;  %v2841_v1 = vadd.f32 0.5, %v2713_v27  ;;  %v2718_v51 = vadd.f32 %v2590_v44, %v10678_v6  ;;  %v2417_v40 = vpop.permute.xlu2 %2416 }
 0x52c   : > { %v4509_v57 = vadd.f32 6.283185, %v4381_v61  ;;  %v4376_v58 = vmul.f32 %v4248_v33, %v9195_v14  ;;  %v3734_v9 = vadd.f32 -76.6265, %v3606_v45  ;;  %v2851_v29 = vadd.f32 0.5, %v2723_v26 }
 0x52d   : > { %v3488_v4 = vadd.f32 41.40318, %v3360_v53  ;;  %v3355_v0 = vmul.f32 -12.575904, %v9258_v36  ;;  %v2969_v11 = vfloor.f32 %v2841_v1  ;;  %v2846_v23 = vadd.f32 0.5, %v2718_v51 }
 0x52e   : > { %v4637_v41 = vmul.f32 %v4509_v57, %v9176_v13  ;;  %v4504_v47 = vadd.f32 6.283185, %v4376_v58  ;;  %v3862_v42 = vmul.f32 %v3734_v9, %v9226_v19  ;;  %v2979_v5 = vfloor.f32 %v2851_v29  ;;  %v2397_v9 = vpop.permute.xlu0 %2396 }
 0x52f   : > { %v3616_v60 = vmul.f32 %v3488_v4, %v9246_v54  ;;  %v3483_v21 = vadd.f32 41.40318, %v3355_v0  ;;  %v9266_v14 = vsub.f32 %v2713_v27, %v2969_v11  ;;  %v2974_v12 = vfloor.f32 %v2846_v23 }
 0x530   : > { %4766 = vst.msk [vmem:[%s7595_s29 + $0x328] sm:$0xff] %vm4664_vm0, %v4637_v41  ;;  %v4632_v8 = vmul.f32 %v4504_v47, %v9185_v49  ;;  %v3990_v52 = vadd.f32 81.60091, %v3862_v42  ;;  %v9271_v56 = vsub.f32 %v2723_v26, %v2979_v5  ;;  %v2588_v13 = vmul.f32 %v8851_v59, %v2377_v17 }
 0x531   : > { %v3744_v43 = vadd.f32 -76.6265, %v3616_v60  ;;  %v3611_v48 = vmul.f32 %v3483_v21, %v9258_v36  ;;  %v9277_v34 = vmul.f32 %v9266_v14, %v9266_v14  ;;  %v9279_v32 = vsub.f32 %v2718_v51, %v2974_v12  ;;  %v9328_v60 = vld [vmem:[%s9692_s1 + $0x2] ss:$0 sm:$0xff]  ;;  %v2389_v21 = vpop.permute.xlu1 %2388 }
 0x532   : > { %4761 = vst.msk [vmem:[%s7595_s29 + $0x300] sm:$0xff] %vm4664_vm0, %v4632_v8  ;;  %v4118_v50 = vmul.f32 %v3990_v52, %v9226_v19  ;;  %v9286_v49 = vmul.f32 %v9271_v56, %v9271_v56  ;;  %v2716_v25 = vadd.f32 %v2588_v13, %v10679_v62  ;;  %v2598_v28 = vmul.f32 %v8851_v59, %v2417_v40 }
 0x533   : > { %v3872_v22 = vmul.f32 %v3744_v43, %v9246_v54  ;;  %v3739_v46 = vadd.f32 -76.6265, %v3611_v48  ;;  %v3353_v31 = vmul.f32 -12.575904, %v9277_v34  ;;  %v9294_v37 = vmul.f32 %v9279_v32, %v9279_v32  ;;  %v2429_v62 = vpop.permute.xlu2 %2428 }
 0x534   : > { %v4246_v2 = vadd.f32 -41.341618, %v4118_v50  ;;  %v3363_v63 = vmul.f32 -12.575904, %v9286_v49  ;;  %v2844_v24 = vadd.f32 0.5, %v2716_v25  ;;  %v2726_v35 = vadd.f32 %v2598_v28, %v10680_v18 }
 0x535   : > { %v4000_v16 = vadd.f32 81.60091, %v3872_v22  ;;  %v3867_v20 = vmul.f32 %v3739_v46, %v9258_v36  ;;  %v3481_v38 = vadd.f32 41.40318, %v3353_v31  ;;  %v3358_v59 = vmul.f32 -12.575904, %v9294_v37 }
 0x536   : > { %v4374_v30 = vmul.f32 %v4246_v2, %v9226_v19  ;;  %v3491_v3 = vadd.f32 41.40318, %v3363_v63  ;;  %v2972_v27 = vfloor.f32 %v2844_v24  ;;  %v2854_v44 = vadd.f32 0.5, %v2726_v35 }
 0x537   : > { %v4128_v61 = vmul.f32 %v4000_v16, %v9246_v54  ;;  %v3995_v33 = vadd.f32 81.60091, %v3867_v20  ;;  %v3609_v45 = vmul.f32 %v3481_v38, %v9277_v34  ;;  %v3486_v10 = vadd.f32 41.40318, %v3358_v59 }
 0x538   : > { %v4502_v26 = vadd.f32 6.283185, %v4374_v30  ;;  %v3619_v53 = vmul.f32 %v3491_v3, %v9286_v49  ;;  %v9304_v1 = vsub.f32 %v2716_v25, %v2972_v27  ;;  %v2982_v6 = vfloor.f32 %v2854_v44  ;;  %v10681_v3 = vld [vmem:[#allocation77_spill] sm:$0xff] }
 0x539   : > { %v4256_v51 = vadd.f32 -41.341618, %v4128_v61  ;;  %v4123_v57 = vmul.f32 %v3995_v33, %v9258_v36  ;;  %v3737_v19 = vadd.f32 -76.6265, %v3609_v45  ;;  %v3614_v58 = vmul.f32 %v3486_v10, %v9294_v37 }
 0x53a   : > { %v4630_v29 = vmul.f32 %v4502_v26, %v9219_v15  ;;  %v3747_v4 = vadd.f32 -76.6265, %v3619_v53  ;;  %v9311_v0 = vmul.f32 %v9304_v1, %v9304_v1  ;;  %v9313_v11 = vsub.f32 %v2726_v35, %v2982_v6  ;;  %v10682_v6 = vld [vmem:[#allocation76_spill] sm:$0xff] }
 0x53b   : > { %v4384_v23 = vmul.f32 %v4256_v51, %v9246_v54  ;;  %v4251_v17 = vadd.f32 -41.341618, %v4123_v57  ;;  %v3865_v41 = vmul.f32 %v3737_v19, %v9277_v34  ;;  %v3742_v47 = vadd.f32 -76.6265, %v3614_v58 }
 0x53c   : > { %4759 = vst.msk [vmem:[%s7595_s29 + $0x2f0] sm:$0xff] %vm4664_vm0, %v4630_v29  ;;  %v3875_v42 = vmul.f32 %v3747_v4, %v9286_v49  ;;  %v3356_v5 = vmul.f32 -12.575904, %v9311_v0  ;;  %v9323_v15 = vmul.f32 %v9313_v11, %v9313_v11  ;;  %v2593_v54 = vmul.f32 %v9328_v60, %v2397_v9  ;;  %v2401_v9 = vpop.permute.xlu1 %2400 }
 0x53d   : > { %v4512_v12 = vadd.f32 6.283185, %v4384_v23  ;;  %v4379_v40 = vmul.f32 %v4251_v17, %v9258_v36  ;;  %v3993_v8 = vadd.f32 81.60091, %v3865_v41  ;;  %v3870_v52 = vmul.f32 %v3742_v47, %v9294_v37 }
 0x53e   : > { %v4003_v13 = vadd.f32 81.60091, %v3875_v42  ;;  %v3484_v43 = vadd.f32 41.40318, %v3356_v5  ;;  %v3366_v48 = vmul.f32 -12.575904, %v9323_v15  ;;  %v2721_v50 = vadd.f32 %v2593_v54, %v7476_v7  ;;  %v2441_v5 = vpop.permute.xlu2 %2440 }
 0x53f   : > { %v4640_v25 = vmul.f32 %v4512_v12, %v9235_v55  ;;  %v4507_v28 = vadd.f32 6.283185, %v4379_v40  ;;  %v4121_v22 = vmul.f32 %v3993_v8, %v9277_v34  ;;  %v3998_v46 = vadd.f32 81.60091, %v3870_v52 }
 0x540   : > { %v4131_v36 = vmul.f32 %v4003_v13, %v9286_v49  ;;  %v3612_v31 = vmul.f32 %v3484_v43, %v9311_v0  ;;  %v3494_v2 = vadd.f32 41.40318, %v3366_v48  ;;  %v2849_v63 = vadd.f32 0.5, %v2721_v50  ;;  %v10683_v43 = vld [vmem:[#allocation83_spill] sm:$0xff] }
 0x541   : > { %4769 = vst.msk [vmem:[%s7595_s29 + $0x340] sm:$0xff] %vm4664_vm0, %v4640_v25  ;;  %v4635_v24 = vmul.f32 %v4507_v28, %v9248_v39  ;;  %v4249_v18 = vadd.f32 -41.341618, %v4121_v22  ;;  %v4126_v7 = vmul.f32 %v3998_v46, %v9294_v37  ;;  %v2591_v55 = vmul.f32 %v9328_v60, %v2389_v21  ;;  %v10684_v22 = vld [vmem:[#allocation84_spill] sm:$0xff] }
 0x542   : > { %v4259_v35 = vadd.f32 -41.341618, %v4131_v36  ;;  %v3740_v16 = vadd.f32 -76.6265, %v3612_v31  ;;  %v3622_v20 = vmul.f32 %v3494_v2, %v9323_v15  ;;  %v2977_v38 = vfloor.f32 %v2849_v63  ;;  %v10685_v63 = vld [vmem:[#allocation79_spill] sm:$0xff] }
 0x543   : > { %4764 = vst.msk [vmem:[%s7595_s29 + $0x318] sm:$0xff] %vm4664_vm0, %v4635_v24  ;;  %v4377_v59 = vmul.f32 %v4249_v18, %v9277_v34  ;;  %v4254_v30 = vadd.f32 -41.341618, %v4126_v7  ;;  %v2719_v27 = vadd.f32 %v2591_v55, %v10681_v3  ;;  %v2601_v44 = vmul.f32 %v9328_v60, %v2429_v62  ;;  %v2409_v34 = vpop.permute.xlu0 %2408 }
 0x544   : > { %v4387_v39 = vmul.f32 %v4259_v35, %v9286_v49  ;;  %v3868_v61 = vmul.f32 %v3740_v16, %v9311_v0  ;;  %v3750_v33 = vadd.f32 -76.6265, %v3622_v20  ;;  %v9352_v45 = vsub.f32 %v2721_v50, %v2977_v38 }
 0x545   : > { %v4505_v10 = vadd.f32 6.283185, %v4377_v59  ;;  %v4382_v26 = vmul.f32 %v4254_v30, %v9294_v37  ;;  %v2847_v53 = vadd.f32 0.5, %v2719_v27  ;;  %v2729_v51 = vadd.f32 %v2601_v44, %v10682_v6 }
 0x546   : > { %v4515_v57 = vadd.f32 6.283185, %v4387_v39  ;;  %v3996_v19 = vadd.f32 81.60091, %v3868_v61  ;;  %v3878_v58 = vmul.f32 %v3750_v33, %v9323_v15  ;;  %v9359_v49 = vmul.f32 %v9352_v45, %v9352_v45  ;;  %v2413_v39 = vpop.permute.xlu1 %2412 }
 0x547   : > { %v4633_v29 = vmul.f32 %v4505_v10, %v9266_v14  ;;  %v4510_v4 = vadd.f32 6.283185, %v4382_v26  ;;  %v2975_v23 = vfloor.f32 %v2847_v53  ;;  %v2857_v37 = vadd.f32 0.5, %v2729_v51 }
 0x548   : > { %v4643_v17 = vmul.f32 %v4515_v57, %v9271_v56  ;;  %v4124_v41 = vmul.f32 %v3996_v19, %v9311_v0  ;;  %v4006_v47 = vadd.f32 81.60091, %v3878_v58  ;;  %v3361_v42 = vmul.f32 -12.575904, %v9359_v49 }
 0x549   : > { %4762 = vst.msk [vmem:[%s7595_s29 + $0x308] sm:$0xff] %vm4664_vm0, %v4633_v29  ;;  %v4638_v54 = vmul.f32 %v4510_v4, %v9279_v32  ;;  %v9368_v21 = vsub.f32 %v2719_v27, %v2975_v23  ;;  %v2985_v12 = vfloor.f32 %v2857_v37  ;;  %v2596_v14 = vmul.f32 %v9328_v60, %v2409_v34 }
 0x54a   : > { %4772 = vst.msk [vmem:[%s7595_s29 + $0x358] sm:$0xff] %vm4664_vm0, %v4643_v17  ;;  %v4252_v40 = vadd.f32 -41.341618, %v4124_v41  ;;  %v4134_v56 = vmul.f32 %v4006_v47, %v9323_v15  ;;  %v3489_v8 = vadd.f32 41.40318, %v3361_v42  ;;  %v2594_v52 = vmul.f32 %v9328_v60, %v2401_v9  ;;  %v10686_v9 = vld [vmem:[#allocation75_spill] sm:$0xff] }
 0x54b   : > { %4767 = vst.msk [vmem:[%s7595_s29 + $0x330] sm:$0xff] %vm4664_vm0, %v4638_v54  ;;  %v9379_v13 = vmul.f32 %v9368_v21, %v9368_v21  ;;  %v9381_v32 = vsub.f32 %v2729_v51, %v2985_v12  ;;  %v2724_v48 = vadd.f32 %v2596_v14, %v10683_v43  ;;  %v2604_v50 = vmul.f32 %v9328_v60, %v2441_v5  ;;  %v2421_v59 = vpop.permute.xlu0 %2420  ;;  %v10687_v54 = vld [vmem:[#allocation82_spill] sm:$0xff] }
 0x54c   : > { %v4380_v62 = vmul.f32 %v4252_v40, %v9311_v0  ;;  %v4262_v25 = vadd.f32 -41.341618, %v4134_v56  ;;  %v3617_v28 = vmul.f32 %v3489_v8, %v9359_v49  ;;  %v2722_v46 = vadd.f32 %v2594_v52, %v10684_v22 }
 0x54d   : > { %v3359_v36 = vmul.f32 -12.575904, %v9379_v13  ;;  %v9391_v31 = vmul.f32 %v9381_v32, %v9381_v32  ;;  %v2852_v2 = vadd.f32 0.5, %v2724_v48  ;;  %v2732_v24 = vadd.f32 %v2604_v50, %v10685_v63 }
 0x54e   : > { %v4508_v18 = vadd.f32 6.283185, %v4380_v62  ;;  %v4390_v7 = vmul.f32 %v4262_v25, %v9323_v15  ;;  %v3745_v55 = vadd.f32 -76.6265, %v3617_v28  ;;  %v2850_v0 = vadd.f32 0.5, %v2722_v46 }
 0x54f   : > { %v3487_v35 = vadd.f32 41.40318, %v3359_v36  ;;  %v3369_v16 = vmul.f32 -12.575904, %v9391_v31  ;;  %v2980_v20 = vfloor.f32 %v2852_v2  ;;  %v2860_v38 = vadd.f32 0.5, %v2732_v24 }
 0x550   : > { %v4636_v30 = vmul.f32 %v4508_v18, %v9304_v1  ;;  %v4518_v3 = vadd.f32 6.283185, %v4390_v7  ;;  %v3873_v27 = vmul.f32 %v3745_v55, %v9359_v49  ;;  %v2978_v44 = vfloor.f32 %v2850_v0  ;;  %v2453_v0 = vpop.permute.xlu2 %2452 }
 0x551   : > { %v3615_v61 = vmul.f32 %v3487_v35, %v9379_v13  ;;  %v3497_v15 = vadd.f32 41.40318, %v3369_v16  ;;  %v9399_v33 = vsub.f32 %v2724_v48, %v2980_v20  ;;  %v2988_v10 = vfloor.f32 %v2860_v38 }
 0x552   : > { %4765 = vst.msk [vmem:[%s7595_s29 + $0x320] sm:$0xff] %vm4664_vm0, %v4636_v30  ;;  %v4646_v26 = vmul.f32 %v4518_v3, %v9313_v11  ;;  %v4001_v53 = vadd.f32 81.60091, %v3873_v27  ;;  %v9404_v6 = vsub.f32 %v2722_v46, %v2978_v44  ;;  %v2599_v1 = vmul.f32 %v9328_v60, %v2421_v59 }
 0x553   : > { %v3743_v51 = vadd.f32 -76.6265, %v3615_v61  ;;  %v3625_v34 = vmul.f32 %v3497_v15, %v9391_v31  ;;  %v9410_v57 = vmul.f32 %v9399_v33, %v9399_v33  ;;  %v9412_v19 = vsub.f32 %v2732_v24, %v2988_v10  ;;  %v2425_v24 = vpop.permute.xlu1 %2424 }
 0x554   : > { %4775 = vst.msk [vmem:[%s7595_s29 + $0x370] sm:$0xff] %vm4664_vm0, %v4646_v26  ;;  %v4129_v58 = vmul.f32 %v4001_v53, %v9359_v49  ;;  %v9419_v11 = vmul.f32 %v9404_v6, %v9404_v6  ;;  %v2727_v29 = vadd.f32 %v2599_v1, %v10686_v9  ;;  %v2597_v4 = vmul.f32 %v9328_v60, %v2413_v39  ;;  %v2433_v53 = vpop.permute.xlu0 %2432 }
 0x555   : > { %v3871_v23 = vmul.f32 %v3743_v51, %v9379_v13  ;;  %v3753_v37 = vadd.f32 -76.6265, %v3625_v34  ;;  %v3364_v17 = vmul.f32 -12.575904, %v9410_v57  ;;  %v9427_v41 = vmul.f32 %v9412_v19, %v9412_v19 }
 0x556   : > { %v4257_v47 = vadd.f32 -41.341618, %v4129_v58  ;;  %v3362_v42 = vmul.f32 -12.575904, %v9419_v11  ;;  %v2855_v5 = vadd.f32 0.5, %v2727_v29  ;;  %v2725_v12 = vadd.f32 %v2597_v4, %v10687_v54  ;;  %v10688_v58 = vld [vmem:[#allocation90_spill] sm:$0xff] }
 0x557   : > { %v3999_v14 = vadd.f32 81.60091, %v3871_v23  ;;  %v3881_v40 = vmul.f32 %v3753_v37, %v9391_v31  ;;  %v3492_v56 = vadd.f32 41.40318, %v3364_v17  ;;  %v3372_v8 = vmul.f32 -12.575904, %v9427_v41 }
 0x558   : > { %v4385_v52 = vmul.f32 %v4257_v47, %v9359_v49  ;;  %v3490_v43 = vadd.f32 41.40318, %v3362_v42  ;;  %v2983_v48 = vfloor.f32 %v2855_v5  ;;  %v2853_v50 = vadd.f32 0.5, %v2725_v12 }
 0x559   : > { %v4127_v62 = vmul.f32 %v3999_v14, %v9379_v13  ;;  %v4009_v25 = vadd.f32 81.60091, %v3881_v40  ;;  %v3620_v28 = vmul.f32 %v3492_v56, %v9410_v57  ;;  %v3500_v22 = vadd.f32 41.40318, %v3372_v8 }
 0x55a   : > { %v4513_v46 = vadd.f32 6.283185, %v4385_v52  ;;  %v3618_v36 = vmul.f32 %v3490_v43, %v9419_v11  ;;  %v9437_v2 = vsub.f32 %v2727_v29, %v2983_v48  ;;  %v2981_v63 = vfloor.f32 %v2853_v50  ;;  %v10689_v50 = vld [vmem:[#allocation88_spill] sm:$0xff] }
 0x55b   : > { %v4255_v18 = vadd.f32 -41.341618, %v4127_v62  ;;  %v4137_v49 = vmul.f32 %v4009_v25, %v9391_v31  ;;  %v3748_v7 = vadd.f32 -76.6265, %v3620_v28  ;;  %v3628_v55 = vmul.f32 %v3500_v22, %v9427_v41  ;;  %v2437_v52 = vpop.permute.xlu1 %2436 }
 0x55c   : > { %v4641_v35 = vmul.f32 %v4513_v46, %v9352_v45  ;;  %v3746_v16 = vadd.f32 -76.6265, %v3618_v36  ;;  %v9444_v20 = vmul.f32 %v9437_v2, %v9437_v2  ;;  %v9446_v38 = vsub.f32 %v2725_v12, %v2981_v63 }
 0x55d   : > { %v4383_v59 = vmul.f32 %v4255_v18, %v9379_v13  ;;  %v4265_v30 = vadd.f32 -41.341618, %v4137_v49  ;;  %v3876_v3 = vmul.f32 %v3748_v7, %v9410_v57  ;;  %v3756_v27 = vadd.f32 -76.6265, %v3628_v55  ;;  %v10690_v49 = vld [vmem:[#allocation183_spill] sm:$0xff] }
 0x55e   : > { %4770 = vst.msk [vmem:[%s7595_s29 + $0x348] sm:$0xff] %vm4664_vm0, %v4641_v35  ;;  %v3874_v44 = vmul.f32 %v3746_v16, %v9419_v11  ;;  %v3367_v39 = vmul.f32 -12.575904, %v9444_v20  ;;  %v9456_v45 = vmul.f32 %v9446_v38, %v9446_v38  ;;  %v2607_v61 = vmul.f32 %v9328_v60, %v2453_v0 }
 0x55f   : > { %v4511_v15 = vadd.f32 6.283185, %v4383_v59  ;;  %v4393_v10 = vmul.f32 %v4265_v30, %v9391_v31  ;;  %v4004_v13 = vadd.f32 81.60091, %v3876_v3  ;;  %v3884_v26 = vmul.f32 %v3756_v27, %v9427_v41 }
 0x560   : > { %v4002_v1 = vadd.f32 81.60091, %v3874_v44  ;;  %v3495_v51 = vadd.f32 41.40318, %v3367_v39  ;;  %v3365_v34 = vmul.f32 -12.575904, %v9456_v45  ;;  %v2735_v9 = vadd.f32 %v2607_v61, %v10688_v58 }
 0x561   : > { %v4639_v29 = vmul.f32 %v4511_v15, %v9368_v21  ;;  %v4521_v4 = vadd.f32 6.283185, %v4393_v10  ;;  %v4132_v23 = vmul.f32 %v4004_v13, %v9410_v57  ;;  %v4012_v37 = vadd.f32 81.60091, %v3884_v26 }
 0x562   : > { %v4130_v31 = vmul.f32 %v4002_v1, %v9419_v11  ;;  %v3623_v17 = vmul.f32 %v3495_v51, %v9444_v20  ;;  %v3493_v47 = vadd.f32 41.40318, %v3365_v34  ;;  %v2863_v42 = vadd.f32 0.5, %v2735_v9  ;;  %v10691_v51 = vld [vmem:[#allocation89_spill] sm:$0xff] }
 0x563   : > { %4768 = vst.msk [vmem:[%s7595_s29 + $0x338] sm:$0xff] %vm4664_vm0, %v4639_v29  ;;  %v4649_v5 = vmul.f32 %v4521_v4, %v9381_v32  ;;  %v4260_v54 = vadd.f32 -41.341618, %v4132_v23  ;;  %v4140_v12 = vmul.f32 %v4012_v37, %v9427_v41  ;;  %v2602_v21 = vmul.f32 %v9328_v60, %v2433_v53  ;;  %v10692_v23 = vld [vmem:[#allocation94_spill] sm:$0xff] }
 0x564   : > { %v4258_v14 = vadd.f32 -41.341618, %v4130_v31  ;;  %v3751_v40 = vadd.f32 -76.6265, %v3623_v17  ;;  %v3621_v56 = vmul.f32 %v3493_v47, %v9456_v45  ;;  %v2991_v8 = vfloor.f32 %v2863_v42  ;;  %v9516_v31 = vpop.permute.xlu1 %2448 }
 0x565   : > { %4778 = vst.msk [vmem:[%s7595_s29 + $0x388] sm:$0xff] %vm4664_vm0, %v4649_v5  ;;  %v4388_v43 = vmul.f32 %v4260_v54, %v9410_v57  ;;  %v4268_v48 = vadd.f32 -41.341618, %v4140_v12  ;;  %v2730_v62 = vadd.f32 %v2602_v21, %v10689_v50  ;;  %v2600_v32 = vmul.f32 %v9328_v60, %v2425_v24  ;;  %v2465_v57 = vpop.permute.xlu2 %2464  ;;  %v10693_v5 = vld [vmem:[#allocation96_spill] sm:$0xff] }
 0x566   : > { %v4386_v25 = vmul.f32 %v4258_v14, %v9419_v11  ;;  %v3879_v28 = vmul.f32 %v3751_v40, %v9444_v20  ;;  %v3749_v22 = vadd.f32 -76.6265, %v3621_v56  ;;  %v9480_v46 = vsub.f32 %v2735_v9, %v2991_v8 }
 0x567   : > { %v4516_v36 = vadd.f32 6.283185, %v4388_v43  ;;  %v4396_v63 = vmul.f32 %v4268_v48, %v9427_v41  ;;  %v2858_v18 = vadd.f32 0.5, %v2730_v62  ;;  %v2728_v7 = vadd.f32 %v2600_v32, %v10690_v49  ;;  %v2445_v41 = vpop.permute.xlu0 %2444 }
 0x568   : > { %v4514_v55 = vadd.f32 6.283185, %v4386_v25  ;;  %v4007_v0 = vadd.f32 81.60091, %v3879_v28  ;;  %v3877_v35 = vmul.f32 %v3749_v22, %v9456_v45  ;;  %v9487_v11 = vmul.f32 %v9480_v46, %v9480_v46 }
 0x569   : > { %v4644_v24 = vmul.f32 %v4516_v36, %v9399_v33  ;;  %v4524_v16 = vadd.f32 6.283185, %v4396_v63  ;;  %v2986_v59 = vfloor.f32 %v2858_v18  ;;  %v2856_v30 = vadd.f32 0.5, %v2728_v7 }
 0x56a   : > { %v4642_v3 = vmul.f32 %v4514_v55, %v9404_v6  ;;  %v4135_v27 = vmul.f32 %v4007_v0, %v9444_v20  ;;  %v4005_v44 = vadd.f32 81.60091, %v3877_v35  ;;  %v3375_v39 = vmul.f32 -12.575904, %v9487_v11 }
 0x56b   : > { %4773 = vst.msk [vmem:[%s7595_s29 + $0x360] sm:$0xff] %vm4664_vm0, %v4644_v24  ;;  %v4652_v61 = vmul.f32 %v4524_v16, %v9412_v19  ;;  %v9496_v15 = vsub.f32 %v2730_v62, %v2986_v59  ;;  %v2984_v10 = vfloor.f32 %v2856_v30  ;;  %v2610_v33 = vmul.f32 %v9328_v60, %v2465_v57  ;;  %v10694_v24 = vld [vmem:[#allocation95_spill] sm:$0xff] }
 0x56c   : > { %4771 = vst.msk [vmem:[%s7595_s29 + $0x350] sm:$0xff] %vm4664_vm0, %v4642_v3  ;;  %v4263_v13 = vadd.f32 -41.341618, %v4135_v27  ;;  %v4133_v26 = vmul.f32 %v4005_v44, %v9456_v45  ;;  %v3503_v6 = vadd.f32 41.40318, %v3375_v39  ;;  %v2605_v53 = vmul.f32 %v9328_v60, %v2445_v41 }
 0x56d   : > { %4781 = vst.msk [vmem:[%s7595_s29 + $0x3a0] sm:$0xff] %vm4664_vm0, %v4652_v61  ;;  %v9507_v1 = vmul.f32 %v9496_v15, %v9496_v15  ;;  %v9509_v19 = vsub.f32 %v2728_v7, %v2984_v10  ;;  %v2738_v34 = vadd.f32 %v2610_v33, %v10691_v51  ;;  %v2603_v58 = vmul.f32 %v9328_v60, %v2437_v52  ;;  %v2477_v43 = vpop.permute.xlu2 %2476  ;;  %v10695_v10 = vld [vmem:[#allocation81_spill] sm:$0xff] }
 0x56e   : > { %v4391_v9 = vmul.f32 %v4263_v13, %v9444_v20  ;;  %v4261_v29 = vadd.f32 -41.341618, %v4133_v26  ;;  %v3631_v4 = vmul.f32 %v3503_v6, %v9487_v11  ;;  %v2733_v37 = vadd.f32 %v2605_v53, %v10692_v23  ;;  %v9561_v13 = vpop.permute.xlu1 %2460 }
 0x56f   : > { %v3370_v17 = vmul.f32 -12.575904, %v9507_v1  ;;  %v9521_v47 = vmul.f32 %v9509_v19, %v9509_v19  ;;  %v2866_v42 = vadd.f32 0.5, %v2738_v34  ;;  %v2731_v54 = vadd.f32 %v2603_v58, %v10693_v5  ;;  %v2457_v36 = vpop.permute.xlu0 %2456 }
 0x570   : > { %v4519_v12 = vadd.f32 6.283185, %v4391_v9  ;;  %v4389_v21 = vmul.f32 %v4261_v29, %v9456_v45  ;;  %v3759_v20 = vadd.f32 -76.6265, %v3631_v4  ;;  %v2861_v14 = vadd.f32 0.5, %v2733_v37 }
 0x571   : > { %v3498_v40 = vadd.f32 41.40318, %v3370_v17  ;;  %v3368_v56 = vmul.f32 -12.575904, %v9521_v47  ;;  %v2994_v8 = vfloor.f32 %v2866_v42  ;;  %v2859_v52 = vadd.f32 0.5, %v2731_v54 }
 0x572   : > { %v4647_v48 = vmul.f32 %v4519_v12, %v9437_v2  ;;  %v4517_v50 = vadd.f32 6.283185, %v4389_v21  ;;  %v3887_v62 = vmul.f32 %v3759_v20, %v9487_v11  ;;  %v2989_v32 = vfloor.f32 %v2861_v14 }
 0x573   : > { %v3626_v25 = vmul.f32 %v3498_v40, %v9507_v1  ;;  %v3496_v28 = vadd.f32 41.40318, %v3368_v56  ;;  %v9529_v45 = vsub.f32 %v2738_v34, %v2994_v8  ;;  %v2987_v22 = vfloor.f32 %v2859_v52 }
 0x574   : > { %4776 = vst.msk [vmem:[%s7595_s29 + $0x378] sm:$0xff] %vm4664_vm0, %v4647_v48  ;;  %v4645_v63 = vmul.f32 %v4517_v50, %v9446_v38  ;;  %v4015_v18 = vadd.f32 81.60091, %v3887_v62  ;;  %v9534_v49 = vsub.f32 %v2733_v37, %v2989_v32  ;;  %v2613_v2 = vmul.f32 %v9328_v60, %v2477_v43 }
 0x575   : > { %v3754_v7 = vadd.f32 -76.6265, %v3626_v25  ;;  %v3624_v57 = vmul.f32 %v3496_v28, %v9521_v47  ;;  %v9540_v55 = vmul.f32 %v9529_v45, %v9529_v45  ;;  %v9542_v0 = vsub.f32 %v2731_v54, %v2987_v22 }
 0x576   : > { %4774 = vst.msk [vmem:[%s7595_s29 + $0x368] sm:$0xff] %vm4664_vm0, %v4645_v63  ;;  %v4143_v35 = vmul.f32 %v4015_v18, %v9487_v11  ;;  %v9549_v38 = vmul.f32 %v9534_v49, %v9534_v49  ;;  %v2741_v16 = vadd.f32 %v2613_v2, %v10694_v24  ;;  %v2608_v59 = vmul.f32 %v9328_v60, %v2457_v36 }
 0x577   : > { %v3882_v30 = vmul.f32 %v3754_v7, %v9507_v1  ;;  %v3752_v41 = vadd.f32 -76.6265, %v3624_v57  ;;  %v3378_v3 = vmul.f32 -12.575904, %v9540_v55  ;;  %v9557_v27 = vmul.f32 %v9542_v0, %v9542_v0  ;;  %v2469_v22 = vpop.permute.xlu0 %2468 }
 0x578   : > { %v4271_v44 = vadd.f32 -41.341618, %v4143_v35  ;;  %v3373_v39 = vmul.f32 -12.575904, %v9549_v38  ;;  %v2869_v61 = vadd.f32 0.5, %v2741_v16  ;;  %v2736_v33 = vadd.f32 %v2608_v59, %v10695_v10  ;;  %v10696_v35 = vld [vmem:[#allocation182_spill] sm:$0xff] }
 0x579   : > { %v4010_v26 = vadd.f32 81.60091, %v3882_v30  ;;  %v3880_v6 = vmul.f32 %v3752_v41, %v9521_v47  ;;  %v3506_v53 = vadd.f32 41.40318, %v3378_v3  ;;  %v3371_v51 = vmul.f32 -12.575904, %v9557_v27 }
 0x57a   : > { %v4399_v34 = vmul.f32 %v4271_v44, %v9487_v11  ;;  %v3501_v58 = vadd.f32 41.40318, %v3373_v39  ;;  %v2997_v9 = vfloor.f32 %v2869_v61  ;;  %v2864_v29 = vadd.f32 0.5, %v2736_v33 }
 0x57b   : > { %v4138_v4 = vmul.f32 %v4010_v26, %v9507_v1  ;;  %v4008_v23 = vadd.f32 81.60091, %v3880_v6  ;;  %v3634_v37 = vmul.f32 %v3506_v53, %v9540_v55  ;;  %v3499_v17 = vadd.f32 41.40318, %v3371_v51 }
 0x57c   : > { %v4527_v42 = vadd.f32 6.283185, %v4399_v34  ;;  %v3629_v5 = vmul.f32 %v3501_v58, %v9549_v38  ;;  %v9569_v54 = vsub.f32 %v2741_v16, %v2997_v9  ;;  %v2992_v12 = vfloor.f32 %v2864_v29  ;;  %v2473_v16 = vpop.permute.xlu1 %2472  ;;  %v10697_v9 = vld [vmem:[#allocation102_spill] sm:$0xff] }
 0x57d   : > { %v4266_v21 = vadd.f32 -41.341618, %v4138_v4  ;;  %v4136_v20 = vmul.f32 %v4008_v23, %v9521_v47  ;;  %v3762_v11 = vadd.f32 -76.6265, %v3634_v37  ;;  %v3627_v14 = vmul.f32 %v3499_v17, %v9557_v27 }
 0x57e   : > { %v4655_v40 = vmul.f32 %v4527_v42, %v9480_v46  ;;  %v3757_v56 = vadd.f32 -76.6265, %v3629_v5  ;;  %v9576_v8 = vmul.f32 %v9569_v54, %v9569_v54  ;;  %v9578_v52 = vsub.f32 %v2736_v33, %v2992_v12 }
 0x57f   : > { %v4394_v43 = vmul.f32 %v4266_v21, %v9507_v1  ;;  %v4264_v48 = vadd.f32 -41.341618, %v4136_v20  ;;  %v3890_v50 = vmul.f32 %v3762_v11, %v9540_v55  ;;  %v3755_v62 = vadd.f32 -76.6265, %v3627_v14  ;;  %v10698_v21 = vld [vmem:[#allocation91_spill] sm:$0xff] }
 0x580   : > { %4784 = vst.msk [vmem:[%s7595_s29 + $0x3b8] sm:$0xff] %vm4664_vm0, %v4655_v40  ;;  %v3885_v32 = vmul.f32 %v3757_v56, %v9549_v38  ;;  %v3381_v25 = vmul.f32 -12.575904, %v9576_v8  ;;  %v9588_v46 = vmul.f32 %v9578_v52, %v9578_v52  ;;  %v2606_v28 = vmul.f32 %v9328_v60, %v9516_v31 }
 0x581   : > { %v4522_v36 = vadd.f32 6.283185, %v4394_v43  ;;  %v4392_v1 = vmul.f32 %v4264_v48, %v9521_v47  ;;  %v4018_v63 = vadd.f32 81.60091, %v3890_v50  ;;  %v3883_v18 = vmul.f32 %v3755_v62, %v9557_v27 }
 0x582   : > { %v4013_v2 = vadd.f32 81.60091, %v3885_v32  ;;  %v3509_v7 = vadd.f32 41.40318, %v3381_v25  ;;  %v3376_v57 = vmul.f32 -12.575904, %v9588_v46  ;;  %v2734_v24 = vadd.f32 %v2606_v28, %v10696_v35 }
 0x583   : > { %v4650_v59 = vmul.f32 %v4522_v36, %v9496_v15  ;;  %v4520_v30 = vadd.f32 6.283185, %v4392_v1  ;;  %v4146_v31 = vmul.f32 %v4018_v63, %v9540_v55  ;;  %v4011_v41 = vadd.f32 81.60091, %v3883_v18 }
 0x584   : > { %v4141_v47 = vmul.f32 %v4013_v2, %v9549_v38  ;;  %v3637_v3 = vmul.f32 %v3509_v7, %v9576_v8  ;;  %v3504_v44 = vadd.f32 41.40318, %v3376_v57  ;;  %v2862_v39 = vadd.f32 0.5, %v2734_v24  ;;  %v2485_v25 = vpop.permute.xlu1 %2484  ;;  %v10699_v7 = vld [vmem:[#allocation86_spill] sm:$0xff] }
 0x585   : > { %4779 = vst.msk [vmem:[%s7595_s29 + $0x390] sm:$0xff] %vm4664_vm0, %v4650_v59  ;;  %v4648_v61 = vmul.f32 %v4520_v30, %v9509_v19  ;;  %v4274_v10 = vadd.f32 -41.341618, %v4146_v31  ;;  %v4139_v33 = vmul.f32 %v4011_v41, %v9557_v27  ;;  %v2611_v15 = vmul.f32 %v9328_v60, %v2469_v22  ;;  %v10700_v31 = vld [vmem:[#allocation87_spill] sm:$0xff] }
 0x586   : > { %v4269_v26 = vadd.f32 -41.341618, %v4141_v47  ;;  %v3765_v6 = vadd.f32 -76.6265, %v3637_v3  ;;  %v3632_v53 = vmul.f32 %v3504_v44, %v9588_v46  ;;  %v2990_v51 = vfloor.f32 %v2862_v39  ;;  %v10701_v44 = vld [vmem:[#allocation99_spill] sm:$0xff] }
 0x587   : > { %4777 = vst.msk [vmem:[%s7595_s29 + $0x380] sm:$0xff] %vm4664_vm0, %v4648_v61  ;;  %v4402_v34 = vmul.f32 %v4274_v10, %v9540_v55  ;;  %v4267_v58 = vadd.f32 -41.341618, %v4139_v33  ;;  %v2739_v29 = vadd.f32 %v2611_v15, %v10697_v9  ;;  %v2609_v19 = vmul.f32 %v9328_v60, %v9561_v13 }
 0x588   : > { %v4397_v4 = vmul.f32 %v4269_v26, %v9549_v38  ;;  %v3893_v23 = vmul.f32 %v3765_v6, %v9576_v8  ;;  %v3760_v37 = vadd.f32 -76.6265, %v3632_v53  ;;  %v9614_v17 = vsub.f32 %v2734_v24, %v2990_v51  ;;  %v2481_v38 = vpop.permute.xlu0 %2480 }
 0x589   : > { %v4530_v42 = vadd.f32 6.283185, %v4402_v34  ;;  %v4395_v5 = vmul.f32 %v4267_v58, %v9557_v27  ;;  %v2867_v12 = vadd.f32 0.5, %v2739_v29  ;;  %v2737_v55 = vadd.f32 %v2609_v19, %v10698_v21 }
 0x58a   : > { %v4525_v20 = vadd.f32 6.283185, %v4397_v4  ;;  %v4021_v11 = vadd.f32 81.60091, %v3893_v23  ;;  %v3888_v14 = vmul.f32 %v3760_v37, %v9588_v46  ;;  %v9621_v13 = vmul.f32 %v9614_v17, %v9614_v17 }
 0x58b   : > { %v4658_v40 = vmul.f32 %v4530_v42, %v9529_v45  ;;  %v4523_v56 = vadd.f32 6.283185, %v4395_v5  ;;  %v2995_v43 = vfloor.f32 %v2867_v12  ;;  %v2865_v48 = vadd.f32 0.5, %v2737_v55 }
 0x58c   : > { %v4653_v27 = vmul.f32 %v4525_v20, %v9534_v49  ;;  %v4149_v50 = vmul.f32 %v4021_v11, %v9576_v8  ;;  %v4016_v62 = vadd.f32 81.60091, %v3888_v14  ;;  %v3374_v32 = vmul.f32 -12.575904, %v9621_v13 }
 0x58d   : > { %4787 = vst.msk [vmem:[%s7595_s29 + $0x3d0] sm:$0xff] %vm4664_vm0, %v4658_v40  ;;  %v4651_v28 = vmul.f32 %v4523_v56, %v9542_v0  ;;  %v9630_v22 = vsub.f32 %v2739_v29, %v2995_v43  ;;  %v2993_v36 = vfloor.f32 %v2865_v48  ;;  %v2614_v45 = vmul.f32 %v9328_v60, %v2481_v38 }
 0x58e   : > { %4782 = vst.msk [vmem:[%s7595_s29 + $0x3a8] sm:$0xff] %vm4664_vm0, %v4653_v27  ;;  %v4277_v1 = vadd.f32 -41.341618, %v4149_v50  ;;  %v4144_v49 = vmul.f32 %v4016_v62, %v9588_v46  ;;  %v3502_v63 = vadd.f32 41.40318, %v3374_v32  ;;  %v2612_v18 = vmul.f32 %v9328_v60, %v2473_v16 }
 0x58f   : > { %4780 = vst.msk [vmem:[%s7595_s29 + $0x398] sm:$0xff] %vm4664_vm0, %v4651_v28  ;;  %v9641_v2 = vmul.f32 %v9630_v22, %v9630_v22  ;;  %v9643_v0 = vsub.f32 %v2737_v55, %v2993_v36  ;;  %v2742_v57 = vadd.f32 %v2614_v45, %v10699_v7  ;;  %v2615_v35 = vmul.f32 %v9328_v60, %v2485_v25 }
 0x590   : > { %v4405_v24 = vmul.f32 %v4277_v1, %v9576_v8  ;;  %v4272_v59 = vadd.f32 -41.341618, %v4144_v49  ;;  %v3630_v30 = vmul.f32 %v3502_v63, %v9621_v13  ;;  %v2740_v41 = vadd.f32 %v2612_v18, %v10700_v31 }
 0x591   : > { %v3379_v16 = vmul.f32 -12.575904, %v9641_v2  ;;  %v3249_v47 = vmul.f32 %v9643_v0, %v9643_v0  ;;  %v2870_v3 = vadd.f32 0.5, %v2742_v57  ;;  %v2743_v39 = vadd.f32 %v2615_v35, %v10701_v44 }
 0x592   : > { %v4533_v61 = vadd.f32 6.283185, %v4405_v24  ;;  %v4400_v10 = vmul.f32 %v4272_v59, %v9588_v46  ;;  %v3758_v60 = vadd.f32 -76.6265, %v3630_v30  ;;  %v2868_v33 = vadd.f32 0.5, %v2740_v41 }
 0x593   : > { %v3507_v8 = vadd.f32 41.40318, %v3379_v16  ;;  %v3377_v15 = vmul.f32 -12.575904, %v3249_v47  ;;  %v2998_v26 = vfloor.f32 %v2870_v3  ;;  %v2871_v6 = vadd.f32 0.5, %v2743_v39 }
 0x594   : > { %v4661_v53 = vmul.f32 %v4533_v61, %v9569_v54  ;;  %v4528_v51 = vadd.f32 6.283185, %v4400_v10  ;;  %v3886_v34 = vmul.f32 %v3758_v60, %v9621_v13  ;;  %v2996_v58 = vfloor.f32 %v2868_v33 }
 0x595   : > { %v3635_v9 = vmul.f32 %v3507_v8, %v9641_v2  ;;  %v3505_v29 = vadd.f32 41.40318, %v3377_v15  ;;  %v9658_v19 = vsub.f32 %v2742_v57, %v2998_v26  ;;  %v2999_v4 = vfloor.f32 %v2871_v6 }
 0x596   : > { %4790 = vst.msk [vmem:[%s7595_s29 + $0x3e8] sm:$0xff] %vm4664_vm0, %v4661_v53  ;;  %v4656_v46 = vmul.f32 %v4528_v51, %v9578_v52  ;;  %v4014_v23 = vadd.f32 81.60091, %v3886_v34  ;;  %v3124_v37 = vsub.f32 %v2740_v41, %v2996_v58 }
 0x597   : > { %v3763_v42 = vadd.f32 -76.6265, %v3635_v9  ;;  %v3633_v5 = vmul.f32 %v3505_v29, %v3249_v47  ;;  %v3254_v54 = vmul.f32 %v9658_v19, %v9658_v19  ;;  %v3127_v12 = vsub.f32 %v2743_v39, %v2999_v4 }
 0x598   : > { %4785 = vst.msk [vmem:[%s7595_s29 + $0x3c0] sm:$0xff] %vm4664_vm0, %v4656_v46  ;;  %v4142_v21 = vmul.f32 %v4014_v23, %v9621_v13  ;;  %v3252_v55 = vmul.f32 %v3124_v37, %v3124_v37 }
 0x599   : > { %v3891_v20 = vmul.f32 %v3763_v42, %v9641_v2  ;;  %v3761_v11 = vadd.f32 -76.6265, %v3633_v5  ;;  %v3382_v14 = vmul.f32 -12.575904, %v3254_v54  ;;  %v3255_v38 = vmul.f32 %v3127_v12, %v3127_v12 }
 0x59a   : > { %v4270_v40 = vadd.f32 -41.341618, %v4142_v21  ;;  %v3380_v52 = vmul.f32 -12.575904, %v3252_v55 }
 0x59b   : > { %v4019_v56 = vadd.f32 81.60091, %v3891_v20  ;;  %v3889_v43 = vmul.f32 %v3761_v11, %v3249_v47  ;;  %v3510_v48 = vadd.f32 41.40318, %v3382_v14  ;;  %v3383_v27 = vmul.f32 -12.575904, %v3255_v38 }
 0x59c   : > { %v4398_v50 = vmul.f32 %v4270_v40, %v9621_v13  ;;  %v3508_v62 = vadd.f32 41.40318, %v3380_v52 }
 0x59d   : > { %v4147_v32 = vmul.f32 %v4019_v56, %v9641_v2  ;;  %v4017_v25 = vadd.f32 81.60091, %v3889_v43  ;;  %v3638_v28 = vmul.f32 %v3510_v48, %v3254_v54  ;;  %v3511_v36 = vadd.f32 41.40318, %v3383_v27 }
 0x59e   : > { %v4526_v45 = vadd.f32 6.283185, %v4398_v50  ;;  %v3636_v1 = vmul.f32 %v3508_v62, %v3252_v55 }
 0x59f   : > { %v4275_v49 = vadd.f32 -41.341618, %v4147_v32  ;;  %v4145_v63 = vmul.f32 %v4017_v25, %v3249_v47  ;;  %v3766_v18 = vadd.f32 -76.6265, %v3638_v28  ;;  %v3639_v7 = vmul.f32 %v3511_v36, %v3255_v38 }
 0x5a0   : > { %v4654_v57 = vmul.f32 %v4526_v45, %v9614_v17  ;;  %v3764_v35 = vadd.f32 -76.6265, %v3636_v1 }
 0x5a1   : > { %v4403_v24 = vmul.f32 %v4275_v49, %v9641_v2  ;;  %v4273_v13 = vadd.f32 -41.341618, %v4145_v63  ;;  %v3894_v59 = vmul.f32 %v3766_v18, %v3254_v54  ;;  %v3767_v30 = vadd.f32 -76.6265, %v3639_v7 }
 0x5a2   : > { %4783 = vst.msk [vmem:[%s7595_s29 + $0x3b0] sm:$0xff] %vm4664_vm0, %v4654_v57  ;;  %v3892_v31 = vmul.f32 %v3764_v35, %v3252_v55 }
 0x5a3   : > { %v4531_v41 = vadd.f32 6.283185, %v4403_v24  ;;  %v4401_v16 = vmul.f32 %v4273_v13, %v3249_v47  ;;  %v4022_v3 = vadd.f32 81.60091, %v3894_v59  ;;  %v3895_v44 = vmul.f32 %v3767_v30, %v3255_v38 }
 0x5a4   : > { %v4020_v39 = vadd.f32 81.60091, %v3892_v31 }
 0x5a5   : > { %v4659_v61 = vmul.f32 %v4531_v41, %v9630_v22  ;;  %v4529_v10 = vadd.f32 6.283185, %v4401_v16  ;;  %v4150_v17 = vmul.f32 %v4022_v3, %v3254_v54  ;;  %v4023_v60 = vadd.f32 81.60091, %v3895_v44 }
 0x5a6   : > { %v4148_v33 = vmul.f32 %v4020_v39, %v3252_v55 }
 0x5a7   : > { %4788 = vst.msk [vmem:[%s7595_s29 + $0x3d8] sm:$0xff] %vm4664_vm0, %v4659_v61  ;;  %v4657_v2 = vmul.f32 %v4529_v10, %v9643_v0  ;;  %v4278_v8 = vadd.f32 -41.341618, %v4150_v17  ;;  %v4151_v15 = vmul.f32 %v4023_v60, %v3255_v38 }
 0x5a8   : > { %v4276_v26 = vadd.f32 -41.341618, %v4148_v33 }
 0x5a9   : > { %4786 = vst.msk [vmem:[%s7595_s29 + $0x3c8] sm:$0xff] %vm4664_vm0, %v4657_v2  ;;  %v4406_v47 = vmul.f32 %v4278_v8, %v3254_v54  ;;  %v4279_v6 = vadd.f32 -41.341618, %v4151_v15 }
 0x5aa   : > { %v4404_v53 = vmul.f32 %v4276_v26, %v3252_v55 }
 0x5ab   : > { %v4534_v22 = vadd.f32 6.283185, %v4406_v47  ;;  %v4407_v51 = vmul.f32 %v4279_v6, %v3255_v38 }
 0x5ac   : > { %v4532_v34 = vadd.f32 6.283185, %v4404_v53 }
 0x5ad   : > { %v4662_v58 = vmul.f32 %v4534_v22, %v9658_v19  ;;  %v4535_v9 = vadd.f32 6.283185, %v4407_v51 }
 0x5ae   : > { %v4660_v29 = vmul.f32 %v4532_v34, %v3124_v37 }
 0x5af   : > { %4791 = vst.msk [vmem:[%s7595_s29 + $0x3f0] sm:$0xff] %vm4664_vm0, %v4662_v58  ;;  %v4663_v0 = vmul.f32 %v4535_v9, %v3127_v12 }
 0x5b0   : > { %4789 = vst.msk [vmem:[%s7595_s29 + $0x3e0] sm:$0xff] %vm4664_vm0, %v4660_v29 }
 0x5b1   : > { %4792 = vst.msk [vmem:[%s7595_s29 + $0x3f8] sm:$0xff] %vm4664_vm0, %v4663_v0 }
 0x5b2 PF: > { %s13_s12 = sadd.s32 1, %s5022_s12  }
 0x5b3   : > { %p10_p4 = scmp.ge.s32.totalorder %s13_s12, 6  }
 0x5b5   :  { %12 = sbr.rel (!%p10_p4) target bundleno = 1 (0x1), region = 62 }

</bundles_post_ra>
